<compile_context>
chip_gen: v7x
topology: tpu7x:2x2x1
jax: 0.10.0
libtpu: 0.0.40
codegen_flags: <defaults>
</compile_context>

<pallas_src>
import functools

import jax
import jax.numpy as jnp
from jax.experimental import pallas as pl
from jax.experimental.pallas import tpu as pltpu


def _round_up(x, m):
    return (x + m - 1) // m * m


def _pad_lanes(v, cp):
    """Zero-extend the last (channel/lane) axis of a value up to cp lanes."""
    c = v.shape[-1]
    if c == cp:
        return v
    zeros = jnp.zeros(v.shape[:-1] + (cp - c,), v.dtype)
    return jnp.concatenate([v, zeros], axis=-1)


def _fixup_res_unit_kernel(scal_ref, x_ref, w1_ref, w2_ref, wsc_ref, o_ref,
                           pad_ref, patch_ref, *, B, H, W, W_pad, Cout, Cp):
    f32 = jnp.float32
    bf16 = jnp.bfloat16
    M = B * H * W

    # Scalars live in SMEM: [bias1a, bias1b, bias2a, scale, bias2b].
    b1a = scal_ref[0]
    b1b = scal_ref[1]
    b2a = scal_ref[2]
    scale = scal_ref[3]
    b2b = scal_ref[4]

    # Zero only the 1-pixel halo of the shared padded scratch; the interior is
    # fully overwritten below.  Done every step so it stays correct when the
    # "parallel" batch axis is split across TensorCores (scratch is per-core
    # and a given core may never run step 0).  All 128 lanes are zeroed, so no
    # uninitialized (possibly NaN) VMEM ever reaches the MXU.
    pad_ref[:, pl.ds(0, 1), :, :] = jnp.zeros((B, 1, W_pad, Cp), bf16)
    pad_ref[:, pl.ds(H + 1, 1), :, :] = jnp.zeros((B, 1, W_pad, Cp), bf16)
    pad_ref[:, :, pl.ds(0, 1), :] = jnp.zeros((B, H + 2, 1, Cp), bf16)
    pad_ref[:, :, pl.ds(W + 1, 1), :] = jnp.zeros((B, H + 2, 1, Cp), bf16)

    def conv3x3(w_ref):
        # im2col: patch[(b*H + y)*W + x, k*Cp + ci] = pad[b, y + dy, x + dx, ci]
        # Per-tap column blocks start at lane offsets k*128 -> lane-aligned
        # full-width bf16 stores (half the traffic of the old f32 patch).
        for k in range(9):
            dy, dx = divmod(k, 3)
            patch_ref[:, pl.ds(k * Cp, Cp)] = (
                pad_ref[:, pl.ds(dy, H), pl.ds(dx, W), :].reshape(M, Cp))
        # Single (M, 9*Cp) @ (9*Cp, Cp) bf16 MXU matmul, f32 accumulation.
        return jnp.dot(patch_ref[...], w_ref[...],
                       preferred_element_type=f32)

    # conv1 input: relu(x) + bias1a in f32, zero-extended to Cp lanes, cast to
    # bf16 only at the VMEM store (zero halo == SAME padding of biased input).
    v1 = jnp.maximum(x_ref[...], 0.0) + b1a                       # (B,H,W,Cin) f32
    pad_ref[:, pl.ds(1, H), pl.ds(1, W), :] = _pad_lanes(v1, Cp).astype(bf16)
    acc1 = conv3x3(w1_ref)                                        # (M, Cp) f32

    # conv2 input: relu(conv1 + bias1b) + bias2a, reusing the same halo buffer
    # (only the interior is rewritten; the border is still zero).
    h2 = jnp.maximum(acc1 + b1b, 0.0) + b2a                       # (M, Cp) f32
    pad_ref[:, pl.ds(1, H), pl.ds(1, W), :] = h2.astype(bf16).reshape(B, H, W, Cp)
    acc2 = conv3x3(w2_ref)                                        # (M, Cp) f32

    # Shortcut 1x1 conv, computed just before the final combine so its (M, Cp)
    # result is not held live across both convs (vreg-pressure fix).
    xsc = _pad_lanes(x_ref[...], Cp).astype(bf16).reshape(M, Cp)
    sc = jnp.dot(xsc, wsc_ref[...], preferred_element_type=f32)   # (M, Cp) f32

    out = sc + acc2 * scale + b2b
    # Write only the real Cout channels back to HBM (no padded output pass).
    o_ref[...] = out[:, :Cout].reshape(B, H, W, Cout)


def prepare_fixup_weights(w1_hwio, w2_hwio, wsc_io=None, *, cp=128):
    """One-time weight prep (hoisted out of the per-call path).

    Pads channels to cp, builds the im2col matrices (row = (dy*3+dx)*cp + ci)
    and casts to bf16.  Zero rows/cols exactly cancel padded-channel terms.
    wsc_io=None means the identity shortcut (in_channels == out_channels).
    """
    cin, cout = w1_hwio.shape[2], w1_hwio.shape[3]
    assert cin <= cp and cout <= cp
    if wsc_io is None:
        assert cin == cout, "identity shortcut requires in_channels == out_channels"
        wsc_io = jnp.eye(cin, dtype=w1_hwio.dtype)
    w1p = jnp.pad(w1_hwio, ((0, 0), (0, 0), (0, cp - cin), (0, cp - cout)))
    w2p = jnp.pad(w2_hwio, ((0, 0), (0, 0), (0, cp - cout), (0, cp - cout)))
    wscp = jnp.pad(wsc_io, ((0, cp - cin), (0, cp - cout)))
    w1m = w1p.reshape(9 * cp, cp).astype(jnp.bfloat16)
    w2m = w2p.reshape(9 * cp, cp).astype(jnp.bfloat16)
    wscm = wscp.astype(jnp.bfloat16)
    return w1m, w2m, wscm


def fixup_res_unit(x_nhwc, packed_weights, scalars, *, cout, cp=128,
                   images_per_step=None):
    """x_nhwc: (N,H,W,Cin) f32; packed_weights from prepare_fixup_weights;
    scalars: (5,) f32 = [bias1a, bias1b, bias2a, scale, bias2b]."""
    w1m, w2m, wscm = packed_weights
    N, H, W, Cin = x_nhwc.shape
    Cout = cout
    assert Cin <= cp and Cout <= cp

    # Batch several images per grid step so M = B*H*W fills the MXU and the
    # per-step overhead / halo re-zero is amortized.
    if images_per_step is None:
        images_per_step = 1
        for b in (8, 4, 2):
            if N % b == 0 and b * H * W <= 4096:
                images_per_step = b
                break
    B = images_per_step
    assert N % B == 0

    # Halo buffer row stride padded to a sublane-packing multiple so the nine
    # shifted-window copies have a regular sublane phase.
    W_pad = _round_up(W + 2, 16)

    kernel = functools.partial(_fixup_res_unit_kernel, B=B, H=H, W=W,
                               W_pad=W_pad, Cout=Cout, Cp=cp)
    return pl.pallas_call(
        kernel,
        out_shape=jax.ShapeDtypeStruct((N, H, W, Cout), jnp.float32),
        grid=(N // B,),
        in_specs=[
            pl.BlockSpec(memory_space=pltpu.MemorySpace.SMEM),       # scalars
            pl.BlockSpec((B, H, W, Cin), lambda n: (n, 0, 0, 0)),    # x (real Cin)
            # Constant block index => DMA'd once, stays resident across steps.
            pl.BlockSpec((9 * cp, cp), lambda n: (0, 0)),            # w1 im2col (bf16)
            pl.BlockSpec((9 * cp, cp), lambda n: (0, 0)),            # w2 im2col (bf16)
            pl.BlockSpec((cp, cp), lambda n: (0, 0)),                # w_sc (bf16)
        ],
        out_specs=pl.BlockSpec((B, H, W, Cout), lambda n: (n, 0, 0, 0)),
        scratch_shapes=[
            pltpu.VMEM((B, H + 2, W_pad, cp), jnp.bfloat16),  # shared zero-halo buf
            pltpu.VMEM((B * H * W, 9 * cp), jnp.bfloat16),    # shared im2col patch
        ],
        compiler_params=pltpu.CompilerParams(
            dimension_semantics=("parallel",),
            vmem_limit_bytes=64 * 1024 * 1024),
    )(scalars, x_nhwc, w1m, w2m, wscm)


def _ref_forward(x_nhwc, w1, w2, wsc, scalars):
    """Pure-JAX f32 reference of the PyTorch forward (NHWC)."""
    b1a, b1b, b2a, scale, b2b = (scalars[i] for i in range(5))
    dn = ("NHWC", "HWIO", "NHWC")
    hi = jax.lax.Precision.HIGHEST

    def conv3x3(v, w):
        return jax.lax.conv_general_dilated(v, w, (1, 1), "SAME",
                                            dimension_numbers=dn, precision=hi)

    out = jnp.maximum(x_nhwc, 0.0)
    out = conv3x3(out + b1a, w1)
    out = out + b1b
    out = jnp.maximum(out, 0.0)
    out = conv3x3(out + b2a, w2)
    out = out * scale + b2b
    sc = jax.lax.conv_general_dilated(x_nhwc, wsc[None, None], (1, 1), "SAME",
                                      dimension_numbers=dn, precision=hi)
    return sc + out


if __name__ == "__main__":
    # Small shapes: batch=2, in_channels=4, out_channels=8, spatial=16x16.
    N, Cin, Cout, H, W = 2, 4, 8, 16, 16

    key = jax.random.PRNGKey(0)
    kx, k1, k2, ks = jax.random.split(key, 4)

    # Input in the module's native NCHW, then converted to NHWC for the kernel.
    x_nchw = jax.random.normal(kx, (N, Cin, H, W), jnp.float32)
    x_nhwc = jnp.transpose(x_nchw, (0, 2, 3, 1))

    # Deterministic weight init (conv weights OIHW as in PyTorch, -> HWIO).
    w1_oihw = jax.random.normal(k1, (Cout, Cin, 3, 3), jnp.float32) * (2.0 / (9 * Cin)) ** 0.5
    w2_oihw = jax.random.normal(k2, (Cout, Cout, 3, 3), jnp.float32) * (2.0 / (9 * Cout)) ** 0.5
    wsc_oihw = jax.random.normal(ks, (Cout, Cin, 1, 1), jnp.float32) * (2.0 / Cin) ** 0.5
    w1_hwio = jnp.transpose(w1_oihw, (2, 3, 1, 0))
    w2_hwio = jnp.transpose(w2_oihw, (2, 3, 1, 0))
    wsc_io = jnp.transpose(wsc_oihw[:, :, 0, 0], (1, 0))  # (Cin, Cout)

    # Module defaults are bias*=0, scale=1; use nonzero deterministic values so
    # the scalar broadcast paths are actually exercised.
    scalars = jnp.array([0.10, -0.05, 0.20, 1.25, -0.30], jnp.float32)

    # One-time weight packing (pad -> im2col reshape -> bf16), hoisted out of
    # the per-call path.
    packed = prepare_fixup_weights(w1_hwio, w2_hwio, wsc_io)

    out = fixup_res_unit(x_nhwc, packed, scalars, cout=Cout)
    out = jax.block_until_ready(out)

    ref = _ref_forward(x_nhwc, w1_hwio, w2_hwio, wsc_io, scalars)
    assert out.shape == (N, H, W, Cout)
    err = float(jnp.max(jnp.abs(out - ref)))
    # bf16 MXU operands: tolerance loosened accordingly (f32 reference).
    assert jnp.allclose(out, ref, atol=0.1, rtol=0.05), f"max abs err {err}"

    print("KERNEL_OK")
</pallas_src>

<mosaic_0001>
module attributes {stable_mosaic.version = 11 : i64} {
  func.func @_fixup_res_unit_kernel(%arg0: i32, %arg1: memref<5xf32, #tpu.memory_space<smem>>, %arg2: memref<2x16x16x4xf32, #tpu.memory_space<vmem>>, %arg3: memref<1152x128xbf16, #tpu.memory_space<vmem>>, %arg4: memref<1152x128xbf16, #tpu.memory_space<vmem>>, %arg5: memref<128x128xbf16, #tpu.memory_space<vmem>>, %arg6: memref<2x16x16x8xf32, #tpu.memory_space<vmem>>, %arg7: memref<2x18x32x128xbf16, #tpu.memory_space<vmem>>, %arg8: memref<512x1152xbf16, #tpu.memory_space<vmem>>) attributes {dimension_semantics = [#tpu.dimension_semantics<parallel>], iteration_bounds = array<i64: 1>, scalar_prefetch = 0 : i64, scratch_operands = 2 : i64, tpu.core_type = #tpu.core_type<tc>, window_params = [{transform_indices = @transform_0, window_bounds = array<i64: 5>}, {transform_indices = @transform_1, window_bounds = array<i64: 2, 16, 16, 4>}, {pipeline_mode = #tpu.pipeline_mode<synchronous>, transform_indices = @transform_2, window_bounds = array<i64: 1152, 128>}, {pipeline_mode = #tpu.pipeline_mode<synchronous>, transform_indices = @transform_3, window_bounds = array<i64: 1152, 128>}, {pipeline_mode = #tpu.pipeline_mode<synchronous>, transform_indices = @transform_4, window_bounds = array<i64: 128, 128>}, {transform_indices = @transform_5, window_bounds = array<i64: 2, 16, 16, 8>}]} {
    %c0 = arith.constant 0 : index
    %0 = memref.load %arg1[%c0] : memref<5xf32, #tpu.memory_space<smem>>
    %c1 = arith.constant 1 : index
    %1 = memref.load %arg1[%c1] : memref<5xf32, #tpu.memory_space<smem>>
    %c2 = arith.constant 2 : index
    %2 = memref.load %arg1[%c2] : memref<5xf32, #tpu.memory_space<smem>>
    %c3 = arith.constant 3 : index
    %3 = memref.load %arg1[%c3] : memref<5xf32, #tpu.memory_space<smem>>
    %c4 = arith.constant 4 : index
    %4 = memref.load %arg1[%c4] : memref<5xf32, #tpu.memory_space<smem>>
    %cst = arith.constant 0.000000e+00 : bf16
    %5 = vector.broadcast %cst : bf16 to vector<2x1x32x128xbf16>
    %c0_0 = arith.constant 0 : index
    %c0_1 = arith.constant 0 : index
    %c0_2 = arith.constant 0 : index
    %c0_3 = arith.constant 0 : index
    %6 = vector.load %arg7[%c0_0, %c0_1, %c0_2, %c0_3] : memref<2x18x32x128xbf16, #tpu.memory_space<vmem>>, vector<2x1x32x128xbf16>
    tpu.vector_store %arg7[%c0_0, %c0_1, %c0_2, %c0_3], %5 {strides = array<i32>} : memref<2x18x32x128xbf16, #tpu.memory_space<vmem>>, vector<2x1x32x128xbf16>,
    %cst_4 = arith.constant 0.000000e+00 : bf16
    %7 = vector.broadcast %cst_4 : bf16 to vector<2x1x32x128xbf16>
    %c0_5 = arith.constant 0 : index
    %c17 = arith.constant 17 : index
    %c0_6 = arith.constant 0 : index
    %c0_7 = arith.constant 0 : index
    %8 = vector.load %arg7[%c0_5, %c17, %c0_6, %c0_7] : memref<2x18x32x128xbf16, #tpu.memory_space<vmem>>, vector<2x1x32x128xbf16>
    tpu.vector_store %arg7[%c0_5, %c17, %c0_6, %c0_7], %7 {strides = array<i32>} : memref<2x18x32x128xbf16, #tpu.memory_space<vmem>>, vector<2x1x32x128xbf16>,
    %cst_8 = arith.constant 0.000000e+00 : bf16
    %9 = vector.broadcast %cst_8 : bf16 to vector<2x18x1x128xbf16>
    %c0_9 = arith.constant 0 : index
    %c0_10 = arith.constant 0 : index
    %c0_11 = arith.constant 0 : index
    %c0_12 = arith.constant 0 : index
    %10 = vector.load %arg7[%c0_9, %c0_10, %c0_11, %c0_12] : memref<2x18x32x128xbf16, #tpu.memory_space<vmem>>, vector<2x18x1x128xbf16>
    tpu.vector_store %arg7[%c0_9, %c0_10, %c0_11, %c0_12], %9 {strides = array<i32>} : memref<2x18x32x128xbf16, #tpu.memory_space<vmem>>, vector<2x18x1x128xbf16>,
    %cst_13 = arith.constant 0.000000e+00 : bf16
    %11 = vector.broadcast %cst_13 : bf16 to vector<2x18x1x128xbf16>
    %c0_14 = arith.constant 0 : index
    %c0_15 = arith.constant 0 : index
    %c17_16 = arith.constant 17 : index
    %c0_17 = arith.constant 0 : index
    %12 = vector.load %arg7[%c0_14, %c0_15, %c17_16, %c0_17] : memref<2x18x32x128xbf16, #tpu.memory_space<vmem>>, vector<2x18x1x128xbf16>
    tpu.vector_store %arg7[%c0_14, %c0_15, %c17_16, %c0_17], %11 {strides = array<i32>} : memref<2x18x32x128xbf16, #tpu.memory_space<vmem>>, vector<2x18x1x128xbf16>,
    %c0_18 = arith.constant 0 : index
    %c0_19 = arith.constant 0 : index
    %c0_20 = arith.constant 0 : index
    %c0_21 = arith.constant 0 : index
    %13 = vector.load %arg2[%c0_18, %c0_19, %c0_20, %c0_21] : memref<2x16x16x4xf32, #tpu.memory_space<vmem>>, vector<2x16x16x4xf32>
    %cst_22 = arith.constant 0.000000e+00 : f32
    %14 = vector.broadcast %cst_22 : f32 to vector<2x16x16x4xf32>
    %15 = arith.maximumf %13, %14 : vector<2x16x16x4xf32>
    %16 = vector.broadcast %0 : f32 to vector<2x16x16x4xf32>
    %17 = arith.addf %15, %16 : vector<2x16x16x4xf32>
    %cst_23 = arith.constant 0.000000e+00 : f32
    %18 = vector.broadcast %cst_23 : f32 to vector<2x16x16x124xf32>
    %19 = tpu.concatenate %17, %18 in 3 : vector<2x16x16x4xf32>, vector<2x16x16x124xf32> -> vector<2x16x16x128xf32>
    %20 = arith.truncf %19 : vector<2x16x16x128xf32> to vector<2x16x16x128xbf16>
    %c0_24 = arith.constant 0 : index
    %c1_25 = arith.constant 1 : index
    %c1_26 = arith.constant 1 : index
    %c0_27 = arith.constant 0 : index
    %21 = vector.load %arg7[%c0_24, %c1_25, %c1_26, %c0_27] : memref<2x18x32x128xbf16, #tpu.memory_space<vmem>>, vector<2x16x16x128xbf16>
    tpu.vector_store %arg7[%c0_24, %c1_25, %c1_26, %c0_27], %20 {strides = array<i32>} : memref<2x18x32x128xbf16, #tpu.memory_space<vmem>>, vector<2x16x16x128xbf16>,
    %c0_28 = arith.constant 0 : index
    %c0_29 = arith.constant 0 : index
    %c0_30 = arith.constant 0 : index
    %c0_31 = arith.constant 0 : index
    %22 = vector.load %arg7[%c0_28, %c0_29, %c0_30, %c0_31] : memref<2x18x32x128xbf16, #tpu.memory_space<vmem>>, vector<2x16x16x128xbf16>
    %23 = vector.shape_cast %22 : vector<2x16x16x128xbf16> to vector<512x128xbf16>
    %c0_32 = arith.constant 0 : index
    %c0_33 = arith.constant 0 : index
    %24 = vector.load %arg8[%c0_32, %c0_33] : memref<512x1152xbf16, #tpu.memory_space<vmem>>, vector<512x128xbf16>
    tpu.vector_store %arg8[%c0_32, %c0_33], %23 {strides = array<i32>} : memref<512x1152xbf16, #tpu.memory_space<vmem>>, vector<512x128xbf16>,
    %c0_34 = arith.constant 0 : index
    %c0_35 = arith.constant 0 : index
    %c1_36 = arith.constant 1 : index
    %c0_37 = arith.constant 0 : index
    %25 = vector.load %arg7[%c0_34, %c0_35, %c1_36, %c0_37] : memref<2x18x32x128xbf16, #tpu.memory_space<vmem>>, vector<2x16x16x128xbf16>
    %26 = vector.shape_cast %25 : vector<2x16x16x128xbf16> to vector<512x128xbf16>
    %c0_38 = arith.constant 0 : index
    %c128 = arith.constant 128 : index
    %27 = vector.load %arg8[%c0_38, %c128] : memref<512x1152xbf16, #tpu.memory_space<vmem>>, vector<512x128xbf16>
    tpu.vector_store %arg8[%c0_38, %c128], %26 {strides = array<i32>} : memref<512x1152xbf16, #tpu.memory_space<vmem>>, vector<512x128xbf16>,
    %c0_39 = arith.constant 0 : index
    %c0_40 = arith.constant 0 : index
    %c2_41 = arith.constant 2 : index
    %c0_42 = arith.constant 0 : index
    %28 = vector.load %arg7[%c0_39, %c0_40, %c2_41, %c0_42] : memref<2x18x32x128xbf16, #tpu.memory_space<vmem>>, vector<2x16x16x128xbf16>
    %29 = vector.shape_cast %28 : vector<2x16x16x128xbf16> to vector<512x128xbf16>
    %c0_43 = arith.constant 0 : index
    %c256 = arith.constant 256 : index
    %30 = vector.load %arg8[%c0_43, %c256] : memref<512x1152xbf16, #tpu.memory_space<vmem>>, vector<512x128xbf16>
    tpu.vector_store %arg8[%c0_43, %c256], %29 {strides = array<i32>} : memref<512x1152xbf16, #tpu.memory_space<vmem>>, vector<512x128xbf16>,
    %c0_44 = arith.constant 0 : index
    %c1_45 = arith.constant 1 : index
    %c0_46 = arith.constant 0 : index
    %c0_47 = arith.constant 0 : index
    %31 = vector.load %arg7[%c0_44, %c1_45, %c0_46, %c0_47] : memref<2x18x32x128xbf16, #tpu.memory_space<vmem>>, vector<2x16x16x128xbf16>
    %32 = vector.shape_cast %31 : vector<2x16x16x128xbf16> to vector<512x128xbf16>
    %c0_48 = arith.constant 0 : index
    %c384 = arith.constant 384 : index
    %33 = vector.load %arg8[%c0_48, %c384] : memref<512x1152xbf16, #tpu.memory_space<vmem>>, vector<512x128xbf16>
    tpu.vector_store %arg8[%c0_48, %c384], %32 {strides = array<i32>} : memref<512x1152xbf16, #tpu.memory_space<vmem>>, vector<512x128xbf16>,
    %c0_49 = arith.constant 0 : index
    %c1_50 = arith.constant 1 : index
    %c1_51 = arith.constant 1 : index
    %c0_52 = arith.constant 0 : index
    %34 = vector.load %arg7[%c0_49, %c1_50, %c1_51, %c0_52] : memref<2x18x32x128xbf16, #tpu.memory_space<vmem>>, vector<2x16x16x128xbf16>
    %35 = vector.shape_cast %34 : vector<2x16x16x128xbf16> to vector<512x128xbf16>
    %c0_53 = arith.constant 0 : index
    %c512 = arith.constant 512 : index
    %36 = vector.load %arg8[%c0_53, %c512] : memref<512x1152xbf16, #tpu.memory_space<vmem>>, vector<512x128xbf16>
    tpu.vector_store %arg8[%c0_53, %c512], %35 {strides = array<i32>} : memref<512x1152xbf16, #tpu.memory_space<vmem>>, vector<512x128xbf16>,
    %c0_54 = arith.constant 0 : index
    %c1_55 = arith.constant 1 : index
    %c2_56 = arith.constant 2 : index
    %c0_57 = arith.constant 0 : index
    %37 = vector.load %arg7[%c0_54, %c1_55, %c2_56, %c0_57] : memref<2x18x32x128xbf16, #tpu.memory_space<vmem>>, vector<2x16x16x128xbf16>
    %38 = vector.shape_cast %37 : vector<2x16x16x128xbf16> to vector<512x128xbf16>
    %c0_58 = arith.constant 0 : index
    %c640 = arith.constant 640 : index
    %39 = vector.load %arg8[%c0_58, %c640] : memref<512x1152xbf16, #tpu.memory_space<vmem>>, vector<512x128xbf16>
    tpu.vector_store %arg8[%c0_58, %c640], %38 {strides = array<i32>} : memref<512x1152xbf16, #tpu.memory_space<vmem>>, vector<512x128xbf16>,
    %c0_59 = arith.constant 0 : index
    %c2_60 = arith.constant 2 : index
    %c0_61 = arith.constant 0 : index
    %c0_62 = arith.constant 0 : index
    %40 = vector.load %arg7[%c0_59, %c2_60, %c0_61, %c0_62] : memref<2x18x32x128xbf16, #tpu.memory_space<vmem>>, vector<2x16x16x128xbf16>
    %41 = vector.shape_cast %40 : vector<2x16x16x128xbf16> to vector<512x128xbf16>
    %c0_63 = arith.constant 0 : index
    %c768 = arith.constant 768 : index
    %42 = vector.load %arg8[%c0_63, %c768] : memref<512x1152xbf16, #tpu.memory_space<vmem>>, vector<512x128xbf16>
    tpu.vector_store %arg8[%c0_63, %c768], %41 {strides = array<i32>} : memref<512x1152xbf16, #tpu.memory_space<vmem>>, vector<512x128xbf16>,
    %c0_64 = arith.constant 0 : index
    %c2_65 = arith.constant 2 : index
    %c1_66 = arith.constant 1 : index
    %c0_67 = arith.constant 0 : index
    %43 = vector.load %arg7[%c0_64, %c2_65, %c1_66, %c0_67] : memref<2x18x32x128xbf16, #tpu.memory_space<vmem>>, vector<2x16x16x128xbf16>
    %44 = vector.shape_cast %43 : vector<2x16x16x128xbf16> to vector<512x128xbf16>
    %c0_68 = arith.constant 0 : index
    %c896 = arith.constant 896 : index
    %45 = vector.load %arg8[%c0_68, %c896] : memref<512x1152xbf16, #tpu.memory_space<vmem>>, vector<512x128xbf16>
    tpu.vector_store %arg8[%c0_68, %c896], %44 {strides = array<i32>} : memref<512x1152xbf16, #tpu.memory_space<vmem>>, vector<512x128xbf16>,
    %c0_69 = arith.constant 0 : index
    %c2_70 = arith.constant 2 : index
    %c2_71 = arith.constant 2 : index
    %c0_72 = arith.constant 0 : index
    %46 = vector.load %arg7[%c0_69, %c2_70, %c2_71, %c0_72] : memref<2x18x32x128xbf16, #tpu.memory_space<vmem>>, vector<2x16x16x128xbf16>
    %47 = vector.shape_cast %46 : vector<2x16x16x128xbf16> to vector<512x128xbf16>
    %c0_73 = arith.constant 0 : index
    %c1024 = arith.constant 1024 : index
    %48 = vector.load %arg8[%c0_73, %c1024] : memref<512x1152xbf16, #tpu.memory_space<vmem>>, vector<512x128xbf16>
    tpu.vector_store %arg8[%c0_73, %c1024], %47 {strides = array<i32>} : memref<512x1152xbf16, #tpu.memory_space<vmem>>, vector<512x128xbf16>,
    %c0_74 = arith.constant 0 : index
    %c0_75 = arith.constant 0 : index
    %49 = vector.load %arg8[%c0_74, %c0_75] : memref<512x1152xbf16, #tpu.memory_space<vmem>>, vector<512x1152xbf16>
    %c0_76 = arith.constant 0 : index
    %c0_77 = arith.constant 0 : index
    %50 = vector.load %arg3[%c0_76, %c0_77] : memref<1152x128xbf16, #tpu.memory_space<vmem>>, vector<1152x128xbf16>
    %cst_78 = arith.constant dense<0.000000e+00> : vector<512x128xf32>
    %51 = tpu.matmul %49, %50, %cst_78 {dimension_numbers = #tpu.dot_dimension_numbers<[1], [0], [0], [1], [0, 0, 1, 1], [], []>} : vector<512x1152xbf16>, vector<1152x128xbf16>, vector<512x128xf32> -> vector<512x128xf32>
    %52 = vector.broadcast %1 : f32 to vector<512x128xf32>
    %53 = arith.addf %51, %52 : vector<512x128xf32>
    %cst_79 = arith.constant 0.000000e+00 : f32
    %54 = vector.broadcast %cst_79 : f32 to vector<512x128xf32>
    %55 = arith.maximumf %53, %54 : vector<512x128xf32>
    %56 = vector.broadcast %2 : f32 to vector<512x128xf32>
    %57 = arith.addf %55, %56 : vector<512x128xf32>
    %58 = arith.truncf %57 : vector<512x128xf32> to vector<512x128xbf16>
    %59 = vector.shape_cast %58 : vector<512x128xbf16> to vector<2x16x16x128xbf16>
    %c0_80 = arith.constant 0 : index
    %c1_81 = arith.constant 1 : index
    %c1_82 = arith.constant 1 : index
    %c0_83 = arith.constant 0 : index
    %60 = vector.load %arg7[%c0_80, %c1_81, %c1_82, %c0_83] : memref<2x18x32x128xbf16, #tpu.memory_space<vmem>>, vector<2x16x16x128xbf16>
    tpu.vector_store %arg7[%c0_80, %c1_81, %c1_82, %c0_83], %59 {strides = array<i32>} : memref<2x18x32x128xbf16, #tpu.memory_space<vmem>>, vector<2x16x16x128xbf16>,
    %c0_84 = arith.constant 0 : index
    %c0_85 = arith.constant 0 : index
    %c0_86 = arith.constant 0 : index
    %c0_87 = arith.constant 0 : index
    %61 = vector.load %arg7[%c0_84, %c0_85, %c0_86, %c0_87] : memref<2x18x32x128xbf16, #tpu.memory_space<vmem>>, vector<2x16x16x128xbf16>
    %62 = vector.shape_cast %61 : vector<2x16x16x128xbf16> to vector<512x128xbf16>
    %c0_88 = arith.constant 0 : index
    %c0_89 = arith.constant 0 : index
    %63 = vector.load %arg8[%c0_88, %c0_89] : memref<512x1152xbf16, #tpu.memory_space<vmem>>, vector<512x128xbf16>
    tpu.vector_store %arg8[%c0_88, %c0_89], %62 {strides = array<i32>} : memref<512x1152xbf16, #tpu.memory_space<vmem>>, vector<512x128xbf16>,
    %c0_90 = arith.constant 0 : index
    %c0_91 = arith.constant 0 : index
    %c1_92 = arith.constant 1 : index
    %c0_93 = arith.constant 0 : index
    %64 = vector.load %arg7[%c0_90, %c0_91, %c1_92, %c0_93] : memref<2x18x32x128xbf16, #tpu.memory_space<vmem>>, vector<2x16x16x128xbf16>
    %65 = vector.shape_cast %64 : vector<2x16x16x128xbf16> to vector<512x128xbf16>
    %c0_94 = arith.constant 0 : index
    %c128_95 = arith.constant 128 : index
    %66 = vector.load %arg8[%c0_94, %c128_95] : memref<512x1152xbf16, #tpu.memory_space<vmem>>, vector<512x128xbf16>
    tpu.vector_store %arg8[%c0_94, %c128_95], %65 {strides = array<i32>} : memref<512x1152xbf16, #tpu.memory_space<vmem>>, vector<512x128xbf16>,
    %c0_96 = arith.constant 0 : index
    %c0_97 = arith.constant 0 : index
    %c2_98 = arith.constant 2 : index
    %c0_99 = arith.constant 0 : index
    %67 = vector.load %arg7[%c0_96, %c0_97, %c2_98, %c0_99] : memref<2x18x32x128xbf16, #tpu.memory_space<vmem>>, vector<2x16x16x128xbf16>
    %68 = vector.shape_cast %67 : vector<2x16x16x128xbf16> to vector<512x128xbf16>
    %c0_100 = arith.constant 0 : index
    %c256_101 = arith.constant 256 : index
    %69 = vector.load %arg8[%c0_100, %c256_101] : memref<512x1152xbf16, #tpu.memory_space<vmem>>, vector<512x128xbf16>
    tpu.vector_store %arg8[%c0_100, %c256_101], %68 {strides = array<i32>} : memref<512x1152xbf16, #tpu.memory_space<vmem>>, vector<512x128xbf16>,
    %c0_102 = arith.constant 0 : index
    %c1_103 = arith.constant 1 : index
    %c0_104 = arith.constant 0 : index
    %c0_105 = arith.constant 0 : index
    %70 = vector.load %arg7[%c0_102, %c1_103, %c0_104, %c0_105] : memref<2x18x32x128xbf16, #tpu.memory_space<vmem>>, vector<2x16x16x128xbf16>
    %71 = vector.shape_cast %70 : vector<2x16x16x128xbf16> to vector<512x128xbf16>
    %c0_106 = arith.constant 0 : index
    %c384_107 = arith.constant 384 : index
    %72 = vector.load %arg8[%c0_106, %c384_107] : memref<512x1152xbf16, #tpu.memory_space<vmem>>, vector<512x128xbf16>
    tpu.vector_store %arg8[%c0_106, %c384_107], %71 {strides = array<i32>} : memref<512x1152xbf16, #tpu.memory_space<vmem>>, vector<512x128xbf16>,
    %c0_108 = arith.constant 0 : index
    %c1_109 = arith.constant 1 : index
    %c1_110 = arith.constant 1 : index
    %c0_111 = arith.constant 0 : index
    %73 = vector.load %arg7[%c0_108, %c1_109, %c1_110, %c0_111] : memref<2x18x32x128xbf16, #tpu.memory_space<vmem>>, vector<2x16x16x128xbf16>
    %74 = vector.shape_cast %73 : vector<2x16x16x128xbf16> to vector<512x128xbf16>
    %c0_112 = arith.constant 0 : index
    %c512_113 = arith.constant 512 : index
    %75 = vector.load %arg8[%c0_112, %c512_113] : memref<512x1152xbf16, #tpu.memory_space<vmem>>, vector<512x128xbf16>
    tpu.vector_store %arg8[%c0_112, %c512_113], %74 {strides = array<i32>} : memref<512x1152xbf16, #tpu.memory_space<vmem>>, vector<512x128xbf16>,
    %c0_114 = arith.constant 0 : index
    %c1_115 = arith.constant 1 : index
    %c2_116 = arith.constant 2 : index
    %c0_117 = arith.constant 0 : index
    %76 = vector.load %arg7[%c0_114, %c1_115, %c2_116, %c0_117] : memref<2x18x32x128xbf16, #tpu.memory_space<vmem>>, vector<2x16x16x128xbf16>
    %77 = vector.shape_cast %76 : vector<2x16x16x128xbf16> to vector<512x128xbf16>
    %c0_118 = arith.constant 0 : index
    %c640_119 = arith.constant 640 : index
    %78 = vector.load %arg8[%c0_118, %c640_119] : memref<512x1152xbf16, #tpu.memory_space<vmem>>, vector<512x128xbf16>
    tpu.vector_store %arg8[%c0_118, %c640_119], %77 {strides = array<i32>} : memref<512x1152xbf16, #tpu.memory_space<vmem>>, vector<512x128xbf16>,
    %c0_120 = arith.constant 0 : index
    %c2_121 = arith.constant 2 : index
    %c0_122 = arith.constant 0 : index
    %c0_123 = arith.constant 0 : index
    %79 = vector.load %arg7[%c0_120, %c2_121, %c0_122, %c0_123] : memref<2x18x32x128xbf16, #tpu.memory_space<vmem>>, vector<2x16x16x128xbf16>
    %80 = vector.shape_cast %79 : vector<2x16x16x128xbf16> to vector<512x128xbf16>
    %c0_124 = arith.constant 0 : index
    %c768_125 = arith.constant 768 : index
    %81 = vector.load %arg8[%c0_124, %c768_125] : memref<512x1152xbf16, #tpu.memory_space<vmem>>, vector<512x128xbf16>
    tpu.vector_store %arg8[%c0_124, %c768_125], %80 {strides = array<i32>} : memref<512x1152xbf16, #tpu.memory_space<vmem>>, vector<512x128xbf16>,
    %c0_126 = arith.constant 0 : index
    %c2_127 = arith.constant 2 : index
    %c1_128 = arith.constant 1 : index
    %c0_129 = arith.constant 0 : index
    %82 = vector.load %arg7[%c0_126, %c2_127, %c1_128, %c0_129] : memref<2x18x32x128xbf16, #tpu.memory_space<vmem>>, vector<2x16x16x128xbf16>
    %83 = vector.shape_cast %82 : vector<2x16x16x128xbf16> to vector<512x128xbf16>
    %c0_130 = arith.constant 0 : index
    %c896_131 = arith.constant 896 : index
    %84 = vector.load %arg8[%c0_130, %c896_131] : memref<512x1152xbf16, #tpu.memory_space<vmem>>, vector<512x128xbf16>
    tpu.vector_store %arg8[%c0_130, %c896_131], %83 {strides = array<i32>} : memref<512x1152xbf16, #tpu.memory_space<vmem>>, vector<512x128xbf16>,
    %c0_132 = arith.constant 0 : index
    %c2_133 = arith.constant 2 : index
    %c2_134 = arith.constant 2 : index
    %c0_135 = arith.constant 0 : index
    %85 = vector.load %arg7[%c0_132, %c2_133, %c2_134, %c0_135] : memref<2x18x32x128xbf16, #tpu.memory_space<vmem>>, vector<2x16x16x128xbf16>
    %86 = vector.shape_cast %85 : vector<2x16x16x128xbf16> to vector<512x128xbf16>
    %c0_136 = arith.constant 0 : index
    %c1024_137 = arith.constant 1024 : index
    %87 = vector.load %arg8[%c0_136, %c1024_137] : memref<512x1152xbf16, #tpu.memory_space<vmem>>, vector<512x128xbf16>
    tpu.vector_store %arg8[%c0_136, %c1024_137], %86 {strides = array<i32>} : memref<512x1152xbf16, #tpu.memory_space<vmem>>, vector<512x128xbf16>,
    %c0_138 = arith.constant 0 : index
    %c0_139 = arith.constant 0 : index
    %88 = vector.load %arg8[%c0_138, %c0_139] : memref<512x1152xbf16, #tpu.memory_space<vmem>>, vector<512x1152xbf16>
    %c0_140 = arith.constant 0 : index
    %c0_141 = arith.constant 0 : index
    %89 = vector.load %arg4[%c0_140, %c0_141] : memref<1152x128xbf16, #tpu.memory_space<vmem>>, vector<1152x128xbf16>
    %cst_142 = arith.constant dense<0.000000e+00> : vector<512x128xf32>
    %90 = tpu.matmul %88, %89, %cst_142 {dimension_numbers = #tpu.dot_dimension_numbers<[1], [0], [0], [1], [0, 0, 1, 1], [], []>} : vector<512x1152xbf16>, vector<1152x128xbf16>, vector<512x128xf32> -> vector<512x128xf32>
    %c0_143 = arith.constant 0 : index
    %c0_144 = arith.constant 0 : index
    %c0_145 = arith.constant 0 : index
    %c0_146 = arith.constant 0 : index
    %91 = vector.load %arg2[%c0_143, %c0_144, %c0_145, %c0_146] : memref<2x16x16x4xf32, #tpu.memory_space<vmem>>, vector<2x16x16x4xf32>
    %cst_147 = arith.constant 0.000000e+00 : f32
    %92 = vector.broadcast %cst_147 : f32 to vector<2x16x16x124xf32>
    %93 = tpu.concatenate %91, %92 in 3 : vector<2x16x16x4xf32>, vector<2x16x16x124xf32> -> vector<2x16x16x128xf32>
    %94 = arith.truncf %93 : vector<2x16x16x128xf32> to vector<2x16x16x128xbf16>
    %95 = vector.shape_cast %94 : vector<2x16x16x128xbf16> to vector<512x128xbf16>
    %c0_148 = arith.constant 0 : index
    %c0_149 = arith.constant 0 : index
    %96 = vector.load %arg5[%c0_148, %c0_149] : memref<128x128xbf16, #tpu.memory_space<vmem>>, vector<128x128xbf16>
    %cst_150 = arith.constant dense<0.000000e+00> : vector<512x128xf32>
    %97 = tpu.matmul %95, %96, %cst_150 {dimension_numbers = #tpu.dot_dimension_numbers<[1], [0], [0], [1], [0, 0, 1, 1], [], []>} : vector<512x128xbf16>, vector<128x128xbf16>, vector<512x128xf32> -> vector<512x128xf32>
    %98 = vector.broadcast %3 : f32 to vector<512x128xf32>
    %99 = arith.mulf %90, %98 : vector<512x128xf32>
    %100 = arith.addf %97, %99 : vector<512x128xf32>
    %101 = vector.broadcast %4 : f32 to vector<512x128xf32>
    %102 = arith.addf %100, %101 : vector<512x128xf32>
    %103 = vector.extract_strided_slice %102 {offsets = [0, 0], sizes = [512, 8], strides = [1, 1]} : vector<512x128xf32> to vector<512x8xf32>
    %104 = vector.shape_cast %103 : vector<512x8xf32> to vector<2x16x16x8xf32>
    %c0_151 = arith.constant 0 : index
    %c0_152 = arith.constant 0 : index
    %c0_153 = arith.constant 0 : index
    %c0_154 = arith.constant 0 : index
    %105 = vector.load %arg6[%c0_151, %c0_152, %c0_153, %c0_154] : memref<2x16x16x8xf32, #tpu.memory_space<vmem>>, vector<2x16x16x8xf32>
    tpu.vector_store %arg6[%c0_151, %c0_152, %c0_153, %c0_154], %104 {strides = array<i32>} : memref<2x16x16x8xf32, #tpu.memory_space<vmem>>, vector<2x16x16x8xf32>,
    return
  }
  func.func @transform_0(%arg0: i32) -> i32 {
    %c0_i32 = arith.constant 0 : i32
    %c0_i32_0 = arith.constant 0 : i32
    return %c0_i32 : i32
  }
  func.func @transform_1(%arg0: i32) -> (i32, i32, i32, i32) {
    %c0_i32 = arith.constant 0 : i32
    %c0_i32_0 = arith.constant 0 : i32
    %c0_i32_1 = arith.constant 0 : i32
    %c0_i32_2 = arith.constant 0 : i32
    return %arg0, %c0_i32, %c0_i32_0, %c0_i32_1 : i32, i32, i32, i32
  }
  func.func @transform_2(%arg0: i32) -> (i32, i32) {
    %c0_i32 = arith.constant 0 : i32
    %c0_i32_0 = arith.constant 0 : i32
    %c0_i32_1 = arith.constant 0 : i32
    return %c0_i32, %c0_i32_0 : i32, i32
  }
  func.func @transform_3(%arg0: i32) -> (i32, i32) {
    %c0_i32 = arith.constant 0 : i32
    %c0_i32_0 = arith.constant 0 : i32
    %c0_i32_1 = arith.constant 0 : i32
    return %c0_i32, %c0_i32_0 : i32, i32
  }
  func.func @transform_4(%arg0: i32) -> (i32, i32) {
    %c0_i32 = arith.constant 0 : i32
    %c0_i32_0 = arith.constant 0 : i32
    %c0_i32_1 = arith.constant 0 : i32
    return %c0_i32, %c0_i32_0 : i32, i32
  }
  func.func @transform_5(%arg0: i32) -> (i32, i32, i32, i32) {
    %c0_i32 = arith.constant 0 : i32
    %c0_i32_0 = arith.constant 0 : i32
    %c0_i32_1 = arith.constant 0 : i32
    %c0_i32_2 = arith.constant 0 : i32
    return %arg0, %c0_i32, %c0_i32_0, %c0_i32_1 : i32, i32, i32, i32
  }
}

</mosaic_0001>

<bundles_post_ra>
// kernel: tpu_custom_call.1
= control target key start
LH: loop header
LB: loop body
LE: loop exit
PB: predicated region body
PF: predicated region fallthrough
CT: control target
= control target key end

     0   :  { %10 = vsyncpa [#allocation7], 0  ;;  %s17068_s0 = inlined_call_operand.hbm [shape: f32[5], index: 0, kind: input, shape index: {}]   ;;  %s17069_s1 = inlined_call_operand.hbm [shape: f32[2,16,16,4], index: 1, kind: input, shape index: {}]   ;;  %s17070_s2 = inlined_call_operand.hbm [shape: bf16[1152,128], index: 2, kind: input, shape index: {}]   ;;  %s17071_s3 = inlined_call_operand.hbm [shape: bf16[1152,128], index: 3, kind: input, shape index: {}]   ;;  %s17072_s4 = inlined_call_operand.hbm [shape: bf16[128,128], index: 4, kind: input, shape index: {}]   ;;  %s17073_s5 = inlined_call_operand.hbm [shape: f32[2,16,16,8], index: 5, kind: output, shape index: {}]  }
   0x1   :  { %11 = vsyncpa [#allocation5], 0 }
   0x2   :  { %12 = vsyncpa [#allocation10], 0 }
   0x3   :  { %13 = vsyncpa [#allocation13], 0 }
   0x4   :  { %14 = vsyncpa [#allocation6], 0  ;;  %s14035_s18 = smov [#allocation9]   ;;  %s13905_s22 = scalar_lea.hbm %s17070_s2, 9216 }
   0x5   :  { %s40_s19 = sshll.u32 %s14035_s18, 4  ;;  %p13906_p0 = scmp.ne.s32.totalorder %s17070_s2, %s13905_s22  ;;  %s41_s19 = int_to_ptr.vmem [resolvable:$true] %s40_s19 }
   0x6   :  { %p13909_p1 = scmp.lt.u32.totalorder %s13905_s22, %s17070_s2 }
   0x8   :  { %p13911_p2 = pnand %p13909_p1, %p13906_p0 }
   0xa   :  { %13914 = shalt.err (!%p13911_p2)
}
   0xb   :  { %s13915_s27 = scalar_lea.vmem %s41_s19, 9216  ;;  %p13920_p4 = scmp.lt.s32.totalorder %s41_s19, %s41_s19 }
   0xc   :  { %p13916_p3 = scmp.ne.s32.totalorder %s41_s19, %s13915_s27  ;;  %p13921_p5 = scmp.lt.s32.totalorder %s13915_s27, %s13915_s27 }
   0xe   :  { %p13922_p6 = por %p13921_p5, %p13920_p4 }
  0x10   :  { %p13923_p7 = pnand %p13922_p6, %p13916_p3 }
  0x12   :  { %13926 = shalt.err (!%p13923_p7)
}
  0x13   :  { %s14036_s28 = smov 64   ;;  %s14037_s29 = smov 4  }
  0x14   :  { %46 = dma.hbm_to_vmem [thread:$0]  %s17070_s2, 9216, %s41_s19, [#allocation10], %s14036_s28, %s14036_s28, %s14037_s29  }
  0x15   :  { %s13927_s9 = scalar_lea.hbm %s17068_s0, 16 }
  0x16   :  { %p13928_p8 = scmp.ne.s32.totalorder %s17068_s0, %s13927_s9  ;;  %p13931_p9 = scmp.lt.u32.totalorder %s13927_s9, %s17068_s0 }
  0x18   :  { %p13933_p10 = pnand %p13931_p9, %p13928_p8 }
  0x1a   :  { %13936 = shalt.err (!%p13933_p10)
}
  0x1b   :  { %s14038_s14 = smov [#allocation4]   ;;  %s14039_s2 = smov [#allocation8]  }
  0x1c   :  { %22 = dma.hbm_to_smem %s17068_s0, 16, %s14038_s14, [#allocation7]  }
  0x1d   :  { %s28_s17 = sshll.u32 %s14039_s2, 4  ;;  %s13937_s20 = scalar_lea.hbm %s17069_s1, 8192  ;;  %s29_s17 = int_to_ptr.vmem [resolvable:$true] %s28_s17 }
  0x1e   :  { %p13938_p11 = scmp.ne.s32.totalorder %s17069_s1, %s13937_s20  ;;  %p13941_p12 = scmp.lt.u32.totalorder %s13937_s20, %s17069_s1 }
  0x20   :  { %p13943_p13 = pnand %p13941_p12, %p13938_p11 }
  0x22   :  { %13946 = shalt.err (!%p13943_p13)
}
  0x23   :  { %s13947_s25 = scalar_lea.vmem %s29_s17, 8192  ;;  %p13952_p1 = scmp.lt.s32.totalorder %s29_s17, %s29_s17 }
  0x24   :  { %p13948_p0 = scmp.ne.s32.totalorder %s29_s17, %s13947_s25  ;;  %p13953_p2 = scmp.lt.s32.totalorder %s13947_s25, %s13947_s25 }
  0x26   :  { %p13954_p3 = por %p13953_p2, %p13952_p1 }
  0x28   :  { %p13955_p4 = pnand %p13954_p3, %p13948_p0 }
  0x2a   :  { %13958 = shalt.err (!%p13955_p4)
}
  0x2b   :  { %s14040_s0 = smov 128   ;;  %s14041_s26 = smov 8  }
  0x2c   :  { %34 = dma.hbm_to_vmem [thread:$0]  %s17069_s1, 8192, %s29_s17, [#allocation5], %s14040_s0, %s14040_s0, %s14041_s26  }
  0x2d   :  { %s14042_s6 = smov [#allocation11]   ;;  %s14043_s8 = smov [#allocation12]  }
  0x2e   :  { %s52_s7 = sshll.u32 %s14042_s6, 4  ;;  %s64_s9 = sshll.u32 %s14043_s8, 4  ;;  %s53_s7 = int_to_ptr.vmem [resolvable:$true] %s52_s7  ;;  %s65_s9 = int_to_ptr.vmem [resolvable:$true] %s64_s9 }
  0x2f   :  { %s13959_s12 = scalar_lea.hbm %s17071_s3, 9216 }
  0x30   :  { %p13960_p5 = scmp.ne.s32.totalorder %s17071_s3, %s13959_s12  ;;  %p13963_p6 = scmp.lt.u32.totalorder %s13959_s12, %s17071_s3 }
  0x32   :  { %p13965_p7 = pnand %p13963_p6, %p13960_p5 }
  0x34   :  { %13968 = shalt.err (!%p13965_p7)
}
  0x35   :  { %s13969_s1 = scalar_lea.vmem %s53_s7, 9216  ;;  %p13974_p9 = scmp.lt.s32.totalorder %s53_s7, %s53_s7 }
  0x36   :  { %p13970_p8 = scmp.ne.s32.totalorder %s53_s7, %s13969_s1  ;;  %p13975_p10 = scmp.lt.s32.totalorder %s13969_s1, %s13969_s1 }
  0x38   :  { %p13976_p11 = por %p13975_p10, %p13974_p9 }
  0x3a   :  { %p13977_p12 = pnand %p13976_p11, %p13970_p8 }
  0x3c   :  { %13980 = shalt.err (!%p13977_p12)
}
  0x3d   :  { %58 = dma.hbm_to_vmem [thread:$0]  %s17071_s3, 9216, %s53_s7, [#allocation10], %s14036_s28, %s14036_s28, %s14037_s29  }
  0x3e   :  { %s13981_s20 = scalar_lea.hbm %s17072_s4, 1024 }
  0x3f   :  { %p13982_p13 = scmp.ne.s32.totalorder %s17072_s4, %s13981_s20  ;;  %p13985_p0 = scmp.lt.u32.totalorder %s13981_s20, %s17072_s4 }
  0x41   :  { %p13987_p1 = pnand %p13985_p0, %p13982_p13 }
  0x43   :  { %13990 = shalt.err (!%p13987_p1)
}
  0x44   :  { %s13991_s25 = scalar_lea.vmem %s65_s9, 1024  ;;  %p13996_p3 = scmp.lt.s32.totalorder %s65_s9, %s65_s9 }
  0x45   :  { %p13992_p2 = scmp.ne.s32.totalorder %s65_s9, %s13991_s25  ;;  %p13997_p4 = scmp.lt.s32.totalorder %s13991_s25, %s13991_s25 }
  0x47   :  { %p13998_p5 = por %p13997_p4, %p13996_p3 }
  0x49   :  { %p13999_p6 = pnand %p13998_p5, %p13992_p2 }
  0x4b   :  { %14002 = shalt.err (!%p13999_p6)
}
  0x4c   :  { %70 = dma.hbm_to_vmem [thread:$0]  %s17072_s4, 1024, %s65_s9, [#allocation13], %s14036_s28, %s14036_s28, %s14037_s29  }
  0x4d   :  { %14025 = dma.done.wait [#allocation7], 16  }
  0x4e   :  { %14026 = vsyncadd [#allocation7], 4294967280 }
  0x4f   :  { %14027 = dma.done.wait [#allocation5], 8192  }
  0x50   :  { %14028 = vsyncadd [#allocation5], 4294959104 }
  0x51   :  { %14029 = dma.done.wait [#allocation10], 18432  }
  0x52   :  { %14030 = vsyncadd [#allocation10], 4294948864 }
  0x53   :  { %14031 = dma.done.wait [#allocation13], 1024  }
  0x54   :  { %14032 = vsyncadd [#allocation13], 4294966272 }
  0x55   :  { %86 = sfence }
  0x56   :  { %v13742_v0 = vld [vmem:[#allocation9] sm:$0xff]   ;;  %v14044_v1 = vmov 0   ;;  %v13743_v2 = vld [vmem:[#allocation9 + $0x8] sm:$0xff]   ;;  %v13744_v3 = vld [vmem:[#allocation9 + $0x10] sm:$0xff]   ;;  %vm102_vm0 = vcmask 1040384   ;;  %s14172_s4 = sld [smem:[#allocation4]] }
  0x57   :  { %4556 = vmatprep.subr.bf16.mxu0 %v14044_v1  ;;  %93 = vst [vmem:[#allocation2] sm:$0xff] %v14044_v1  ;;  %94 = vst [vmem:[#allocation2 + $0x8] sm:$0xff] %v14044_v1  ;;  %v13745_v4 = vld [vmem:[#allocation9 + $0x18] sm:$0xff]   ;;  %v13746_v5 = vld [vmem:[#allocation9 + $0x20] sm:$0xff]   ;;  %vm103_vm1 = vsmask.f32 256 }
  0x58   :  { %95 = vst [vmem:[#allocation2 + $0x120] sm:$0xff] %v14044_v1  ;;  %96 = vst [vmem:[#allocation2 + $0x128] sm:$0xff] %v14044_v1  ;;  %4557 = vmatpush1.bf16.msra.mxu0 %v13742_v0  ;;  %vm213_vm2 = vsmask.f32 7938  ;;  %v13747_v9 = vld [vmem:[#allocation9 + $0x28] sm:$0xff]   ;;  %v323_v17 = vld [vmem:[#allocation8] sm:$0xff] }
  0x59   :  { %98 = vst [vmem:[#allocation2 + $0x110] sm:$0xff] %v14044_v1  ;;  %99 = vst [vmem:[#allocation2 + $0x118] sm:$0xff] %v14044_v1  ;;  %4558 = vmatprep.subr.bf16.mxu0 %v14044_v1  ;;  %v108_v13 = vld [vmem:[#allocation2 + $0x10] sm:$0x1]  ;;  %v218_v14 = vld [vmem:[#allocation2 + $0x18] sm:$0x1] }
  0x5a   :  { %100 = vst [vmem:[#allocation2 + $0x230] sm:$0xff] %v14044_v1  ;;  %101 = vst [vmem:[#allocation2 + $0x238] sm:$0xff] %v14044_v1  ;;  %v324_v18 = vld [vmem:[#allocation8 + $0x8] sm:$0xff]  ;;  %v111_v19 = vld [vmem:[#allocation2 + $0x20] sm:$0x1]  ;;  %vm902_vm5 = vcmask 1047552  }
  0x5b   :  { %vm14161_vm3 = vmand %vm102_vm0, %vm103_vm1  ;;  %v387_v20 = vmax.f32 %v323_v17, 0.0  ;;  %v388_v21 = vmax.f32 %v324_v18, 0.0  ;;  %v221_v23 = vld [vmem:[#allocation2 + $0x28] sm:$0x1]  ;;  %v325_v24 = vld [vmem:[#allocation8 + $0x10] sm:$0xff]  ;;  %vm516_vm7 = vcmask 31744  }
  0x5c   :  { %4559 = vmatpush1.bf16.msra.mxu0 %v13743_v2  ;;  %vm14168_vm4 = vmand %vm102_vm0, %vm213_vm2  ;;  %v109_v15 = vsel %vm14161_vm3, 0, %v108_v13  ;;  %v112_v22 = vsel %vm14161_vm3, 0, %v111_v19  ;;  %v13748_v25 = vld [vmem:[#allocation9 + $0x30] sm:$0xff]   ;;  %vm1224_vm6 = vsmask.f32 7424  ;;  %v326_v27 = vld [vmem:[#allocation8 + $0x18] sm:$0xff]  ;;  %v14187_v32 = vstv %s14172_s4 }
  0x5d   :  { %4560 = vmatprep.subr.bf16.mxu0 %v14044_v1  ;;  %v219_v16 = vsel %vm14168_vm4, 0, %v218_v14  ;;  %110 = vst [vmem:[#allocation2 + $0x10] sm:$0x1] %v109_v15  ;;  %113 = vst [vmem:[#allocation2 + $0x20] sm:$0x1] %v112_v22  ;;  %v222_v26 = vsel %vm14168_vm4, 0, %v221_v23  ;;  %v452_v38 = vadd.f32 %v14187_v32, %v387_v20  ;;  %v453_v39 = vadd.f32 %v14187_v32, %v388_v21 }
  0x5e   :  { %v105_v6 = vld [vmem:[#allocation2] sm:$0x1]  ;;  %v215_v8 = vld [vmem:[#allocation2 + $0x8] sm:$0x1]  ;;  %220 = vst [vmem:[#allocation2 + $0x18] sm:$0x1] %v219_v16  ;;  %vm14217_vm8 = vmand %vm902_vm5, %vm213_vm2 }
  0x5f   :  { %v106_v10 = vsel %vm14161_vm3, 0, %v105_v6  ;;  %v216_v12 = vsel %vm14168_vm4, 0, %v215_v8  ;;  %v389_v28 = vmax.f32 %v325_v24, 0.0  ;;  %223 = vst [vmem:[#allocation2 + $0x28] sm:$0x1] %v222_v26  ;;  %v390_v29 = vmax.f32 %v326_v27, 0.0  ;;  %vm16555_vm10 = vmpackc.low %vm516_vm7, %vm516_vm7 }
  0x60   :  { %4561 = vmatpush1.bf16.msra.mxu0 %v13744_v3  ;;  %107 = vst [vmem:[#allocation2] sm:$0x1] %v106_v10  ;;  %217 = vst [vmem:[#allocation2 + $0x8] sm:$0x1] %v216_v12  ;;  %v114_v30 = vld [vmem:[#allocation2 + $0x30] sm:$0x1] }
  0x61   :  { %4562 = vmatprep.subr.bf16.mxu0 %v14044_v1  ;;  %v327_v31 = vld [vmem:[#allocation8 + $0x20] sm:$0xff]  ;;  %v115_v33 = vsel %vm14161_vm3, 0, %v114_v30  ;;  %v224_v34 = vld [vmem:[#allocation2 + $0x38] sm:$0x1]  ;;  %v328_v35 = vld [vmem:[#allocation8 + $0x28] sm:$0xff]  ;;  %v454_v40 = vadd.f32 %v14187_v32, %v389_v28  ;;  %v455_v41 = vadd.f32 %v14187_v32, %v390_v29  ;;  %v517_v52 = vsel %vm516_vm7, %v452_v38, 0.0 }
  0x62   :  { %v391_v36 = vmax.f32 %v327_v31, 0.0  ;;  %v13749_v37 = vld [vmem:[#allocation9 + $0x38] sm:$0xff]   ;;  %116 = vst [vmem:[#allocation2 + $0x30] sm:$0x1] %v115_v33  ;;  %v117_v42 = vld [vmem:[#allocation2 + $0x40] sm:$0x1] }
  0x63   :  { %v227_v43 = vld [vmem:[#allocation2 + $0x48] sm:$0x1]  ;;  %v225_v45 = vsel %vm14168_vm4, 0, %v224_v34  ;;  %v392_v46 = vmax.f32 %v328_v35, 0.0  ;;  %v118_v48 = vsel %vm14161_vm3, 0, %v117_v42  ;;  %v518_v53 = vsel %vm516_vm7, %v453_v39, 0.0 }
  0x64   :  { %4563 = vmatpush1.bf16.msra.mxu0 %v13745_v4  ;;  %v456_v47 = vadd.f32 %v14187_v32, %v391_v36  ;;  %226 = vst [vmem:[#allocation2 + $0x38] sm:$0x1] %v225_v45  ;;  %119 = vst [vmem:[#allocation2 + $0x40] sm:$0x1] %v118_v48  ;;  %v13750_v54 = vld [vmem:[#allocation9 + $0x40] sm:$0xff]   ;;  %v581_v56 = vpack.c.bf16 %v518_v53, %v517_v52  ;;  %v519_v57 = vsel %vm516_vm7, %v454_v40, 0.0 }
  0x65   :  { %4564 = vmatprep.subr.bf16.mxu0 %v14044_v1  ;;  %v520_v58 = vsel %vm516_vm7, %v455_v41, 0.0  ;;  %v329_v59 = vld [vmem:[#allocation8 + $0x30] sm:$0xff]  ;;  %v330_v60 = vld [vmem:[#allocation8 + $0x38] sm:$0xff]  ;;  %v457_v0 = vadd.f32 %v14187_v32, %v392_v46  ;;  %v228_v8 = vsel %vm14168_vm4, 0, %v227_v43  ;;  %v331_v26 = vld [vmem:[#allocation8 + $0x40] sm:$0xff]  ;;  %vm1801_vm9 = vcmask 1046528  }
  0x66   :  { %v907_v62 = vld [vmem:[#allocation2 + $0x18] sm:$0x1]  ;;  %v582_v63 = vpack.c.bf16 %v520_v58, %v519_v57  ;;  %v521_v2 = vsel %vm516_vm7, %v456_v47, 0.0  ;;  %v614_v4 = vshrl.u32 %v581_v56, 16  ;;  %v913_v6 = vld [vmem:[#allocation2 + $0x28] sm:$0x1] }
  0x67   :  { %v14195_v44 = vld [vmem:[#allocation2] sm:$0xff]  ;;  %v1161_v49 = vld [vmem:[#allocation2 + $0x8] sm:$0x1]  ;;  %v522_v13 = vsel %vm516_vm7, %v457_v0, 0.0  ;;  %229 = vst [vmem:[#allocation2 + $0x48] sm:$0x1] %v228_v8 }
  0x68   :  { %4565 = vmatpush1.bf16.msra.mxu0 %v13746_v5  ;;  %v1226_v50 = vshrl.u32 %v14195_v44, 16  ;;  %v1228_v51 = vshll.u32 %v14195_v44, 16  ;;  %v1233_v55 = vshll.u32 %v1161_v49, 16  ;;  %v617_v5 = vshll.u32 %v581_v56, 16  ;;  %v120_v14 = vld [vmem:[#allocation2 + $0x50] sm:$0x1] }
  0x69   :  { %4566 = vmatprep.subr.bf16.mxu0 %v14044_v1  ;;  %v621_v10 = vshrl.u32 %v582_v63, 16  ;;  %v624_v12 = vshll.u32 %v582_v63, 16  ;;  %v616_v16 = vrot.slane %v614_v4, 7  ;;  %v583_v17 = vpack.c.bf16 %v522_v13, %v521_v2  ;;  %v230_v20 = vld [vmem:[#allocation2 + $0x58] sm:$0x1]  ;;  %v904_v22 = vld [vmem:[#allocation2 + $0x10] sm:$0xff] }
  0x6a   :  { %v1230_v61 = vrot.slane %v1228_v51, 1  ;;  %v1235_v3 = vrot.slane %v1233_v55, 1  ;;  %v393_v18 = vmax.f32 %v329_v59, 0.0  ;;  %v394_v19 = vmax.f32 %v330_v60, 0.0  ;;  %v332_v27 = vld [vmem:[#allocation8 + $0x48] sm:$0xff]  ;;  %v910_v31 = vld [vmem:[#allocation2 + $0x20] sm:$0xff] }
  0x6b   :  { %v623_v23 = vrot.slane %v621_v10, 7  ;;  %v121_v24 = vsel %vm14161_vm3, 0, %v120_v14  ;;  %v13751_v28 = vld [vmem:[#allocation9 + $0x48] sm:$0xff]   ;;  %v619_v29 = vor.u32 %v617_v5, %v616_v16  ;;  %v908_v30 = vsel %vm14161_vm3, %v616_v16, %v907_v62  ;;  %v916_v46 = vld [vmem:[#allocation2 + $0x30] sm:$0xff]  ;;  %v123_v48 = vld [vmem:[#allocation2 + $0x60] sm:$0x1] }
  0x6c   :  { %4567 = vmatpush1.bf16.msra.mxu0 %v13747_v9  ;;  %v1231_v9 = vor.u32 %v1230_v61, %v1226_v50  ;;  %v628_v33 = vshrl.u32 %v583_v17, 16  ;;  %v631_v34 = vshll.u32 %v583_v17, 16  ;;  %122 = vst [vmem:[#allocation2 + $0x50] sm:$0x1] %v121_v24  ;;  %909 = vst [vmem:[#allocation2 + $0x18] sm:$0x1] %v908_v30  ;;  %v458_v38 = vadd.f32 %v14187_v32, %v393_v18 }
  0x6d   :  { %4568 = vmatprep.subr.bf16.mxu0 %v14044_v1  ;;  %v626_v35 = vor.u32 %v624_v12, %v623_v23  ;;  %v914_v36 = vsel %vm14161_vm3, %v623_v23, %v913_v6  ;;  %v459_v39 = vadd.f32 %v14187_v32, %v394_v19  ;;  %v14235_v40 = vsel %vm14217_vm8, %v619_v29, %v904_v22  ;;  %v13752_v49 = vld [vmem:[#allocation9 + $0x50] sm:$0xff]   ;;  %v233_v58 = vld [vmem:[#allocation2 + $0x68] sm:$0x1]  ;;  %v334_v61 = vld [vmem:[#allocation8 + $0x58] sm:$0xff]  ;;  %s12271_s28 = sld [smem:[#allocation4 + $0x1]]  ;;  %s12272_s29 = sld [smem:[#allocation4 + $0x2]] }
  0x6e   :  { %v1236_v21 = vsel %vm1224_vm6, %v1231_v9, %v1235_v3  ;;  %915 = vst [vmem:[#allocation2 + $0x28] sm:$0x1] %v914_v36  ;;  %v630_v41 = vrot.slane %v628_v33, 7  ;;  %v395_v42 = vmax.f32 %v331_v26, 0.0  ;;  %v396_v43 = vmax.f32 %v332_v27, 0.0  ;;  %906 = vst [vmem:[#allocation2 + $0x10] sm:$0xff] %v14235_v40 }
  0x6f   :  { %4588 = vmatprep.mubr.bf16.mxu0 %v1236_v21  ;;  %v14240_v45 = vsel %vm14217_vm8, %v626_v35, %v910_v31  ;;  %v523_v47 = vsel %vm516_vm7, %v458_v38, 0.0  ;;  %v524_v52 = vsel %vm516_vm7, %v459_v39, 0.0  ;;  %v124_v57 = vsel %vm14161_vm3, 0, %v123_v48  ;;  %v333_v60 = vld [vmem:[#allocation8 + $0x50] sm:$0xff]  ;;  %v13753_v62 = vld [vmem:[#allocation9 + $0x58] sm:$0xff]   ;;  %v922_v8 = vld [vmem:[#allocation2 + $0x40] sm:$0xff] }
  0x70   :  { %4569 = vmatpush1.bf16.msra.mxu0 %v13748_v25  ;;  %v231_v25 = vsel %vm14168_vm4, 0, %v230_v20  ;;  %912 = vst [vmem:[#allocation2 + $0x20] sm:$0xff] %v14240_v45  ;;  %v633_v50 = vor.u32 %v631_v34, %v630_v41  ;;  %v460_v53 = vadd.f32 %v14187_v32, %v395_v42  ;;  %v584_v56 = vpack.c.bf16 %v524_v52, %v523_v47  ;;  %v925_v3 = vld [vmem:[#allocation2 + $0x48] sm:$0x1]  ;;  %v126_v14 = vld [vmem:[#allocation2 + $0x70] sm:$0x1] }
  0x71   :  { %4570 = vmatprep.subr.bf16.mxu0 %v14044_v1  ;;  %232 = vst [vmem:[#allocation2 + $0x58] sm:$0x1] %v231_v25  ;;  %125 = vst [vmem:[#allocation2 + $0x60] sm:$0x1] %v124_v57  ;;  %v234_v5 = vsel %vm14168_vm4, 0, %v233_v58  ;;  %v397_v9 = vmax.f32 %v333_v60, 0.0 }
  0x72   :  { %v14252_v55 = vsel %vm14217_vm8, %v633_v50, %v916_v46  ;;  %v525_v59 = vsel %vm516_vm7, %v460_v53, 0.0  ;;  %v635_v63 = vshrl.u32 %v584_v56, 16  ;;  %v638_v0 = vshll.u32 %v584_v56, 16  ;;  %235 = vst [vmem:[#allocation2 + $0x68] sm:$0x1] %v234_v5  ;;  %v13754_v16 = vld [vmem:[#allocation9 + $0x60] sm:$0xff]  }
  0x73   :  { %918 = vst [vmem:[#allocation2 + $0x30] sm:$0xff] %v14252_v55  ;;  %v398_v10 = vmax.f32 %v334_v61, 0.0  ;;  %v462_v19 = vadd.f32 %v14187_v32, %v397_v9  ;;  %v236_v23 = vld [vmem:[#allocation2 + $0x78] sm:$0x1]  ;;  %v335_v24 = vld [vmem:[#allocation8 + $0x60] sm:$0xff]  ;;  %v928_v26 = vld [vmem:[#allocation2 + $0x50] sm:$0xff] }
  0x74   :  { %4571 = vmatpush1.bf16.msra.mxu0 %v13749_v37  ;;  %v919_v37 = vld [vmem:[#allocation2 + $0x38] sm:$0x1]  ;;  %v637_v6 = vrot.slane %v635_v63, 7  ;;  %v1240_v29 = vshll.u32 %v14235_v40, 16  ;;  %v336_v31 = vld [vmem:[#allocation8 + $0x68] sm:$0xff]  ;;  %v399_v38 = vmax.f32 %v335_v24, 0.0 }
  0x75   :  { %4572 = vmatprep.subr.bf16.mxu0 %v14044_v1  ;;  %v920_v51 = vsel %vm14161_vm3, %v630_v41, %v919_v37  ;;  %v463_v22 = vadd.f32 %v14187_v32, %v398_v10  ;;  %v527_v27 = vsel %vm516_vm7, %v462_v19, 0.0  ;;  %v129_v33 = vld [vmem:[#allocation2 + $0x80] sm:$0x1]  ;;  %v13755_v34 = vld [vmem:[#allocation9 + $0x68] sm:$0xff]   ;;  %v237_v37 = vsel %vm14168_vm4, 0, %v236_v23  ;;  %v337_v46 = vld [vmem:[#allocation8 + $0x70] sm:$0xff] }
  0x76   :  { %921 = vst [vmem:[#allocation2 + $0x38] sm:$0x1] %v920_v51  ;;  %v640_v17 = vor.u32 %v638_v0, %v637_v6  ;;  %v926_v18 = vsel %vm14161_vm3, %v637_v6, %v925_v3  ;;  %v1238_v39 = vshrl.u32 %v14235_v40, 16  ;;  %238 = vst [vmem:[#allocation2 + $0x78] sm:$0x1] %v237_v37  ;;  %v400_v48 = vmax.f32 %v336_v31, 0.0 }
  0x77   :  { %927 = vst [vmem:[#allocation2 + $0x48] sm:$0x1] %v926_v18  ;;  %v528_v36 = vsel %vm516_vm7, %v463_v22, 0.0  ;;  %v1163_v47 = vld [vmem:[#allocation2 + $0x18] sm:$0x1]  ;;  %v1252_v52 = vshll.u32 %v14240_v45, 16 }
  0x78   :  { %4573 = vmatpush1.bf16.msra.mxu0 %v13750_v54  ;;  %v461_v54 = vadd.f32 %v14187_v32, %v396_v43  ;;  %v931_v21 = vld [vmem:[#allocation2 + $0x58] sm:$0x1]  ;;  %v14269_v25 = vsel %vm14217_vm8, %v640_v17, %v922_v8  ;;  %v586_v42 = vpack.c.bf16 %v528_v36, %v527_v27  ;;  %v239_v43 = vld [vmem:[#allocation2 + $0x88] sm:$0x1]  ;;  %v132_v51 = vld [vmem:[#allocation2 + $0x90] sm:$0x1]  ;;  %v465_v61 = vadd.f32 %v14187_v32, %v400_v48 }
  0x79   :  { %4574 = vmatprep.subr.bf16.mxu0 %v14044_v1  ;;  %924 = vst [vmem:[#allocation2 + $0x40] sm:$0xff] %v14269_v25  ;;  %v338_v50 = vld [vmem:[#allocation8 + $0x78] sm:$0xff]  ;;  %v130_v56 = vsel %vm14161_vm3, 0, %v129_v33  ;;  %v13756_v58 = vld [vmem:[#allocation9 + $0x70] sm:$0xff]   ;;  %v937_v60 = vld [vmem:[#allocation2 + $0x68] sm:$0x1] }
  0x7a   :  { %v526_v2 = vsel %vm516_vm7, %v461_v54, 0.0  ;;  %v649_v53 = vshrl.u32 %v586_v42, 16  ;;  %v652_v54 = vshll.u32 %v586_v42, 16  ;;  %v242_v57 = vld [vmem:[#allocation2 + $0x98] sm:$0x1]  ;;  %v240_v63 = vsel %vm14168_vm4, 0, %v239_v43 }
  0x7b   :  { %v585_v4 = vpack.c.bf16 %v526_v2, %v525_v59  ;;  %v1242_v59 = vrot.slane %v1240_v29, 1  ;;  %131 = vst [vmem:[#allocation2 + $0x80] sm:$0x1] %v130_v56  ;;  %v1245_v0 = vshll.u32 %v1163_v47, 16  ;;  %241 = vst [vmem:[#allocation2 + $0x88] sm:$0x1] %v240_v63 }
  0x7c   :  { %4575 = vmatpush1.bf16.msra.mxu0 %v13751_v28  ;;  %v127_v28 = vsel %vm14161_vm3, 0, %v126_v14  ;;  %v651_v2 = vrot.slane %v649_v53, 7  ;;  %v401_v3 = vmax.f32 %v337_v46, 0.0  ;;  %v339_v5 = vld [vmem:[#allocation8 + $0x80] sm:$0xff]  ;;  %v340_v6 = vld [vmem:[#allocation8 + $0x88] sm:$0xff]  ;;  %v530_v9 = vsel %vm516_vm7, %v465_v61, 0.0 }
  0x7d   :  { %4576 = vmatprep.subr.bf16.mxu0 %v14044_v1  ;;  %v642_v12 = vshrl.u32 %v585_v4, 16  ;;  %v645_v13 = vshll.u32 %v585_v4, 16  ;;  %128 = vst [vmem:[#allocation2 + $0x70] sm:$0x1] %v127_v28  ;;  %v402_v4 = vmax.f32 %v338_v50, 0.0  ;;  %v934_v8 = vld [vmem:[#allocation2 + $0x60] sm:$0xff]  ;;  %v1243_v24 = vor.u32 %v1242_v59, %v1238_v39 }
  0x7e   :  { %v133_v10 = vsel %vm14161_vm3, 0, %v132_v51  ;;  %v654_v14 = vor.u32 %v652_v54, %v651_v2  ;;  %v13757_v18 = vld [vmem:[#allocation9 + $0x78] sm:$0xff]   ;;  %v1165_v19 = vld [vmem:[#allocation2 + $0x28] sm:$0x1]  ;;  %v403_v22 = vmax.f32 %v339_v5, 0.0  ;;  %v404_v23 = vmax.f32 %v340_v6, 0.0 }
  0x7f   :  { %v644_v20 = vrot.slane %v642_v12, 7  ;;  %v243_v12 = vsel %vm14168_vm4, 0, %v242_v57  ;;  %134 = vst [vmem:[#allocation2 + $0x90] sm:$0x1] %v133_v10  ;;  %v135_v29 = vld [vmem:[#allocation2 + $0xa0] sm:$0x1] }
  0x80   :  { %4577 = vmatpush1.bf16.msra.mxu0 %v13752_v49  ;;  %v464_v49 = vadd.f32 %v14187_v32, %v399_v38  ;;  %244 = vst [vmem:[#allocation2 + $0x98] sm:$0x1] %v243_v12  ;;  %v14310_v27 = vsel %vm14217_vm8, %v654_v14, %v934_v8  ;;  %v1264_v31 = vshll.u32 %v14252_v55, 16  ;;  %v13758_v36 = vld [vmem:[#allocation9 + $0x80] sm:$0xff]   ;;  %v1257_v37 = vshll.u32 %v1165_v19, 16  ;;  %v341_v43 = vld [vmem:[#allocation8 + $0x90] sm:$0xff] }
  0x81   :  { %4578 = vmatprep.subr.bf16.mxu0 %v14044_v1  ;;  %v647_v30 = vor.u32 %v645_v13, %v644_v20  ;;  %v932_v35 = vsel %vm14161_vm3, %v644_v20, %v931_v21  ;;  %v1250_v13 = vshrl.u32 %v14240_v45, 16  ;;  %v466_v20 = vadd.f32 %v14187_v32, %v401_v3  ;;  %936 = vst [vmem:[#allocation2 + $0x60] sm:$0xff] %v14310_v27  ;;  %v245_v50 = vld [vmem:[#allocation2 + $0xa8] sm:$0x1]  ;;  %v1167_v61 = vld [vmem:[#allocation2 + $0x38] sm:$0x1] }
  0x82   :  { %933 = vst [vmem:[#allocation2 + $0x58] sm:$0x1] %v932_v35  ;;  %v467_v21 = vadd.f32 %v14187_v32, %v402_v4  ;;  %v468_v42 = vadd.f32 %v14187_v32, %v403_v22  ;;  %v469_v48 = vadd.f32 %v14187_v32, %v404_v23  ;;  %v1262_v56 = vshrl.u32 %v14252_v55, 16  ;;  %v949_v63 = vld [vmem:[#allocation2 + $0x88] sm:$0x1]  ;;  %v946_v10 = vld [vmem:[#allocation2 + $0x80] sm:$0xff] }
  0x83   :  { %v14285_v41 = vsel %vm14217_vm8, %v647_v30, %v928_v26  ;;  %v1247_v26 = vrot.slane %v1245_v0, 1  ;;  %v1254_v30 = vrot.slane %v1252_v52, 1  ;;  %v531_v35 = vsel %vm516_vm7, %v466_v20, 0.0  ;;  %v13759_v6 = vld [vmem:[#allocation9 + $0x88] sm:$0xff]   ;;  %s12273_s30 = sld [smem:[#allocation4 + $0x3]]  ;;  %s12274_s6 = sld [smem:[#allocation4 + $0x4]] }
  0x84   :  { %4579 = vmatpush1.bf16.msra.mxu0 %v13753_v62  ;;  %930 = vst [vmem:[#allocation2 + $0x50] sm:$0xff] %v14285_v41  ;;  %v529_v62 = vsel %vm516_vm7, %v464_v49, 0.0  ;;  %v532_v39 = vsel %vm516_vm7, %v467_v21, 0.0  ;;  %v940_v46 = vld [vmem:[#allocation2 + $0x70] sm:$0xff]  ;;  %v136_v49 = vsel %vm14161_vm3, 0, %v135_v29  ;;  %v533_v54 = vsel %vm516_vm7, %v468_v42, 0.0 }
  0x85   :  { %4580 = vmatprep.subr.bf16.mxu0 %v14044_v1  ;;  %v587_v17 = vpack.c.bf16 %v530_v9, %v529_v62  ;;  %v588_v47 = vpack.c.bf16 %v532_v39, %v531_v35  ;;  %v1248_v51 = vsel %vm1224_vm6, %v1243_v24, %v1247_v26  ;;  %137 = vst [vmem:[#allocation2 + $0xa0] sm:$0x1] %v136_v49  ;;  %v534_v59 = vsel %vm516_vm7, %v469_v48, 0.0  ;;  %v138_v9 = vld [vmem:[#allocation2 + $0xb0] sm:$0x1]  ;;  %v343_v26 = vld [vmem:[#allocation8 + $0xa0] sm:$0xff] }
  0x86   :  { %v589_v0 = vpack.c.bf16 %v534_v59, %v533_v54  ;;  %v405_v3 = vmax.f32 %v341_v43, 0.0  ;;  %v1255_v4 = vor.u32 %v1254_v30, %v1250_v13  ;;  %v1259_v5 = vrot.slane %v1257_v37, 1  ;;  %v13760_v29 = vld [vmem:[#allocation9 + $0x90] sm:$0xff]   ;;  %v141_v35 = vld [vmem:[#allocation2 + $0xc0] sm:$0x1]  ;;  %v13761_v49 = vld [vmem:[#allocation9 + $0x98] sm:$0xff]  }
  0x87   :  { %v656_v28 = vshrl.u32 %v587_v17, 16  ;;  %v659_v33 = vshll.u32 %v587_v17, 16  ;;  %v663_v57 = vshrl.u32 %v588_v47, 16  ;;  %v1266_v8 = vrot.slane %v1264_v31, 1  ;;  %v955_v21 = vld [vmem:[#allocation2 + $0x98] sm:$0x1] }
  0x88   :  { %4581 = vmatpush1.bf16.msra.mxu0 %v13754_v16  ;;  %v938_v16 = vsel %vm14161_vm3, %v651_v2, %v937_v60  ;;  %v342_v60 = vld [vmem:[#allocation8 + $0x98] sm:$0xff]  ;;  %v246_v2 = vsel %vm14168_vm4, 0, %v245_v50  ;;  %v670_v12 = vshrl.u32 %v589_v0, 16  ;;  %v673_v14 = vshll.u32 %v589_v0, 16  ;;  %v952_v31 = vld [vmem:[#allocation2 + $0x90] sm:$0xff]  ;;  %s14045_s7 = smov [#allocation14]  }
  0x89   :  { %4582 = vmatprep.subr.bf16.mxu0 %v14044_v1  ;;  %939 = vst [vmem:[#allocation2 + $0x68] sm:$0x1] %v938_v16  ;;  %v658_v38 = vrot.slane %v656_v28, 7  ;;  %247 = vst [vmem:[#allocation2 + $0xa8] sm:$0x1] %v246_v2  ;;  %v406_v16 = vmax.f32 %v342_v60, 0.0  ;;  %v470_v17 = vadd.f32 %v14187_v32, %v405_v3  ;;  %v1267_v37 = vor.u32 %v1266_v8, %v1262_v56 }
  0x8a   :  { %v1269_v19 = vshll.u32 %v1167_v61, 16  ;;  %v672_v22 = vrot.slane %v670_v12, 7  ;;  %v139_v24 = vsel %vm14161_vm3, 0, %v138_v9  ;;  %v344_v28 = vld [vmem:[#allocation8 + $0xa8] sm:$0xff]  ;;  %v1276_v48 = vshll.u32 %v14269_v25, 16  ;;  %v345_v54 = vld [vmem:[#allocation8 + $0xb0] sm:$0xff] }
  0x8b   :  { %v661_v52 = vor.u32 %v659_v33, %v658_v38  ;;  %v471_v23 = vadd.f32 %v14187_v32, %v406_v16  ;;  %v535_v33 = vsel %vm516_vm7, %v470_v17, 0.0  ;;  %140 = vst [vmem:[#allocation2 + $0xb0] sm:$0x1] %v139_v24  ;;  %v1169_v56 = vld [vmem:[#allocation2 + $0x48] sm:$0x1]  ;;  %v1274_v0 = vshrl.u32 %v14269_v25, 16 }
  0x8c   :  { %4583 = vmatpush1.bf16.msra.mxu0 %v13755_v34  ;;  %v943_v34 = vld [vmem:[#allocation2 + $0x78] sm:$0x1]  ;;  %v956_v39 = vsel %vm14161_vm3, %v672_v22, %v955_v21  ;;  %v1271_v42 = vrot.slane %v1269_v19, 1  ;;  %v144_v61 = vld [vmem:[#allocation2 + $0xd0] sm:$0x1]  ;;  %v409_v9 = vmax.f32 %v345_v54, 0.0 }
  0x8d   :  { %4584 = vmatprep.subr.bf16.mxu0 %v14044_v1  ;;  %v944_v53 = vsel %vm14161_vm3, %v658_v38, %v943_v34  ;;  %v14330_v62 = vsel %vm14217_vm8, %v661_v52, %v940_v46  ;;  %v675_v38 = vor.u32 %v673_v14, %v672_v22  ;;  %957 = vst [vmem:[#allocation2 + $0x98] sm:$0x1] %v956_v39  ;;  %v536_v43 = vsel %vm516_vm7, %v471_v23, 0.0  ;;  %v958_v12 = vld [vmem:[#allocation2 + $0xa0] sm:$0xff]  ;;  %v1171_v19 = vld [vmem:[#allocation2 + $0x58] sm:$0x1] }
  0x8e   :  { %945 = vst [vmem:[#allocation2 + $0x78] sm:$0x1] %v944_v53  ;;  %942 = vst [vmem:[#allocation2 + $0x70] sm:$0xff] %v14330_v62  ;;  %v407_v46 = vmax.f32 %v343_v26, 0.0  ;;  %v142_v52 = vsel %vm14161_vm3, 0, %v141_v35  ;;  %v145_v17 = vsel %vm14161_vm3, 0, %v144_v61  ;;  %v474_v22 = vadd.f32 %v14187_v32, %v409_v9 }
  0x8f   :  { %v14359_v50 = vsel %vm14217_vm8, %v675_v38, %v952_v31  ;;  %v251_v53 = vld [vmem:[#allocation2 + $0xc8] sm:$0x1]  ;;  %143 = vst [vmem:[#allocation2 + $0xc0] sm:$0x1] %v142_v52  ;;  %146 = vst [vmem:[#allocation2 + $0xd0] sm:$0x1] %v145_v17 }
  0x90   :  { %4585 = vmatpush1.bf16.msra.mxu0 %v13756_v58  ;;  %v666_v58 = vshll.u32 %v588_v47, 16  ;;  %v408_v47 = vmax.f32 %v344_v28, 0.0  ;;  %954 = vst [vmem:[#allocation2 + $0x90] sm:$0xff] %v14359_v50  ;;  %v961_v2 = vld [vmem:[#allocation2 + $0xa8] sm:$0x1]  ;;  %v347_v23 = vld [vmem:[#allocation8 + $0xc0] sm:$0xff] }
  0x91   :  { %4586 = vmatprep.subr.bf16.mxu0 %v14044_v1  ;;  %v348_v24 = vld [vmem:[#allocation8 + $0xc8] sm:$0xff]  ;;  %v1286_v35 = vshrl.u32 %v14285_v41, 16  ;;  %v260_v9 = vld [vmem:[#allocation2 + $0xf8] sm:$0x1]  ;;  %vm12186_vm11 = vcmask 64512   ;;  %s12256_s8 = sshll.u32 %s14045_s7, 4  ;;  %s12257_s8 = int_to_ptr.vmem [resolvable:$true] %s12256_s8 }
  0x92   :  { %v473_v60 = vadd.f32 %v14187_v32, %v408_v47  ;;  %v13763_v26 = vld [vmem:[#allocation9 + $0xa8] sm:$0xff]   ;;  %v964_v47 = vld [vmem:[#allocation2 + $0xb0] sm:$0xff]  ;;  %s14003_s9 = scalar_lea.vmem %s12257_s8, 8192  ;;  %p14008_p8 = scmp.lt.s32.totalorder %s12257_s8, %s12257_s8 }
  0x93   :  { %p14004_p7 = scmp.ne.s32.totalorder %s12257_s8, %s14003_s9  ;;  %p14009_p9 = scmp.lt.s32.totalorder %s14003_s9, %s14003_s9 }
  0x94   :  { %4587 = vmatpush1.bf16.msra.mxu0 %v13757_v18  ;;  %v248_v18 = vld [vmem:[#allocation2 + $0xb8] sm:$0x1] }
  0x95   :  { %4845 = vmatprep.subr.bf16.mxu0 %v14044_v1  ;;  %v249_v34 = vsel %vm14168_vm4, 0, %v248_v18  ;;  %v254_v18 = vld [vmem:[#allocation2 + $0xd8] sm:$0x1]  ;;  %p14010_p10 = por %p14009_p9, %p14008_p8 }
  0x96   :  { %250 = vst [vmem:[#allocation2 + $0xb8] sm:$0x1] %v249_v34  ;;  %v257_v34 = vld [vmem:[#allocation2 + $0xe8] sm:$0x1]  ;;  %v255_v38 = vsel %vm14168_vm4, 0, %v254_v18  ;;  %v13765_v18 = vld [vmem:[#allocation9 + $0xb8] sm:$0xff]  }
  0x97   :  { %4589 = vmatmul.mubr.bf16.vlgmr.msra.gmra.mrb[0].mxu0 %v14195_v44  ;;  %v665_v44 = vrot.slane %v663_v57, 7  ;;  %v346_v57 = vld [vmem:[#allocation8 + $0xb8] sm:$0xff]  ;;  %256 = vst [vmem:[#allocation2 + $0xd8] sm:$0x1] %v255_v38  ;;  %v258_v61 = vsel %vm14168_vm4, 0, %v257_v34  ;;  %v352_v34 = vld [vmem:[#allocation8 + $0xe8] sm:$0xff]  ;;  %p14011_p11 = pnand %p14010_p10, %p14004_p7 }
  0x98   :  { %4846 = vmatpush1.bf16.msra.mxu0 %v13758_v36  ;;  %4596 = vmatprep.mubr.bf16.mxu0 %v1248_v51  ;;  %v1260_v36 = vsel %vm1224_vm6, %v1255_v4, %v1259_v5  ;;  %v590_v51 = vpack.c.bf16 %v536_v43, %v535_v33  ;;  %v252_v4 = vsel %vm14168_vm4, 0, %v251_v53  ;;  %v1278_v5 = vrot.slane %v1276_v48, 1  ;;  %v147_v33 = vld [vmem:[#allocation2 + $0xe0] sm:$0x1]  ;;  %v350_v53 = vld [vmem:[#allocation8 + $0xd8] sm:$0xff] }
  0x99   :  { %4847 = vmatprep.subr.bf16.mxu0 %v14044_v1  ;;  %v668_v20 = vor.u32 %v666_v58, %v665_v44  ;;  %v950_v13 = vsel %vm14161_vm3, %v665_v44, %v949_v63  ;;  %v1272_v63 = vsel %vm1224_vm6, %v1267_v37, %v1271_v42  ;;  %v538_v44 = vsel %vm516_vm7, %v473_v60, 0.0  ;;  %253 = vst [vmem:[#allocation2 + $0xc8] sm:$0x1] %v252_v4 }
  0x9a   :  { %951 = vst [vmem:[#allocation2 + $0x88] sm:$0x1] %v950_v13  ;;  %v677_v58 = vshrl.u32 %v590_v51, 16  ;;  %v680_v59 = vshll.u32 %v590_v51, 16  ;;  %v410_v16 = vmax.f32 %v346_v57, 0.0  ;;  %v1279_v39 = vor.u32 %v1278_v5, %v1274_v0 }
  0x9b   :  { %v14344_v30 = vsel %vm14217_vm8, %v668_v20, %v946_v10  ;;  %v1281_v10 = vshll.u32 %v1169_v56, 16  ;;  %v1288_v20 = vshll.u32 %v14285_v41, 16  ;;  %v412_v51 = vmax.f32 %v348_v24, 0.0  ;;  %259 = vst [vmem:[#allocation2 + $0xe8] sm:$0x1] %v258_v61 }
  0x9c   :  { %4848 = vmatpush1.bf16.msra.mxu0 %v13759_v6  ;;  %948 = vst [vmem:[#allocation2 + $0x80] sm:$0xff] %v14344_v30  ;;  %v13762_v6 = vld [vmem:[#allocation9 + $0xa0] sm:$0xff]   ;;  %v679_v8 = vrot.slane %v677_v58, 7  ;;  %v475_v31 = vadd.f32 %v14187_v32, %v410_v16  ;;  %v148_v52 = vsel %vm14161_vm3, 0, %v147_v33  ;;  %v1293_v56 = vshll.u32 %v1171_v19, 16 }
  0x9d   :  { %4849 = vmatprep.subr.bf16.mxu0 %v14044_v1  ;;  %v967_v37 = vld [vmem:[#allocation2 + $0xb8] sm:$0x1]  ;;  %v1283_v42 = vrot.slane %v1281_v10, 1  ;;  %v1290_v54 = vrot.slane %v1288_v20, 1  ;;  %149 = vst [vmem:[#allocation2 + $0xe0] sm:$0x1] %v148_v52  ;;  %v477_v60 = vadd.f32 %v14187_v32, %v412_v51 }
  0x9e   :  { %v682_v13 = vor.u32 %v680_v59, %v679_v8  ;;  %v962_v21 = vsel %vm14161_vm3, %v679_v8, %v961_v2  ;;  %v540_v48 = vsel %vm516_vm7, %v475_v31, 0.0  ;;  %v13764_v2 = vld [vmem:[#allocation9 + $0xb0] sm:$0xff]   ;;  %v414_v4 = vmax.f32 %v350_v53, 0.0  ;;  %v1173_v19 = vld [vmem:[#allocation2 + $0x68] sm:$0x1]  ;;  %v14421_v33 = vld [vmem:[#allocation2 + $0x120] sm:$0xff] }
  0x9f   :  { %4597 = vmatmul.mubr.bf16.gmra.mrb[4].mxu0 %v14235_v40  ;;  %v472_v40 = vadd.f32 %v14187_v32, %v407_v46  ;;  %963 = vst [vmem:[#allocation2 + $0xa8] sm:$0x1] %v962_v21  ;;  %v539_v46 = vsel %vm516_vm7, %v474_v22, 0.0  ;;  %v1284_v5 = vsel %vm1224_vm6, %v1279_v39, %v1283_v42  ;;  %v1295_v10 = vrot.slane %v1293_v56, 1  ;;  %v351_v22 = vld [vmem:[#allocation8 + $0xe0] sm:$0xff]  ;;  %v976_v51 = vld [vmem:[#allocation2 + $0xd0] sm:$0xff] }
  0xa0   :  { %4604 = vmatprep.mubr.bf16.mxu0 %v1260_v36  ;;  %4850 = vmatpush1.bf16.msra.mxu0 %v13760_v29  ;;  %v14385_v36 = vsel %vm14217_vm8, %v682_v13, %v958_v12  ;;  %v592_v58 = vpack.c.bf16 %v540_v48, %v539_v46  ;;  %v973_v12 = vld [vmem:[#allocation2 + $0xc8] sm:$0x1]  ;;  %v542_v16 = vsel %vm516_vm7, %v477_v60, 0.0  ;;  %v479_v21 = vadd.f32 %v14187_v32, %v414_v4  ;;  %v979_v38 = vld [vmem:[#allocation2 + $0xd8] sm:$0x1]  ;;  %v13766_v56 = vld [vmem:[#allocation9 + $0xc0] sm:$0xff]  }
  0xa1   :  { %4851 = vmatprep.subr.bf16.mxu0 %v14044_v1  ;;  %v537_v3 = vsel %vm516_vm7, %v472_v40, 0.0  ;;  %960 = vst [vmem:[#allocation2 + $0xa0] sm:$0xff] %v14385_v36  ;;  %v415_v42 = vmax.f32 %v351_v22, 0.0  ;;  %v416_v52 = vmax.f32 %v352_v34, 0.0  ;;  %v269_v60 = vld [vmem:[#allocation2 + $0x128] sm:$0x1] }
  0xa2   :  { %v591_v14 = vpack.c.bf16 %v538_v44, %v537_v3  ;;  %v694_v8 = vshll.u32 %v592_v58, 16  ;;  %v150_v44 = vld [vmem:[#allocation2 + $0xf0] sm:$0x1]  ;;  %v544_v39 = vsel %vm516_vm7, %v479_v21, 0.0  ;;  %v356_v21 = vld [vmem:[#allocation8 + $0x108] sm:$0xff]  ;;  %v1310_v34 = vshrl.u32 %v14330_v62, 16 }
  0xa3   :  { %v480_v53 = vadd.f32 %v14187_v32, %v415_v42  ;;  %v162_v4 = vld [vmem:[#allocation2 + $0x130] sm:$0x1]  ;;  %v165_v22 = vld [vmem:[#allocation2 + $0x140] sm:$0x1] }
  0xa4   :  { %4852 = vmatpush1.bf16.msra.mxu0 %v13761_v49  ;;  %v684_v28 = vshrl.u32 %v591_v14, 16  ;;  %v687_v29 = vshll.u32 %v591_v14, 16  ;;  %v411_v49 = vmax.f32 %v347_v23, 0.0  ;;  %v970_v23 = vld [vmem:[#allocation2 + $0xc0] sm:$0xff] }
  0xa5   :  { %4853 = vmatprep.subr.bf16.mxu0 %v14044_v1 }
  0xa6   :  { %v686_v43 = vrot.slane %v684_v28, 7  ;;  %v476_v59 = vadd.f32 %v14187_v32, %v411_v49  ;;  %v261_v28 = vsel %vm14168_vm4, 0, %v260_v9  ;;  %v1305_v49 = vshll.u32 %v1173_v19, 16  ;;  %v272_v9 = vld [vmem:[#allocation2 + $0x138] sm:$0x1] }
  0xa7   :  { %4605 = vmatmul.mubr.bf16.gmra.mrb[8].mxu0 %v14240_v45  ;;  %v349_v45 = vld [vmem:[#allocation8 + $0xd0] sm:$0xff]  ;;  %262 = vst [vmem:[#allocation2 + $0xf8] sm:$0x1] %v261_v28 }
  0xa8   :  { %4612 = vmatprep.mubr.bf16.mxu0 %v1272_v63  ;;  %4854 = vmatpush1.bf16.msra.mxu0 %v13762_v6  ;;  %v689_v40 = vor.u32 %v687_v29, %v686_v43  ;;  %v968_v57 = vsel %vm14161_vm3, %v686_v43, %v967_v37  ;;  %v1300_v63 = vshll.u32 %v14310_v27, 16  ;;  %v413_v3 = vmax.f32 %v349_v45, 0.0 }
  0xa9   :  { %4855 = vmatprep.subr.bf16.mxu0 %v14044_v1  ;;  %969 = vst [vmem:[#allocation2 + $0xb8] sm:$0x1] %v968_v57  ;;  %v691_v6 = vshrl.u32 %v592_v58, 16  ;;  %v541_v14 = vsel %vm516_vm7, %v476_v59, 0.0 }
  0xaa   :  { %v14404_v0 = vsel %vm14217_vm8, %v689_v40, %v964_v47  ;;  %v478_v17 = vadd.f32 %v14187_v32, %v413_v3  ;;  %v593_v13 = vpack.c.bf16 %v542_v16, %v541_v14  ;;  %v1302_v43 = vrot.slane %v1300_v63, 1  ;;  %v985_v63 = vld [vmem:[#allocation2 + $0xe8] sm:$0x1]  ;;  %v1175_v14 = vld [vmem:[#allocation2 + $0x78] sm:$0x1]  ;;  %v982_v16 = vld [vmem:[#allocation2 + $0xe0] sm:$0xff] }
  0xab   :  { %966 = vst [vmem:[#allocation2 + $0xb0] sm:$0xff] %v14404_v0  ;;  %v693_v20 = vrot.slane %v691_v6, 7  ;;  %v1312_v40 = vshll.u32 %v14330_v62, 16  ;;  %v545_v3 = vsel %vm516_vm7, %v480_v53, 0.0  ;;  %v357_v53 = vld [vmem:[#allocation8 + $0x110] sm:$0xff] }
  0xac   :  { %4856 = vmatpush1.bf16.msra.mxu0 %v13763_v26  ;;  %v543_v24 = vsel %vm516_vm7, %v478_v17, 0.0  ;;  %v151_v26 = vsel %vm14161_vm3, 0, %v150_v44  ;;  %v698_v31 = vshrl.u32 %v593_v13, 16  ;;  %v701_v37 = vshll.u32 %v593_v13, 16 }
  0xad   :  { %4857 = vmatprep.subr.bf16.mxu0 %v14044_v1  ;;  %v1291_v1 = vor.u32 %v1290_v54, %v1286_v35  ;;  %v696_v29 = vor.u32 %v694_v8, %v693_v20  ;;  %152 = vst [vmem:[#allocation2 + $0xf0] sm:$0x1] %v151_v26  ;;  %v1298_v35 = vshrl.u32 %v14310_v27, 16  ;;  %v594_v47 = vpack.c.bf16 %v544_v39, %v543_v24  ;;  %v159_v54 = vld [vmem:[#allocation2 + $0x120] sm:$0x1]  ;;  %v13768_v39 = vld [vmem:[#allocation9 + $0xd0] sm:$0xff]  }
  0xae   :  { %v700_v45 = vrot.slane %v698_v31, 7  ;;  %v160_v44 = vsel %vm14161_vm3, 0, %v159_v54  ;;  %v270_v13 = vsel %vm14168_vm4, 0, %v269_v60  ;;  %v275_v24 = vld [vmem:[#allocation2 + $0x148] sm:$0x1]  ;;  %v1336_v60 = vshll.u32 %v14359_v50, 16 }
  0xaf   :  { %4613 = vmatmul.mubr.bf16.gmra.mrb[12].mxu0 %v14252_v55  ;;  %v974_v55 = vsel %vm14161_vm3, %v693_v20, %v973_v12  ;;  %v14428_v46 = vsel %vm14217_vm8, %v696_v29, %v970_v23  ;;  %v1296_v48 = vsel %vm1224_vm6, %v1291_v1, %v1295_v10  ;;  %v705_v59 = vshrl.u32 %v594_v47, 16  ;;  %161 = vst [vmem:[#allocation2 + $0x120] sm:$0x1] %v160_v44  ;;  %v1179_v54 = vld [vmem:[#allocation2 + $0x98] sm:$0x1] }
  0xb0   :  { %4620 = vmatprep.mubr.bf16.mxu0 %v1284_v5  ;;  %4858 = vmatpush1.bf16.msra.mxu0 %v13764_v2  ;;  %975 = vst [vmem:[#allocation2 + $0xc8] sm:$0x1] %v974_v55  ;;  %972 = vst [vmem:[#allocation2 + $0xc0] sm:$0xff] %v14428_v46  ;;  %v703_v57 = vor.u32 %v701_v37, %v700_v45  ;;  %v980_v58 = vsel %vm14161_vm3, %v700_v45, %v979_v38  ;;  %v708_v61 = vshll.u32 %v594_v47, 16  ;;  %v355_v5 = vld [vmem:[#allocation8 + $0x100] sm:$0xff] }
  0xb1   :  { %4859 = vmatprep.subr.bf16.mxu0 %v14421_v33  ;;  %981 = vst [vmem:[#allocation2 + $0xd8] sm:$0x1] %v980_v58  ;;  %v481_v2 = vadd.f32 %v14187_v32, %v416_v52  ;;  %v707_v8 = vrot.slane %v705_v59, 7  ;;  %v1303_v10 = vor.u32 %v1302_v43, %v1298_v35  ;;  %v1307_v12 = vrot.slane %v1305_v49, 1  ;;  %271 = vst [vmem:[#allocation2 + $0x128] sm:$0x1] %v270_v13 }
  0xb2   :  { %v14442_v6 = vsel %vm14217_vm8, %v703_v57, %v976_v51  ;;  %v163_v1 = vsel %vm14161_vm3, 0, %v162_v4  ;;  %v273_v23 = vsel %vm14168_vm4, 0, %v272_v9  ;;  %v419_v55 = vmax.f32 %v355_v5, 0.0  ;;  %v991_v38 = vld [vmem:[#allocation2 + $0xf8] sm:$0x1] }
  0xb3   :  { %978 = vst [vmem:[#allocation2 + $0xd0] sm:$0xff] %v14442_v6  ;;  %v546_v17 = vsel %vm516_vm7, %v481_v2, 0.0  ;;  %v986_v19 = vsel %vm14161_vm3, %v707_v8, %v985_v63  ;;  %164 = vst [vmem:[#allocation2 + $0x130] sm:$0x1] %v163_v1  ;;  %v1308_v31 = vsel %vm1224_vm6, %v1303_v10, %v1307_v12  ;;  %v1314_v35 = vrot.slane %v1312_v40, 1  ;;  %v358_v63 = vld [vmem:[#allocation8 + $0x118] sm:$0xff] }
  0xb4   :  { %4860 = vmatpush1.bf16.msra.mxu0 %v13765_v18  ;;  %v710_v18 = vor.u32 %v708_v61, %v707_v8  ;;  %v595_v20 = vpack.c.bf16 %v546_v17, %v545_v3  ;;  %987 = vst [vmem:[#allocation2 + $0xe8] sm:$0x1] %v986_v19  ;;  %274 = vst [vmem:[#allocation2 + $0x138] sm:$0x1] %v273_v23  ;;  %v1317_v37 = vshll.u32 %v1175_v14, 16  ;;  %v420_v43 = vmax.f32 %v356_v21, 0.0 }
  0xb5   :  { %4861 = vmatprep.subr.bf16.mxu0 %v14421_v33  ;;  %v484_v45 = vadd.f32 %v14187_v32, %v419_v55  ;;  %v166_v47 = vsel %vm14161_vm3, 0, %v165_v22  ;;  %v1324_v49 = vshll.u32 %v14344_v30, 16  ;;  %v988_v51 = vld [vmem:[#allocation2 + $0xf0] sm:$0xff]  ;;  %v276_v52 = vsel %vm14168_vm4, 0, %v275_v24  ;;  %v359_v19 = vld [vmem:[#allocation8 + $0x120] sm:$0xff]  ;;  %v360_v1 = vld [vmem:[#allocation8 + $0x128] sm:$0xff] }
  0xb6   :  { %v14459_v26 = vsel %vm14217_vm8, %v710_v18, %v982_v16  ;;  %v712_v28 = vshrl.u32 %v595_v20, 16  ;;  %v715_v29 = vshll.u32 %v595_v20, 16  ;;  %167 = vst [vmem:[#allocation2 + $0x140] sm:$0x1] %v166_v47  ;;  %v485_v57 = vadd.f32 %v14187_v32, %v420_v43  ;;  %277 = vst [vmem:[#allocation2 + $0x148] sm:$0x1] %v276_v52 }
  0xb7   :  { %4621 = vmatmul.mubr.bf16.gmra.mrb[16].mxu0 %v14269_v25  ;;  %v13767_v25 = vld [vmem:[#allocation9 + $0xc8] sm:$0xff]   ;;  %984 = vst [vmem:[#allocation2 + $0xe0] sm:$0xff] %v14459_v26  ;;  %v1315_v58 = vor.u32 %v1314_v35, %v1310_v34  ;;  %v1319_v59 = vrot.slane %v1317_v37, 1  ;;  %v549_v61 = vsel %vm516_vm7, %v484_v45, 0.0  ;;  %v421_v4 = vmax.f32 %v357_v53, 0.0 }
  0xb8   :  { %4628 = vmatprep.mubr.bf16.mxu0 %v1296_v48  ;;  %4862 = vmatpush1.bf16.msra.mxu0 %v13766_v56  ;;  %v714_v42 = vrot.slane %v712_v28, 7  ;;  %v1177_v48 = vld [vmem:[#allocation2 + $0x88] sm:$0x1]  ;;  %v550_v3 = vsel %vm516_vm7, %v485_v57, 0.0  ;;  %v168_v5 = vld [vmem:[#allocation2 + $0x150] sm:$0x1] }
  0xb9   :  { %4863 = vmatprep.subr.bf16.mxu0 %v14421_v33  ;;  %v1329_v2 = vshll.u32 %v1177_v48, 16  ;;  %v1341_v8 = vshll.u32 %v1179_v54, 16  ;;  %v1322_v44 = vshrl.u32 %v14344_v30, 16  ;;  %v1326_v9 = vrot.slane %v1324_v49, 1  ;;  %v278_v18 = vld [vmem:[#allocation2 + $0x158] sm:$0x1] }
  0xba   :  { %v717_v56 = vor.u32 %v715_v29, %v714_v42  ;;  %v992_v40 = vsel %vm14161_vm3, %v714_v42, %v991_v38  ;;  %v597_v10 = vpack.c.bf16 %v550_v3, %v549_v61  ;;  %v422_v12 = vmax.f32 %v358_v63, 0.0  ;;  %v171_v23 = vld [vmem:[#allocation2 + $0x160] sm:$0x1]  ;;  %v13769_v42 = vld [vmem:[#allocation9 + $0xd8] sm:$0xff]   ;;  %v1000_v45 = vld [vmem:[#allocation2 + $0x130] sm:$0xff] }
  0xbb   :  { %993 = vst [vmem:[#allocation2 + $0xf8] sm:$0x1] %v992_v40  ;;  %v1334_v14 = vshrl.u32 %v14359_v50, 16  ;;  %v14486_v16 = vrot.slane %v1336_v60, 1  ;;  %v486_v17 = vadd.f32 %v14187_v32, %v421_v4  ;;  %v1320_v20 = vsel %vm1224_vm6, %v1315_v58, %v1319_v59  ;;  %v1003_v28 = vld [vmem:[#allocation2 + $0x138] sm:$0x1] }
  0xbc   :  { %4864 = vmatpush1.bf16.msra.mxu0 %v13767_v25  ;;  %v169_v25 = vsel %vm14161_vm3, 0, %v168_v5  ;;  %v1331_v13 = vrot.slane %v1329_v2, 1  ;;  %v726_v21 = vshrl.u32 %v597_v10, 16  ;;  %v729_v22 = vshll.u32 %v597_v10, 16  ;;  %v174_v59 = vld [vmem:[#allocation2 + $0x170] sm:$0x1] }
  0xbd   :  { %4865 = vmatprep.subr.bf16.mxu0 %v14421_v33  ;;  %170 = vst [vmem:[#allocation2 + $0x150] sm:$0x1] %v169_v25  ;;  %v14492_v24 = vrot.slane %v1341_v8, 1  ;;  %v487_v29 = vadd.f32 %v14187_v32, %v422_v12  ;;  %v551_v55 = vsel %vm516_vm7, %v486_v17, 0.0  ;;  %v1348_v34 = vshll.u32 %v14385_v36, 16  ;;  %v363_v3 = vld [vmem:[#allocation8 + $0x140] sm:$0xff] }
  0xbe   :  { %v728_v35 = vrot.slane %v726_v21, 7  ;;  %v279_v37 = vsel %vm14168_vm4, 0, %v278_v18  ;;  %v423_v38 = vmax.f32 %v359_v19, 0.0  ;;  %v1327_v43 = vor.u32 %v1326_v9, %v1322_v44  ;;  %v1009_v44 = vld [vmem:[#allocation2 + $0x148] sm:$0x1] }
  0xbf   :  { %4629 = vmatmul.mubr.bf16.gmra.mrb[20].mxu0 %v14285_v41  ;;  %v14479_v41 = vsel %vm14217_vm8, %v717_v56, %v988_v51  ;;  %v552_v47 = vsel %vm516_vm7, %v487_v29, 0.0  ;;  %280 = vst [vmem:[#allocation2 + $0x158] sm:$0x1] %v279_v37  ;;  %v424_v48 = vmax.f32 %v360_v1, 0.0  ;;  %v172_v49 = vsel %vm14161_vm3, 0, %v171_v23  ;;  %v364_v10 = vld [vmem:[#allocation8 + $0x148] sm:$0xff] }
  0xc0   :  { %4636 = vmatprep.mubr.bf16.mxu0 %v1308_v31  ;;  %4866 = vmatpush1.bf16.msra.mxu0 %v13768_v39  ;;  %990 = vst [vmem:[#allocation2 + $0xf0] sm:$0xff] %v14479_v41  ;;  %v281_v31 = vld [vmem:[#allocation2 + $0x168] sm:$0x1]  ;;  %v361_v39 = vld [vmem:[#allocation8 + $0x130] sm:$0xff]  ;;  %v731_v51 = vor.u32 %v729_v22, %v728_v35  ;;  %v1004_v52 = vsel %vm14161_vm3, %v728_v35, %v1003_v28  ;;  %173 = vst [vmem:[#allocation2 + $0x160] sm:$0x1] %v172_v49 }
  0xc1   :  { %4867 = vmatprep.subr.bf16.mxu0 %v14421_v33  ;;  %v598_v53 = vpack.c.bf16 %v552_v47, %v551_v55  ;;  %v488_v54 = vadd.f32 %v14187_v32, %v423_v38  ;;  %v284_v56 = vld [vmem:[#allocation2 + $0x178] sm:$0x1]  ;;  %1005 = vst [vmem:[#allocation2 + $0x138] sm:$0x1] %v1004_v52  ;;  %v489_v40 = vadd.f32 %v14187_v32, %v424_v48  ;;  %v282_v57 = vsel %vm14168_vm4, 0, %v281_v31 }
  0xc2   :  { %v425_v58 = vmax.f32 %v361_v39, 0.0  ;;  %v14512_v60 = vsel %vm14217_vm8, %v731_v51, %v1000_v45  ;;  %283 = vst [vmem:[#allocation2 + $0x168] sm:$0x1] %v282_v57  ;;  %v1332_v4 = vsel %vm1224_vm6, %v1327_v43, %v1331_v13  ;;  %v1346_v5 = vshrl.u32 %v14385_v36, 16  ;;  %v1181_v12 = vld [vmem:[#allocation2 + $0xa8] sm:$0x1] }
  0xc3   :  { %v733_v61 = vshrl.u32 %v598_v53, 16  ;;  %v736_v63 = vshll.u32 %v598_v53, 16  ;;  %v553_v2 = vsel %vm516_vm7, %v488_v54, 0.0  ;;  %v14517_v8 = vrot.slane %v1348_v34, 1  ;;  %1002 = vst [vmem:[#allocation2 + $0x130] sm:$0xff] %v14512_v60  ;;  %v365_v51 = vld [vmem:[#allocation8 + $0x150] sm:$0xff] }
  0xc4   :  { %4868 = vmatpush1.bf16.msra.mxu0 %v13769_v42  ;;  %v554_v9 = vsel %vm516_vm7, %v489_v40, 0.0  ;;  %v490_v19 = vadd.f32 %v14187_v32, %v425_v58  ;;  %v175_v13 = vsel %vm14161_vm3, 0, %v174_v59  ;;  %v285_v21 = vsel %vm14168_vm4, 0, %v284_v56  ;;  %v177_v1 = vld [vmem:[#allocation2 + $0x180] sm:$0x1]  ;;  %v1012_v49 = vld [vmem:[#allocation2 + $0x150] sm:$0xff] }
  0xc5   :  { %4869 = vmatprep.subr.bf16.mxu0 %v14421_v33  ;;  %v735_v17 = vrot.slane %v733_v61, 7  ;;  %v599_v25 = vpack.c.bf16 %v554_v9, %v553_v2  ;;  %v427_v22 = vmax.f32 %v363_v3, 0.0  ;;  %176 = vst [vmem:[#allocation2 + $0x170] sm:$0x1] %v175_v13  ;;  %286 = vst [vmem:[#allocation2 + $0x178] sm:$0x1] %v285_v21  ;;  %v1339_v34 = vor.u32 %v14486_v16, %v1334_v14 }
  0xc6   :  { %v287_v31 = vld [vmem:[#allocation2 + $0x188] sm:$0x1]  ;;  %v1015_v35 = vld [vmem:[#allocation2 + $0x158] sm:$0x1]  ;;  %v428_v38 = vmax.f32 %v364_v10, 0.0  ;;  %v178_v47 = vsel %vm14161_vm3, 0, %v177_v1 }
  0xc7   :  { %4637 = vmatmul.mubr.bf16.gmra.mrb[24].mxu0 %v14310_v27  ;;  %v362_v27 = vld [vmem:[#allocation8 + $0x138] sm:$0xff]  ;;  %v738_v23 = vor.u32 %v736_v63, %v735_v17  ;;  %v1010_v28 = vsel %vm14161_vm3, %v735_v17, %v1009_v44  ;;  %v740_v29 = vshrl.u32 %v599_v25, 16  ;;  %v743_v55 = vshll.u32 %v599_v25, 16  ;;  %179 = vst [vmem:[#allocation2 + $0x180] sm:$0x1] %v178_v47  ;;  %v13770_v21 = vld [vmem:[#allocation9 + $0xe0] sm:$0xff]  }
  0xc8   :  { %4644 = vmatprep.mubr.bf16.mxu0 %v1320_v20  ;;  %v426_v18 = vmax.f32 %v362_v27, 0.0  ;;  %v1006_v20 = vld [vmem:[#allocation2 + $0x140] sm:$0xff]  ;;  %1011 = vst [vmem:[#allocation2 + $0x148] sm:$0x1] %v1010_v28  ;;  %v1183_v39 = vld [vmem:[#allocation2 + $0xb8] sm:$0x1]  ;;  %v492_v45 = vadd.f32 %v14187_v32, %v427_v22  ;;  %v493_v56 = vadd.f32 %v14187_v32, %v428_v38  ;;  %v1344_v40 = vsel %vm1224_vm6, %v1339_v34, %v14492_v24 }
  0xc9   :  { %v14536_v42 = vsel %vm14217_vm8, %v738_v23, %v1006_v20  ;;  %v742_v43 = vrot.slane %v740_v29, 7  ;;  %v1353_v48 = vshll.u32 %v1181_v12, 16  ;;  %v1358_v14 = vshrl.u32 %v14404_v0, 16  ;;  %v366_v61 = vld [vmem:[#allocation8 + $0x158] sm:$0xff]  ;;  %v180_v9 = vld [vmem:[#allocation2 + $0x190] sm:$0x1]  ;;  %4870 = vmatpush1.bf16.msra.mxu0 %v13770_v21 }
  0xca   :  { %v491_v37 = vadd.f32 %v14187_v32, %v426_v18  ;;  %v1360_v16 = vshll.u32 %v14404_v0, 16  ;;  %1008 = vst [vmem:[#allocation2 + $0x140] sm:$0xff] %v14536_v42  ;;  %v1365_v57 = vshll.u32 %v1183_v39, 16  ;;  %v557_v58 = vsel %vm516_vm7, %v492_v45, 0.0  ;;  %v290_v63 = vld [vmem:[#allocation2 + $0x198] sm:$0x1]  ;;  %4871 = vmatprep.subr.bf16.mxu0 %v14421_v33 }
  0xcb   :  { %v745_v52 = vor.u32 %v743_v55, %v742_v43  ;;  %v1016_v53 = vsel %vm14161_vm3, %v742_v43, %v1015_v35  ;;  %v288_v59 = vsel %vm14168_vm4, 0, %v287_v31  ;;  %v558_v44 = vsel %vm516_vm7, %v493_v56, 0.0  ;;  %v1021_v25 = vld [vmem:[#allocation2 + $0x168] sm:$0x1]  ;;  %v1018_v23 = vld [vmem:[#allocation2 + $0x160] sm:$0xff] }
  0xcc   :  { %v556_v27 = vsel %vm516_vm7, %v491_v37, 0.0  ;;  %1017 = vst [vmem:[#allocation2 + $0x158] sm:$0x1] %v1016_v53  ;;  %289 = vst [vmem:[#allocation2 + $0x188] sm:$0x1] %v288_v59  ;;  %v1355_v24 = vrot.slane %v1353_v48, 1  ;;  %v1351_v22 = vor.u32 %v14517_v8, %v1346_v5 }
  0xcd   :  { %v14555_v2 = vsel %vm14217_vm8, %v745_v52, %v1012_v49  ;;  %v1362_v10 = vrot.slane %v1360_v16, 1  ;;  %v1370_v12 = vshrl.u32 %v14428_v46, 16  ;;  %v1372_v17 = vshll.u32 %v14428_v46, 16  ;;  %v367_v55 = vld [vmem:[#allocation8 + $0x160] sm:$0xff]  ;;  %v1027_v5 = vld [vmem:[#allocation2 + $0x178] sm:$0x1] }
  0xce   :  { %1014 = vst [vmem:[#allocation2 + $0x150] sm:$0xff] %v14555_v2  ;;  %v429_v20 = vmax.f32 %v365_v51, 0.0  ;;  %v430_v13 = vmax.f32 %v366_v61, 0.0  ;;  %v1367_v1 = vrot.slane %v1365_v57, 1  ;;  %v181_v28 = vsel %vm14161_vm3, 0, %v180_v9  ;;  %v1024_v49 = vld [vmem:[#allocation2 + $0x170] sm:$0xff] }
  0xcf   :  { %4645 = vmatmul.mubr.bf16.gmra.mrb[28].mxu0 %v14330_v62  ;;  %v555_v62 = vsel %vm516_vm7, %v490_v19, 0.0  ;;  %v601_v19 = vpack.c.bf16 %v558_v44, %v557_v58  ;;  %v291_v29 = vsel %vm14168_vm4, 0, %v290_v63  ;;  %182 = vst [vmem:[#allocation2 + $0x190] sm:$0x1] %v181_v28  ;;  %v431_v43 = vmax.f32 %v367_v55, 0.0  ;;  %v369_v61 = vld [vmem:[#allocation8 + $0x170] sm:$0xff] }
  0xd0   :  { %4652 = vmatprep.mubr.bf16.mxu0 %v1332_v4  ;;  %v600_v54 = vpack.c.bf16 %v556_v27, %v555_v62  ;;  %292 = vst [vmem:[#allocation2 + $0x198] sm:$0x1] %v291_v29  ;;  %v494_v8 = vadd.f32 %v14187_v32, %v429_v20  ;;  %v495_v62 = vadd.f32 %v14187_v32, %v430_v13  ;;  %v1374_v16 = vrot.slane %v1372_v17, 1  ;;  %v183_v27 = vld [vmem:[#allocation2 + $0x1a0] sm:$0x1] }
  0xd1   :  { %v754_v35 = vshrl.u32 %v601_v19, 16  ;;  %v757_v37 = vshll.u32 %v601_v19, 16  ;;  %v1356_v47 = vsel %vm1224_vm6, %v1351_v22, %v1355_v24  ;;  %v1363_v48 = vor.u32 %v1362_v10, %v1358_v14  ;;  %v293_v51 = vld [vmem:[#allocation2 + $0x1a8] sm:$0x1]  ;;  %v370_v24 = vld [vmem:[#allocation8 + $0x178] sm:$0xff]  ;;  %v371_v28 = vld [vmem:[#allocation8 + $0x180] sm:$0xff] }
  0xd2   :  { %v747_v3 = vshrl.u32 %v600_v54, 16  ;;  %v750_v4 = vshll.u32 %v600_v54, 16  ;;  %v1185_v52 = vld [vmem:[#allocation2 + $0xc8] sm:$0x1]  ;;  %v559_v56 = vsel %vm516_vm7, %v494_v8, 0.0  ;;  %v1382_v57 = vshrl.u32 %v14442_v6, 16 }
  0xd3   :  { %v756_v39 = vrot.slane %v754_v35, 7  ;;  %v1384_v58 = vshll.u32 %v14442_v6, 16  ;;  %v496_v59 = vadd.f32 %v14187_v32, %v431_v43  ;;  %v294_v44 = vsel %vm14168_vm4, 0, %v293_v51  ;;  %v296_v10 = vld [vmem:[#allocation2 + $0x1b8] sm:$0x1] }
  0xd4   :  { %v749_v18 = vrot.slane %v747_v3, 7  ;;  %v1377_v9 = vshll.u32 %v1185_v52, 16  ;;  %295 = vst [vmem:[#allocation2 + $0x1a8] sm:$0x1] %v294_v44  ;;  %v1368_v20 = vsel %vm1224_vm6, %v1363_v48, %v1367_v1  ;;  %v1375_v13 = vor.u32 %v1374_v16, %v1370_v12  ;;  %v1033_v21 = vld [vmem:[#allocation2 + $0x188] sm:$0x1] }
  0xd5   :  { %v759_v53 = vor.u32 %v757_v37, %v756_v39  ;;  %v1028_v54 = vsel %vm14161_vm3, %v756_v39, %v1027_v5  ;;  %v434_v55 = vmax.f32 %v370_v24, 0.0  ;;  %v1386_v35 = vrot.slane %v1384_v58, 1  ;;  %v1030_v37 = vld [vmem:[#allocation2 + $0x180] sm:$0xff]  ;;  %v372_v12 = vld [vmem:[#allocation8 + $0x188] sm:$0xff]  ;;  %v1187_v8 = vld [vmem:[#allocation2 + $0xd8] sm:$0x1] }
  0xd6   :  { %v752_v31 = vor.u32 %v750_v4, %v749_v18  ;;  %v1022_v34 = vsel %vm14161_vm3, %v749_v18, %v1021_v25  ;;  %1029 = vst [vmem:[#allocation2 + $0x178] sm:$0x1] %v1028_v54  ;;  %v184_v4 = vsel %vm14161_vm3, 0, %v183_v27  ;;  %v561_v18 = vsel %vm516_vm7, %v496_v59, 0.0  ;;  %v1036_v52 = vld [vmem:[#allocation2 + $0x190] sm:$0xff] }
  0xd7   :  { %4653 = vmatmul.mubr.bf16.gmra.mrb[32].mxu0 %v14344_v30  ;;  %v368_v30 = vld [vmem:[#allocation8 + $0x168] sm:$0xff]  ;;  %1023 = vst [vmem:[#allocation2 + $0x168] sm:$0x1] %v1022_v34  ;;  %v14590_v63 = vsel %vm14217_vm8, %v759_v53, %v1024_v49  ;;  %185 = vst [vmem:[#allocation2 + $0x1a0] sm:$0x1] %v184_v4  ;;  %v1379_v34 = vrot.slane %v1377_v9, 1 }
  0xd8   :  { %4660 = vmatprep.mubr.bf16.mxu0 %v1344_v40  ;;  %v14576_v38 = vsel %vm14217_vm8, %v752_v31, %v1018_v23  ;;  %v432_v45 = vmax.f32 %v368_v30, 0.0  ;;  %v560_v40 = vsel %vm516_vm7, %v495_v62, 0.0  ;;  %1026 = vst [vmem:[#allocation2 + $0x170] sm:$0xff] %v14590_v63  ;;  %v433_v23 = vmax.f32 %v369_v61, 0.0  ;;  %v1039_v49 = vld [vmem:[#allocation2 + $0x198] sm:$0x1] }
  0xd9   :  { %1020 = vst [vmem:[#allocation2 + $0x160] sm:$0xff] %v14576_v38  ;;  %v602_v14 = vpack.c.bf16 %v560_v40, %v559_v56  ;;  %v297_v31 = vsel %vm14168_vm4, 0, %v296_v10  ;;  %v1396_v48 = vshll.u32 %v14459_v26, 16  ;;  %v435_v27 = vmax.f32 %v371_v28, 0.0  ;;  %v189_v40 = vld [vmem:[#allocation2 + $0x1c0] sm:$0x1] }
  0xda   :  { %v497_v3 = vadd.f32 %v14187_v32, %v432_v45  ;;  %298 = vst [vmem:[#allocation2 + $0x1b8] sm:$0x1] %v297_v31  ;;  %v498_v43 = vadd.f32 %v14187_v32, %v433_v23  ;;  %v499_v45 = vadd.f32 %v14187_v32, %v434_v55  ;;  %v436_v56 = vmax.f32 %v372_v12, 0.0  ;;  %v299_v59 = vld [vmem:[#allocation2 + $0x1c8] sm:$0x1]  ;;  %v373_v61 = vld [vmem:[#allocation8 + $0x190] sm:$0xff] }
  0xdb   :  { %v761_v17 = vshrl.u32 %v602_v14, 16  ;;  %v764_v25 = vshll.u32 %v602_v14, 16  ;;  %v1389_v58 = vshll.u32 %v1187_v8, 16  ;;  %v500_v44 = vadd.f32 %v14187_v32, %v435_v27  ;;  %v374_v10 = vld [vmem:[#allocation8 + $0x198] sm:$0xff]  ;;  %v1189_v55 = vld [vmem:[#allocation2 + $0xe8] sm:$0x1] }
  0xdc   :  { %v562_v19 = vsel %vm516_vm7, %v497_v3, 0.0  ;;  %v563_v53 = vsel %vm516_vm7, %v498_v43, 0.0  ;;  %v564_v54 = vsel %vm516_vm7, %v499_v45, 0.0  ;;  %v13771_v3 = vld [vmem:[#allocation9 + $0xe8] sm:$0xff]   ;;  %v501_v9 = vadd.f32 %v14187_v32, %v436_v56 }
  0xdd   :  { %v603_v22 = vpack.c.bf16 %v562_v19, %v561_v18  ;;  %v763_v29 = vrot.slane %v761_v17, 7  ;;  %v604_v4 = vpack.c.bf16 %v564_v54, %v563_v53  ;;  %4872 = vmatpush1.bf16.msra.mxu0 %v13771_v3  ;;  %v1380_v17 = vsel %vm1224_vm6, %v1375_v13, %v1379_v34  ;;  %v192_v19 = vld [vmem:[#allocation2 + $0x1d0] sm:$0x1]  ;;  %v376_v43 = vld [vmem:[#allocation8 + $0x1a8] sm:$0xff]  ;;  %v195_v3 = vld [vmem:[#allocation2 + $0x1e0] sm:$0x1] }
  0xde   :  { %4873 = vmatprep.subr.bf16.mxu0 %v14421_v33  ;;  %v565_v23 = vsel %vm516_vm7, %v500_v44, 0.0  ;;  %v566_v28 = vsel %vm516_vm7, %v501_v9, 0.0  ;;  %v1391_v13 = vrot.slane %v1389_v58, 1  ;;  %v438_v12 = vmax.f32 %v374_v10, 0.0  ;;  %v305_v58 = vld [vmem:[#allocation2 + $0x1e8] sm:$0x1] }
  0xdf   :  { %4661 = vmatmul.mubr.bf16.gmra.mrb[36].mxu0 %v14359_v50  ;;  %v186_v50 = vld [vmem:[#allocation2 + $0x1b0] sm:$0x1]  ;;  %v768_v5 = vshrl.u32 %v603_v22, 16  ;;  %v771_v1 = vshll.u32 %v603_v22, 16  ;;  %v766_v62 = vor.u32 %v764_v25, %v763_v29  ;;  %v1034_v39 = vsel %vm14161_vm3, %v763_v29, %v1033_v21  ;;  %v1045_v22 = vld [vmem:[#allocation2 + $0x1a8] sm:$0x1] }
  0xe0   :  { %4668 = vmatprep.mubr.bf16.mxu0 %v1356_v47  ;;  %v187_v30 = vsel %vm14161_vm3, 0, %v186_v50  ;;  %v1394_v47 = vshrl.u32 %v14459_v26, 16  ;;  %1035 = vst [vmem:[#allocation2 + $0x188] sm:$0x1] %v1034_v39  ;;  %v190_v50 = vsel %vm14161_vm3, 0, %v189_v40  ;;  %v775_v25 = vshrl.u32 %v604_v4, 16 }
  0xe1   :  { %188 = vst [vmem:[#allocation2 + $0x1b0] sm:$0x1] %v187_v30  ;;  %v770_v16 = vrot.slane %v768_v5, 7  ;;  %v14616_v51 = vsel %vm14217_vm8, %v766_v62, %v1030_v37  ;;  %v778_v18 = vshll.u32 %v604_v4, 16  ;;  %191 = vst [vmem:[#allocation2 + $0x1c0] sm:$0x1] %v190_v50  ;;  %v605_v34 = vpack.c.bf16 %v566_v28, %v565_v23 }
  0xe2   :  { %1032 = vst [vmem:[#allocation2 + $0x180] sm:$0xff] %v14616_v51  ;;  %v14634_v21 = vrot.slane %v1396_v48, 1  ;;  %v300_v29 = vsel %vm14168_vm4, 0, %v299_v59  ;;  %v14640_v30 = vld [vmem:[#allocation2 + $0x120] sm:$0xff]  ;;  %v777_v31 = vrot.slane %v775_v25, 7  ;;  %v437_v37 = vmax.f32 %v373_v61, 0.0 }
  0xe3   :  { %v773_v14 = vor.u32 %v771_v1, %v770_v16  ;;  %301 = vst [vmem:[#allocation2 + $0x1c8] sm:$0x1] %v300_v29  ;;  %v1387_v5 = vor.u32 %v1386_v35, %v1382_v57  ;;  %v1042_v1 = vld [vmem:[#allocation2 + $0x1a0] sm:$0xff]  ;;  %v193_v8 = vsel %vm14161_vm3, 0, %v192_v19  ;;  %v1418_v45 = vshrl.u32 %v14640_v30, 16  ;;  %v377_v28 = vld [vmem:[#allocation8 + $0x1b0] sm:$0xff] }
  0xe4   :  { %v375_v39 = vld [vmem:[#allocation8 + $0x1a0] sm:$0xff]  ;;  %v780_v48 = vor.u32 %v778_v18, %v777_v31  ;;  %v1051_v57 = vld [vmem:[#allocation2 + $0x1b8] sm:$0x1]  ;;  %194 = vst [vmem:[#allocation2 + $0x1d0] sm:$0x1] %v193_v8  ;;  %v1420_v35 = vshll.u32 %v14640_v30, 16  ;;  %v503_v53 = vadd.f32 %v14187_v32, %v438_v12  ;;  %v1399_v12 = vor.u32 %v14634_v21, %v1394_v47 }
  0xe5   :  { %v14627_v24 = vsel %vm14217_vm8, %v773_v14, %v1036_v52  ;;  %v785_v27 = vshll.u32 %v605_v34, 16  ;;  %v502_v52 = vadd.f32 %v14187_v32, %v437_v37  ;;  %v439_v56 = vmax.f32 %v375_v39, 0.0  ;;  %v1191_v50 = vld [vmem:[#allocation2 + $0xf8] sm:$0x1]  ;;  %v380_v47 = vld [vmem:[#allocation8 + $0x1c8] sm:$0xff] }
  0xe6   :  { %1038 = vst [vmem:[#allocation2 + $0x190] sm:$0xff] %v14627_v24  ;;  %v440_v40 = vmax.f32 %v376_v43, 0.0  ;;  %v1392_v14 = vsel %vm1224_vm6, %v1387_v5, %v1391_v13  ;;  %v1401_v59 = vshll.u32 %v1189_v55, 16  ;;  %v568_v9 = vsel %vm516_vm7, %v503_v53, 0.0  ;;  %v378_v13 = vld [vmem:[#allocation8 + $0x1b8] sm:$0xff] }
  0xe7   :  { %4669 = vmatmul.mubr.bf16.gmra.mrb[40].mxu0 %v14385_v36  ;;  %v1040_v36 = vsel %vm14161_vm3, %v770_v16, %v1039_v49  ;;  %v1046_v16 = vsel %vm14161_vm3, %v777_v31, %v1045_v22  ;;  %v782_v49 = vshrl.u32 %v605_v34, 16  ;;  %v567_v44 = vsel %vm516_vm7, %v502_v52, 0.0  ;;  %v198_v55 = vld [vmem:[#allocation2 + $0x1f0] sm:$0x1]  ;;  %v308_v31 = vld [vmem:[#allocation2 + $0x1f8] sm:$0x1] }
  0xe8   :  { %4676 = vmatprep.mubr.bf16.mxu0 %v1368_v20  ;;  %1041 = vst [vmem:[#allocation2 + $0x198] sm:$0x1] %v1040_v36  ;;  %v302_v20 = vld [vmem:[#allocation2 + $0x1d8] sm:$0x1]  ;;  %1047 = vst [vmem:[#allocation2 + $0x1a8] sm:$0x1] %v1046_v16  ;;  %v606_v25 = vpack.c.bf16 %v568_v9, %v567_v44  ;;  %v504_v18 = vadd.f32 %v14187_v32, %v439_v56 }
  0xe9   :  { %v303_v62 = vsel %vm14168_vm4, 0, %v302_v20  ;;  %v784_v54 = vrot.slane %v782_v49, 7  ;;  %v1048_v61 = vld [vmem:[#allocation2 + $0x1b0] sm:$0xff]  ;;  %v1406_v10 = vshrl.u32 %v14479_v41, 16  ;;  %v505_v20 = vadd.f32 %v14187_v32, %v440_v40  ;;  %v379_v16 = vld [vmem:[#allocation8 + $0x1c0] sm:$0xff] }
  0xea   :  { %304 = vst [vmem:[#allocation2 + $0x1d8] sm:$0x1] %v303_v62  ;;  %v196_v22 = vsel %vm14161_vm3, 0, %v195_v3  ;;  %v306_v23 = vsel %vm14168_vm4, 0, %v305_v58  ;;  %v1403_v29 = vrot.slane %v1401_v59, 1  ;;  %v789_v34 = vshrl.u32 %v606_v25, 16 }
  0xeb   :  { %v787_v36 = vor.u32 %v785_v27, %v784_v54  ;;  %v1052_v4 = vsel %vm14161_vm3, %v784_v54, %v1051_v57  ;;  %197 = vst [vmem:[#allocation2 + $0x1e0] sm:$0x1] %v196_v22  ;;  %307 = vst [vmem:[#allocation2 + $0x1e8] sm:$0x1] %v306_v23  ;;  %v792_v37 = vshll.u32 %v606_v25, 16  ;;  %v569_v5 = vsel %vm516_vm7, %v504_v18, 0.0 }
  0xec   :  { %1053 = vst [vmem:[#allocation2 + $0x1b8] sm:$0x1] %v1052_v4  ;;  %v1413_v8 = vshll.u32 %v1191_v50, 16  ;;  %v1057_v62 = vld [vmem:[#allocation2 + $0x1c8] sm:$0x1]  ;;  %v441_v43 = vmax.f32 %v377_v28, 0.0 }
  0xed   :  { %v14670_v19 = vsel %vm14217_vm8, %v787_v36, %v1048_v61  ;;  %v791_v49 = vrot.slane %v789_v34, 7  ;;  %v442_v57 = vmax.f32 %v378_v13, 0.0  ;;  %v309_v27 = vsel %vm14168_vm4, 0, %v308_v31  ;;  %v1054_v52 = vld [vmem:[#allocation2 + $0x1c0] sm:$0xff]  ;;  %v1193_v4 = vld [vmem:[#allocation2 + $0x128] sm:$0x1] }
  0xee   :  { %1050 = vst [vmem:[#allocation2 + $0x1b0] sm:$0xff] %v14670_v19  ;;  %310 = vst [vmem:[#allocation2 + $0x1f8] sm:$0x1] %v309_v27  ;;  %v506_v40 = vadd.f32 %v14187_v32, %v441_v43  ;;  %v443_v36 = vmax.f32 %v379_v16, 0.0  ;;  %v1060_v9 = vld [vmem:[#allocation2 + $0x1d0] sm:$0xff]  ;;  %v444_v18 = vmax.f32 %v380_v47, 0.0 }
  0xef   :  { %4677 = vmatmul.mubr.bf16.gmra.mrb[44].mxu0 %v14404_v0  ;;  %v14657_v0 = vsel %vm14217_vm8, %v780_v48, %v1042_v1  ;;  %v570_v1 = vsel %vm516_vm7, %v505_v20, 0.0  ;;  %v13772_v48 = vld [vmem:[#allocation9 + $0xf0] sm:$0xff]   ;;  %v794_v21 = vor.u32 %v792_v37, %v791_v49  ;;  %v1058_v56 = vsel %vm14161_vm3, %v791_v49, %v1057_v62  ;;  %v201_v20 = vld [vmem:[#allocation2 + $0x200] sm:$0x1]  ;;  %v311_v22 = vld [vmem:[#allocation2 + $0x208] sm:$0x1] }
  0xf0   :  { %4684 = vmatprep.mubr.bf16.mxu0 %v1380_v17  ;;  %1044 = vst [vmem:[#allocation2 + $0x1a0] sm:$0xff] %v14657_v0  ;;  %v1408_v17 = vshll.u32 %v14479_v41, 16  ;;  %v607_v39 = vpack.c.bf16 %v570_v1, %v569_v5  ;;  %4874 = vmatpush1.bf16.msra.mxu0 %v13772_v48  ;;  %v507_v58 = vadd.f32 %v14187_v32, %v442_v57  ;;  %1059 = vst [vmem:[#allocation2 + $0x1c8] sm:$0x1] %v1058_v56  ;;  %v381_v23 = vld [vmem:[#allocation8 + $0x1d0] sm:$0xff]  ;;  %v382_v37 = vld [vmem:[#allocation8 + $0x1d8] sm:$0xff] }
  0xf1   :  { %4875 = vmatprep.subr.bf16.mxu0 %v14421_v33  ;;  %v1063_v3 = vld [vmem:[#allocation2 + $0x1d8] sm:$0x1]  ;;  %v14696_v44 = vsel %vm14217_vm8, %v794_v21, %v1054_v52  ;;  %v571_v50 = vsel %vm516_vm7, %v506_v40, 0.0  ;;  %v1415_v33 = vrot.slane %v1413_v8, 1  ;;  %v508_v13 = vadd.f32 %v14187_v32, %v443_v36  ;;  %v383_v27 = vld [vmem:[#allocation8 + $0x1e0] sm:$0xff]  ;;  %v384_v52 = vld [vmem:[#allocation8 + $0x1e8] sm:$0xff] }
  0xf2   :  { %v796_v53 = vshrl.u32 %v607_v39, 16  ;;  %v799_v54 = vshll.u32 %v607_v39, 16  ;;  %v1410_v59 = vrot.slane %v1408_v17, 1  ;;  %v572_v25 = vsel %vm516_vm7, %v507_v58, 0.0  ;;  %1056 = vst [vmem:[#allocation2 + $0x1c0] sm:$0xff] %v14696_v44 }
  0xf3   :  { %v202_v34 = vsel %vm14161_vm3, 0, %v201_v20  ;;  %v314_v8 = vld [vmem:[#allocation2 + $0x218] sm:$0x1]  ;;  %v1425_v62 = vshll.u32 %v1193_v4, 16  ;;  %v1069_v39 = vld [vmem:[#allocation2 + $0x1e8] sm:$0x1] }
  0xf4   :  { %v798_v61 = vrot.slane %v796_v53, 7  ;;  %203 = vst [vmem:[#allocation2 + $0x200] sm:$0x1] %v202_v34  ;;  %v573_v43 = vsel %vm516_vm7, %v508_v13, 0.0  ;;  %v312_v16 = vsel %vm14168_vm4, 0, %v311_v22  ;;  %v1422_v49 = vrot.slane %v1420_v35, 1 }
  0xf5   :  { %313 = vst [vmem:[#allocation2 + $0x208] sm:$0x1] %v312_v16  ;;  %v1066_v53 = vld [vmem:[#allocation2 + $0x1e0] sm:$0xff]  ;;  %v446_v47 = vmax.f32 %v382_v37, 0.0  ;;  %v315_v56 = vsel %vm14168_vm4, 0, %v314_v8 }
  0xf6   :  { %v801_v17 = vor.u32 %v799_v54, %v798_v61  ;;  %v1064_v28 = vsel %vm14161_vm3, %v798_v61, %v1063_v3  ;;  %v1075_v54 = vld [vmem:[#allocation2 + $0x1f8] sm:$0x1]  ;;  %316 = vst [vmem:[#allocation2 + $0x218] sm:$0x1] %v315_v56  ;;  %v1423_v20 = vor.u32 %v1422_v49, %v1418_v45  ;;  %v14744_v45 = vld [vmem:[#allocation2 + $0x110] sm:$0xff] }
  0xf7   :  { %4685 = vmatmul.mubr.bf16.gmra.mrb[48].mxu0 %v14428_v46  ;;  %v199_v46 = vsel %vm14161_vm3, 0, %v198_v55  ;;  %v509_v55 = vadd.f32 %v14187_v32, %v444_v18  ;;  %1065 = vst [vmem:[#allocation2 + $0x1d8] sm:$0x1] %v1064_v28  ;;  %v511_v36 = vadd.f32 %v14187_v32, %v446_v47  ;;  %v448_v18 = vmax.f32 %v384_v52, 0.0 }
  0xf8   :  { %4692 = vmatprep.mubr.bf16.mxu0 %v1392_v14  ;;  %200 = vst [vmem:[#allocation2 + $0x1f0] sm:$0x1] %v199_v46  ;;  %v1404_v14 = vsel %vm1224_vm6, %v1399_v12, %v1403_v29  ;;  %v608_v29 = vpack.c.bf16 %v572_v25, %v571_v50  ;;  %v14708_v31 = vsel %vm14217_vm8, %v801_v17, %v1060_v9  ;;  %v204_v12 = vld [vmem:[#allocation2 + $0x210] sm:$0x1]  ;;  %v445_v46 = vmax.f32 %v381_v23, 0.0  ;;  %v13773_v50 = vld [vmem:[#allocation9 + $0xf8] sm:$0xff]  }
  0xf9   :  { %1062 = vst [vmem:[#allocation2 + $0x1d0] sm:$0xff] %v14708_v31  ;;  %v574_v48 = vsel %vm516_vm7, %v509_v55, 0.0  ;;  %v205_v21 = vsel %vm14161_vm3, 0, %v204_v12  ;;  %v447_v25 = vmax.f32 %v383_v27, 0.0  ;;  %v1432_v17 = vshll.u32 %v14512_v60, 16  ;;  %4876 = vmatpush1.bf16.msra.mxu0 %v13773_v50 }
  0xfa   :  { %v803_v5 = vshrl.u32 %v608_v29, 16  ;;  %v806_v1 = vshll.u32 %v608_v29, 16  ;;  %v609_v57 = vpack.c.bf16 %v574_v48, %v573_v43  ;;  %206 = vst [vmem:[#allocation2 + $0x210] sm:$0x1] %v205_v21  ;;  %v510_v3 = vadd.f32 %v14187_v32, %v445_v46  ;;  %5134 = vmatprep.subr.bf16.mxu0 %v14744_v45 }
  0xfb   :  { %v576_v29 = vsel %vm516_vm7, %v511_v36, 0.0  ;;  %v512_v55 = vadd.f32 %v14187_v32, %v447_v25  ;;  %v513_v37 = vadd.f32 %v14187_v32, %v448_v18  ;;  %v1199_v18 = vld [vmem:[#allocation2 + $0x158] sm:$0x1] }
  0xfc   :  { %v813_v61 = vshll.u32 %v609_v57, 16  ;;  %v575_v28 = vsel %vm516_vm7, %v510_v3, 0.0  ;;  %v1081_v48 = vld [vmem:[#allocation2 + $0x208] sm:$0x1] }
  0xfd   :  { %v610_v13 = vpack.c.bf16 %v576_v29, %v575_v28  ;;  %v578_v43 = vsel %vm516_vm7, %v513_v37, 0.0  ;;  %v1201_v28 = vld [vmem:[#allocation2 + $0x168] sm:$0x1]  ;;  %v1466_v29 = vshrl.u32 %v14576_v38, 16 }
  0xfe   :  { %v1473_v37 = vshll.u32 %v1201_v28, 16 }
  0xff   :  { %4693 = vmatmul.mubr.bf16.gmra.mrb[52].mxu0 %v14442_v6  ;;  %v1411_v6 = vor.u32 %v1410_v59, %v1406_v10  ;;  %v805_v10 = vrot.slane %v803_v5, 7  ;;  %v1427_v59 = vrot.slane %v1425_v62, 1  ;;  %v1072_v22 = vld [vmem:[#allocation2 + $0x1f0] sm:$0xff]  ;;  %v1430_v5 = vshrl.u32 %v14512_v60, 16 }
 0x100   :  { %4700 = vmatprep.mubr.bf16.mxu0 %v1404_v14  ;;  %v810_v14 = vshrl.u32 %v609_v57, 16  ;;  %v817_v8 = vshrl.u32 %v610_v13, 16  ;;  %v820_v62 = vshll.u32 %v610_v13, 16  ;;  %v1078_v57 = vld [vmem:[#allocation2 + $0x200] sm:$0xff] }
 0x101   :  { %v1416_v40 = vsel %vm1224_vm6, %v1411_v6, %v1415_v33  ;;  %v808_v58 = vor.u32 %v806_v1, %v805_v10  ;;  %v1070_v35 = vsel %vm14161_vm3, %v805_v10, %v1069_v39  ;;  %v1195_v33 = vld [vmem:[#allocation2 + $0x138] sm:$0x1]  ;;  %v1428_v6 = vsel %vm1224_vm6, %v1423_v20, %v1427_v59 }
 0x102   :  { %1071 = vst [vmem:[#allocation2 + $0x1e8] sm:$0x1] %v1070_v35  ;;  %v812_v9 = vrot.slane %v810_v14, 7  ;;  %v1434_v1 = vrot.slane %v1432_v17, 1  ;;  %v1437_v12 = vshll.u32 %v1195_v33, 16  ;;  %v577_v39 = vsel %vm516_vm7, %v512_v55, 0.0 }
 0x103   :  { %v14733_v4 = vsel %vm14217_vm8, %v808_v58, %v1066_v53  ;;  %v611_v16 = vpack.c.bf16 %v578_v43, %v577_v39  ;;  %v819_v49 = vrot.slane %v817_v8, 7  ;;  %v1444_v10 = vshll.u32 %v14536_v42, 16  ;;  %v1087_v58 = vld [vmem:[#allocation2 + $0x218] sm:$0x1] }
 0x104   :  { %1068 = vst [vmem:[#allocation2 + $0x1e0] sm:$0xff] %v14733_v4  ;;  %v815_v23 = vor.u32 %v813_v61, %v812_v9  ;;  %v1435_v52 = vor.u32 %v1434_v1, %v1430_v5  ;;  %v1439_v53 = vrot.slane %v1437_v12, 1  ;;  %v1442_v35 = vshrl.u32 %v14536_v42, 16  ;;  %v1203_v5 = vld [vmem:[#allocation2 + $0x178] sm:$0x1] }
 0x105   :  { %v824_v46 = vshrl.u32 %v611_v16, 16  ;;  %v827_v27 = vshll.u32 %v611_v16, 16  ;;  %v822_v47 = vor.u32 %v820_v62, %v819_v49  ;;  %v1082_v21 = vsel %vm14161_vm3, %v819_v49, %v1081_v48  ;;  %v1205_v48 = vld [vmem:[#allocation2 + $0x188] sm:$0x1] }
 0x106   :  { %v14749_v34 = vsel %vm14217_vm8, %v815_v23, %v1072_v22  ;;  %1083 = vst [vmem:[#allocation2 + $0x208] sm:$0x1] %v1082_v21  ;;  %v1446_v14 = vrot.slane %v1444_v10, 1  ;;  %v1440_v3 = vsel %vm1224_vm6, %v1435_v52, %v1439_v53  ;;  %v1456_v20 = vshll.u32 %v14555_v2, 16  ;;  %v1207_v52 = vld [vmem:[#allocation2 + $0x198] sm:$0x1] }
 0x107   :  { %4701 = vmatmul.mubr.bf16.gmra.mrb[56].mxu0 %v14459_v26  ;;  %v1076_v26 = vsel %vm14161_vm3, %v812_v9, %v1075_v54  ;;  %1074 = vst [vmem:[#allocation2 + $0x1f0] sm:$0xff] %v14749_v34  ;;  %v1197_v54 = vld [vmem:[#allocation2 + $0x148] sm:$0x1]  ;;  %v826_v56 = vrot.slane %v824_v46, 7  ;;  %v1461_v33 = vshll.u32 %v1199_v18, 16  ;;  %v1468_v17 = vshll.u32 %v14576_v38, 16 }
 0x108   :  { %4708 = vmatprep.mubr.bf16.mxu0 %v1416_v40  ;;  %1077 = vst [vmem:[#allocation2 + $0x1f8] sm:$0x1] %v1076_v26  ;;  %v1084_v40 = vld [vmem:[#allocation2 + $0x210] sm:$0xff]  ;;  %v1449_v59 = vshll.u32 %v1197_v54, 16  ;;  %v1447_v50 = vor.u32 %v1446_v14, %v1442_v35  ;;  %v1454_v23 = vshrl.u32 %v14555_v2, 16  ;;  %v1458_v26 = vrot.slane %v1456_v20, 1 }
 0x109   :  { %v829_v61 = vor.u32 %v827_v27, %v826_v56  ;;  %v1088_v36 = vsel %vm14161_vm3, %v826_v56, %v1087_v58  ;;  %v1470_v13 = vrot.slane %v1468_v17, 1  ;;  %v1475_v12 = vrot.slane %v1473_v37, 1  ;;  %v1209_v58 = vld [vmem:[#allocation2 + $0x1a8] sm:$0x1] }
 0x10a   :  { %1089 = vst [vmem:[#allocation2 + $0x218] sm:$0x1] %v1088_v36  ;;  %v1451_v25 = vrot.slane %v1449_v59, 1  ;;  %v1459_v55 = vor.u32 %v1458_v26, %v1454_v23  ;;  %v1478_v8 = vshrl.u32 %v14590_v63, 16  ;;  %v1485_v39 = vshll.u32 %v1203_v5, 16 }
 0x10b   :  { %v14772_v9 = vsel %vm14217_vm8, %v829_v61, %v1084_v40  ;;  %v1492_v43 = vshll.u32 %v14616_v51, 16  ;;  %v1490_v10 = vshrl.u32 %v14616_v51, 16  ;;  %v1497_v46 = vshll.u32 %v1205_v48, 16  ;;  %v1213_v23 = vld [vmem:[#allocation2 + $0x1c8] sm:$0x1] }
 0x10c   :  { %1086 = vst [vmem:[#allocation2 + $0x210] sm:$0xff] %v14772_v9  ;;  %v1452_v22 = vsel %vm1224_vm6, %v1447_v50, %v1451_v25  ;;  %v1487_v49 = vrot.slane %v1485_v39, 1  ;;  %v1504_v27 = vshll.u32 %v14627_v24, 16  ;;  %v1509_v56 = vshll.u32 %v1207_v52, 16  ;;  %v1211_v50 = vld [vmem:[#allocation2 + $0x1b8] sm:$0x1] }
 0x10d   :  { %v1499_v54 = vrot.slane %v1497_v46, 1  ;;  %v1516_v40 = vshll.u32 %v14657_v0, 16  ;;  %v1514_v59 = vshrl.u32 %v14657_v0, 16  ;;  %v1528_v36 = vshll.u32 %v14670_v19, 16 }
 0x10e   :  { %v1506_v21 = vrot.slane %v1504_v27, 1  ;;  %v1511_v14 = vrot.slane %v1509_v56, 1  ;;  %v1526_v20 = vshrl.u32 %v14670_v19, 16  ;;  %v1533_v17 = vshll.u32 %v1211_v50, 16 }
 0x10f   :  { %4709 = vmatmul.mubr.bf16.gmra.mrb[60].mxu0 %v14479_v41  ;;  %v14763_v41 = vsel %vm14217_vm8, %v822_v47, %v1078_v57  ;;  %v1494_v57 = vrot.slane %v1492_v43, 1  ;;  %v1502_v47 = vshrl.u32 %v14627_v24, 16  ;;  %v1518_v61 = vrot.slane %v1516_v40, 1 }
 0x110   :  { %4716 = vmatprep.mubr.bf16.mxu0 %v1428_v6  ;;  %1080 = vst [vmem:[#allocation2 + $0x200] sm:$0xff] %v14763_v41  ;;  %v1480_v6 = vshll.u32 %v14590_v63, 16  ;;  %v1535_v28 = vrot.slane %v1533_v17, 1  ;;  %v1552_v5 = vshll.u32 %v14708_v31, 16  ;;  %v1564_v43 = vshll.u32 %v14733_v4, 16 }
 0x111   :  { %v1576_v46 = vshll.u32 %v14749_v34, 16  ;;  %v1574_v52 = vshrl.u32 %v14749_v34, 16  ;;  %v1586_v40 = vshrl.u32 %v14763_v41, 16 }
 0x112   :  { %v1482_v62 = vrot.slane %v1480_v6, 1  ;;  %v1550_v6 = vshrl.u32 %v14708_v31, 16 }
 0x117   :  { %4717 = vmatmul.mubr.bf16.gmra.mrb[64].mxu0 %v14640_v30  ;;  %v1463_v30 = vrot.slane %v1461_v33, 1  ;;  %v1530_v33 = vrot.slane %v1528_v36, 1 }
 0x118   :  { %4724 = vmatprep.mubr.bf16.mxu0 %v1440_v3  ;;  %v1521_v3 = vshll.u32 %v1209_v58, 16 }
 0x119   :  { %v1464_v1 = vsel %vm1224_vm6, %v1459_v55, %v1463_v30  ;;  %v1538_v30 = vshrl.u32 %v14696_v44, 16 }
 0x11a   :  { %v1523_v18 = vrot.slane %v1521_v3, 1  ;;  %v1598_v3 = vshrl.u32 %v14772_v9, 16 }
 0x11f   :  { %4725 = vmatmul.mubr.bf16.gmra.mrb[68].mxu0 %v14512_v60  ;;  %v1471_v60 = vor.u32 %v1470_v13, %v1466_v29  ;;  %v1531_v29 = vor.u32 %v1530_v33, %v1526_v20  ;;  %v1545_v13 = vshll.u32 %v1213_v23, 16  ;;  %v153_v23 = vld [vmem:[#allocation2 + $0x100] sm:$0x1] }
 0x120   :  { %4732 = vmatprep.mubr.bf16.mxu0 %v1452_v22  ;;  %v1540_v22 = vshll.u32 %v14696_v44, 16 }
 0x121   :  { %v1476_v16 = vsel %vm1224_vm6, %v1471_v60, %v1475_v12  ;;  %v1536_v55 = vsel %vm1224_vm6, %v1531_v29, %v1535_v28  ;;  %v1547_v37 = vrot.slane %v1545_v13, 1  ;;  %v1215_v12 = vld [vmem:[#allocation2 + $0x1d8] sm:$0x1] }
 0x127   :  { %4733 = vmatmul.mubr.bf16.gmra.mrb[72].mxu0 %v14536_v42  ;;  %v1483_v42 = vor.u32 %v1482_v62, %v1478_v8  ;;  %v1554_v8 = vrot.slane %v1552_v5, 1  ;;  %v1557_v62 = vshll.u32 %v1215_v12, 16  ;;  %v14839_v5 = vld [vmem:[#allocation2 + $0x10] sm:$0xff]  ;;  %v1674_v12 = vld [vmem:[#allocation2 + $0x8] sm:$0x1] }
 0x128   :  { %4740 = vmatprep.mubr.bf16.mxu0 %v1464_v1 }
 0x129   :  { %v1488_v53 = vsel %vm1224_vm6, %v1483_v42, %v1487_v49  ;;  %v1555_v60 = vor.u32 %v1554_v8, %v1550_v6  ;;  %v1559_v39 = vrot.slane %v1557_v62, 1  ;;  %v1566_v49 = vrot.slane %v1564_v43, 1  ;;  %v1675_v43 = vld [vmem:[#allocation2 + $0x10] sm:$0xfe] }
 0x12a   :  { %v1803_v8 = vrot.slane %v1674_v12, 1 }
 0x12b   :  { %v1560_v48 = vsel %vm1224_vm6, %v1555_v60, %v1559_v39  ;;  %v13774_v60 = vld [vmem:[#allocation9 + $0x100] sm:$0xff]  }
 0x12c   :  { %v14849_v39 = vld [vmem:[#allocation2 + $0x20] sm:$0xff] }
 0x12f   :  { %4741 = vmatmul.mubr.bf16.gmra.mrb[76].mxu0 %v14555_v2  ;;  %v1495_v2 = vor.u32 %v1494_v57, %v1490_v10 }
 0x130   :  { %4748 = vmatprep.mubr.bf16.mxu0 %v1476_v16  ;;  %v1562_v16 = vshrl.u32 %v14733_v4, 16 }
 0x131   :  { %v1500_v35 = vsel %vm1224_vm6, %v1495_v2, %v1499_v54  ;;  %v1588_v2 = vshll.u32 %v14763_v41, 16 }
 0x132   :  { %v1567_v57 = vor.u32 %v1566_v49, %v1562_v16  ;;  %v13775_v49 = vld [vmem:[#allocation9 + $0x108] sm:$0xff]  }
 0x133   :  { %v1590_v58 = vrot.slane %v1588_v2, 1  ;;  %v1680_v2 = vld [vmem:[#allocation2 + $0x38] sm:$0x1] }
 0x137   :  { %4749 = vmatmul.mubr.bf16.gmra.mrb[80].mxu0 %v14576_v38  ;;  %v1507_v38 = vor.u32 %v1506_v21, %v1502_v47 }
 0x138   :  { %4756 = vmatprep.mubr.bf16.mxu0 %v1488_v53  ;;  %v1578_v53 = vrot.slane %v1576_v46, 1  ;;  %v1678_v46 = vld [vmem:[#allocation2 + $0x28] sm:$0x1] }
 0x139   :  { %v1512_v25 = vsel %vm1224_vm6, %v1507_v38, %v1511_v14  ;;  %v1591_v14 = vor.u32 %v1590_v58, %v1586_v40  ;;  %v13779_v40 = vld [vmem:[#allocation9 + $0x128] sm:$0xff]  }
 0x13a   :  { %v1579_v47 = vor.u32 %v1578_v53, %v1574_v52  ;;  %v13777_v52 = vld [vmem:[#allocation9 + $0x118] sm:$0xff]  }
 0x13f   :  { %4757 = vmatmul.mubr.bf16.gmra.mrb[84].mxu0 %v14590_v63  ;;  %v1519_v63 = vor.u32 %v1518_v61, %v1514_v59  ;;  %v1600_v61 = vshll.u32 %v14772_v9, 16 }
 0x140   :  { %4764 = vmatprep.mubr.bf16.mxu0 %v1500_v35 }
 0x141   :  { %v1524_v26 = vsel %vm1224_vm6, %v1519_v63, %v1523_v18  ;;  %v1602_v36 = vrot.slane %v1600_v61, 1  ;;  %v354_v18 = vld [vmem:[#allocation8 + $0xf8] sm:$0xff]  ;;  %v1682_v61 = vld [vmem:[#allocation2 + $0x48] sm:$0x1] }
 0x142   :  { %v418_v33 = vmax.f32 %v354_v18, 0.0  ;;  %v1683_v18 = vld [vmem:[#allocation2 + $0x50] sm:$0xfe] }
 0x147   :  { %4765 = vmatmul.mubr.bf16.gmra.mrb[88].mxu0 %v14616_v51  ;;  %v1542_v51 = vrot.slane %v1540_v22, 1  ;;  %v483_v22 = vadd.f32 %v14187_v32, %v418_v33  ;;  %v1817_v33 = vrot.slane %v1683_v18, 1 }
 0x148   :  { %4772 = vmatprep.mubr.bf16.mxu0 %v1512_v25  ;;  %v353_v25 = vld [vmem:[#allocation8 + $0xf0] sm:$0xff] }
 0x149   :  { %v1543_v1 = vor.u32 %v1542_v51, %v1538_v30  ;;  %v417_v20 = vmax.f32 %v353_v25, 0.0  ;;  %v548_v30 = vsel %vm516_vm7, %v483_v22, 0.0  ;;  %v14872_v25 = vld [vmem:[#allocation2 + $0x60] sm:$0xff]  ;;  %v13784_v22 = vld [vmem:[#allocation9 + $0x150] sm:$0xff]  }
 0x14b   :  { %v482_v17 = vadd.f32 %v14187_v32, %v417_v20  ;;  %v1684_v20 = vld [vmem:[#allocation2 + $0x58] sm:$0x1] }
 0x14d   :  { %v547_v28 = vsel %vm516_vm7, %v482_v17, 0.0 }
 0x14e   :  { %v596_v29 = vpack.c.bf16 %v548_v30, %v547_v28  ;;  %v1686_v28 = vld [vmem:[#allocation2 + $0x68] sm:$0x1] }
 0x14f   :  { %4773 = vmatmul.mubr.bf16.gmra.mrb[92].mxu0 %v14627_v24  ;;  %v1548_v24 = vsel %vm1224_vm6, %v1543_v1, %v1547_v37  ;;  %v1673_v1 = vld [vmem:[#allocation2] sm:$0xfe] }
 0x150   :  { %4780 = vmatprep.mubr.bf16.mxu0 %v1524_v26  ;;  %v154_v26 = vsel %vm14161_vm3, 0, %v153_v23  ;;  %v719_v51 = vshrl.u32 %v596_v29, 16  ;;  %v722_v13 = vshll.u32 %v596_v29, 16  ;;  %v14878_v23 = vld [vmem:[#allocation2 + $0x70] sm:$0xff] }
 0x151   :  { %155 = vst [vmem:[#allocation2 + $0x100] sm:$0x1] %v154_v26  ;;  %v1685_v26 = vld [vmem:[#allocation2 + $0x60] sm:$0xfe] }
 0x152   :  { %v1820_v30 = vrot.slane %v1685_v26, 1 }
 0x157   :  { %4781 = vmatmul.mubr.bf16.gmra.mrb[96].mxu0 %v14657_v0  ;;  %v1217_v0 = vld [vmem:[#allocation2 + $0x1e8] sm:$0x1] }
 0x158   :  { %4788 = vmatprep.mubr.bf16.mxu0 %v1536_v55  ;;  %v1569_v10 = vshll.u32 %v1217_v0, 16  ;;  %v14836_v55 = vrot.slane %v719_v51, 7  ;;  %v994_v6 = vld [vmem:[#allocation2 + $0x100] sm:$0xff]  ;;  %v1676_v0 = vld [vmem:[#allocation2 + $0x18] sm:$0x1] }
 0x159   :  { %v1806_v16 = vrot.slane %v1676_v0, 1  ;;  %v14884_v51 = vld [vmem:[#allocation2 + $0x80] sm:$0xff] }
 0x15a   :  { %v1571_v42 = vrot.slane %v1569_v10, 1  ;;  %v724_v37 = vor.u32 %v722_v13, %v14836_v55  ;;  %v13776_v10 = vld [vmem:[#allocation9 + $0x110] sm:$0xff]  }
 0x15b   :  { %v1687_v13 = vld [vmem:[#allocation2 + $0x70] sm:$0xfe] }
 0x15c   :  { %v1572_v27 = vsel %vm1224_vm6, %v1567_v57, %v1571_v42  ;;  %v14854_v57 = vld [vmem:[#allocation2 + $0x30] sm:$0xff]  ;;  %v1677_v42 = vld [vmem:[#allocation2 + $0x20] sm:$0xfe] }
 0x15f   :  { %4789 = vmatmul.mubr.bf16.gmra.mrb[100].mxu0 %v14670_v19  ;;  %v1219_v19 = vld [vmem:[#allocation2 + $0x1f8] sm:$0x1] }
 0x160   :  { %4796 = vmatprep.mubr.bf16.mxu0 %v1548_v24  ;;  %v1581_v54 = vshll.u32 %v1219_v19, 16  ;;  %v14843_v24 = vsel %vm14217_vm8, %v724_v37, %v994_v6  ;;  %v1808_v19 = vrot.slane %v1677_v42, 1  ;;  %v1688_v37 = vld [vmem:[#allocation2 + $0x78] sm:$0x1] }
 0x161   :  { %996 = vst [vmem:[#allocation2 + $0x100] sm:$0xff] %v14843_v24  ;;  %v13785_v6 = vld [vmem:[#allocation9 + $0x158] sm:$0xff]   ;;  %v1824_v12 = vrot.slane %v1688_v37, 1 }
 0x162   :  { %v1583_v21 = vrot.slane %v1581_v54, 1  ;;  %v13778_v54 = vld [vmem:[#allocation9 + $0x120] sm:$0xff]  }
 0x164   :  { %v1584_v56 = vsel %vm1224_vm6, %v1579_v47, %v1583_v21  ;;  %v14860_v47 = vld [vmem:[#allocation2 + $0x40] sm:$0xff]  ;;  %v1679_v21 = vld [vmem:[#allocation2 + $0x30] sm:$0xfe] }
 0x167   :  { %4797 = vmatmul.mubr.bf16.gmra.mrb[104].mxu0 %v14696_v44  ;;  %v1221_v44 = vld [vmem:[#allocation2 + $0x208] sm:$0x1] }
 0x168   :  { %4804 = vmatprep.mubr.bf16.mxu0 %v1560_v48  ;;  %v1593_v35 = vshll.u32 %v1221_v44, 16  ;;  %v1805_v48 = vrot.slane %v1675_v43, 1  ;;  %v1811_v44 = vrot.slane %v1679_v21, 1 }
 0x16a   :  { %v1595_v59 = vrot.slane %v1593_v35, 1  ;;  %v13780_v35 = vld [vmem:[#allocation9 + $0x130] sm:$0xff]  }
 0x16c   :  { %v1596_v38 = vsel %vm1224_vm6, %v1591_v14, %v1595_v59  ;;  %v14866_v14 = vld [vmem:[#allocation2 + $0x50] sm:$0xff]  ;;  %v1681_v59 = vld [vmem:[#allocation2 + $0x40] sm:$0xfe] }
 0x16f   :  { %4805 = vmatmul.mubr.bf16.gmra.mrb[108].mxu0 %v14708_v31  ;;  %v1223_v31 = vld [vmem:[#allocation2 + $0x218] sm:$0x1] }
 0x170   :  { %4812 = vmatprep.mubr.bf16.mxu0 %v1572_v27  ;;  %v1605_v50 = vshll.u32 %v1223_v31, 16  ;;  %v1809_v27 = vrot.slane %v1678_v46, 1  ;;  %v1814_v31 = vrot.slane %v1681_v59, 1  ;;  %v14905_v59 = vld [vmem:[#allocation2 + $0x110] sm:$0xff] }
 0x172   :  { %v1607_v63 = vrot.slane %v1605_v50, 1  ;;  %v1810_v53 = vsel %vm1801_vm9, %v1808_v19, %v1809_v27  ;;  %v13782_v50 = vld [vmem:[#allocation9 + $0x140] sm:$0xff]   ;;  %v14898_v27 = vld [vmem:[#allocation2 + $0xb0] sm:$0xff] }
 0x177   :  { %4813 = vmatmul.mubr.bf16.gmra.mrb[112].mxu0 %v14733_v4  ;;  %v1603_v4 = vor.u32 %v1602_v36, %v1598_v3  ;;  %v13781_v3 = vld [vmem:[#allocation9 + $0x138] sm:$0xff]  }
 0x178   :  { %4820 = vmatprep.mubr.bf16.mxu0 %v1584_v56  ;;  %v1812_v56 = vrot.slane %v1680_v2, 1 }
 0x17a   :  { %v1813_v58 = vsel %vm1801_vm9, %v1811_v44, %v1812_v56  ;;  %v14902_v44 = vld [vmem:[#allocation2 + $0xc0] sm:$0xff]  ;;  %v1695_v56 = vld [vmem:[#allocation2 + $0xb0] sm:$0xfe] }
 0x17f   :  { %4821 = vmatmul.mubr.bf16.gmra.mrb[116].mxu0 %v14749_v34  ;;  %v1608_v34 = vsel %vm1224_vm6, %v1603_v4, %v1607_v63  ;;  %v1818_v4 = vrot.slane %v1684_v20, 1  ;;  %v13783_v63 = vld [vmem:[#allocation9 + $0x148] sm:$0xff]   ;;  %v14913_v20 = vld [vmem:[#allocation2 + $0xe0] sm:$0xff] }
 0x180   :  { %4828 = vmatprep.mubr.bf16.mxu0 %v1596_v38  ;;  %v1815_v38 = vrot.slane %v1682_v61, 1 }
 0x181   :  { %v1819_v17 = vsel %vm1801_vm9, %v1817_v33, %v1818_v4  ;;  %v1699_v33 = vld [vmem:[#allocation2 + $0xd0] sm:$0xfe]  ;;  %v1700_v4 = vld [vmem:[#allocation2 + $0xd8] sm:$0x1] }
 0x182   :  { %v1816_v36 = vsel %vm1801_vm9, %v1814_v31, %v1815_v38  ;;  %v14909_v31 = vld [vmem:[#allocation2 + $0xd0] sm:$0xff]  ;;  %v1697_v38 = vld [vmem:[#allocation2 + $0xc0] sm:$0xfe] }
 0x187   :  { %4829 = vmatmul.mubr.bf16.gmra.mrb[120].mxu0 %v14763_v41  ;;  %v1802_v41 = vrot.slane %v1673_v1, 1  ;;  %v1823_v1 = vrot.slane %v1687_v13, 1  ;;  %v386_v13 = vld [vmem:[#allocation8 + $0x1f8] sm:$0xff] }
 0x188   :  { %4836 = vmatprep.mubr.bf16.mxu0 %v1608_v34  ;;  %v1821_v34 = vrot.slane %v1686_v28, 1  ;;  %v14918_v28 = vld [vmem:[#allocation2 + $0xf0] sm:$0xff] }
 0x189   :  { %v1804_v62 = vsel %vm1801_vm9, %v1802_v41, %v1803_v8  ;;  %v1825_v41 = vsel %vm1801_vm9, %v1823_v1, %v1824_v12  ;;  %v14889_v8 = vld [vmem:[#allocation2 + $0x90] sm:$0xff]  ;;  %v450_v12 = vmax.f32 %v386_v13, 0.0 }
 0x18a   :  { %v1822_v29 = vsel %vm1801_vm9, %v1820_v30, %v1821_v34  ;;  %v1701_v30 = vld [vmem:[#allocation2 + $0xe0] sm:$0xfe]  ;;  %v1702_v34 = vld [vmem:[#allocation2 + $0xe8] sm:$0x1]  ;;  %v1711_v13 = vld [vmem:[#allocation2 + $0x150] sm:$0xfe] }
 0x18b   :  { %v1844_v37 = vrot.slane %v1701_v30, 1 }
 0x18f   :  { %4837 = vmatmul.mubr.bf16.gmra.mrb[124].mxu0 %v14772_v9  ;;  %v1807_v9 = vsel %vm1801_vm9, %v1805_v48, %v1806_v16  ;;  %v14893_v16 = vld [vmem:[#allocation2 + $0xa0] sm:$0xff] }
 0x190   :  { %4877 = vmatprep.mubr.bf16.mxu0 %v14839_v5 }
 0x197   :  { %4878 = vmatmul.mubr.bf16.vlgmr.msra.gmra.mrb[0].mxu0 %v1804_v62  ;;  %v1689_v62 = vld [vmem:[#allocation2 + $0x80] sm:$0xfe] }
 0x198   :  { %5135 = vmatpush1.bf16.msra.mxu0 %v13774_v60  ;;  %4885 = vmatprep.mubr.bf16.mxu0 %v14849_v39  ;;  %v1690_v60 = vld [vmem:[#allocation2 + $0x88] sm:$0x1]  ;;  %v1826_v43 = vrot.slane %v1689_v62, 1  ;;  %v515_v62 = vadd.f32 %v14187_v32, %v450_v12 }
 0x199   :  { %5136 = vmatprep.subr.bf16.mxu0 %v14744_v45  ;;  %v1827_v0 = vrot.slane %v1690_v60, 1  ;;  %v207_v60 = vld [vmem:[#allocation2 + $0x220] sm:$0x1] }
 0x19b   :  { %v1828_v48 = vsel %vm1801_vm9, %v1826_v43, %v1827_v0  ;;  %v208_v0 = vsel %vm14161_vm3, 0, %v207_v60  ;;  %v1714_v60 = vld [vmem:[#allocation2 + $0x168] sm:$0x1] }
 0x19c   :  { %5137 = vmatpush1.bf16.msra.mxu0 %v13775_v49  ;;  %v1691_v49 = vld [vmem:[#allocation2 + $0x90] sm:$0xfe]  ;;  %209 = vst [vmem:[#allocation2 + $0x220] sm:$0x1] %v208_v0  ;;  %v1863_v0 = vrot.slane %v1714_v60, 1 }
 0x19d   :  { %5138 = vmatprep.subr.bf16.mxu0 %v14744_v45  ;;  %v1829_v42 = vrot.slane %v1691_v49, 1  ;;  %v580_v49 = vsel %vm516_vm7, %v515_v62, 0.0  ;;  %v1713_v62 = vld [vmem:[#allocation2 + $0x160] sm:$0xfe] }
 0x19f   :  { %4886 = vmatmul.mubr.bf16.gmra.mrb[4].mxu0 %v1807_v9  ;;  %v1692_v9 = vld [vmem:[#allocation2 + $0x98] sm:$0x1] }
 0x1a0   :  { %4893 = vmatprep.mubr.bf16.mxu0 %v14854_v57  ;;  %5139 = vmatpush1.bf16.msra.mxu0 %v13776_v10  ;;  %v13786_v10 = vld [vmem:[#allocation9 + $0x160] sm:$0xff]   ;;  %v1830_v46 = vrot.slane %v1692_v9, 1  ;;  %v1703_v9 = vld [vmem:[#allocation2 + $0xf0] sm:$0xfe] }
 0x1a1   :  { %5140 = vmatprep.subr.bf16.mxu0 %v14744_v45 }
 0x1a2   :  { %v1831_v19 = vsel %vm1801_vm9, %v1829_v42, %v1830_v46  ;;  %v13789_v46 = vld [vmem:[#allocation9 + $0x178] sm:$0xff]  }
 0x1a4   :  { %5141 = vmatpush1.bf16.msra.mxu0 %v13777_v52  ;;  %v1693_v52 = vld [vmem:[#allocation2 + $0xa0] sm:$0xfe] }
 0x1a5   :  { %5142 = vmatprep.subr.bf16.mxu0 %v14744_v45 }
 0x1a7   :  { %4894 = vmatmul.mubr.bf16.gmra.mrb[8].mxu0 %v1810_v53  ;;  %v1694_v53 = vld [vmem:[#allocation2 + $0xa8] sm:$0x1] }
 0x1a8   :  { %4901 = vmatprep.mubr.bf16.mxu0 %v14860_v47  ;;  %5143 = vmatpush1.bf16.msra.mxu0 %v13778_v54  ;;  %v1832_v54 = vrot.slane %v1693_v52, 1  ;;  %v1833_v21 = vrot.slane %v1694_v53, 1 }
 0x1a9   :  { %5144 = vmatprep.subr.bf16.mxu0 %v14744_v45 }
 0x1aa   :  { %v1834_v2 = vsel %vm1801_vm9, %v1832_v54, %v1833_v21 }
 0x1ac   :  { %5145 = vmatpush1.bf16.msra.mxu0 %v13779_v40  ;;  %v1696_v40 = vld [vmem:[#allocation2 + $0xb8] sm:$0x1] }
 0x1ad   :  { %5146 = vmatprep.subr.bf16.mxu0 %v14744_v45 }
 0x1af   :  { %4902 = vmatmul.mubr.bf16.gmra.mrb[12].mxu0 %v1813_v58  ;;  %v13787_v58 = vld [vmem:[#allocation9 + $0x168] sm:$0xff]  }
 0x1b0   :  { %4909 = vmatprep.mubr.bf16.mxu0 %v14866_v14  ;;  %5147 = vmatpush1.bf16.msra.mxu0 %v13780_v35  ;;  %v1836_v35 = vrot.slane %v1696_v40, 1  ;;  %v14934_v40 = vld [vmem:[#allocation2 + $0x130] sm:$0xff] }
 0x1b1   :  { %5148 = vmatprep.subr.bf16.mxu0 %v14744_v45 }
 0x1b4   :  { %5149 = vmatpush1.bf16.msra.mxu0 %v13781_v3  ;;  %v1698_v3 = vld [vmem:[#allocation2 + $0xc8] sm:$0x1] }
 0x1b5   :  { %5150 = vmatprep.subr.bf16.mxu0 %v14744_v45 }
 0x1b7   :  { %4910 = vmatmul.mubr.bf16.gmra.mrb[16].mxu0 %v1816_v36  ;;  %v1838_v36 = vrot.slane %v1697_v38, 1 }
 0x1b8   :  { %4917 = vmatprep.mubr.bf16.mxu0 %v14872_v25  ;;  %5151 = vmatpush1.bf16.msra.mxu0 %v13782_v50  ;;  %v1839_v50 = vrot.slane %v1698_v3, 1  ;;  %v14943_v3 = vld [vmem:[#allocation2 + $0x140] sm:$0xff] }
 0x1b9   :  { %5152 = vmatprep.subr.bf16.mxu0 %v14744_v45 }
 0x1ba   :  { %v1840_v18 = vsel %vm1801_vm9, %v1838_v36, %v1839_v50  ;;  %v1707_v36 = vld [vmem:[#allocation2 + $0x130] sm:$0xfe]  ;;  %v1708_v50 = vld [vmem:[#allocation2 + $0x138] sm:$0x1] }
 0x1bc   :  { %5153 = vmatpush1.bf16.msra.mxu0 %v13783_v63  ;;  %v13788_v63 = vld [vmem:[#allocation9 + $0x170] sm:$0xff]  }
 0x1bd   :  { %5154 = vmatprep.subr.bf16.mxu0 %v14744_v45 }
 0x1bf   :  { %4918 = vmatmul.mubr.bf16.gmra.mrb[20].mxu0 %v1819_v17  ;;  %v1841_v17 = vrot.slane %v1699_v33, 1  ;;  %v1854_v33 = vrot.slane %v1708_v50, 1  ;;  %v1986_v50 = vld [vmem:[#allocation2 + $0x1b0] sm:$0xff] }
 0x1c0   :  { %4925 = vmatprep.mubr.bf16.mxu0 %v14878_v23  ;;  %5155 = vmatpush1.bf16.msra.mxu0 %v13784_v22  ;;  %v1842_v22 = vrot.slane %v1700_v4, 1 }
 0x1c1   :  { %5156 = vmatprep.subr.bf16.mxu0 %v14744_v45 }
 0x1c2   :  { %v1843_v26 = vsel %vm1801_vm9, %v1841_v17, %v1842_v22  ;;  %v1709_v17 = vld [vmem:[#allocation2 + $0x140] sm:$0xfe]  ;;  %v1710_v22 = vld [vmem:[#allocation2 + $0x148] sm:$0x1] }
 0x1c3   :  { %v1857_v30 = vrot.slane %v1710_v22, 1 }
 0x1c4   :  { %5157 = vmatpush1.bf16.msra.mxu0 %v13785_v6  ;;  %v1845_v6 = vrot.slane %v1702_v34, 1 }
 0x1c5   :  { %5158 = vmatprep.subr.bf16.mxu0 %v14744_v45 }
 0x1c6   :  { %v1846_v43 = vsel %vm1801_vm9, %v1844_v37, %v1845_v6  ;;  %v1712_v37 = vld [vmem:[#allocation2 + $0x158] sm:$0x1]  ;;  %v1859_v6 = vrot.slane %v1711_v13, 1 }
 0x1c7   :  { %4926 = vmatmul.mubr.bf16.gmra.mrb[24].mxu0 %v1822_v29  ;;  %v385_v29 = vld [vmem:[#allocation8 + $0x1f0] sm:$0xff] }
 0x1c8   :  { %4933 = vmatprep.mubr.bf16.mxu0 %v14884_v51  ;;  %5159 = vmatpush1.bf16.msra.mxu0 %v13786_v10  ;;  %v449_v1 = vmax.f32 %v385_v29, 0.0  ;;  %v1704_v10 = vld [vmem:[#allocation2 + $0xf8] sm:$0x1]  ;;  %v1981_v29 = vld [vmem:[#allocation2 + $0x160] sm:$0xff] }
 0x1c9   :  { %5160 = vmatprep.subr.bf16.mxu0 %v14744_v45  ;;  %v1835_v45 = vrot.slane %v1695_v56, 1  ;;  %v1848_v53 = vrot.slane %v1704_v10, 1  ;;  %v1090_v56 = vld [vmem:[#allocation2 + $0x220] sm:$0xff]  ;;  %v1716_v10 = vld [vmem:[#allocation2 + $0x178] sm:$0x1] }
 0x1cb   :  { %v1837_v61 = vsel %vm1801_vm9, %v1835_v45, %v1836_v35  ;;  %v1706_v45 = vld [vmem:[#allocation2 + $0x128] sm:$0x1] }
 0x1cc   :  { %5161 = vmatpush1.bf16.msra.mxu0 %v13787_v58  ;;  %v1705_v58 = vld [vmem:[#allocation2 + $0x120] sm:$0xfe] }
 0x1cd   :  { %5162 = vmatprep.subr.bf16.mxu0 %v14905_v59 }
 0x1cf   :  { %4934 = vmatmul.mubr.bf16.gmra.mrb[28].mxu0 %v1825_v41  ;;  %v514_v41 = vadd.f32 %v14187_v32, %v449_v1  ;;  %v1847_v32 = vrot.slane %v1703_v9, 1  ;;  %v1860_v1 = vrot.slane %v1712_v37, 1  ;;  %v1715_v9 = vld [vmem:[#allocation2 + $0x170] sm:$0xfe] }
 0x1d0   :  { %4941 = vmatprep.mubr.bf16.mxu0 %v14889_v8  ;;  %5163 = vmatpush1.bf16.msra.mxu0 %v13788_v63  ;;  %v14947_v63 = vld [vmem:[#allocation2 + $0x150] sm:$0xff] }
 0x1d1   :  { %5164 = vmatprep.subr.bf16.mxu0 %v14905_v59  ;;  %v1861_v12 = vsel %vm1801_vm9, %v1859_v6, %v1860_v1  ;;  %v1725_v6 = vld [vmem:[#allocation2 + $0x1c0] sm:$0xfe]  ;;  %v1726_v1 = vld [vmem:[#allocation2 + $0x1c8] sm:$0x1] }
 0x1d4   :  { %5165 = vmatpush1.bf16.msra.mxu0 %v13789_v46  ;;  %v1866_v46 = vrot.slane %v1716_v10, 1 }
 0x1d5   :  { %5423 = vmatprep.subr.bf16.mxu0 %v14905_v59 }
 0x1d7   :  { %4942 = vmatmul.mubr.bf16.gmra.mrb[32].mxu0 %v1828_v48  ;;  %v579_v48 = vsel %vm516_vm7, %v514_v41, 0.0  ;;  %v1982_v41 = vld [vmem:[#allocation2 + $0x170] sm:$0xff] }
 0x1d8   :  { %4949 = vmatprep.mubr.bf16.mxu0 %v14893_v16  ;;  %v612_v42 = vpack.c.bf16 %v580_v49, %v579_v48  ;;  %v1983_v49 = vld [vmem:[#allocation2 + $0x180] sm:$0xff] }
 0x1da   :  { %v834_v52 = vshll.u32 %v612_v42, 16 }
 0x1df   :  { %4950 = vmatmul.mubr.bf16.gmra.mrb[36].mxu0 %v1831_v19  ;;  %v831_v19 = vshrl.u32 %v612_v42, 16  ;;  %v1865_v42 = vrot.slane %v1715_v9, 1 }
 0x1e0   :  { %4957 = vmatprep.mubr.bf16.mxu0 %v14898_v27 }
 0x1e1   :  { %v14929_v54 = vrot.slane %v831_v19, 7  ;;  %v1867_v19 = vsel %vm1801_vm9, %v1865_v42, %v1866_v46  ;;  %v1729_v42 = vld [vmem:[#allocation2 + $0x1e0] sm:$0xfe]  ;;  %v1730_v46 = vld [vmem:[#allocation2 + $0x1e8] sm:$0x1] }
 0x1e3   :  { %v836_v21 = vor.u32 %v834_v52, %v14929_v54  ;;  %v1984_v52 = vld [vmem:[#allocation2 + $0x190] sm:$0xff] }
 0x1e5   :  { %v14938_v35 = vsel %vm14217_vm8, %v836_v21, %v1090_v56 }
 0x1e6   :  { %1092 = vst [vmem:[#allocation2 + $0x220] sm:$0xff] %v14938_v35 }
 0x1e7   :  { %4958 = vmatmul.mubr.bf16.gmra.mrb[40].mxu0 %v1834_v2  ;;  %v1849_v2 = vsel %vm1801_vm9, %v1847_v32, %v1848_v53  ;;  %v1717_v32 = vld [vmem:[#allocation2 + $0x180] sm:$0xfe]  ;;  %v1718_v53 = vld [vmem:[#allocation2 + $0x188] sm:$0x1] }
 0x1e8   :  { %4965 = vmatprep.mubr.bf16.mxu0 %v14902_v44  ;;  %v1868_v21 = vrot.slane %v1717_v32, 1  ;;  %v1887_v32 = vrot.slane %v1730_v46, 1 }
 0x1ef   :  { %4966 = vmatmul.mubr.bf16.gmra.mrb[44].mxu0 %v1837_v61  ;;  %v1851_v61 = vrot.slane %v1706_v45, 1  ;;  %v1719_v45 = vld [vmem:[#allocation2 + $0x190] sm:$0xfe] }
 0x1f0   :  { %4973 = vmatprep.mubr.bf16.mxu0 %v14909_v31 }
 0x1f7   :  { %4974 = vmatmul.mubr.bf16.gmra.mrb[48].mxu0 %v1840_v18  ;;  %v1853_v18 = vrot.slane %v1707_v36, 1 }
 0x1f8   :  { %4981 = vmatprep.mubr.bf16.mxu0 %v14913_v20 }
 0x1f9   :  { %v1855_v4 = vsel %vm1801_vm9, %v1853_v18, %v1854_v33  ;;  %v1721_v18 = vld [vmem:[#allocation2 + $0x1a0] sm:$0xfe]  ;;  %v1722_v33 = vld [vmem:[#allocation2 + $0x1a8] sm:$0x1] }
 0x1ff   :  { %4982 = vmatmul.mubr.bf16.gmra.mrb[52].mxu0 %v1843_v26  ;;  %v1856_v26 = vrot.slane %v1709_v17, 1  ;;  %v1875_v17 = vrot.slane %v1722_v33, 1 }
 0x200   :  { %4989 = vmatprep.mubr.bf16.mxu0 %v14918_v28 }
 0x201   :  { %v1858_v34 = vsel %vm1801_vm9, %v1856_v26, %v1857_v30  ;;  %v1723_v26 = vld [vmem:[#allocation2 + $0x1b0] sm:$0xfe]  ;;  %v1724_v30 = vld [vmem:[#allocation2 + $0x1b8] sm:$0x1] }
 0x202   :  { %v1878_v13 = vrot.slane %v1724_v30, 1  ;;  %v1735_v30 = vld [vmem:[#allocation2 + $0x210] sm:$0xfe] }
 0x207   :  { %4990 = vmatmul.mubr.bf16.gmra.mrb[56].mxu0 %v1846_v43  ;;  %v1862_v43 = vrot.slane %v1713_v62, 1  ;;  %v1881_v62 = vrot.slane %v1726_v1, 1  ;;  %v2093_v1 = vshll.u32 %v14839_v5, 16 }
 0x208   :  { %4997 = vmatprep.mubr.bf16.mxu0 %v14843_v24  ;;  %v1850_v24 = vrot.slane %v1705_v58, 1  ;;  %v1985_v58 = vld [vmem:[#allocation2 + $0x1a0] sm:$0xff] }
 0x209   :  { %v1864_v48 = vsel %vm1801_vm9, %v1862_v43, %v1863_v0  ;;  %v1727_v43 = vld [vmem:[#allocation2 + $0x1d0] sm:$0xfe]  ;;  %v1728_v0 = vld [vmem:[#allocation2 + $0x1d8] sm:$0x1] }
 0x20a   :  { %v1852_v38 = vsel %vm1801_vm9, %v1850_v24, %v1851_v61  ;;  %v1720_v24 = vld [vmem:[#allocation2 + $0x198] sm:$0x1]  ;;  %v1871_v61 = vrot.slane %v1719_v45, 1  ;;  %v1884_v9 = vrot.slane %v1728_v0, 1 }
 0x20f   :  { %4998 = vmatmul.mubr.bf16.gmra.mrb[60].mxu0 %v1849_v2  ;;  %v1869_v2 = vrot.slane %v1718_v53, 1 }
 0x210   :  { %5005 = vmatprep.mubr.bf16.mxu0 %v14934_v40 }
 0x211   :  { %v1870_v56 = vsel %vm1801_vm9, %v1868_v21, %v1869_v2  ;;  %v1731_v21 = vld [vmem:[#allocation2 + $0x1f0] sm:$0xfe]  ;;  %v1732_v2 = vld [vmem:[#allocation2 + $0x1f8] sm:$0x1] }
 0x212   :  { %v1890_v45 = vrot.slane %v1732_v2, 1 }
 0x217   :  { %5006 = vmatmul.mubr.bf16.gmra.mrb[64].mxu0 %v1852_v38  ;;  %v1872_v38 = vrot.slane %v1720_v24, 1  ;;  %v263_v24 = vld [vmem:[#allocation2 + $0x108] sm:$0x1] }
 0x218   :  { %5013 = vmatprep.mubr.bf16.mxu0 %v14943_v3 }
 0x219   :  { %v1873_v36 = vsel %vm1801_vm9, %v1871_v61, %v1872_v38  ;;  %v264_v61 = vsel %vm14168_vm4, 0, %v263_v24 }
 0x21a   :  { %265 = vst [vmem:[#allocation2 + $0x108] sm:$0x1] %v264_v61 }
 0x21f   :  { %5014 = vmatmul.mubr.bf16.gmra.mrb[68].mxu0 %v1855_v4  ;;  %v1874_v4 = vrot.slane %v1721_v18, 1  ;;  %v13902_v18 = vld [vmem:[#allocation2 + $0x210] sm:$0xff] }
 0x220   :  { %5021 = vmatprep.mubr.bf16.mxu0 %v14947_v63 }
 0x221   :  { %v1876_v22 = vsel %vm1801_vm9, %v1874_v4, %v1875_v17  ;;  %v997_v17 = vld [vmem:[#allocation2 + $0x108] sm:$0x1] }
 0x227   :  { %5022 = vmatmul.mubr.bf16.gmra.mrb[72].mxu0 %v1858_v34  ;;  %v13897_v34 = vld [vmem:[#allocation2 + $0x1c0] sm:$0xff] }
 0x228   :  { %5029 = vmatprep.mubr.bf16.mxu0 %v1981_v29  ;;  %v1877_v29 = vrot.slane %v1723_v26, 1 }
 0x22a   :  { %v1879_v37 = vsel %vm1801_vm9, %v1877_v29, %v1878_v13  ;;  %v2538_v29 = vld [vmem:[#allocation2 + $0x10] sm:$0xfe]  ;;  %v2539_v13 = vld [vmem:[#allocation2 + $0x18] sm:$0x1] }
 0x22f   :  { %5030 = vmatmul.mubr.bf16.gmra.mrb[76].mxu0 %v1861_v12  ;;  %v13898_v12 = vld [vmem:[#allocation2 + $0x1d0] sm:$0xff] }
 0x230   :  { %5037 = vmatprep.mubr.bf16.mxu0 %v1982_v41  ;;  %v1880_v41 = vrot.slane %v1725_v6, 1 }
 0x232   :  { %v1882_v60 = vsel %vm1801_vm9, %v1880_v41, %v1881_v62  ;;  %v2667_v41 = vrot.slane %v2539_v13, 1  ;;  %v2027_v62 = vld [vmem:[#allocation2 + $0x18] sm:$0x1] }
 0x233   :  { %v2098_v0 = vshll.u32 %v2027_v62, 16 }
 0x237   :  { %5038 = vmatmul.mubr.bf16.gmra.mrb[80].mxu0 %v1864_v48  ;;  %v13899_v48 = vld [vmem:[#allocation2 + $0x1e0] sm:$0xff] }
 0x238   :  { %5045 = vmatprep.mubr.bf16.mxu0 %v1983_v49  ;;  %v1883_v49 = vrot.slane %v1727_v43, 1  ;;  %v2095_v43 = vrot.slane %v2093_v1, 1  ;;  %v13793_v1 = vld [vmem:[#allocation9 + $0x198] sm:$0xff]  }
 0x23a   :  { %v1885_v10 = vsel %vm1801_vm9, %v1883_v49, %v1884_v9  ;;  %v2540_v49 = vld [vmem:[#allocation2 + $0x20] sm:$0xfe]  ;;  %v2541_v9 = vld [vmem:[#allocation2 + $0x28] sm:$0x1] }
 0x23b   :  { %v2669_v46 = vrot.slane %v2540_v49, 1  ;;  %v2546_v49 = vld [vmem:[#allocation2 + $0x50] sm:$0xfe] }
 0x23f   :  { %5046 = vmatmul.mubr.bf16.gmra.mrb[84].mxu0 %v1867_v19  ;;  %v13900_v19 = vld [vmem:[#allocation2 + $0x1f0] sm:$0xff] }
 0x240   :  { %5053 = vmatprep.mubr.bf16.mxu0 %v1984_v52  ;;  %v1886_v52 = vrot.slane %v1729_v42, 1  ;;  %v2105_v42 = vshll.u32 %v14849_v39, 16 }
 0x242   :  { %v1888_v53 = vsel %vm1801_vm9, %v1886_v52, %v1887_v32  ;;  %v2029_v52 = vld [vmem:[#allocation2 + $0x28] sm:$0x1] }
 0x243   :  { %v2110_v2 = vshll.u32 %v2029_v52, 16  ;;  %v2035_v52 = vld [vmem:[#allocation2 + $0x58] sm:$0x1] }
 0x245   :  { %v2112_v61 = vrot.slane %v2110_v2, 1  ;;  %v13796_v2 = vld [vmem:[#allocation9 + $0x1b0] sm:$0xff]  }
 0x247   :  { %5054 = vmatmul.mubr.bf16.gmra.mrb[88].mxu0 %v1870_v56  ;;  %v13901_v56 = vld [vmem:[#allocation2 + $0x200] sm:$0xff] }
 0x248   :  { %5061 = vmatprep.mubr.bf16.mxu0 %v1985_v58  ;;  %v1889_v58 = vrot.slane %v1731_v21, 1  ;;  %v2107_v21 = vrot.slane %v2105_v42, 1  ;;  %v2141_v42 = vshll.u32 %v14866_v14, 16 }
 0x24a   :  { %v1891_v38 = vsel %vm1801_vm9, %v1889_v58, %v1890_v45  ;;  %v2542_v58 = vld [vmem:[#allocation2 + $0x30] sm:$0xfe]  ;;  %v2543_v45 = vld [vmem:[#allocation2 + $0x38] sm:$0x1] }
 0x24f   :  { %5062 = vmatmul.mubr.bf16.gmra.mrb[92].mxu0 %v1873_v36  ;;  %v1733_v36 = vld [vmem:[#allocation2 + $0x200] sm:$0xfe] }
 0x250   :  { %5069 = vmatprep.mubr.bf16.mxu0 %v1986_v50  ;;  %v1734_v50 = vld [vmem:[#allocation2 + $0x208] sm:$0x1]  ;;  %v1892_v33 = vrot.slane %v1733_v36, 1 }
 0x251   :  { %v1893_v4 = vrot.slane %v1734_v50, 1  ;;  %v13791_v36 = vld [vmem:[#allocation9 + $0x188] sm:$0xff]   ;;  %v2672_v50 = vrot.slane %v2542_v58, 1  ;;  %v2548_v58 = vld [vmem:[#allocation2 + $0x60] sm:$0xfe] }
 0x253   :  { %v1894_v26 = vsel %vm1801_vm9, %v1892_v33, %v1893_v4  ;;  %v2031_v33 = vld [vmem:[#allocation2 + $0x38] sm:$0x1]  ;;  %v2115_v4 = vshrl.u32 %v14854_v57, 16 }
 0x257   :  { %5070 = vmatmul.mubr.bf16.gmra.mrb[96].mxu0 %v1876_v22  ;;  %v998_v22 = vsel %vm14161_vm3, %v14836_v55, %v997_v17  ;;  %v2091_v55 = vshrl.u32 %v14839_v5, 16  ;;  %v2103_v5 = vshrl.u32 %v14849_v39, 16 }
 0x258   :  { %5077 = vmatprep.mubr.bf16.mxu0 %v13897_v34  ;;  %999 = vst [vmem:[#allocation2 + $0x108] sm:$0x1] %v998_v22  ;;  %v1736_v34 = vld [vmem:[#allocation2 + $0x218] sm:$0x1]  ;;  %v2122_v22 = vshll.u32 %v2031_v33, 16 }
 0x259   :  { %v1896_v6 = vrot.slane %v1736_v34, 1  ;;  %v2108_v24 = vor.u32 %v2107_v21, %v2103_v5  ;;  %v2544_v34 = vld [vmem:[#allocation2 + $0x40] sm:$0xfe]  ;;  %v2143_v5 = vrot.slane %v2141_v42, 1  ;;  %v2146_v21 = vshll.u32 %v2035_v52, 16 }
 0x25b   :  { %v2113_v39 = vsel %vm1224_vm6, %v2108_v24, %v2112_v61  ;;  %v2148_v61 = vrot.slane %v2146_v21, 1  ;;  %v13801_v21 = vld [vmem:[#allocation9 + $0x1d8] sm:$0xff]  }
 0x25f   :  { %5078 = vmatmul.mubr.bf16.gmra.mrb[100].mxu0 %v1879_v37  ;;  %v1895_v37 = vrot.slane %v1735_v30, 1 }
 0x260   :  { %5085 = vmatprep.mubr.bf16.mxu0 %v13898_v12  ;;  %v2666_v12 = vrot.slane %v2538_v29, 1  ;;  %v2545_v29 = vld [vmem:[#allocation2 + $0x48] sm:$0x1] }
 0x267   :  { %5086 = vmatmul.mubr.bf16.gmra.mrb[104].mxu0 %v1882_v60  ;;  %v1897_v60 = vsel %vm1801_vm9, %v1895_v37, %v1896_v6  ;;  %v2124_v37 = vrot.slane %v2122_v22, 1  ;;  %v2129_v6 = vshll.u32 %v14860_v47, 16  ;;  %v13798_v22 = vld [vmem:[#allocation9 + $0x1c0] sm:$0xff]  }
 0x268   :  { %5093 = vmatprep.mubr.bf16.mxu0 %v13899_v48  ;;  %v2668_v48 = vsel %vm1801_vm9, %v2666_v12, %v2667_v41  ;;  %v2675_v12 = vrot.slane %v2544_v34, 1  ;;  %v2033_v41 = vld [vmem:[#allocation2 + $0x48] sm:$0x1]  ;;  %v2551_v34 = vld [vmem:[#allocation2 + $0x78] sm:$0x1] }
 0x26f   :  { %5094 = vmatmul.mubr.bf16.gmra.mrb[108].mxu0 %v1885_v10  ;;  %v2100_v10 = vrot.slane %v2098_v0, 1  ;;  %v13794_v0 = vld [vmem:[#allocation9 + $0x1a0] sm:$0xff]  }
 0x270   :  { %5101 = vmatprep.mubr.bf16.mxu0 %v13900_v19  ;;  %v2670_v19 = vrot.slane %v2541_v9, 1  ;;  %v2547_v9 = vld [vmem:[#allocation2 + $0x58] sm:$0x1] }
 0x277   :  { %5102 = vmatmul.mubr.bf16.gmra.mrb[112].mxu0 %v1888_v53  ;;  %v13790_v53 = vld [vmem:[#allocation9 + $0x180] sm:$0xff]  }
 0x278   :  { %5109 = vmatprep.mubr.bf16.mxu0 %v13901_v56  ;;  %v2671_v56 = vsel %vm1801_vm9, %v2669_v46, %v2670_v19  ;;  %v13795_v46 = vld [vmem:[#allocation9 + $0x1a8] sm:$0xff]   ;;  %v2678_v19 = vrot.slane %v2546_v49, 1 }
 0x27f   :  { %5110 = vmatmul.mubr.bf16.gmra.mrb[116].mxu0 %v1891_v38  ;;  %v2117_v38 = vshll.u32 %v14854_v57, 16  ;;  %v2676_v57 = vrot.slane %v2545_v29, 1 }
 0x280   :  { %5117 = vmatprep.mubr.bf16.mxu0 %v13902_v18  ;;  %v2673_v18 = vrot.slane %v2543_v45, 1  ;;  %v2549_v45 = vld [vmem:[#allocation2 + $0x68] sm:$0x1] }
 0x281   :  { %v2119_v17 = vrot.slane %v2117_v38, 1  ;;  %v2153_v38 = vshll.u32 %v14872_v25, 16 }
 0x282   :  { %v2674_v30 = vsel %vm1801_vm9, %v2672_v50, %v2673_v18  ;;  %v2681_v50 = vrot.slane %v2548_v58, 1  ;;  %v2037_v18 = vld [vmem:[#allocation2 + $0x68] sm:$0x1]  ;;  %v2189_v58 = vshll.u32 %v14889_v8, 16 }
 0x283   :  { %v2120_v13 = vor.u32 %v2119_v17, %v2115_v4  ;;  %v2155_v4 = vrot.slane %v2153_v38, 1  ;;  %v2158_v17 = vshll.u32 %v2037_v18, 16  ;;  %v2187_v38 = vshrl.u32 %v14889_v8, 16  ;;  %v2556_v18 = vld [vmem:[#allocation2 + $0xa0] sm:$0xfe] }
 0x285   :  { %v2125_v62 = vsel %vm1224_vm6, %v2120_v13, %v2124_v37  ;;  %v2160_v13 = vrot.slane %v2158_v17, 1  ;;  %v2165_v37 = vshll.u32 %v14878_v23, 16  ;;  %v2201_v17 = vshll.u32 %v14893_v16, 16 }
 0x287   :  { %5118 = vmatmul.mubr.bf16.gmra.mrb[120].mxu0 %v1894_v26  ;;  %v13792_v26 = vld [vmem:[#allocation9 + $0x190] sm:$0xff]   ;;  %v2203_v8 = vrot.slane %v2201_v17, 1 }
 0x288   :  { %5125 = vmatprep.mubr.bf16.mxu0 %v14938_v35  ;;  %v2096_v35 = vor.u32 %v2095_v43, %v2091_v55  ;;  %v2131_v55 = vrot.slane %v2129_v6, 1  ;;  %v2134_v43 = vshll.u32 %v2033_v41, 16  ;;  %v13799_v6 = vld [vmem:[#allocation9 + $0x1c8] sm:$0xff]   ;;  %v2163_v41 = vshrl.u32 %v14878_v23, 16 }
 0x289   :  { %v2041_v23 = vld [vmem:[#allocation2 + $0x88] sm:$0x1] }
 0x28a   :  { %v2101_v32 = vsel %vm1224_vm6, %v2096_v35, %v2100_v10  ;;  %v2136_v10 = vrot.slane %v2134_v43, 1  ;;  %v2182_v52 = vshll.u32 %v2041_v23, 16  ;;  %v2225_v23 = vshll.u32 %v14902_v44, 16 }
 0x28f   :  { %5126 = vmatmul.mubr.bf16.gmra.mrb[124].mxu0 %v1897_v60  ;;  %v2127_v60 = vshrl.u32 %v14860_v47, 16  ;;  %v2679_v47 = vrot.slane %v2547_v9, 1 }
 0x290   :  { %5166 = vmatprep.mubr.bf16.mxu0 %v2668_v48  ;;  %v2677_v48 = vsel %vm1801_vm9, %v2675_v12, %v2676_v57  ;;  %v2039_v12 = vld [vmem:[#allocation2 + $0x78] sm:$0x1] }
 0x291   :  { %v2132_v35 = vor.u32 %v2131_v55, %v2127_v60  ;;  %v2170_v60 = vshll.u32 %v2039_v12, 16  ;;  %v13800_v55 = vld [vmem:[#allocation9 + $0x1d0] sm:$0xff]  }
 0x293   :  { %v2172_v9 = vrot.slane %v2170_v60, 1 }
 0x297   :  { %5167 = vmatmul.mubr.bf16.vlgmr.msra.gmra.mrb[0].mxu0 %v2101_v32  ;;  %v2137_v32 = vsel %vm1224_vm6, %v2132_v35, %v2136_v10  ;;  %v2177_v35 = vshll.u32 %v14884_v51, 16 }
 0x298   :  { %5424 = vmatpush1.bf16.msra.mxu0 %v13790_v53  ;;  %5174 = vmatprep.mubr.bf16.mxu0 %v2671_v56  ;;  %v2139_v53 = vshrl.u32 %v14866_v14, 16  ;;  %v2680_v56 = vsel %vm1801_vm9, %v2678_v19, %v2679_v47  ;;  %v2682_v14 = vrot.slane %v2549_v45, 1  ;;  %v2175_v19 = vshrl.u32 %v14884_v51, 16 }
 0x299   :  { %5425 = vmatprep.subr.bf16.mxu0 %v14905_v59  ;;  %v2179_v47 = vrot.slane %v2177_v35, 1  ;;  %v2561_v35 = vld [vmem:[#allocation2 + $0xc8] sm:$0x1] }
 0x29a   :  { %v2144_v24 = vor.u32 %v2143_v5, %v2139_v53  ;;  %v2554_v53 = vld [vmem:[#allocation2 + $0x90] sm:$0xfe]  ;;  %v2555_v5 = vld [vmem:[#allocation2 + $0x98] sm:$0x1] }
 0x29b   :  { %v2690_v45 = vrot.slane %v2554_v53, 1 }
 0x29c   :  { %5426 = vmatpush1.bf16.msra.mxu0 %v13791_v36  ;;  %v13797_v36 = vld [vmem:[#allocation9 + $0x1b8] sm:$0xff]   ;;  %v2149_v33 = vsel %vm1224_vm6, %v2144_v24, %v2148_v61  ;;  %v2691_v24 = vrot.slane %v2555_v5, 1 }
 0x29d   :  { %5427 = vmatprep.subr.bf16.mxu0 %v14905_v59  ;;  %v2043_v61 = vld [vmem:[#allocation2 + $0x98] sm:$0x1] }
 0x29f   :  { %5175 = vmatmul.mubr.bf16.gmra.mrb[4].mxu0 %v2113_v39  ;;  %v2151_v39 = vshrl.u32 %v14872_v25, 16  ;;  %v2685_v25 = vrot.slane %v2551_v34, 1 }
 0x2a0   :  { %5182 = vmatprep.mubr.bf16.mxu0 %v2674_v30  ;;  %5428 = vmatpush1.bf16.msra.mxu0 %v13792_v26  ;;  %v2683_v26 = vsel %vm1801_vm9, %v2681_v50, %v2682_v14  ;;  %v2550_v30 = vld [vmem:[#allocation2 + $0x70] sm:$0xfe]  ;;  %v2194_v50 = vshll.u32 %v2043_v61, 16  ;;  %v2692_v14 = vsel %vm1801_vm9, %v2690_v45, %v2691_v24  ;;  %v2237_v24 = vshll.u32 %v14909_v31, 16 }
 0x2a1   :  { %5429 = vmatprep.subr.bf16.mxu0 %v14905_v59  ;;  %v2156_v29 = vor.u32 %v2155_v4, %v2151_v39 }
 0x2a2   :  { %v2196_v4 = vrot.slane %v2194_v50, 1  ;;  %v2239_v50 = vrot.slane %v2237_v24, 1 }
 0x2a3   :  { %v2161_v57 = vsel %vm1224_vm6, %v2156_v29, %v2160_v13  ;;  %v2199_v29 = vshrl.u32 %v14893_v16, 16 }
 0x2a4   :  { %5430 = vmatpush1.bf16.msra.mxu0 %v13793_v1  ;;  %v2684_v1 = vrot.slane %v2550_v30, 1  ;;  %v2045_v30 = vld [vmem:[#allocation2 + $0xa8] sm:$0x1] }
 0x2a5   :  { %5431 = vmatprep.subr.bf16.mxu0 %v14905_v59  ;;  %v2206_v13 = vshll.u32 %v2045_v30, 16  ;;  %v2204_v12 = vor.u32 %v2203_v8, %v2199_v29  ;;  %v2247_v8 = vshrl.u32 %v14913_v20, 16 }
 0x2a6   :  { %v2686_v43 = vsel %vm1801_vm9, %v2684_v1, %v2685_v25  ;;  %v2559_v1 = vld [vmem:[#allocation2 + $0xb8] sm:$0x1]  ;;  %v13802_v25 = vld [vmem:[#allocation9 + $0x1e0] sm:$0xff]  }
 0x2a7   :  { %5183 = vmatmul.mubr.bf16.gmra.mrb[8].mxu0 %v2125_v62  ;;  %v2167_v62 = vrot.slane %v2165_v37, 1  ;;  %v2697_v60 = vrot.slane %v2559_v1, 1  ;;  %v2567_v1 = vld [vmem:[#allocation2 + $0xf8] sm:$0x1] }
 0x2a8   :  { %5190 = vmatprep.mubr.bf16.mxu0 %v2677_v48  ;;  %5432 = vmatpush1.bf16.msra.mxu0 %v13794_v0  ;;  %v2552_v0 = vld [vmem:[#allocation2 + $0x80] sm:$0xfe]  ;;  %v2553_v48 = vld [vmem:[#allocation2 + $0x88] sm:$0x1] }
 0x2a9   :  { %5433 = vmatprep.subr.bf16.mxu0 %v14905_v59  ;;  %v2168_v49 = vor.u32 %v2167_v62, %v2163_v41  ;;  %v2687_v10 = vrot.slane %v2552_v0, 1  ;;  %v2688_v42 = vrot.slane %v2553_v48, 1  ;;  %v2213_v41 = vshll.u32 %v14898_v27, 16 }
 0x2ab   :  { %v2215_v0 = vrot.slane %v2213_v41, 1  ;;  %v2261_v41 = vshll.u32 %v14918_v28, 16 }
 0x2ac   :  { %5434 = vmatpush1.bf16.msra.mxu0 %v13795_v46  ;;  %v2173_v46 = vsel %vm1224_vm6, %v2168_v49, %v2172_v9  ;;  %v2560_v9 = vld [vmem:[#allocation2 + $0xc0] sm:$0xfe] }
 0x2ad   :  { %5435 = vmatprep.subr.bf16.mxu0 %v14905_v59 }
 0x2af   :  { %5191 = vmatmul.mubr.bf16.gmra.mrb[12].mxu0 %v2137_v32  ;;  %v2689_v32 = vsel %vm1801_vm9, %v2687_v10, %v2688_v42 }
 0x2b0   :  { %5198 = vmatprep.mubr.bf16.mxu0 %v2680_v56  ;;  %5436 = vmatpush1.bf16.msra.mxu0 %v13796_v2  ;;  %v2180_v2 = vor.u32 %v2179_v47, %v2175_v19  ;;  %v2184_v56 = vrot.slane %v2182_v52, 1  ;;  %v2700_v19 = vrot.slane %v2561_v35, 1  ;;  %v2049_v47 = vld [vmem:[#allocation2 + $0xc8] sm:$0x1]  ;;  %v2568_v35 = vld [vmem:[#allocation2 + $0x100] sm:$0xfe] }
 0x2b1   :  { %5437 = vmatprep.subr.bf16.mxu0 %v14905_v59  ;;  %v2230_v53 = vshll.u32 %v2049_v47, 16 }
 0x2b2   :  { %v2185_v51 = vsel %vm1224_vm6, %v2180_v2, %v2184_v56  ;;  %v2563_v2 = vld [vmem:[#allocation2 + $0xd8] sm:$0x1]  ;;  %v13803_v56 = vld [vmem:[#allocation9 + $0x1e8] sm:$0xff]  }
 0x2b3   :  { %v2232_v45 = vrot.slane %v2230_v53, 1 }
 0x2b4   :  { %5438 = vmatpush1.bf16.msra.mxu0 %v13797_v36  ;;  %v2191_v36 = vrot.slane %v2189_v58, 1 }
 0x2b5   :  { %5439 = vmatprep.subr.bf16.mxu0 %v14905_v59 }
 0x2b6   :  { %v2192_v39 = vor.u32 %v2191_v36, %v2187_v38  ;;  %v2051_v38 = vld [vmem:[#allocation2 + $0xd8] sm:$0x1]  ;;  %v2235_v36 = vshrl.u32 %v14909_v31, 16 }
 0x2b7   :  { %5199 = vmatmul.mubr.bf16.gmra.mrb[16].mxu0 %v2149_v33  ;;  %v2557_v33 = vld [vmem:[#allocation2 + $0xa8] sm:$0x1] }
 0x2b8   :  { %5206 = vmatprep.mubr.bf16.mxu0 %v2683_v26  ;;  %5440 = vmatpush1.bf16.msra.mxu0 %v13798_v22  ;;  %v2693_v22 = vrot.slane %v2556_v18, 1  ;;  %v2694_v26 = vrot.slane %v2557_v33, 1  ;;  %v2197_v34 = vsel %vm1224_vm6, %v2192_v39, %v2196_v4  ;;  %v2564_v33 = vld [vmem:[#allocation2 + $0xe0] sm:$0xfe]  ;;  %v2565_v39 = vld [vmem:[#allocation2 + $0xe8] sm:$0x1]  ;;  %v2240_v4 = vor.u32 %v2239_v50, %v2235_v36 }
 0x2b9   :  { %5441 = vmatprep.subr.bf16.mxu0 %v14905_v59  ;;  %v2706_v30 = vrot.slane %v2565_v39, 1  ;;  %v2283_v50 = vshrl.u32 %v14934_v40, 16  ;;  %v2572_v39 = vld [vmem:[#allocation2 + $0x140] sm:$0xfe] }
 0x2ba   :  { %v2695_v37 = vsel %vm1801_vm9, %v2693_v22, %v2694_v26  ;;  %v2249_v22 = vshll.u32 %v14913_v20, 16  ;;  %v2705_v26 = vrot.slane %v2564_v33, 1 }
 0x2bc   :  { %5442 = vmatpush1.bf16.msra.mxu0 %v13799_v6  ;;  %v2558_v6 = vld [vmem:[#allocation2 + $0xb0] sm:$0xfe]  ;;  %v2251_v31 = vrot.slane %v2249_v22, 1 }
 0x2bd   :  { %5443 = vmatprep.subr.bf16.mxu0 %v14905_v59  ;;  %v2696_v62 = vrot.slane %v2558_v6, 1  ;;  %v2566_v6 = vld [vmem:[#allocation2 + $0xf0] sm:$0xfe] }
 0x2bf   :  { %5207 = vmatmul.mubr.bf16.gmra.mrb[20].mxu0 %v2161_v57  ;;  %v2208_v57 = vrot.slane %v2206_v13, 1  ;;  %v2698_v49 = vsel %vm1801_vm9, %v2696_v62, %v2697_v60  ;;  %v2708_v62 = vrot.slane %v2566_v6, 1  ;;  %v2709_v60 = vrot.slane %v2567_v1, 1  ;;  %v2574_v6 = vld [vmem:[#allocation2 + $0x150] sm:$0xfe] }
 0x2c0   :  { %5214 = vmatprep.mubr.bf16.mxu0 %v2686_v43  ;;  %5444 = vmatpush1.bf16.msra.mxu0 %v13800_v55  ;;  %v2047_v55 = vld [vmem:[#allocation2 + $0xb8] sm:$0x1]  ;;  %v2211_v43 = vshrl.u32 %v14898_v27, 16  ;;  %v2227_v27 = vrot.slane %v2225_v23, 1 }
 0x2c1   :  { %5445 = vmatprep.subr.bf16.mxu0 %v14905_v59  ;;  %v2209_v16 = vsel %vm1224_vm6, %v2204_v12, %v2208_v57  ;;  %v2218_v48 = vshll.u32 %v2047_v55, 16  ;;  %v2252_v12 = vor.u32 %v2251_v31, %v2247_v8  ;;  %v2055_v55 = vld [vmem:[#allocation2 + $0xf8] sm:$0x1]  ;;  %v2295_v31 = vshrl.u32 %v14943_v3, 16 }
 0x2c2   :  { %v2216_v10 = vor.u32 %v2215_v0, %v2211_v43  ;;  %v2259_v0 = vshrl.u32 %v14918_v28, 16  ;;  %v2575_v1 = vld [vmem:[#allocation2 + $0x158] sm:$0x1] }
 0x2c3   :  { %v2220_v42 = vrot.slane %v2218_v48, 1  ;;  %v2263_v48 = vrot.slane %v2261_v41, 1  ;;  %v2309_v41 = vshll.u32 %v14947_v63, 16 }
 0x2c4   :  { %5446 = vmatpush1.bf16.msra.mxu0 %v13801_v21  ;;  %v2562_v21 = vld [vmem:[#allocation2 + $0xd0] sm:$0xfe] }
 0x2c5   :  { %5447 = vmatprep.subr.bf16.mxu0 %v14905_v59  ;;  %v2221_v52 = vsel %vm1224_vm6, %v2216_v10, %v2220_v42  ;;  %v2702_v61 = vrot.slane %v2562_v21, 1  ;;  %v2569_v10 = vld [vmem:[#allocation2 + $0x108] sm:$0x1]  ;;  %v2264_v42 = vor.u32 %v2263_v48, %v2259_v0  ;;  %v2064_v48 = vld [vmem:[#allocation2 + $0x160] sm:$0xff] }
 0x2c6   :  { %v2712_v47 = vrot.slane %v2569_v10, 1 }
 0x2c7   :  { %5215 = vmatmul.mubr.bf16.gmra.mrb[24].mxu0 %v2173_v46  ;;  %v2699_v46 = vrot.slane %v2560_v9, 1  ;;  %v2710_v9 = vsel %vm1801_vm9, %v2708_v62, %v2709_v60  ;;  %v2720_v62 = vrot.slane %v2574_v6, 1  ;;  %v2721_v60 = vrot.slane %v2575_v1, 1 }
 0x2c8   :  { %5222 = vmatprep.mubr.bf16.mxu0 %v2689_v32  ;;  %5448 = vmatpush1.bf16.msra.mxu0 %v13802_v25  ;;  %v2223_v32 = vshrl.u32 %v14902_v44, 16  ;;  %v13804_v25 = vld [vmem:[#allocation9 + $0x1f0] sm:$0xff]  }
 0x2c9   :  { %5449 = vmatprep.subr.bf16.mxu0 %v14905_v59  ;;  %v2701_v5 = vsel %vm1801_vm9, %v2699_v46, %v2700_v19  ;;  %v13903_v46 = vld [vmem:[#allocation2 + $0x100] sm:$0xff]  ;;  %v2711_v19 = vrot.slane %v2568_v35, 1  ;;  %v2722_v0 = vsel %vm1801_vm9, %v2720_v62, %v2721_v60 }
 0x2ca   :  { %v2228_v58 = vor.u32 %v2227_v27, %v2223_v32  ;;  %v2271_v53 = vshrl.u32 %v13903_v46, 16 }
 0x2cc   :  { %5450 = vmatpush1.bf16.msra.mxu0 %v13803_v56  ;;  %v2233_v44 = vsel %vm1224_vm6, %v2228_v58, %v2232_v45  ;;  %v2570_v56 = vld [vmem:[#allocation2 + $0x130] sm:$0xfe]  ;;  %v2571_v58 = vld [vmem:[#allocation2 + $0x138] sm:$0x1] }
 0x2cd   :  { %5451 = vmatprep.subr.bf16.mxu0 %v14905_v59  ;;  %v13805_v45 = vld [vmem:[#allocation9 + $0x1f8] sm:$0xff]  }
 0x2cf   :  { %5223 = vmatmul.mubr.bf16.gmra.mrb[28].mxu0 %v2185_v51  ;;  %v2703_v51 = vrot.slane %v2563_v2, 1  ;;  %v2713_v2 = vsel %vm1801_vm9, %v2711_v19, %v2712_v47  ;;  %v2319_v47 = vshrl.u32 %v2064_v48, 16 }
 0x2d0   :  { %5230 = vmatprep.mubr.bf16.mxu0 %v2692_v14  ;;  %v2242_v14 = vshll.u32 %v2051_v38, 16  ;;  %5452 = vmatpush1.bf16.msra.mxu0 %v13804_v25  ;;  %v2714_v38 = vrot.slane %v2570_v56, 1  ;;  %v15059_v25 = vld [vmem:[#allocation9 + $0x200] sm:$0xff]  }
 0x2d1   :  { %v2704_v18 = vsel %vm1801_vm9, %v2702_v61, %v2703_v51  ;;  %5453 = vmatprep.subr.bf16.mxu0 %v14905_v59  ;;  %v2273_v59 = vshll.u32 %v13903_v46, 16  ;;  %v2285_v51 = vshll.u32 %v14934_v40, 16  ;;  %12883 = vmatprep.subr.bf16.mxu1 %v15059_v25 }
 0x2d2   :  { %v2244_v17 = vrot.slane %v2242_v14, 1  ;;  %12891 = vmatpush3.bf16.msra.mxu1 %v15059_v25 }
 0x2d3   :  { %v2287_v14 = vrot.slane %v2285_v51, 1 }
 0x2d4   :  { %v2245_v29 = vsel %vm1224_vm6, %v2240_v4, %v2244_v17  ;;  %5454 = vmatpush1.bf16.msra.mxu0 %v13805_v45  ;;  %v2573_v4 = vld [vmem:[#allocation2 + $0x148] sm:$0x1]  ;;  %v2067_v45 = vld [vmem:[#allocation2 + $0x178] sm:$0x1] }
 0x2d5   :  { %v2288_v17 = vor.u32 %v2287_v14, %v2283_v50  ;;  %12643 = vmatprep.subr.bf16.mxu0 %v15059_v25  ;;  %v2581_v50 = vld [vmem:[#allocation2 + $0x188] sm:$0x1] }
 0x2d7   :  { %5231 = vmatmul.mubr.bf16.gmra.mrb[32].mxu0 %v2197_v34  ;;  %v2053_v34 = vld [vmem:[#allocation2 + $0xe8] sm:$0x1] }
 0x2d8   :  { %5238 = vmatprep.mubr.bf16.mxu0 %v2695_v37  ;;  %v2254_v13 = vshll.u32 %v2053_v34, 16  ;;  %v2707_v37 = vsel %vm1801_vm9, %v2705_v26, %v2706_v30  ;;  %v2297_v26 = vshll.u32 %v14943_v3, 16  ;;  %v2717_v30 = vrot.slane %v2572_v39, 1 }
 0x2d9   :  { %v2718_v34 = vrot.slane %v2573_v4, 1  ;;  %v2730_v4 = vrot.slane %v2581_v50, 1 }
 0x2da   :  { %v2256_v57 = vrot.slane %v2254_v13, 1  ;;  %v2299_v40 = vrot.slane %v2297_v26, 1 }
 0x2dc   :  { %v2257_v43 = vsel %vm1224_vm6, %v2252_v12, %v2256_v57  ;;  %v2300_v12 = vor.u32 %v2299_v40, %v2295_v31  ;;  %v2582_v31 = vld [vmem:[#allocation2 + $0x190] sm:$0xfe]  ;;  %v2583_v40 = vld [vmem:[#allocation2 + $0x198] sm:$0x1] }
 0x2df   :  { %5239 = vmatmul.mubr.bf16.gmra.mrb[36].mxu0 %v2209_v16  ;;  %v317_v16 = vld [vmem:[#allocation2 + $0x228] sm:$0x1] }
 0x2e0   :  { %5246 = vmatprep.mubr.bf16.mxu0 %v2698_v49  ;;  %v318_v20 = vsel %vm14168_vm4, 0, %v317_v16  ;;  %v2266_v49 = vshll.u32 %v2055_v55, 16  ;;  %v2063_v55 = vld [vmem:[#allocation2 + $0x158] sm:$0x1]  ;;  %v2307_v16 = vshrl.u32 %v14947_v63, 16 }
 0x2e1   :  { %319 = vst [vmem:[#allocation2 + $0x228] sm:$0x1] %v318_v20  ;;  %v2311_v20 = vrot.slane %v2309_v41, 1  ;;  %v2071_v41 = vld [vmem:[#allocation2 + $0x198] sm:$0x1] }
 0x2e2   :  { %v2268_v23 = vrot.slane %v2266_v49, 1  ;;  %v2576_v49 = vld [vmem:[#allocation2 + $0x160] sm:$0xfe] }
 0x2e3   :  { %v2312_v35 = vor.u32 %v2311_v20, %v2307_v16  ;;  %v2072_v20 = vld [vmem:[#allocation2 + $0x1a0] sm:$0xff] }
 0x2e4   :  { %v2269_v27 = vsel %vm1224_vm6, %v2264_v42, %v2268_v23  ;;  %v2321_v42 = vshll.u32 %v2064_v48, 16  ;;  %v2723_v23 = vrot.slane %v2576_v49, 1 }
 0x2e7   :  { %5247 = vmatmul.mubr.bf16.gmra.mrb[40].mxu0 %v2221_v52  ;;  %v2057_v52 = vld [vmem:[#allocation2 + $0x108] sm:$0x1] }
 0x2e8   :  { %5254 = vmatprep.mubr.bf16.mxu0 %v2701_v5  ;;  %v1093_v32 = vld [vmem:[#allocation2 + $0x228] sm:$0x1]  ;;  %v2275_v5 = vrot.slane %v2273_v59, 1  ;;  %v2278_v21 = vshll.u32 %v2057_v52, 16  ;;  %v2323_v52 = vrot.slane %v2321_v42, 1 }
 0x2e9   :  { %v1094_v28 = vsel %vm14161_vm3, %v14929_v54, %v1093_v32  ;;  %v2059_v54 = vld [vmem:[#allocation2 + $0x138] sm:$0x1]  ;;  %v2065_v59 = vld [vmem:[#allocation2 + $0x168] sm:$0x1] }
 0x2ea   :  { %1095 = vst [vmem:[#allocation2 + $0x228] sm:$0x1] %v1094_v28  ;;  %v2276_v24 = vor.u32 %v2275_v5, %v2271_v53  ;;  %v2280_v61 = vrot.slane %v2278_v21, 1  ;;  %v2326_v63 = vshll.u32 %v2065_v59, 16  ;;  %v2066_v28 = vld [vmem:[#allocation2 + $0x170] sm:$0xff]  ;;  %v2324_v5 = vor.u32 %v2323_v52, %v2319_v47 }
 0x2eb   :  { %v2579_v53 = vld [vmem:[#allocation2 + $0x178] sm:$0x1]  ;;  %v2073_v42 = vld [vmem:[#allocation2 + $0x1a8] sm:$0x1]  ;;  %v2074_v52 = vld [vmem:[#allocation2 + $0x1b0] sm:$0xff] }
 0x2ec   :  { %v2281_v36 = vsel %vm1224_vm6, %v2276_v24, %v2280_v61  ;;  %v2328_v21 = vrot.slane %v2326_v63, 1  ;;  %v2331_v61 = vshrl.u32 %v2066_v28, 16  ;;  %v2586_v63 = vld [vmem:[#allocation2 + $0x1b0] sm:$0xfe] }
 0x2ee   :  { %v2329_v24 = vsel %vm1224_vm6, %v2324_v5, %v2328_v21  ;;  %v2738_v5 = vrot.slane %v2586_v63, 1  ;;  %v2595_v63 = vld [vmem:[#allocation2 + $0x1f8] sm:$0x1] }
 0x2ef   :  { %5255 = vmatmul.mubr.bf16.gmra.mrb[44].mxu0 %v2233_v44  ;;  %v2715_v44 = vrot.slane %v2571_v58, 1  ;;  %v2727_v58 = vrot.slane %v2579_v53, 1  ;;  %v2381_v53 = vshll.u32 %v2074_v52, 16 }
 0x2f0   :  { %5262 = vmatprep.mubr.bf16.mxu0 %v2704_v18  ;;  %v2290_v18 = vshll.u32 %v2059_v54, 16  ;;  %v2068_v54 = vld [vmem:[#allocation2 + $0x180] sm:$0xff] }
 0x2f1   :  { %v2716_v33 = vsel %vm1801_vm9, %v2714_v38, %v2715_v44  ;;  %v2338_v38 = vshll.u32 %v2067_v45, 16  ;;  %v2343_v26 = vshrl.u32 %v2068_v54, 16  ;;  %v2383_v45 = vrot.slane %v2381_v53, 1 }
 0x2f2   :  { %v2292_v22 = vrot.slane %v2290_v18, 1 }
 0x2f3   :  { %v2340_v18 = vrot.slane %v2338_v38, 1  ;;  %v2588_v38 = vld [vmem:[#allocation2 + $0x1c0] sm:$0xfe] }
 0x2f4   :  { %v2293_v8 = vsel %vm1224_vm6, %v2288_v17, %v2292_v22  ;;  %v2069_v17 = vld [vmem:[#allocation2 + $0x188] sm:$0x1] }
 0x2f7   :  { %5263 = vmatmul.mubr.bf16.gmra.mrb[48].mxu0 %v2245_v29  ;;  %v2061_v29 = vld [vmem:[#allocation2 + $0x148] sm:$0x1] }
 0x2f8   :  { %5270 = vmatprep.mubr.bf16.mxu0 %v2707_v37  ;;  %v2302_v13 = vshll.u32 %v2061_v29, 16  ;;  %v2719_v37 = vsel %vm1801_vm9, %v2717_v30, %v2718_v34  ;;  %v2350_v34 = vshll.u32 %v2069_v17, 16 }
 0x2fa   :  { %v2304_v57 = vrot.slane %v2302_v13, 1  ;;  %v15074_v13 = vld [vmem:[#allocation9 + $0x208] sm:$0xff]   ;;  %v2352_v6 = vrot.slane %v2350_v34, 1  ;;  %v2590_v34 = vld [vmem:[#allocation2 + $0x1d0] sm:$0xfe] }
 0x2fb   :  { %12884 = vmatprep.subr.bf16.mxu1 %v15074_v13 }
 0x2fc   :  { %v2305_v3 = vsel %vm1224_vm6, %v2300_v12, %v2304_v57  ;;  %v2732_v12 = vrot.slane %v2582_v31, 1  ;;  %v2733_v57 = vrot.slane %v2583_v40, 1  ;;  %12892 = vmatpush3.bf16.msra.mxu1 %v15074_v13 }
 0x2fe   :  { %v2734_v16 = vsel %vm1801_vm9, %v2732_v12, %v2733_v57  ;;  %v2079_v12 = vld [vmem:[#allocation2 + $0x1d8] sm:$0x1] }
 0x2ff   :  { %5271 = vmatmul.mubr.bf16.gmra.mrb[52].mxu0 %v2257_v43  ;;  %v2314_v43 = vshll.u32 %v2063_v55, 16 }
 0x300   :  { %5278 = vmatprep.mubr.bf16.mxu0 %v2710_v9  ;;  %v2577_v9 = vld [vmem:[#allocation2 + $0x168] sm:$0x1] }
 0x301   :  { %v2316_v10 = vrot.slane %v2314_v43, 1  ;;  %v2724_v46 = vrot.slane %v2577_v9, 1  ;;  %v2584_v43 = vld [vmem:[#allocation2 + $0x1a0] sm:$0xfe]  ;;  %v2369_v9 = vshll.u32 %v2072_v20, 16 }
 0x303   :  { %v2317_v19 = vsel %vm1224_vm6, %v2312_v35, %v2316_v10  ;;  %v2725_v32 = vsel %vm1801_vm9, %v2723_v23, %v2724_v46  ;;  %v2735_v35 = vrot.slane %v2584_v43, 1  ;;  %v2367_v46 = vshrl.u32 %v2072_v20, 16  ;;  %v2593_v20 = vld [vmem:[#allocation2 + $0x1e8] sm:$0x1]  ;;  %v15092_v43 = vld [vmem:[#allocation9 + $0x218] sm:$0xff]  }
 0x304   :  { %v2371_v59 = vrot.slane %v2369_v9, 1 }
 0x307   :  { %5279 = vmatmul.mubr.bf16.gmra.mrb[56].mxu0 %v2269_v27  ;;  %v2578_v27 = vld [vmem:[#allocation2 + $0x170] sm:$0xfe] }
 0x308   :  { %5286 = vmatprep.mubr.bf16.mxu0 %v2713_v2  ;;  %v2333_v2 = vshll.u32 %v2066_v28, 16  ;;  %v2726_v56 = vrot.slane %v2578_v27, 1  ;;  %v2372_v28 = vor.u32 %v2371_v59, %v2367_v46 }
 0x30a   :  { %v2335_v51 = vrot.slane %v2333_v2, 1  ;;  %v2728_v44 = vsel %vm1801_vm9, %v2726_v56, %v2727_v58  ;;  %v2075_v2 = vld [vmem:[#allocation2 + $0x1b8] sm:$0x1]  ;;  %v2379_v58 = vshrl.u32 %v2074_v52, 16  ;;  %v2594_v52 = vld [vmem:[#allocation2 + $0x1f0] sm:$0xfe] }
 0x30c   :  { %v2336_v14 = vor.u32 %v2335_v51, %v2331_v61  ;;  %v2076_v51 = vld [vmem:[#allocation2 + $0x1c0] sm:$0xff] }
 0x30d   :  { %v2393_v50 = vshll.u32 %v2076_v51, 16 }
 0x30e   :  { %v2341_v22 = vsel %vm1224_vm6, %v2336_v14, %v2340_v18  ;;  %v2741_v14 = vrot.slane %v2588_v38, 1 }
 0x30f   :  { %5287 = vmatmul.mubr.bf16.gmra.mrb[60].mxu0 %v2281_v36  ;;  %v2580_v36 = vld [vmem:[#allocation2 + $0x180] sm:$0xfe]  ;;  %v2395_v17 = vrot.slane %v2393_v50, 1 }
 0x310   :  { %5294 = vmatprep.mubr.bf16.mxu0 %v2716_v33  ;;  %v2345_v33 = vshll.u32 %v2068_v54, 16  ;;  %v2729_v39 = vrot.slane %v2580_v36, 1  ;;  %v2384_v54 = vor.u32 %v2383_v45, %v2379_v58 }
 0x312   :  { %v2347_v30 = vrot.slane %v2345_v33, 1  ;;  %v2731_v29 = vsel %vm1801_vm9, %v2729_v39, %v2730_v4  ;;  %v2077_v33 = vld [vmem:[#allocation2 + $0x1c8] sm:$0x1]  ;;  %v2391_v4 = vshrl.u32 %v2076_v51, 16  ;;  %v2084_v51 = vld [vmem:[#allocation2 + $0x200] sm:$0xff] }
 0x313   :  { %v2441_v50 = vshll.u32 %v2084_v51, 16 }
 0x314   :  { %v2396_v31 = vor.u32 %v2395_v17, %v2391_v4 }
 0x317   :  { %5295 = vmatmul.mubr.bf16.gmra.mrb[64].mxu0 %v2293_v8  ;;  %v2070_v8 = vld [vmem:[#allocation2 + $0x190] sm:$0xff] }
 0x318   :  { %5302 = vmatprep.mubr.bf16.mxu0 %v2719_v37  ;;  %v2348_v37 = vor.u32 %v2347_v30, %v2343_v26  ;;  %v2357_v1 = vshll.u32 %v2070_v8, 16  ;;  %v2355_v60 = vshrl.u32 %v2070_v8, 16  ;;  %v2078_v30 = vld [vmem:[#allocation2 + $0x1d0] sm:$0xff] }
 0x319   :  { %v15086_v8 = vld [vmem:[#allocation9 + $0x210] sm:$0xff]  }
 0x31a   :  { %v2353_v62 = vsel %vm1224_vm6, %v2348_v37, %v2352_v6  ;;  %v2359_v55 = vrot.slane %v2357_v1, 1  ;;  %v2405_v37 = vshll.u32 %v2078_v30, 16  ;;  %v2744_v6 = vrot.slane %v2590_v34, 1  ;;  %12885 = vmatprep.subr.bf16.mxu1 %v15086_v8  ;;  %v3427_v34 = vld [vmem:[#allocation2 + $0xe0] sm:$0xfe] }
 0x31b   :  { %12893 = vmatpush3.bf16.msra.mxu1 %v15086_v8 }
 0x31c   :  { %v2360_v48 = vor.u32 %v2359_v55, %v2355_v60  ;;  %v2410_v60 = vshll.u32 %v2079_v12, 16  ;;  %12886 = vmatprep.subr.bf16.mxu1 %v15092_v43 }
 0x31f   :  { %5303 = vmatmul.mubr.bf16.gmra.mrb[68].mxu0 %v2305_v3  ;;  %v2362_v3 = vshll.u32 %v2071_v41, 16  ;;  %v2403_v41 = vshrl.u32 %v2078_v30, 16  ;;  %12894 = vmatpush3.bf16.msra.mxu1 %v15092_v43 }
 0x320   :  { %5310 = vmatprep.mubr.bf16.mxu0 %v2722_v0  ;;  %v2585_v0 = vld [vmem:[#allocation2 + $0x1a8] sm:$0x1] }
 0x321   :  { %v2364_v49 = vrot.slane %v2362_v3, 1  ;;  %v2736_v10 = vrot.slane %v2585_v0, 1  ;;  %v2080_v3 = vld [vmem:[#allocation2 + $0x1e0] sm:$0xff] }
 0x323   :  { %v2365_v23 = vsel %vm1224_vm6, %v2360_v48, %v2364_v49  ;;  %v2737_v47 = vsel %vm1801_vm9, %v2735_v35, %v2736_v10  ;;  %v2412_v48 = vrot.slane %v2410_v60, 1  ;;  %v2417_v49 = vshll.u32 %v2080_v3, 16  ;;  %v2081_v10 = vld [vmem:[#allocation2 + $0x1e8] sm:$0x1]  ;;  %v2598_v60 = vld [vmem:[#allocation2 + $0x210] sm:$0xfe] }
 0x324   :  { %v2748_v35 = vrot.slane %v2593_v20, 1  ;;  %v2422_v59 = vshll.u32 %v2081_v10, 16  ;;  %v2087_v10 = vld [vmem:[#allocation2 + $0x218] sm:$0x1] }
 0x325   :  { %v2419_v46 = vrot.slane %v2417_v49, 1 }
 0x326   :  { %v2424_v53 = vrot.slane %v2422_v59, 1 }
 0x327   :  { %5311 = vmatmul.mubr.bf16.gmra.mrb[72].mxu0 %v2317_v19  ;;  %v2374_v19 = vshll.u32 %v2073_v42, 16 }
 0x328   :  { %5318 = vmatprep.mubr.bf16.mxu0 %v2725_v32  ;;  %v2587_v32 = vld [vmem:[#allocation2 + $0x1b8] sm:$0x1] }
 0x329   :  { %v2376_v27 = vrot.slane %v2374_v19, 1  ;;  %v2739_v21 = vrot.slane %v2587_v32, 1  ;;  %v15098_v32 = vld [vmem:[#allocation9 + $0x220] sm:$0xff]  }
 0x32a   :  { %12887 = vmatprep.subr.bf16.mxu1 %v15098_v32 }
 0x32b   :  { %v2377_v56 = vsel %vm1224_vm6, %v2372_v28, %v2376_v27  ;;  %v2740_v61 = vsel %vm1801_vm9, %v2738_v5, %v2739_v21  ;;  %v15100_v28 = vld [vmem:[#allocation9 + $0x228] sm:$0xff]   ;;  %v2750_v21 = vrot.slane %v2594_v52, 1  ;;  %12895 = vmatpush3.bf16.msra.mxu1 %v15098_v32 }
 0x32c   :  { %12888 = vmatprep.subr.bf16.mxu1 %v15100_v28 }
 0x32f   :  { %5319 = vmatmul.mubr.bf16.gmra.mrb[76].mxu0 %v2329_v24  ;;  %v2386_v24 = vshll.u32 %v2075_v2, 16  ;;  %v2751_v2 = vrot.slane %v2595_v63, 1  ;;  %12896 = vmatpush3.bf16.msra.mxu1 %v15100_v28 }
 0x330   :  { %5326 = vmatprep.mubr.bf16.mxu0 %v2728_v44  ;;  %v2589_v44 = vld [vmem:[#allocation2 + $0x1c8] sm:$0x1] }
 0x331   :  { %v2388_v36 = vrot.slane %v2386_v24, 1  ;;  %v2742_v18 = vrot.slane %v2589_v44, 1  ;;  %v2752_v38 = vsel %vm1801_vm9, %v2750_v21, %v2751_v2  ;;  %v2596_v44 = vld [vmem:[#allocation2 + $0x200] sm:$0xfe] }
 0x332   :  { %v2753_v4 = vrot.slane %v2596_v44, 1  ;;  %v15127_v2 = vld [vmem:[#allocation2 + $0x20] sm:$0xff] }
 0x333   :  { %v2389_v39 = vsel %vm1224_vm6, %v2384_v54, %v2388_v36  ;;  %v2743_v26 = vsel %vm1801_vm9, %v2741_v14, %v2742_v18  ;;  %v2597_v54 = vld [vmem:[#allocation2 + $0x208] sm:$0x1]  ;;  %v15108_v36 = vld [vmem:[#allocation9 + $0x230] sm:$0xff]   ;;  %v15110_v14 = vld [vmem:[#allocation9 + $0x238] sm:$0xff]  }
 0x334   :  { %12889 = vmatprep.subr.bf16.mxu1 %v15108_v36  ;;  %v2754_v17 = vrot.slane %v2597_v54, 1 }
 0x335   :  { %12897 = vmatpush3.bf16.msra.mxu1 %v15108_v36 }
 0x336   :  { %12890 = vmatprep.subr.bf16.mxu1 %v15110_v14  ;;  %v2755_v12 = vsel %vm1801_vm9, %v2753_v4, %v2754_v17  ;;  %v3432_v4 = vld [vmem:[#allocation2 + $0x108] sm:$0x1] }
 0x337   :  { %5327 = vmatmul.mubr.bf16.gmra.mrb[80].mxu0 %v2341_v22  ;;  %v2398_v22 = vshll.u32 %v2077_v33, 16 }
 0x338   :  { %5334 = vmatprep.mubr.bf16.mxu0 %v2731_v29  ;;  %v2591_v29 = vld [vmem:[#allocation2 + $0x1d8] sm:$0x1] }
 0x339   :  { %v2400_v40 = vrot.slane %v2398_v22, 1  ;;  %v2745_v1 = vrot.slane %v2591_v29, 1  ;;  %v2439_v22 = vshrl.u32 %v2084_v51, 16  ;;  %v3428_v29 = vld [vmem:[#allocation2 + $0xe8] sm:$0x1]  ;;  %12898 = vmatpush3.bf16.msra.mxu1 %v15110_v14 }
 0x33a   :  { %v2089_v51 = vld [vmem:[#allocation2 + $0x228] sm:$0x1] }
 0x33b   :  { %v2401_v57 = vsel %vm1224_vm6, %v2396_v31, %v2400_v40  ;;  %v2746_v55 = vsel %vm1801_vm9, %v2744_v6, %v2745_v1  ;;  %v3567_v40 = vrot.slane %v3427_v34, 1  ;;  %v3429_v6 = vld [vmem:[#allocation2 + $0xf0] sm:$0xfe]  ;;  %v3430_v1 = vld [vmem:[#allocation2 + $0xf8] sm:$0x1] }
 0x33c   :  { %v3433_v34 = vld [vmem:[#allocation2 + $0x110] sm:$0xfe] }
 0x33f   :  { %5335 = vmatmul.mubr.bf16.gmra.mrb[84].mxu0 %v2353_v62  ;;  %v2407_v62 = vrot.slane %v2405_v37, 1  ;;  %v3568_v37 = vrot.slane %v3428_v29, 1 }
 0x340   :  { %5342 = vmatprep.mubr.bf16.mxu0 %v2734_v16  ;;  %v2592_v16 = vld [vmem:[#allocation2 + $0x1e0] sm:$0xfe] }
 0x341   :  { %v2408_v0 = vor.u32 %v2407_v62, %v2403_v41  ;;  %v2747_v9 = vrot.slane %v2592_v16, 1  ;;  %v3570_v41 = vrot.slane %v3429_v6, 1  ;;  %v3571_v62 = vrot.slane %v3430_v1, 1  ;;  %v15119_v16 = vld [vmem:[#allocation2 + $0x110] sm:$0xff] }
 0x342   :  { %10098 = vmatprep.subr.bf16.mxu1 %v15119_v16  ;;  %v3576_v6 = vrot.slane %v3433_v34, 1 }
 0x343   :  { %v2413_v42 = vsel %vm1224_vm6, %v2408_v0, %v2412_v48  ;;  %v2749_v19 = vsel %vm1801_vm9, %v2747_v9, %v2748_v35  ;;  %v3572_v48 = vsel %vm1801_vm9, %v3570_v41, %v3571_v62  ;;  %v2756_v9 = vrot.slane %v2598_v60, 1 }
 0x347   :  { %5343 = vmatmul.mubr.bf16.gmra.mrb[88].mxu0 %v2365_v23  ;;  %v2415_v23 = vshrl.u32 %v2080_v3, 16  ;;  %v3569_v3 = vsel %vm1801_vm9, %v3567_v40, %v3568_v37  ;;  %v2893_v37 = vld [vmem:[#allocation2 + $0x30] sm:$0xff] }
 0x348   :  { %5350 = vmatprep.mubr.bf16.mxu0 %v2737_v47  ;;  %v2082_v47 = vld [vmem:[#allocation2 + $0x1f0] sm:$0xff]  ;;  %12683 = vmatprep.mubr.bf16.mxu1 %v3569_v3  ;;  %v2970_v60 = vshll.u32 %v2893_v37, 16 }
 0x349   :  { %v2420_v27 = vor.u32 %v2419_v46, %v2415_v23  ;;  %v2429_v5 = vshll.u32 %v2082_v47, 16  ;;  %v2427_v45 = vshrl.u32 %v2082_v47, 16  ;;  %12684 = vmatmul.mubr.bf16.vlgmr.msra.gmra.mrb[0].mxu1 %v3572_v48  ;;  %v2088_v23 = vld [vmem:[#allocation2 + $0x220] sm:$0xff]  ;;  %v266_v46 = vld [vmem:[#allocation2 + $0x118] sm:$0x1]  ;;  %v2458_v47 = vshll.u32 %v2087_v10, 16 }
 0x34a   :  { %v267_v52 = vsel %vm14168_vm4, 0, %v266_v46  ;;  %v2465_v21 = vshll.u32 %v2088_v23, 16  ;;  %v2463_v44 = vshrl.u32 %v2088_v23, 16  ;;  %v2968_v48 = vshrl.u32 %v2893_v37, 16  ;;  %v15139_v10 = vld [vmem:[#allocation2 + $0x40] sm:$0xff] }
 0x34b   :  { %v2425_v58 = vsel %vm1224_vm6, %v2420_v27, %v2424_v53  ;;  %v2431_v24 = vrot.slane %v2429_v5, 1  ;;  %v2600_v27 = vld [vmem:[#allocation2 + $0x220] sm:$0xfe]  ;;  %v2601_v53 = vld [vmem:[#allocation2 + $0x228] sm:$0x1]  ;;  %v2982_v46 = vshll.u32 %v15139_v10, 16 }
 0x34c   :  { %268 = vst [vmem:[#allocation2 + $0x118] sm:$0x1] %v267_v52  ;;  %v156_v5 = vld [vmem:[#allocation2 + $0x110] sm:$0x1]  ;;  %v2467_v54 = vrot.slane %v2465_v21, 1 }
 0x34d   :  { %v2432_v18 = vor.u32 %v2431_v24, %v2427_v45  ;;  %v2460_v45 = vrot.slane %v2458_v47, 1  ;;  %v2759_v24 = vrot.slane %v2600_v27, 1  ;;  %v3435_v47 = vld [vmem:[#allocation2 + $0x140] sm:$0xfe]  ;;  %v3436_v52 = vld [vmem:[#allocation2 + $0x148] sm:$0x1] }
 0x34e   :  { %v2468_v41 = vor.u32 %v2467_v54, %v2463_v44  ;;  %v3579_v27 = vrot.slane %v3435_v47, 1  ;;  %v3438_v21 = vld [vmem:[#allocation2 + $0x158] sm:$0x1]  ;;  %v3444_v47 = vld [vmem:[#allocation2 + $0x188] sm:$0x1] }
 0x34f   :  { %5351 = vmatmul.mubr.bf16.gmra.mrb[92].mxu0 %v2377_v56  ;;  %v2083_v56 = vld [vmem:[#allocation2 + $0x1f8] sm:$0x1] }
 0x350   :  { %5358 = vmatprep.mubr.bf16.mxu0 %v2740_v61  ;;  %v2434_v61 = vshll.u32 %v2083_v56, 16  ;;  %v157_v56 = vsel %vm14161_vm3, 0, %v156_v5  ;;  %v3437_v5 = vld [vmem:[#allocation2 + $0x150] sm:$0xfe] }
 0x351   :  { %158 = vst [vmem:[#allocation2 + $0x110] sm:$0x1] %v157_v56  ;;  %v2984_v56 = vrot.slane %v2982_v46, 1  ;;  %v2904_v46 = vld [vmem:[#allocation2 + $0x88] sm:$0x1] }
 0x352   :  { %v2436_v33 = vrot.slane %v2434_v61, 1  ;;  %v2760_v61 = vrot.slane %v2601_v53, 1  ;;  %v3580_v53 = vrot.slane %v3436_v52, 1 }
 0x353   :  { %v3434_v29 = vld [vmem:[#allocation2 + $0x118] sm:$0x1] }
 0x354   :  { %v2437_v31 = vsel %vm1224_vm6, %v2432_v18, %v2436_v33  ;;  %v2470_v18 = vshll.u32 %v2089_v51, 16  ;;  %v2956_v33 = vshrl.u32 %v15127_v2, 16  ;;  %v3577_v1 = vrot.slane %v3434_v29, 1  ;;  %v3440_v29 = vld [vmem:[#allocation2 + $0x168] sm:$0x1] }
 0x355   :  { %v3581_v51 = vsel %vm1801_vm9, %v3579_v27, %v3580_v53  ;;  %v3445_v27 = vld [vmem:[#allocation2 + $0x190] sm:$0xfe]  ;;  %v3446_v53 = vld [vmem:[#allocation2 + $0x198] sm:$0x1] }
 0x356   :  { %v2472_v62 = vrot.slane %v2470_v18, 1  ;;  %v2898_v18 = vld [vmem:[#allocation2 + $0x58] sm:$0x1] }
 0x357   :  { %5359 = vmatmul.mubr.bf16.gmra.mrb[96].mxu0 %v2389_v39  ;;  %v2085_v39 = vld [vmem:[#allocation2 + $0x208] sm:$0x1] }
 0x358   :  { %5366 = vmatprep.mubr.bf16.mxu0 %v2743_v26  ;;  %v2443_v26 = vrot.slane %v2441_v50, 1  ;;  %v2446_v30 = vshll.u32 %v2085_v39, 16  ;;  %v2892_v50 = vld [vmem:[#allocation2 + $0x28] sm:$0x1]  ;;  %v3431_v39 = vld [vmem:[#allocation2 + $0x100] sm:$0xfe] }
 0x359   :  { %v2963_v40 = vshll.u32 %v2892_v50, 16 }
 0x35a   :  { %v2444_v20 = vor.u32 %v2443_v26, %v2439_v22  ;;  %v2448_v0 = vrot.slane %v2446_v30, 1  ;;  %v2761_v22 = vsel %vm1801_vm9, %v2759_v24, %v2760_v61  ;;  %v3573_v26 = vrot.slane %v3431_v39, 1 }
 0x35b   :  { %v3574_v30 = vrot.slane %v3432_v4, 1  ;;  %v2965_v3 = vrot.slane %v2963_v40, 1  ;;  %v3582_v24 = vrot.slane %v3437_v5, 1  ;;  %v3583_v61 = vrot.slane %v3438_v21, 1 }
 0x35c   :  { %v2999_v4 = vshll.u32 %v2898_v18, 16  ;;  %v3035_v21 = vshll.u32 %v2904_v46, 16 }
 0x35f   :  { %5367 = vmatmul.mubr.bf16.gmra.mrb[100].mxu0 %v2401_v57  ;;  %v2086_v57 = vld [vmem:[#allocation2 + $0x210] sm:$0xff] }
 0x360   :  { %5374 = vmatprep.mubr.bf16.mxu0 %v2746_v55  ;;  %v2599_v55 = vld [vmem:[#allocation2 + $0x218] sm:$0x1]  ;;  %v2453_v49 = vshll.u32 %v2086_v57, 16  ;;  %v2451_v59 = vshrl.u32 %v2086_v57, 16  ;;  %v3578_v57 = vsel %vm1801_vm9, %v3576_v6, %v3577_v1  ;;  %v3441_v6 = vld [vmem:[#allocation2 + $0x170] sm:$0xfe] }
 0x361   :  { %v2757_v35 = vrot.slane %v2599_v55, 1  ;;  %v3442_v1 = vld [vmem:[#allocation2 + $0x178] sm:$0x1] }
 0x363   :  { %v2758_v63 = vsel %vm1801_vm9, %v2756_v9, %v2757_v35 }
 0x367   :  { %5375 = vmatmul.mubr.bf16.gmra.mrb[104].mxu0 %v2413_v42  ;;  %v2449_v42 = vsel %vm1224_vm6, %v2444_v20, %v2448_v0  ;;  %v2894_v20 = vld [vmem:[#allocation2 + $0x38] sm:$0x1]  ;;  %v2473_v0 = vsel %vm1224_vm6, %v2468_v41, %v2472_v62  ;;  %v3588_v41 = vrot.slane %v3441_v6, 1  ;;  %v3589_v62 = vrot.slane %v3442_v1, 1  ;;  %v2909_v6 = vld [vmem:[#allocation2 + $0xb0] sm:$0xff] }
 0x368   :  { %5382 = vmatprep.mubr.bf16.mxu0 %v2749_v19  ;;  %v2455_v19 = vrot.slane %v2453_v49, 1  ;;  %v2972_v49 = vrot.slane %v2970_v60, 1  ;;  %v2975_v9 = vshll.u32 %v2894_v20, 16 }
 0x36a   :  { %v2977_v23 = vrot.slane %v2975_v9, 1 }
 0x36f   :  { %5383 = vmatmul.mubr.bf16.gmra.mrb[108].mxu0 %v2425_v58  ;;  %v2456_v58 = vor.u32 %v2455_v19, %v2451_v59  ;;  %v2896_v59 = vld [vmem:[#allocation2 + $0x48] sm:$0x1]  ;;  %v2980_v19 = vshrl.u32 %v15139_v10, 16 }
 0x370   :  { %5390 = vmatprep.mubr.bf16.mxu0 %v2752_v38  ;;  %v2958_v38 = vshll.u32 %v15127_v2, 16 }
 0x371   :  { %v2461_v17 = vsel %vm1224_vm6, %v2456_v58, %v2460_v45  ;;  %v2987_v58 = vshll.u32 %v2896_v59, 16  ;;  %v15144_v45 = vld [vmem:[#allocation2 + $0x50] sm:$0xff]  ;;  %v2985_v54 = vor.u32 %v2984_v56, %v2980_v19  ;;  %v3443_v19 = vld [vmem:[#allocation2 + $0x180] sm:$0xfe] }
 0x372   :  { %v2994_v44 = vshll.u32 %v15144_v45, 16  ;;  %v3591_v52 = vrot.slane %v3443_v19, 1  ;;  %v2905_v56 = vld [vmem:[#allocation2 + $0x90] sm:$0xff] }
 0x373   :  { %v2989_v50 = vrot.slane %v2987_v58, 1  ;;  %v3594_v58 = vrot.slane %v3445_v27, 1  ;;  %v2913_v27 = vld [vmem:[#allocation2 + $0xd0] sm:$0xff] }
 0x374   :  { %v2996_v39 = vrot.slane %v2994_v44, 1  ;;  %v2906_v44 = vld [vmem:[#allocation2 + $0x98] sm:$0x1] }
 0x377   :  { %5391 = vmatmul.mubr.bf16.gmra.mrb[112].mxu0 %v2437_v31  ;;  %v2960_v31 = vrot.slane %v2958_v38, 1  ;;  %v3584_v38 = vsel %vm1801_vm9, %v3582_v24, %v3583_v61  ;;  %v3042_v61 = vshll.u32 %v2905_v56, 16 }
 0x378   :  { %5398 = vmatprep.mubr.bf16.mxu0 %v2755_v12  ;;  %v3575_v12 = vsel %vm1801_vm9, %v3573_v26, %v3574_v30  ;;  %v2900_v30 = vld [vmem:[#allocation2 + $0x68] sm:$0x1] }
 0x379   :  { %12687 = vmatprep.mubr.bf16.mxu1 %v3575_v12  ;;  %v2961_v55 = vor.u32 %v2960_v31, %v2956_v33  ;;  %v2992_v33 = vshrl.u32 %v15144_v45, 16 }
 0x37a   :  { %12688 = vmatmul.mubr.bf16.gmra.mrb[4].mxu1 %v3578_v57  ;;  %v3011_v57 = vshll.u32 %v2900_v30, 16 }
 0x37b   :  { %v2966_v35 = vsel %vm1224_vm6, %v2961_v55, %v2965_v3  ;;  %12691 = vmatprep.mubr.bf16.mxu1 %v3581_v51  ;;  %v3590_v55 = vsel %vm1801_vm9, %v3588_v41, %v3589_v62  ;;  %v3066_v41 = vshll.u32 %v2909_v6, 16 }
 0x37c   :  { %v3013_v20 = vrot.slane %v3011_v57, 1 }
 0x37f   :  { %5399 = vmatmul.mubr.bf16.gmra.mrb[116].mxu0 %v2449_v42  ;;  %v2973_v42 = vor.u32 %v2972_v49, %v2968_v48 }
 0x380   :  { %5406 = vmatprep.mubr.bf16.mxu0 %v2758_v63 }
 0x381   :  { %v2978_v63 = vsel %vm1224_vm6, %v2973_v42, %v2977_v23 }
 0x382   :  { %12692 = vmatmul.mubr.bf16.gmra.mrb[8].mxu1 %v3584_v38  ;;  %v3037_v38 = vrot.slane %v3035_v21, 1 }
 0x387   :  { %5407 = vmatmul.mubr.bf16.gmra.mrb[120].mxu0 %v2461_v17  ;;  %v2997_v17 = vor.u32 %v2996_v39, %v2992_v33  ;;  %v2907_v33 = vld [vmem:[#allocation2 + $0xa0] sm:$0xff] }
 0x388   :  { %5414 = vmatprep.mubr.bf16.mxu0 %v2761_v22  ;;  %v3001_v22 = vrot.slane %v2999_v4, 1 }
 0x38a   :  { %v3002_v31 = vsel %vm1224_vm6, %v2997_v17, %v3001_v22  ;;  %v3052_v17 = vshrl.u32 %v2907_v33, 16  ;;  %v3447_v22 = vld [vmem:[#allocation2 + $0x1a0] sm:$0xfe] }
 0x38f   :  { %5415 = vmatmul.mubr.bf16.gmra.mrb[124].mxu0 %v2473_v0  ;;  %v2902_v0 = vld [vmem:[#allocation2 + $0x78] sm:$0x1] }
 0x390   :  { %5455 = vmatprep.mubr.bf16.mxu0 %v2966_v35  ;;  %v3023_v9 = vshll.u32 %v2902_v0, 16 }
 0x392   :  { %v3025_v42 = vrot.slane %v3023_v9, 1 }
 0x397   :  { %5456 = vmatmul.mubr.bf16.vlgmr.msra.gmra.mrb[0].mxu0 %v15127_v2  ;;  %v2990_v2 = vsel %vm1224_vm6, %v2985_v54, %v2989_v50  ;;  %v3040_v54 = vshrl.u32 %v2905_v56, 16  ;;  %v3047_v50 = vshll.u32 %v2906_v44, 16 }
 0x398   :  { %12644 = vmatpush3.bf16.msra.mxu0 %v15059_v25  ;;  %5463 = vmatprep.mubr.bf16.mxu0 %v2978_v63  ;;  %v15156_v25 = vld [vmem:[#allocation2 + $0x60] sm:$0xff]  ;;  %v3592_v63 = vrot.slane %v3444_v47, 1  ;;  %v3453_v47 = vld [vmem:[#allocation2 + $0x1d0] sm:$0xfe] }
 0x399   :  { %12645 = vmatprep.subr.bf16.mxu0 %v15074_v13  ;;  %v3006_v26 = vshll.u32 %v15156_v25, 16  ;;  %v3004_v34 = vshrl.u32 %v15156_v25, 16  ;;  %v3049_v4 = vrot.slane %v3047_v50, 1 }
 0x39b   :  { %v3008_v12 = vrot.slane %v3006_v26, 1  ;;  %v3448_v26 = vld [vmem:[#allocation2 + $0x1a8] sm:$0x1] }
 0x39c   :  { %12646 = vmatpush3.bf16.msra.mxu0 %v15074_v13  ;;  %v3439_v13 = vld [vmem:[#allocation2 + $0x160] sm:$0xfe] }
 0x39d   :  { %12647 = vmatprep.subr.bf16.mxu0 %v15086_v8  ;;  %v3585_v40 = vrot.slane %v3439_v13, 1  ;;  %v3009_v3 = vor.u32 %v3008_v12, %v3004_v34  ;;  %v3597_v34 = vrot.slane %v3447_v22, 1  ;;  %v3598_v13 = vrot.slane %v3448_v26, 1  ;;  %v3457_v26 = vld [vmem:[#allocation2 + $0x1f0] sm:$0xfe] }
 0x39f   :  { %5464 = vmatmul.mubr.bf16.gmra.mrb[4].mxu0 %v2893_v37  ;;  %v3586_v37 = vrot.slane %v3440_v29, 1  ;;  %v3014_v35 = vsel %vm1224_vm6, %v3009_v3, %v3013_v20  ;;  %v3449_v29 = vld [vmem:[#allocation2 + $0x1b0] sm:$0xfe]  ;;  %v3599_v57 = vsel %vm1801_vm9, %v3597_v34, %v3598_v13  ;;  %v3068_v3 = vrot.slane %v3066_v41, 1 }
 0x3a0   :  { %5471 = vmatprep.mubr.bf16.mxu0 %v2990_v2  ;;  %12648 = vmatpush3.bf16.msra.mxu0 %v15086_v8  ;;  %v2901_v8 = vld [vmem:[#allocation2 + $0x70] sm:$0xff]  ;;  %v3054_v2 = vshll.u32 %v2907_v33, 16  ;;  %v3600_v1 = vrot.slane %v3449_v29, 1 }
 0x3a1   :  { %12649 = vmatprep.subr.bf16.mxu0 %v15092_v43  ;;  %v3587_v60 = vsel %vm1801_vm9, %v3585_v40, %v3586_v37  ;;  %v3016_v48 = vshrl.u32 %v2901_v8, 16  ;;  %v2917_v29 = vld [vmem:[#allocation2 + $0xf0] sm:$0xff] }
 0x3a2   :  { %12695 = vmatprep.mubr.bf16.mxu1 %v3587_v60  ;;  %v3056_v40 = vrot.slane %v3054_v2, 1  ;;  %v3456_v2 = vld [vmem:[#allocation2 + $0x1e8] sm:$0x1]  ;;  %v3112_v41 = vshrl.u32 %v2917_v29, 16 }
 0x3a3   :  { %12696 = vmatmul.mubr.bf16.gmra.mrb[12].mxu1 %v3590_v55  ;;  %v2910_v55 = vld [vmem:[#allocation2 + $0xb8] sm:$0x1]  ;;  %v3610_v22 = vrot.slane %v3456_v2, 1  ;;  %v3464_v2 = vld [vmem:[#allocation2 + $0x228] sm:$0x1] }
 0x3a4   :  { %12650 = vmatpush3.bf16.msra.mxu0 %v15092_v43  ;;  %v3018_v43 = vshll.u32 %v2901_v8, 16  ;;  %v3057_v62 = vor.u32 %v3056_v40, %v3052_v17  ;;  %v3071_v20 = vshll.u32 %v2910_v55, 16 }
 0x3a5   :  { %12651 = vmatprep.subr.bf16.mxu0 %v15098_v32 }
 0x3a6   :  { %v3020_v49 = vrot.slane %v3018_v43, 1  ;;  %v3064_v43 = vshrl.u32 %v2909_v6, 16  ;;  %v3073_v9 = vrot.slane %v3071_v20, 1 }
 0x3a7   :  { %5472 = vmatmul.mubr.bf16.gmra.mrb[8].mxu0 %v15139_v10  ;;  %v2903_v10 = vld [vmem:[#allocation2 + $0x80] sm:$0xff] }
 0x3a8   :  { %5479 = vmatprep.mubr.bf16.mxu0 %v3002_v31  ;;  %12652 = vmatpush3.bf16.msra.mxu0 %v15098_v32  ;;  %v3021_v32 = vor.u32 %v3020_v49, %v3016_v48  ;;  %v3030_v23 = vshll.u32 %v2903_v10, 16  ;;  %v3028_v59 = vshrl.u32 %v2903_v10, 16  ;;  %v3450_v31 = vld [vmem:[#allocation2 + $0x1b8] sm:$0x1]  ;;  %v2911_v48 = vld [vmem:[#allocation2 + $0xc0] sm:$0xff]  ;;  %v3069_v49 = vor.u32 %v3068_v3, %v3064_v43 }
 0x3a9   :  { %12653 = vmatprep.subr.bf16.mxu0 %v15100_v28  ;;  %v3601_v12 = vrot.slane %v3450_v31, 1  ;;  %v3612_v31 = vrot.slane %v3457_v26, 1  ;;  %v2919_v43 = vld [vmem:[#allocation2 + $0x100] sm:$0xff] }
 0x3aa   :  { %v3032_v5 = vrot.slane %v3030_v23, 1  ;;  %v3452_v23 = vld [vmem:[#allocation2 + $0x1c8] sm:$0x1]  ;;  %v3074_v46 = vsel %vm1224_vm6, %v3069_v49, %v3073_v9  ;;  %v3124_v49 = vshrl.u32 %v2919_v43, 16  ;;  %v3459_v9 = vld [vmem:[#allocation2 + $0x200] sm:$0xfe] }
 0x3ab   :  { %v3604_v19 = vrot.slane %v3452_v23, 1  ;;  %v3461_v23 = vld [vmem:[#allocation2 + $0x210] sm:$0xfe] }
 0x3ac   :  { %12654 = vmatpush3.bf16.msra.mxu0 %v15100_v28  ;;  %v3026_v28 = vsel %vm1224_vm6, %v3021_v32, %v3025_v42  ;;  %v3033_v51 = vor.u32 %v3032_v5, %v3028_v59  ;;  %v3076_v32 = vshrl.u32 %v2911_v48, 16  ;;  %v3451_v42 = vld [vmem:[#allocation2 + $0x1c0] sm:$0xfe] }
 0x3ad   :  { %12655 = vmatprep.subr.bf16.mxu0 %v15108_v36  ;;  %v3603_v59 = vrot.slane %v3451_v42, 1 }
 0x3ae   :  { %v3038_v18 = vsel %vm1224_vm6, %v3033_v51, %v3037_v38 }
 0x3af   :  { %5480 = vmatmul.mubr.bf16.gmra.mrb[12].mxu0 %v15144_v45  ;;  %v3593_v45 = vsel %vm1801_vm9, %v3591_v52, %v3592_v63  ;;  %v3605_v21 = vsel %vm1801_vm9, %v3603_v59, %v3604_v19 }
 0x3b0   :  { %5487 = vmatprep.mubr.bf16.mxu0 %v3014_v35  ;;  %12656 = vmatpush3.bf16.msra.mxu0 %v15108_v36  ;;  %v3595_v36 = vrot.slane %v3446_v53, 1  ;;  %v3078_v35 = vshll.u32 %v2911_v48, 16  ;;  %v3606_v53 = vrot.slane %v3453_v47, 1  ;;  %v2921_v47 = vld [vmem:[#allocation2 + $0x110] sm:$0xff] }
 0x3b1   :  { %12657 = vmatprep.subr.bf16.mxu0 %v15110_v14  ;;  %12699 = vmatprep.mubr.bf16.mxu1 %v3593_v45 }
 0x3b2   :  { %v3596_v24 = vsel %vm1801_vm9, %v3594_v58, %v3595_v36  ;;  %v3080_v52 = vrot.slane %v3078_v35, 1  ;;  %v3090_v58 = vshll.u32 %v2913_v27, 16  ;;  %v3460_v35 = vld [vmem:[#allocation2 + $0x208] sm:$0x1] }
 0x3b3   :  { %12700 = vmatmul.mubr.bf16.gmra.mrb[16].mxu1 %v3596_v24  ;;  %v2914_v24 = vld [vmem:[#allocation2 + $0xd8] sm:$0x1]  ;;  %v3616_v42 = vrot.slane %v3460_v35, 1 }
 0x3b4   :  { %12658 = vmatpush3.bf16.msra.mxu0 %v15110_v14  ;;  %v3044_v14 = vrot.slane %v3042_v61, 1  ;;  %12703 = vmatprep.mubr.bf16.mxu1 %v3599_v57  ;;  %v3081_v36 = vor.u32 %v3080_v52, %v3076_v32  ;;  %v3088_v61 = vshrl.u32 %v2913_v27, 16  ;;  %v3092_v51 = vrot.slane %v3090_v58, 1  ;;  %v320_v58 = vld [vmem:[#allocation2 + $0x238] sm:$0x1] }
 0x3b5   :  { %v3095_v38 = vshll.u32 %v2914_v24, 16  ;;  %v3615_v32 = vrot.slane %v3459_v9, 1 }
 0x3b6   :  { %v3045_v39 = vor.u32 %v3044_v14, %v3040_v54  ;;  %v2915_v54 = vld [vmem:[#allocation2 + $0xe0] sm:$0xff]  ;;  %v3093_v14 = vor.u32 %v3092_v51, %v3088_v61  ;;  %v321_v61 = vsel %vm14168_vm4, 0, %v320_v58 }
 0x3b7   :  { %5488 = vmatmul.mubr.bf16.gmra.mrb[16].mxu0 %v15156_v25  ;;  %v2908_v25 = vld [vmem:[#allocation2 + $0xa8] sm:$0x1]  ;;  %v3097_v50 = vrot.slane %v3095_v38, 1  ;;  %322 = vst [vmem:[#allocation2 + $0x238] sm:$0x1] %v321_v61 }
 0x3b8   :  { %5495 = vmatprep.mubr.bf16.mxu0 %v3026_v28  ;;  %v3050_v30 = vsel %vm1224_vm6, %v3045_v39, %v3049_v4  ;;  %v3059_v37 = vshll.u32 %v2908_v25, 16  ;;  %v3454_v28 = vld [vmem:[#allocation2 + $0x1d8] sm:$0x1]  ;;  %v3100_v39 = vshrl.u32 %v2915_v54, 16  ;;  %v3455_v4 = vld [vmem:[#allocation2 + $0x1e0] sm:$0xfe] }
 0x3b9   :  { %v3607_v5 = vrot.slane %v3454_v28, 1  ;;  %v3098_v25 = vsel %vm1224_vm6, %v3093_v14, %v3097_v50  ;;  %v3609_v17 = vrot.slane %v3455_v4, 1  ;;  %v3618_v28 = vrot.slane %v3461_v23, 1  ;;  %v210_v38 = vld [vmem:[#allocation2 + $0x230] sm:$0x1] }
 0x3ba   :  { %v3061_v60 = vrot.slane %v3059_v37, 1  ;;  %v3463_v4 = vld [vmem:[#allocation2 + $0x220] sm:$0xfe] }
 0x3bb   :  { %v3611_v37 = vsel %vm1801_vm9, %v3609_v17, %v3610_v22  ;;  %v3622_v17 = vrot.slane %v3464_v2, 1  ;;  %v3465_v22 = vld [vmem:[#allocation2 + $0x230] sm:$0xfe]  ;;  %v2936_v2 = vld [vmem:[#allocation2 + $0x1a8] sm:$0x1] }
 0x3bc   :  { %v3062_v0 = vsel %vm1224_vm6, %v3057_v62, %v3061_v60 }
 0x3be   :  { %v3466_v26 = vld [vmem:[#allocation2 + $0x238] sm:$0x1] }
 0x3bf   :  { %5496 = vmatmul.mubr.bf16.gmra.mrb[20].mxu0 %v2901_v8  ;;  %v3602_v8 = vsel %vm1801_vm9, %v3600_v1, %v3601_v12  ;;  %v3114_v1 = vshll.u32 %v2917_v29, 16 }
 0x3c0   :  { %5503 = vmatprep.mubr.bf16.mxu0 %v3038_v18  ;;  %12704 = vmatmul.mubr.bf16.gmra.mrb[20].mxu1 %v3602_v8  ;;  %v3102_v18 = vshll.u32 %v2915_v54, 16  ;;  %v2918_v8 = vld [vmem:[#allocation2 + $0xf8] sm:$0x1] }
 0x3c1   :  { %12707 = vmatprep.mubr.bf16.mxu1 %v3605_v21  ;;  %v3116_v62 = vrot.slane %v3114_v1, 1  ;;  %v3119_v60 = vshll.u32 %v2918_v8, 16 }
 0x3c2   :  { %v3104_v34 = vrot.slane %v3102_v18, 1 }
 0x3c3   :  { %v3117_v3 = vor.u32 %v3116_v62, %v3112_v41  ;;  %v3121_v20 = vrot.slane %v3119_v60, 1 }
 0x3c4   :  { %v3105_v12 = vor.u32 %v3104_v34, %v3100_v39 }
 0x3c7   :  { %5504 = vmatmul.mubr.bf16.gmra.mrb[24].mxu0 %v2903_v10  ;;  %v2912_v10 = vld [vmem:[#allocation2 + $0xc8] sm:$0x1] }
 0x3c8   :  { %5511 = vmatprep.mubr.bf16.mxu0 %v3050_v30  ;;  %v3083_v63 = vshll.u32 %v2912_v10, 16  ;;  %v3458_v30 = vld [vmem:[#allocation2 + $0x1f8] sm:$0x1]  ;;  %v3122_v10 = vsel %vm1224_vm6, %v3117_v3, %v3121_v20 }
 0x3c9   :  { %v3613_v40 = vrot.slane %v3458_v30, 1 }
 0x3ca   :  { %v3085_v45 = vrot.slane %v3083_v63, 1  ;;  %v3617_v63 = vsel %vm1801_vm9, %v3615_v32, %v3616_v42 }
 0x3cc   :  { %v3086_v44 = vsel %vm1224_vm6, %v3081_v36, %v3085_v45  ;;  %v3136_v36 = vshrl.u32 %v2921_v47, 16 }
 0x3cf   :  { %5512 = vmatmul.mubr.bf16.gmra.mrb[28].mxu0 %v2905_v56  ;;  %v3608_v56 = vsel %vm1801_vm9, %v3606_v53, %v3607_v5  ;;  %v3138_v53 = vshll.u32 %v2921_v47, 16 }
 0x3d0   :  { %5519 = vmatprep.mubr.bf16.mxu0 %v3062_v0  ;;  %12708 = vmatmul.mubr.bf16.gmra.mrb[24].mxu1 %v3608_v56  ;;  %v3126_v0 = vshll.u32 %v2919_v43, 16  ;;  %v2922_v56 = vld [vmem:[#allocation2 + $0x118] sm:$0x1] }
 0x3d1   :  { %12711 = vmatprep.mubr.bf16.mxu1 %v3611_v37  ;;  %v3140_v45 = vrot.slane %v3138_v53, 1  ;;  %v3143_v24 = vshll.u32 %v2922_v56, 16 }
 0x3d2   :  { %v3128_v59 = vrot.slane %v3126_v0, 1  ;;  %v2928_v0 = vld [vmem:[#allocation2 + $0x168] sm:$0x1] }
 0x3d3   :  { %v3141_v14 = vor.u32 %v3140_v45, %v3136_v36  ;;  %v3145_v50 = vrot.slane %v3143_v24, 1  ;;  %v3179_v35 = vshll.u32 %v2928_v0, 16  ;;  %v2933_v45 = vld [vmem:[#allocation2 + $0x190] sm:$0xff] }
 0x3d4   :  { %v3129_v5 = vor.u32 %v3128_v59, %v3124_v49 }
 0x3d5   :  { %v3146_v11 = vsel %vm1224_vm6, %v3141_v14, %v3145_v50  ;;  %v3181_v42 = vrot.slane %v3179_v35, 1 }
 0x3d7   :  { %5520 = vmatmul.mubr.bf16.gmra.mrb[32].mxu0 %v2907_v33  ;;  %v2916_v33 = vld [vmem:[#allocation2 + $0xe8] sm:$0x1] }
 0x3d8   :  { %5527 = vmatprep.mubr.bf16.mxu0 %v3074_v46  ;;  %v3107_v13 = vshll.u32 %v2916_v33, 16  ;;  %v3462_v46 = vld [vmem:[#allocation2 + $0x218] sm:$0x1]  ;;  %v2924_v33 = vld [vmem:[#allocation2 + $0x148] sm:$0x1] }
 0x3d9   :  { %v3619_v52 = vrot.slane %v3462_v46, 1  ;;  %v3155_v34 = vshll.u32 %v2924_v33, 16  ;;  %v2930_v46 = vld [vmem:[#allocation2 + $0x178] sm:$0x1] }
 0x3da   :  { %v3109_v57 = vrot.slane %v3107_v13, 1  ;;  %v3624_v13 = vrot.slane %v3465_v22, 1  ;;  %v3227_v22 = vshll.u32 %v2936_v2, 16 }
 0x3db   :  { %v3157_v1 = vrot.slane %v3155_v34, 1 }
 0x3dc   :  { %v3110_v55 = vsel %vm1224_vm6, %v3105_v12, %v3109_v57  ;;  %v2926_v57 = vld [vmem:[#allocation2 + $0x158] sm:$0x1]  ;;  %v3229_v34 = vrot.slane %v3227_v22, 1 }
 0x3dd   :  { %v3167_v60 = vshll.u32 %v2926_v57, 16 }
 0x3df   :  { %5528 = vmatmul.mubr.bf16.gmra.mrb[36].mxu0 %v2909_v6  ;;  %v3614_v6 = vsel %vm1801_vm9, %v3612_v31, %v3613_v40  ;;  %v3625_v31 = vrot.slane %v3466_v26, 1  ;;  %v3169_v20 = vrot.slane %v3167_v60, 1  ;;  %v2937_v26 = vld [vmem:[#allocation2 + $0x1b0] sm:$0xff] }
 0x3e0   :  { %5535 = vmatprep.mubr.bf16.mxu0 %v3086_v44  ;;  %12712 = vmatmul.mubr.bf16.gmra.mrb[28].mxu1 %v3614_v6  ;;  %v2923_v44 = vld [vmem:[#allocation2 + $0x140] sm:$0xff] }
 0x3e1   :  { %12715 = vmatprep.mubr.bf16.mxu1 %v3617_v63  ;;  %v3150_v18 = vshll.u32 %v2923_v44, 16  ;;  %v3148_v39 = vshrl.u32 %v2923_v44, 16  ;;  %v3626_v37 = vsel %vm1801_vm9, %v3624_v13, %v3625_v31  ;;  %v3234_v13 = vshll.u32 %v2937_v26, 16  ;;  %v2938_v31 = vld [vmem:[#allocation2 + $0x1b8] sm:$0x1] }
 0x3e3   :  { %v3152_v30 = vrot.slane %v3150_v18, 1  ;;  %v2935_v18 = vld [vmem:[#allocation2 + $0x1a0] sm:$0xff] }
 0x3e5   :  { %v3153_v6 = vor.u32 %v3152_v30, %v3148_v39 }
 0x3e7   :  { %5536 = vmatmul.mubr.bf16.gmra.mrb[40].mxu0 %v2911_v48  ;;  %v2920_v48 = vld [vmem:[#allocation2 + $0x108] sm:$0x1]  ;;  %v3158_v8 = vsel %vm1224_vm6, %v3153_v6, %v3157_v1  ;;  %v3239_v6 = vshll.u32 %v2938_v31, 16  ;;  %v2939_v1 = vld [vmem:[#allocation2 + $0x1c0] sm:$0xff] }
 0x3e8   :  { %5543 = vmatprep.mubr.bf16.mxu0 %v3098_v25  ;;  %v3131_v19 = vshll.u32 %v2920_v48, 16  ;;  %v3621_v25 = vrot.slane %v3463_v4, 1  ;;  %v3222_v4 = vshll.u32 %v2935_v18, 16  ;;  %v3244_v60 = vshrl.u32 %v2939_v1, 16 }
 0x3e9   :  { %v3241_v57 = vrot.slane %v3239_v6, 1 }
 0x3ea   :  { %v3133_v21 = vrot.slane %v3131_v19, 1  ;;  %v3623_v40 = vsel %vm1801_vm9, %v3621_v25, %v3622_v17  ;;  %v3220_v25 = vshrl.u32 %v2935_v18, 16  ;;  %v3224_v17 = vrot.slane %v3222_v4, 1 }
 0x3ec   :  { %v3134_v51 = vsel %vm1224_vm6, %v3129_v5, %v3133_v21  ;;  %v2932_v5 = vld [vmem:[#allocation2 + $0x188] sm:$0x1]  ;;  %v3225_v30 = vor.u32 %v3224_v17, %v3220_v25 }
 0x3ed   :  { %v3203_v36 = vshll.u32 %v2932_v5, 16 }
 0x3ef   :  { %5544 = vmatmul.mubr.bf16.gmra.mrb[44].mxu0 %v2913_v27  ;;  %v3620_v27 = vsel %vm1801_vm9, %v3618_v28, %v3619_v52  ;;  %v3191_v28 = vshll.u32 %v2930_v46, 16  ;;  %v2931_v52 = vld [vmem:[#allocation2 + $0x180] sm:$0xff]  ;;  %v3205_v61 = vrot.slane %v3203_v36, 1 }
 0x3f0   :  { %5551 = vmatprep.mubr.bf16.mxu0 %v3110_v55  ;;  %12716 = vmatmul.mubr.bf16.gmra.mrb[32].mxu1 %v3620_v27  ;;  %v2927_v55 = vld [vmem:[#allocation2 + $0x160] sm:$0xff]  ;;  %v3198_v53 = vshll.u32 %v2931_v52, 16  ;;  %v3196_v56 = vshrl.u32 %v2931_v52, 16 }
 0x3f1   :  { %12719 = vmatprep.mubr.bf16.mxu1 %v3623_v40  ;;  %v3172_v49 = vshrl.u32 %v2927_v55, 16  ;;  %v3193_v27 = vrot.slane %v3191_v28, 1  ;;  %v3232_v40 = vshrl.u32 %v2937_v26, 16 }
 0x3f2   :  { %v3200_v58 = vrot.slane %v3198_v53, 1 }
 0x3f4   :  { %v3201_v24 = vor.u32 %v3200_v58, %v3196_v56  ;;  %v2945_v56 = vld [vmem:[#allocation2 + $0x1f0] sm:$0xff] }
 0x3f7   :  { %5552 = vmatmul.mubr.bf16.gmra.mrb[48].mxu0 %v2915_v54  ;;  %v211_v54 = vsel %vm14161_vm3, 0, %v210_v38  ;;  %v2934_v38 = vld [vmem:[#allocation2 + $0x198] sm:$0x1] }
 0x3f8   :  { %5559 = vmatprep.mubr.bf16.mxu0 %v3122_v10  ;;  %212 = vst [vmem:[#allocation2 + $0x230] sm:$0x1] %v211_v54  ;;  %12720 = vmatmul.mubr.bf16.gmra.mrb[36].mxu1 %v3626_v37  ;;  %v2929_v10 = vld [vmem:[#allocation2 + $0x170] sm:$0xff]  ;;  %v3208_v54 = vshrl.u32 %v2933_v45, 16  ;;  %v3215_v50 = vshll.u32 %v2934_v38, 16  ;;  %v3236_v37 = vrot.slane %v3234_v13, 1 }
 0x3f9   :  { %v3186_v23 = vshll.u32 %v2929_v10, 16  ;;  %v3184_v19 = vshrl.u32 %v2929_v10, 16 }
 0x3fa   :  { %v3217_v39 = vrot.slane %v3215_v50, 1 }
 0x3ff   :  { %5560 = vmatmul.mubr.bf16.gmra.mrb[52].mxu0 %v2917_v29  ;;  %v2925_v29 = vld [vmem:[#allocation2 + $0x150] sm:$0xff] }
 0x400   :  { %5567 = vmatprep.mubr.bf16.mxu0 %v3134_v51  ;;  %v3162_v12 = vshll.u32 %v2925_v29, 16  ;;  %v3160_v41 = vshrl.u32 %v2925_v29, 16  ;;  %v3210_v51 = vshll.u32 %v2933_v45, 16 }
 0x402   :  { %v3164_v62 = vrot.slane %v3162_v12, 1  ;;  %v3212_v14 = vrot.slane %v3210_v51, 1  ;;  %v3237_v12 = vor.u32 %v3236_v37, %v3232_v40  ;;  %v2950_v40 = vld [vmem:[#allocation2 + $0x218] sm:$0x1] }
 0x404   :  { %v3165_v3 = vor.u32 %v3164_v62, %v3160_v41  ;;  %v3213_v33 = vor.u32 %v3212_v14, %v3208_v54  ;;  %v2940_v41 = vld [vmem:[#allocation2 + $0x1c8] sm:$0x1]  ;;  %v3242_v62 = vsel %vm1224_vm6, %v3237_v12, %v3241_v57 }
 0x406   :  { %v3170_v48 = vsel %vm1224_vm6, %v3165_v3, %v3169_v20  ;;  %v3251_v3 = vshll.u32 %v2940_v41, 16  ;;  %v2941_v20 = vld [vmem:[#allocation2 + $0x1d0] sm:$0xff] }
 0x407   :  { %5568 = vmatmul.mubr.bf16.gmra.mrb[56].mxu0 %v2919_v43  ;;  %v3174_v43 = vshll.u32 %v2927_v55, 16 }
 0x408   :  { %5575 = vmatprep.mubr.bf16.mxu0 %v3146_v11  ;;  %v3218_v11 = vsel %vm1224_vm6, %v3213_v33, %v3217_v39  ;;  %v3253_v0 = vrot.slane %v3251_v3, 1 }
 0x409   :  { %v3176_v9 = vrot.slane %v3174_v43, 1 }
 0x40b   :  { %v3177_v32 = vor.u32 %v3176_v9, %v3172_v49  ;;  %v2942_v49 = vld [vmem:[#allocation2 + $0x1d8] sm:$0x1] }
 0x40d   :  { %v3182_v59 = vsel %vm1224_vm6, %v3177_v32, %v3181_v42  ;;  %v3256_v32 = vshrl.u32 %v2941_v20, 16 }
 0x40f   :  { %5576 = vmatmul.mubr.bf16.gmra.mrb[60].mxu0 %v2921_v47  ;;  %v3188_v47 = vrot.slane %v3186_v23, 1  ;;  %v3263_v23 = vshll.u32 %v2942_v49, 16 }
 0x410   :  { %5583 = vmatprep.mubr.bf16.mxu0 %v3158_v8  ;;  %v3246_v8 = vshll.u32 %v2939_v1, 16 }
 0x411   :  { %v3189_v63 = vor.u32 %v3188_v47, %v3184_v19  ;;  %v3265_v28 = vrot.slane %v3263_v23, 1 }
 0x413   :  { %v3194_v21 = vsel %vm1224_vm6, %v3189_v63, %v3193_v27  ;;  %v2944_v63 = vld [vmem:[#allocation2 + $0x1e8] sm:$0x1] }
 0x417   :  { %5584 = vmatmul.mubr.bf16.gmra.mrb[64].mxu0 %v2923_v44  ;;  %v3206_v44 = vsel %vm1224_vm6, %v3201_v24, %v3205_v61  ;;  %v2946_v24 = vld [vmem:[#allocation2 + $0x1f8] sm:$0x1] }
 0x418   :  { %5591 = vmatprep.mubr.bf16.mxu0 %v3170_v48  ;;  %v3258_v48 = vshll.u32 %v2941_v20, 16  ;;  %v3287_v14 = vshll.u32 %v2946_v24, 16 }
 0x41a   :  { %v3260_v42 = vrot.slane %v3258_v48, 1  ;;  %v3289_v4 = vrot.slane %v3287_v14, 1 }
 0x41c   :  { %v15213_v9 = vpop.f32.mrb[0].mxu1  ;;  %v3261_v47 = vor.u32 %v3260_v42, %v3256_v32 }
 0x41d   :  { %v15215_v35 = vpop.f32.mrb[1].mxu1 }
 0x41e   :  { %v15218_v46 = vpop.f32.mrb[2].mxu1  ;;  %v3266_v27 = vsel %vm1224_vm6, %v3261_v47, %v3265_v28 }
 0x41f   :  { %5592 = vmatmul.mubr.bf16.gmra.mrb[68].mxu0 %v2925_v29  ;;  %v3230_v29 = vsel %vm1224_vm6, %v3225_v30, %v3229_v34  ;;  %v15220_v19 = vpop.f32.mrb[3].mxu1  ;;  %v2949_v30 = vld [vmem:[#allocation2 + $0x210] sm:$0xff] }
 0x420   :  { %5599 = vmatprep.mubr.bf16.mxu0 %v3182_v59  ;;  %v2943_v59 = vld [vmem:[#allocation2 + $0x1e0] sm:$0xff]  ;;  %v3306_v31 = vshll.u32 %v2949_v30, 16 }
 0x421   :  { %v3268_v53 = vshrl.u32 %v2943_v59, 16 }
 0x422   :  { %v3308_v41 = vrot.slane %v3306_v31, 1  ;;  %v3404_v31 = vld [vmem:[#allocation2 + $0x28] sm:$0x1] }
 0x427   :  { %5600 = vmatmul.mubr.bf16.gmra.mrb[72].mxu0 %v2927_v55  ;;  %v3248_v55 = vrot.slane %v3246_v8, 1  ;;  %v3304_v8 = vshrl.u32 %v2949_v30, 16 }
 0x428   :  { %5607 = vmatprep.mubr.bf16.mxu0 %v3194_v21  ;;  %v3275_v21 = vshll.u32 %v2944_v63, 16  ;;  %v2953_v63 = vld [vmem:[#allocation2 + $0x230] sm:$0xff] }
 0x429   :  { %v3249_v43 = vor.u32 %v3248_v55, %v3244_v60  ;;  %v2951_v55 = vld [vmem:[#allocation2 + $0x220] sm:$0xff] }
 0x42a   :  { %v3277_v36 = vrot.slane %v3275_v21, 1  ;;  %v3318_v48 = vshll.u32 %v2951_v55, 16  ;;  %v3316_v47 = vshrl.u32 %v2951_v55, 16 }
 0x42c   :  { %v3320_v28 = vrot.slane %v3318_v48, 1  ;;  %v3406_v48 = vld [vmem:[#allocation2 + $0x38] sm:$0x1] }
 0x42f   :  { %5608 = vmatmul.mubr.bf16.gmra.mrb[76].mxu0 %v2929_v10  ;;  %v3254_v10 = vsel %vm1224_vm6, %v3249_v43, %v3253_v0  ;;  %v3309_v43 = vor.u32 %v3308_v41, %v3304_v8 }
 0x430   :  { %5615 = vmatprep.mubr.bf16.mxu0 %v3206_v44  ;;  %v3280_v44 = vshrl.u32 %v2945_v56, 16 }
 0x437   :  { %5616 = vmatmul.mubr.bf16.gmra.mrb[80].mxu0 %v2931_v52  ;;  %v3270_v52 = vshll.u32 %v2943_v59, 16 }
 0x438   :  { %5623 = vmatprep.mubr.bf16.mxu0 %v3218_v11  ;;  %v2948_v11 = vld [vmem:[#allocation2 + $0x208] sm:$0x1] }
 0x439   :  { %v3272_v5 = vrot.slane %v3270_v52, 1 }
 0x43b   :  { %v3273_v58 = vor.u32 %v3272_v5, %v3268_v53  ;;  %v3330_v5 = vshll.u32 %v2953_v63, 16 }
 0x43d   :  { %v3278_v38 = vsel %vm1224_vm6, %v3273_v58, %v3277_v36 }
 0x43f   :  { %5624 = vmatmul.mubr.bf16.gmra.mrb[84].mxu0 %v2933_v45  ;;  %v3282_v45 = vshll.u32 %v2945_v56, 16 }
 0x440   :  { %5631 = vmatprep.mubr.bf16.mxu0 %v3230_v29 }
 0x441   :  { %v3284_v54 = vrot.slane %v3282_v45, 1 }
 0x443   :  { %v3285_v39 = vor.u32 %v3284_v54, %v3280_v44  ;;  %v3328_v44 = vshrl.u32 %v2953_v63, 16  ;;  %v3332_v54 = vrot.slane %v3330_v5, 1 }
 0x445   :  { %v3290_v25 = vsel %vm1224_vm6, %v3285_v39, %v3289_v4 }
 0x447   :  { %5632 = vmatmul.mubr.bf16.gmra.mrb[88].mxu0 %v2935_v18  ;;  %v2947_v18 = vld [vmem:[#allocation2 + $0x200] sm:$0xff] }
 0x448   :  { %5639 = vmatprep.mubr.bf16.mxu0 %v3242_v62  ;;  %v3294_v2 = vshll.u32 %v2947_v18, 16  ;;  %v3292_v17 = vshrl.u32 %v2947_v18, 16  ;;  %v3311_v62 = vshll.u32 %v2950_v40, 16 }
 0x44a   :  { %v3296_v22 = vrot.slane %v3294_v2, 1  ;;  %v3313_v0 = vrot.slane %v3311_v62, 1  ;;  %v3333_v2 = vor.u32 %v3332_v54, %v3328_v44  ;;  %v3410_v44 = vld [vmem:[#allocation2 + $0x58] sm:$0x1]  ;;  %v3411_v54 = vld [vmem:[#allocation2 + $0x60] sm:$0xfe] }
 0x44c   :  { %v3297_v34 = vor.u32 %v3296_v22, %v3292_v17 }
 0x44d   :  { %v15223_v61 = vpop.f32.mrb[4].mxu1 }
 0x44e   :  { %v15225_v51 = vpop.f32.mrb[5].mxu1 }
 0x44f   :  { %5640 = vmatmul.mubr.bf16.gmra.mrb[92].mxu0 %v2937_v26  ;;  %v15228_v50 = vpop.f32.mrb[6].mxu1  ;;  %v3299_v26 = vshll.u32 %v2948_v11, 16 }
 0x450   :  { %5647 = vmatprep.mubr.bf16.mxu0 %v3254_v10  ;;  %v15230_v33 = vpop.f32.mrb[7].mxu1  ;;  %v2952_v10 = vld [vmem:[#allocation2 + $0x228] sm:$0x1] }
 0x451   :  { %v3301_v13 = vrot.slane %v3299_v26, 1  ;;  %v3323_v52 = vshll.u32 %v2952_v10, 16 }
 0x453   :  { %v3302_v57 = vsel %vm1224_vm6, %v3297_v34, %v3301_v13  ;;  %v3325_v53 = vrot.slane %v3323_v52, 1  ;;  %v3403_v13 = vld [vmem:[#allocation2 + $0x20] sm:$0xfe] }
 0x454   :  { %v3531_v40 = vrot.slane %v3403_v13, 1 }
 0x457   :  { %5648 = vmatmul.mubr.bf16.gmra.mrb[96].mxu0 %v2939_v1  ;;  %v15237_v1 = vpop.f32.mrb[8].mxu1 }
 0x458   :  { %5655 = vmatprep.mubr.bf16.mxu0 %v3266_v27  ;;  %v15240_v60 = vpop.f32.mrb[9].mxu1  ;;  %v3321_v27 = vor.u32 %v3320_v28, %v3316_v47  ;;  %v3535_v47 = vrot.slane %v3406_v48, 1 }
 0x459   :  { %v15242_v3 = vpop.f32.mrb[10].mxu1 }
 0x45f   :  { %5656 = vmatmul.mubr.bf16.gmra.mrb[100].mxu0 %v2941_v20  ;;  %v15244_v20 = vpop.f32.mrb[11].mxu1 }
 0x460   :  { %5663 = vmatprep.mubr.bf16.mxu0 %v3278_v38  ;;  %v3326_v38 = vsel %vm1224_vm6, %v3321_v27, %v3325_v53 }
 0x467   :  { %5664 = vmatmul.mubr.bf16.gmra.mrb[104].mxu0 %v2943_v59  ;;  %v3314_v59 = vsel %vm1224_vm6, %v3309_v43, %v3313_v0  ;;  %v3405_v0 = vld [vmem:[#allocation2 + $0x30] sm:$0xfe] }
 0x468   :  { %5671 = vmatprep.mubr.bf16.mxu0 %v3290_v25 }
 0x46a   :  { %v15233_v29 = vpop.f32.mrb[0].mxu0 }
 0x46b   :  { %v5459_v37 = vpop.f32.mrb[1].mxu0 }
 0x46c   :  { %v15235_v6 = vpop.f32.mrb[2].mxu0  ;;  %v3532_v37 = vrot.slane %v3404_v31, 1 }
 0x46d   :  { %v5462_v12 = vpop.f32.mrb[3].mxu0 }
 0x46e   :  { %v3533_v43 = vsel %vm1801_vm9, %v3531_v40, %v3532_v37 }
 0x46f   :  { %5672 = vmatmul.mubr.bf16.gmra.mrb[108].mxu0 %v2945_v56  ;;  %v2954_v56 = vld [vmem:[#allocation2 + $0x238] sm:$0x1] }
 0x470   :  { %5679 = vmatprep.mubr.bf16.mxu0 %v3302_v57  ;;  %v3335_v14 = vshll.u32 %v2954_v56, 16 }
 0x472   :  { %v15246_v49 = vpop.f32.mrb[4].mxu0  ;;  %v3337_v11 = vrot.slane %v3335_v14, 1  ;;  %v3412_v14 = vld [vmem:[#allocation2 + $0x68] sm:$0x1] }
 0x473   :  { %v5467_v32 = vpop.f32.mrb[5].mxu0 }
 0x474   :  { %v15248_v42 = vpop.f32.mrb[6].mxu0  ;;  %v3338_v34 = vsel %vm1224_vm6, %v3333_v2, %v3337_v11  ;;  %v3408_v32 = vld [vmem:[#allocation2 + $0x48] sm:$0x1]  ;;  %v3541_v2 = vrot.slane %v3410_v44, 1  ;;  %v3543_v11 = vrot.slane %v3411_v54, 1 }
 0x475   :  { %v5470_v23 = vpop.f32.mrb[7].mxu0  ;;  %v3538_v52 = vrot.slane %v3408_v32, 1  ;;  %v3416_v32 = vld [vmem:[#allocation2 + $0x88] sm:$0x1] }
 0x476   :  { %v15255_v45 = vpop.f32.mrb[12].mxu1 }
 0x477   :  { %5680 = vmatmul.mubr.bf16.gmra.mrb[112].mxu0 %v2947_v18  ;;  %v15258_v39 = vpop.f32.mrb[13].mxu1 }
 0x478   :  { %5687 = vmatprep.mubr.bf16.mxu0 %v3314_v59  ;;  %v15260_v18 = vpop.f32.mrb[14].mxu1  ;;  %v3534_v59 = vrot.slane %v3405_v0, 1  ;;  %v3414_v0 = vld [vmem:[#allocation2 + $0x78] sm:$0x1] }
 0x479   :  { %v15262_v4 = vpop.f32.mrb[15].mxu1 }
 0x47a   :  { %v15251_v21 = vpop.f32.mrb[8].mxu0  ;;  %v3536_v56 = vsel %vm1801_vm9, %v3534_v59, %v3535_v47 }
 0x47b   :  { %v5475_v58 = vpop.f32.mrb[9].mxu0 }
 0x47c   :  { %v15253_v36 = vpop.f32.mrb[10].mxu0 }
 0x47d   :  { %17080 = vst [vmem:[#allocation20_spill] sm:$0xff] %v15253_v36  ;;  %v5478_v24 = vpop.f32.mrb[11].mxu0 }
 0x47f   :  { %5688 = vmatmul.mubr.bf16.gmra.mrb[116].mxu0 %v2949_v30 }
 0x480   :  { %5695 = vmatprep.mubr.bf16.mxu0 %v3326_v38  ;;  %v3409_v38 = vld [vmem:[#allocation2 + $0x50] sm:$0xfe] }
 0x482   :  { %v15264_v25 = vpop.f32.mrb[12].mxu0 }
 0x483   :  { %17081 = vst [vmem:[#allocation21_spill] sm:$0xff] %v15264_v25  ;;  %v5483_v17 = vpop.f32.mrb[13].mxu0 }
 0x484   :  { %v15266_v22 = vpop.f32.mrb[14].mxu0  ;;  %v3544_v17 = vrot.slane %v3412_v14, 1  ;;  %v3417_v14 = vld [vmem:[#allocation2 + $0x90] sm:$0xfe] }
 0x485   :  { %17082 = vst [vmem:[#allocation22_spill] sm:$0xff] %v15266_v22  ;;  %v5486_v26 = vpop.f32.mrb[15].mxu0  ;;  %v6522_v22 = vld [vmem:[#allocation2 + $0xd0] sm:$0xff] }
 0x486   :  { %v15271_v57 = vpop.f32.mrb[16].mxu1 }
 0x487   :  { %5696 = vmatmul.mubr.bf16.gmra.mrb[120].mxu0 %v2951_v55  ;;  %v15275_v41 = vpop.f32.mrb[17].mxu1  ;;  %v3407_v55 = vld [vmem:[#allocation2 + $0x40] sm:$0xfe] }
 0x488   :  { %5703 = vmatprep.mubr.bf16.mxu0 %v3338_v34  ;;  %v15278_v10 = vpop.f32.mrb[18].mxu1  ;;  %v3537_v28 = vrot.slane %v3407_v55, 1  ;;  %v3415_v55 = vld [vmem:[#allocation2 + $0x80] sm:$0xfe] }
 0x489   :  { %v15280_v23 = vpop.f32.mrb[19].mxu1 }
 0x48a   :  { %v15269_v30 = vpop.f32.mrb[16].mxu0  ;;  %v3539_v24 = vsel %vm1801_vm9, %v3537_v28, %v3538_v52  ;;  %v3547_v28 = vrot.slane %v3414_v0, 1  ;;  %v3549_v52 = vrot.slane %v3415_v55, 1 }
 0x48b   :  { %17083 = vst [vmem:[#allocation23_spill] sm:$0xff] %v15269_v30  ;;  %v5491_v12 = vpop.f32.mrb[17].mxu0 }
 0x48c   :  { %v15273_v8 = vpop.f32.mrb[18].mxu0 }
 0x48d   :  { %17084 = vst [vmem:[#allocation24_spill] sm:$0xff] %v15273_v8  ;;  %v5494_v62 = vpop.f32.mrb[19].mxu0 }
 0x48e   :  { %v3545_v62 = vsel %vm1801_vm9, %v3543_v11, %v3544_v17  ;;  %v3420_v11 = vld [vmem:[#allocation2 + $0xa8] sm:$0x1]  ;;  %v3552_v17 = vrot.slane %v3417_v14, 1 }
 0x48f   :  { %5704 = vmatmul.mubr.bf16.gmra.mrb[124].mxu0 %v2953_v63  ;;  %v3540_v63 = vrot.slane %v3409_v38, 1 }
 0x490   :  { %12659 = vmatprep.mubr.bf16.mxu0 %v3533_v43  ;;  %v3413_v43 = vld [vmem:[#allocation2 + $0x70] sm:$0xfe] }
 0x491   :  { %v3542_v40 = vsel %vm1801_vm9, %v3540_v63, %v3541_v2  ;;  %v3546_v47 = vrot.slane %v3413_v43, 1  ;;  %v3418_v63 = vld [vmem:[#allocation2 + $0x98] sm:$0x1]  ;;  %v3419_v2 = vld [vmem:[#allocation2 + $0xa0] sm:$0xfe] }
 0x492   :  { %v15282_v27 = vpop.f32.mrb[20].mxu0 }
 0x493   :  { %17085 = vst [vmem:[#allocation25_spill] sm:$0xff] %v15282_v27  ;;  %v5499_v53 = vpop.f32.mrb[21].mxu0  ;;  %v15290_v13 = vpop.f32.mrb[20].mxu1  ;;  %v3548_v38 = vsel %vm1801_vm9, %v3546_v47, %v3547_v28 }
 0x494   :  { %v15284_v5 = vpop.f32.mrb[22].mxu0  ;;  %v15295_v37 = vpop.f32.mrb[21].mxu1  ;;  %v3550_v53 = vrot.slane %v3416_v32, 1 }
 0x495   :  { %17086 = vst [vmem:[#allocation26_spill] sm:$0xff] %v15284_v5  ;;  %v5502_v58 = vpop.f32.mrb[23].mxu0  ;;  %v15298_v48 = vpop.f32.mrb[22].mxu1 }
 0x496   :  { %v15300_v59 = vpop.f32.mrb[23].mxu1  ;;  %v3551_v54 = vsel %vm1801_vm9, %v3549_v52, %v3550_v53  ;;  %v3421_v53 = vld [vmem:[#allocation2 + $0xb0] sm:$0xfe] }
 0x497   :  { %12660 = vmatmul.mubr.bf16.vlgmr.msra.gmra.mrb[128].mxu0 %v3536_v56 }
 0x498   :  { %12663 = vmatprep.mubr.bf16.mxu0 %v3539_v24 }
 0x49a   :  { %v15288_v26 = vpop.f32.mrb[24].mxu0 }
 0x49b   :  { %17087 = vst [vmem:[#allocation27_spill] sm:$0xff] %v15288_v26  ;;  %v5507_v34 = vpop.f32.mrb[25].mxu0 }
 0x49c   :  { %v15292_v31 = vpop.f32.mrb[26].mxu0  ;;  %v3553_v34 = vrot.slane %v3418_v63, 1  ;;  %v3558_v63 = vrot.slane %v3421_v53, 1 }
 0x49d   :  { %17088 = vst [vmem:[#allocation28_spill] sm:$0xff] %v15292_v31  ;;  %v5510_v12 = vpop.f32.mrb[27].mxu0 }
 0x49e   :  { %v3556_v12 = vrot.slane %v3420_v11, 1  ;;  %v3554_v32 = vsel %vm1801_vm9, %v3552_v17, %v3553_v34 }
 0x49f   :  { %12664 = vmatmul.mubr.bf16.gmra.mrb[132].mxu0 %v3542_v40  ;;  %v3555_v40 = vrot.slane %v3419_v2, 1 }
 0x4a0   :  { %12667 = vmatprep.mubr.bf16.mxu0 %v3545_v62 }
 0x4a1   :  { %v3557_v52 = vsel %vm1801_vm9, %v3555_v40, %v3556_v12 }
 0x4a2   :  { %v15302_v56 = vpop.f32.mrb[28].mxu0 }
 0x4a3   :  { %17089 = vst [vmem:[#allocation29_spill] sm:$0xff] %v15302_v56  ;;  %v5515_v58 = vpop.f32.mrb[29].mxu0  ;;  %v15310_v0 = vpop.f32.mrb[24].mxu1  ;;  %v13818_v56 = vld [vmem:[#allocation11 + $0x20] sm:$0xff]  }
 0x4a4   :  { %v15304_v24 = vpop.f32.mrb[30].mxu0  ;;  %v15315_v47 = vpop.f32.mrb[25].mxu1  ;;  %v3422_v58 = vld [vmem:[#allocation2 + $0xb8] sm:$0x1] }
 0x4a5   :  { %17090 = vst [vmem:[#allocation30_spill] sm:$0xff] %v15304_v24  ;;  %v5518_v44 = vpop.f32.mrb[31].mxu0  ;;  %v3559_v2 = vrot.slane %v3422_v58, 1  ;;  %v3426_v24 = vld [vmem:[#allocation2 + $0xd8] sm:$0x1] }
 0x4a6   :  { %v3423_v44 = vld [vmem:[#allocation2 + $0xc0] sm:$0xfe] }
 0x4a7   :  { %12668 = vmatmul.mubr.bf16.gmra.mrb[136].mxu0 %v3548_v38  ;;  %v15318_v38 = vpop.f32.mrb[26].mxu1  ;;  %v3561_v11 = vrot.slane %v3423_v44, 1  ;;  %v3560_v40 = vsel %vm1801_vm9, %v3558_v63, %v3559_v2 }
 0x4a8   :  { %12671 = vmatprep.mubr.bf16.mxu0 %v3551_v54  ;;  %v3424_v54 = vld [vmem:[#allocation2 + $0xc8] sm:$0x1]  ;;  %v15320_v14 = vpop.f32.mrb[27].mxu1 }
 0x4aa   :  { %v15308_v62 = vpop.f32.mrb[32].mxu0 }
 0x4ab   :  { %17091 = vst [vmem:[#allocation31_spill] sm:$0xff] %v15308_v62  ;;  %v5523_v43 = vpop.f32.mrb[33].mxu0  ;;  %v3425_v62 = vld [vmem:[#allocation2 + $0xd0] sm:$0xfe] }
 0x4ac   :  { %v15312_v55 = vpop.f32.mrb[34].mxu0  ;;  %v3562_v43 = vrot.slane %v3424_v54, 1 }
 0x4ad   :  { %17092 = vst [vmem:[#allocation32_spill] sm:$0xff] %v15312_v55  ;;  %v5526_v28 = vpop.f32.mrb[35].mxu0 }
 0x4ae   :  { %v3563_v55 = vsel %vm1801_vm9, %v3561_v11, %v3562_v43 }
 0x4af   :  { %12672 = vmatmul.mubr.bf16.gmra.mrb[140].mxu0 %v3554_v32  ;;  %v3564_v32 = vrot.slane %v3425_v62, 1 }
 0x4b0   :  { %12675 = vmatprep.mubr.bf16.mxu0 %v3557_v52  ;;  %v3565_v52 = vrot.slane %v3426_v24, 1 }
 0x4b2   :  { %v15322_v17 = vpop.f32.mrb[36].mxu0 }
 0x4b3   :  { %17093 = vst [vmem:[#allocation33_spill] sm:$0xff] %v15322_v17  ;;  %v5531_v34 = vpop.f32.mrb[37].mxu0  ;;  %v15330_v44 = vpop.f32.mrb[28].mxu1  ;;  %v15363_v17 = vstv %s12272_s29 }
 0x4b4   :  { %v15324_v28 = vpop.f32.mrb[38].mxu0  ;;  %v3566_v34 = vsel %vm1801_vm9, %v3564_v32, %v3565_v52  ;;  %v13816_v32 = vld [vmem:[#allocation11 + $0x10] sm:$0xff]   ;;  %v15347_v52 = vstv %s12271_s28 }
 0x4b5   :  { %17094 = vst [vmem:[#allocation34_spill] sm:$0xff] %v15324_v28  ;;  %v5534_v12 = vpop.f32.mrb[39].mxu0  ;;  %v15335_v28 = vpop.f32.mrb[29].mxu1 }
 0x4b6   :  { %v15337_v2 = vpop.f32.mrb[30].mxu1 }
 0x4b7   :  { %12676 = vmatmul.mubr.bf16.gmra.mrb[144].mxu0 %v3560_v40  ;;  %v15339_v11 = vpop.f32.mrb[31].mxu1  ;;  %v13815_v40 = vld [vmem:[#allocation11 + $0x8] sm:$0xff]  }
 0x4b8   :  { %12679 = vmatprep.mubr.bf16.mxu0 %v3563_v55  ;;  %v13814_v55 = vld [vmem:[#allocation11] sm:$0xff]  }
 0x4b9   :  { %10099 = vmatpush1.bf16.msra.mxu1 %v13814_v55 }
 0x4ba   :  { %v15328_v53 = vpop.f32.mrb[40].mxu0  ;;  %10100 = vmatprep.subr.bf16.mxu1 %v15119_v16 }
 0x4bb   :  { %17095 = vst [vmem:[#allocation35_spill] sm:$0xff] %v15328_v53  ;;  %v5539_v58 = vpop.f32.mrb[41].mxu0 }
 0x4bc   :  { %v15332_v54 = vpop.f32.mrb[42].mxu0 }
 0x4bd   :  { %17096 = vst [vmem:[#allocation36_spill] sm:$0xff] %v15332_v54  ;;  %v5542_v63 = vpop.f32.mrb[43].mxu0  ;;  %10101 = vmatpush1.bf16.msra.mxu1 %v13815_v40 }
 0x4be   :  { %10102 = vmatprep.subr.bf16.mxu1 %v15119_v16 }
 0x4bf   :  { %12680 = vmatmul.mubr.bf16.gmra.mrb[148].mxu0 %v3566_v34 }
 0x4c1   :  { %10103 = vmatpush1.bf16.msra.mxu1 %v13816_v32 }
 0x4c2   :  { %v15341_v24 = vpop.f32.mrb[44].mxu0  ;;  %10104 = vmatprep.subr.bf16.mxu1 %v15119_v16 }
 0x4c3   :  { %17097 = vst [vmem:[#allocation37_spill] sm:$0xff] %v15341_v24  ;;  %v5547_v62 = vpop.f32.mrb[45].mxu0  ;;  %v15351_v55 = vpop.f32.mrb[32].mxu1 }
 0x4c4   :  { %v15344_v43 = vpop.f32.mrb[46].mxu0  ;;  %v15353_v24 = vpop.f32.mrb[33].mxu1 }
 0x4c5   :  { %17098 = vst [vmem:[#allocation38_spill] sm:$0xff] %v15344_v43  ;;  %v5550_v12 = vpop.f32.mrb[47].mxu0  ;;  %v13817_v43 = vld [vmem:[#allocation11 + $0x18] sm:$0xff]   ;;  %v15357_v53 = vpop.f32.mrb[34].mxu1 }
 0x4c6   :  { %10105 = vmatpush1.bf16.msra.mxu1 %v13817_v43  ;;  %v15359_v32 = vpop.f32.mrb[35].mxu1 }
 0x4c7   :  { %10106 = vmatprep.subr.bf16.mxu1 %v15119_v16 }
 0x4ca   :  { %v5553_v58 = vpop.f32.mrb[48].mxu0  ;;  %10107 = vmatpush1.bf16.msra.mxu1 %v13818_v56 }
 0x4cb   :  { %v12923_v34 = vadd.f32 %v5553_v58, %v15347_v52  ;;  %v5555_v63 = vpop.f32.mrb[49].mxu0  ;;  %10108 = vmatprep.subr.bf16.mxu1 %v15119_v16 }
 0x4cc   :  { %v5556_v62 = vpop.f32.mrb[50].mxu0 }
 0x4cd   :  { %v12924_v40 = vadd.f32 %v5556_v62, %v15347_v52  ;;  %v5843_v12 = vadd.f32 %v12923_v34, %v15215_v35  ;;  %v5558_v54 = vpop.f32.mrb[51].mxu0 }
 0x4cf   :  { %v6025_v58 = vmax.f32 %v5843_v12, 0.0  ;;  %v5846_v63 = vadd.f32 %v12924_v40, %v15220_v19  ;;  %v13819_v12 = vld [vmem:[#allocation11 + $0x28] sm:$0xff]  }
 0x4d0   :  { %10109 = vmatpush1.bf16.msra.mxu1 %v13819_v12 }
 0x4d1   :  { %v6026_v31 = vmax.f32 %v5846_v63, 0.0  ;;  %v6090_v62 = vadd.f32 %v15363_v17, %v6025_v58  ;;  %10110 = vmatprep.subr.bf16.mxu1 %v15119_v16 }
 0x4d2   :  { %v5561_v26 = vpop.f32.mrb[52].mxu0 }
 0x4d3   :  { %v6091_v35 = vadd.f32 %v15363_v17, %v6026_v31  ;;  %v12925_v54 = vadd.f32 %v5561_v26, %v15347_v52  ;;  %v5563_v43 = vpop.f32.mrb[53].mxu0  ;;  %v6525_v31 = vld [vmem:[#allocation2 + $0xd8] sm:$0x1]  ;;  %v13820_v26 = vld [vmem:[#allocation11 + $0x30] sm:$0xff]  }
 0x4d4   :  { %v5564_v34 = vpop.f32.mrb[54].mxu0  ;;  %10111 = vmatpush1.bf16.msra.mxu1 %v13820_v26 }
 0x4d5   :  { %v6142_v19 = vpack.c.bf16 %v6091_v35, %v6090_v62  ;;  %v5851_v40 = vadd.f32 %v12925_v54, %v15213_v9  ;;  %v12926_v5 = vadd.f32 %v5564_v34, %v15347_v52  ;;  %v5566_v27 = vpop.f32.mrb[55].mxu0  ;;  %10112 = vmatprep.subr.bf16.mxu1 %v15119_v16  ;;  %v15379_v34 = vpop.f32.mrb[36].mxu1 }
 0x4d7   :  { %v6247_v63 = vshrl.u32 %v6142_v19, 16  ;;  %v6027_v56 = vmax.f32 %v5851_v40, 0.0  ;;  %v5854_v58 = vadd.f32 %v12926_v5, %v15218_v46  ;;  %v6250_v8 = vshll.u32 %v6142_v19, 16  ;;  %v13821_v19 = vld [vmem:[#allocation11 + $0x38] sm:$0xff]   ;;  %v15381_v40 = vpop.f32.mrb[37].mxu1 }
 0x4d8   :  { %10113 = vmatpush1.bf16.msra.mxu1 %v13821_v19 }
 0x4d9   :  { %v6249_v43 = vrot.slane %v6247_v63, 7  ;;  %v6028_v30 = vmax.f32 %v5854_v58, 0.0  ;;  %v6092_v62 = vadd.f32 %v15363_v17, %v6027_v56  ;;  %10114 = vmatprep.subr.bf16.mxu1 %v15119_v16 }
 0x4da   :  { %v5569_v35 = vpop.f32.mrb[56].mxu0 }
 0x4db   :  { %v6252_v9 = vor.u32 %v6250_v8, %v6249_v43  ;;  %v6526_v27 = vsel %vm14161_vm3, %v6249_v43, %v6525_v31  ;;  %v6093_v54 = vadd.f32 %v15363_v17, %v6028_v30  ;;  %v12927_v46 = vadd.f32 %v5569_v35, %v15347_v52  ;;  %v5571_v5 = vpop.f32.mrb[57].mxu0  ;;  %v15387_v31 = vpop.f32.mrb[38].mxu1 }
 0x4dc   :  { %6527 = vst [vmem:[#allocation2 + $0xd8] sm:$0x1] %v6526_v27  ;;  %v5572_v12 = vpop.f32.mrb[58].mxu0  ;;  %v15389_v26 = vpop.f32.mrb[39].mxu1  ;;  %v6531_v5 = vld [vmem:[#allocation2 + $0xe8] sm:$0x1] }
 0x4dd   :  { %v6523_v8 = vsel %vm14217_vm8, %v6252_v9, %v6522_v22  ;;  %v6143_v63 = vpack.c.bf16 %v6093_v54, %v6092_v62  ;;  %v12928_v56 = vadd.f32 %v5572_v12, %v15347_v52  ;;  %v5859_v30 = vadd.f32 %v12927_v46, %v15225_v51  ;;  %v5574_v58 = vpop.f32.mrb[59].mxu0  ;;  %v13822_v22 = vld [vmem:[#allocation11 + $0x40] sm:$0xff]  }
 0x4de   :  { %6524 = vst [vmem:[#allocation2 + $0xd0] sm:$0xff] %v6523_v8  ;;  %v6528_v12 = vld [vmem:[#allocation2 + $0xe0] sm:$0xff]  ;;  %10115 = vmatpush1.bf16.msra.mxu1 %v13822_v22 }
 0x4df   :  { %v6254_v43 = vshrl.u32 %v6143_v63, 16  ;;  %v6029_v35 = vmax.f32 %v5859_v30, 0.0  ;;  %v5862_v27 = vadd.f32 %v12928_v56, %v15230_v33  ;;  %v6257_v9 = vshll.u32 %v6143_v63, 16  ;;  %10116 = vmatprep.subr.bf16.mxu1 %v15119_v16  ;;  %v13823_v63 = vld [vmem:[#allocation11 + $0x48] sm:$0xff]  }
 0x4e1   :  { %v6256_v62 = vrot.slane %v6254_v43, 7  ;;  %v6030_v54 = vmax.f32 %v5862_v27, 0.0  ;;  %v6094_v51 = vadd.f32 %v15363_v17, %v6029_v35 }
 0x4e2   :  { %v5577_v46 = vpop.f32.mrb[60].mxu0  ;;  %10117 = vmatpush1.bf16.msra.mxu1 %v13823_v63 }
 0x4e3   :  { %v6259_v8 = vor.u32 %v6257_v9, %v6256_v62  ;;  %v6532_v19 = vsel %vm14161_vm3, %v6256_v62, %v6531_v5  ;;  %v6095_v30 = vadd.f32 %v15363_v17, %v6030_v54  ;;  %v12929_v33 = vadd.f32 %v5577_v46, %v15347_v52  ;;  %v5579_v56 = vpop.f32.mrb[61].mxu0  ;;  %10118 = vmatprep.subr.bf16.mxu1 %v15119_v16  ;;  %v6537_v46 = vld [vmem:[#allocation2 + $0xf8] sm:$0x1] }
 0x4e4   :  { %6533 = vst [vmem:[#allocation2 + $0xe8] sm:$0x1] %v6532_v19  ;;  %v5580_v58 = vpop.f32.mrb[62].mxu0  ;;  %v13824_v19 = vld [vmem:[#allocation11 + $0x50] sm:$0xff]  }
 0x4e5   :  { %v6529_v43 = vsel %vm14217_vm8, %v6259_v8, %v6528_v12  ;;  %v6144_v35 = vpack.c.bf16 %v6095_v30, %v6094_v51  ;;  %v5867_v27 = vadd.f32 %v12929_v33, %v15223_v61  ;;  %v12930_v22 = vadd.f32 %v5580_v58, %v15347_v52  ;;  %v5582_v9 = vpop.f32.mrb[63].mxu0  ;;  %v6534_v12 = vld [vmem:[#allocation2 + $0xf0] sm:$0xff] }
 0x4e6   :  { %6530 = vst [vmem:[#allocation2 + $0xe0] sm:$0xff] %v6529_v43  ;;  %10119 = vmatpush1.bf16.msra.mxu1 %v13824_v19  ;;  %v13825_v43 = vld [vmem:[#allocation11 + $0x58] sm:$0xff]   ;;  %v13827_v19 = vld [vmem:[#allocation11 + $0x60] sm:$0xff]  }
 0x4e7   :  { %v6261_v5 = vshrl.u32 %v6144_v35, 16  ;;  %v6031_v62 = vmax.f32 %v5867_v27, 0.0  ;;  %v5870_v54 = vadd.f32 %v12930_v22, %v15228_v50  ;;  %v6264_v25 = vshll.u32 %v6144_v35, 16  ;;  %10120 = vmatprep.subr.bf16.mxu1 %v15119_v16 }
 0x4e9   :  { %v6263_v56 = vrot.slane %v6261_v5, 7  ;;  %v6032_v36 = vmax.f32 %v5870_v54, 0.0  ;;  %v6096_v51 = vadd.f32 %v15363_v17, %v6031_v62 }
 0x4ea   :  { %v5585_v61 = vpop.f32.mrb[64].mxu0  ;;  %10121 = vmatpush1.bf16.msra.mxu1 %v13825_v43 }
 0x4eb   :  { %v6266_v8 = vor.u32 %v6264_v25, %v6263_v56  ;;  %v6538_v30 = vsel %vm14161_vm3, %v6263_v56, %v6537_v46  ;;  %v6097_v33 = vadd.f32 %v15363_v17, %v6032_v36  ;;  %v12931_v50 = vadd.f32 %v5585_v61, %v15347_v52  ;;  %v5587_v58 = vpop.f32.mrb[65].mxu0  ;;  %v13826_v36 = vld [vmem:[#allocation11 + $0x200] sm:$0xff]   ;;  %10122 = vmatprep.subr.bf16.mxu1 %v15119_v16  ;;  %v6543_v46 = vld [vmem:[#allocation2 + $0x108] sm:$0x1] }
 0x4ec   :  { %6539 = vst [vmem:[#allocation2 + $0xf8] sm:$0x1] %v6538_v30  ;;  %v5588_v63 = vpop.f32.mrb[66].mxu0  ;;  %12723 = vmatprep.subr.bf16.mxu0 %v13826_v36  ;;  %v6540_v61 = vld [vmem:[#allocation2 + $0x100] sm:$0xff] }
 0x4ed   :  { %v6535_v35 = vsel %vm14217_vm8, %v6266_v8, %v6534_v12  ;;  %v6145_v27 = vpack.c.bf16 %v6097_v33, %v6096_v51  ;;  %v12932_v22 = vadd.f32 %v5588_v63, %v15347_v52  ;;  %v5875_v25 = vadd.f32 %v12931_v50, %v15240_v60  ;;  %v5590_v9 = vpop.f32.mrb[67].mxu0  ;;  %12724 = vmatpush3.bf16.msra.mxu0 %v13826_v36  ;;  %v13828_v63 = vld [vmem:[#allocation11 + $0x208] sm:$0xff]  }
 0x4ee   :  { %6536 = vst [vmem:[#allocation2 + $0xf0] sm:$0xff] %v6535_v35  ;;  %10123 = vmatpush1.bf16.msra.mxu1 %v13827_v19  ;;  %12725 = vmatprep.subr.bf16.mxu0 %v13828_v63  ;;  %v13829_v36 = vld [vmem:[#allocation11 + $0x68] sm:$0xff]   ;;  %v6549_v19 = vld [vmem:[#allocation2 + $0x138] sm:$0x1] }
 0x4ef   :  { %v6268_v5 = vshrl.u32 %v6145_v27, 16  ;;  %v6033_v62 = vmax.f32 %v5875_v25, 0.0  ;;  %v5878_v54 = vadd.f32 %v12932_v22, %v15244_v20  ;;  %v6271_v12 = vshll.u32 %v6145_v27, 16  ;;  %10124 = vmatprep.subr.bf16.mxu1 %v15119_v16 }
 0x4f1   :  { %v6270_v56 = vrot.slane %v6268_v5, 7  ;;  %v6034_v51 = vmax.f32 %v5878_v54, 0.0  ;;  %v6098_v60 = vadd.f32 %v15363_v17, %v6033_v62  ;;  %12726 = vmatpush3.bf16.msra.mxu0 %v13828_v63  ;;  %v13832_v63 = vld [vmem:[#allocation11 + $0x218] sm:$0xff]  }
 0x4f2   :  { %v5593_v8 = vpop.f32.mrb[68].mxu0  ;;  %10125 = vmatpush1.bf16.msra.mxu1 %v13829_v36 }
 0x4f3   :  { %v6273_v30 = vor.u32 %v6271_v12, %v6270_v56  ;;  %v6544_v33 = vsel %vm14161_vm3, %v6270_v56, %v6543_v46  ;;  %v6099_v20 = vadd.f32 %v15363_v17, %v6034_v51  ;;  %v12933_v50 = vadd.f32 %v5593_v8, %v15347_v52  ;;  %v5595_v58 = vpop.f32.mrb[69].mxu0  ;;  %v13830_v46 = vld [vmem:[#allocation11 + $0x210] sm:$0xff]   ;;  %10126 = vmatprep.subr.bf16.mxu1 %v15119_v16 }
 0x4f4   :  { %6545 = vst [vmem:[#allocation2 + $0x108] sm:$0x1] %v6544_v33  ;;  %v5596_v43 = vpop.f32.mrb[70].mxu0  ;;  %12727 = vmatprep.subr.bf16.mxu0 %v13830_v46 }
 0x4f5   :  { %v6541_v35 = vsel %vm14217_vm8, %v6273_v30, %v6540_v61  ;;  %v6146_v27 = vpack.c.bf16 %v6099_v20, %v6098_v60  ;;  %v5883_v22 = vadd.f32 %v12933_v50, %v15237_v1  ;;  %v12934_v25 = vadd.f32 %v5596_v43, %v15347_v52  ;;  %v5598_v9 = vpop.f32.mrb[71].mxu0  ;;  %v13831_v1 = vld [vmem:[#allocation11 + $0x70] sm:$0xff]   ;;  %12728 = vmatpush3.bf16.msra.mxu0 %v13830_v46  ;;  %v6706_v30 = vld [vmem:[#allocation2] sm:$0xff]  ;;  %v6707_v43 = vld [vmem:[#allocation2 + $0x8] sm:$0x1] }
 0x4f6   :  { %6542 = vst [vmem:[#allocation2 + $0x100] sm:$0xff] %v6541_v35  ;;  %v6546_v61 = vld [vmem:[#allocation2 + $0x130] sm:$0xff]  ;;  %10127 = vmatpush1.bf16.msra.mxu1 %v13831_v1  ;;  %12729 = vmatprep.subr.bf16.mxu0 %v13832_v63  ;;  %v13834_v46 = vld [vmem:[#allocation11 + $0x78] sm:$0xff]  }
 0x4f7   :  { %v6275_v5 = vshrl.u32 %v6146_v27, 16  ;;  %v6035_v62 = vmax.f32 %v5883_v22, 0.0  ;;  %v5886_v54 = vadd.f32 %v12934_v25, %v15242_v3  ;;  %v6278_v12 = vshll.u32 %v6146_v27, 16  ;;  %10128 = vmatprep.subr.bf16.mxu1 %v15119_v16 }
 0x4f8   :  { %v6771_v27 = vshrl.u32 %v6706_v30, 16  ;;  %v6773_v22 = vshll.u32 %v6706_v30, 16  ;;  %v6778_v25 = vshll.u32 %v6707_v43, 16 }
 0x4f9   :  { %v6277_v56 = vrot.slane %v6275_v5, 7  ;;  %v6036_v51 = vmax.f32 %v5886_v54, 0.0  ;;  %v6100_v60 = vadd.f32 %v15363_v17, %v6035_v62  ;;  %12730 = vmatpush3.bf16.msra.mxu0 %v13832_v63 }
 0x4fa   :  { %v5601_v8 = vpop.f32.mrb[72].mxu0  ;;  %10129 = vmatpush1.bf16.msra.mxu1 %v13834_v46 }
 0x4fb   :  { %v6280_v33 = vor.u32 %v6278_v12, %v6277_v56  ;;  %v6550_v3 = vsel %vm14161_vm3, %v6277_v56, %v6549_v19  ;;  %v6101_v20 = vadd.f32 %v15363_v17, %v6036_v51  ;;  %v12935_v50 = vadd.f32 %v5601_v8, %v15347_v52  ;;  %v5603_v58 = vpop.f32.mrb[73].mxu0  ;;  %v13833_v8 = vld [vmem:[#allocation11 + $0x220] sm:$0xff]   ;;  %10387 = vmatprep.subr.bf16.mxu1 %v15119_v16 }
 0x4fc   :  { %6551 = vst [vmem:[#allocation2 + $0x138] sm:$0x1] %v6550_v3  ;;  %v5604_v35 = vpop.f32.mrb[74].mxu0  ;;  %v6775_v19 = vrot.slane %v6773_v22, 1  ;;  %v6780_v56 = vrot.slane %v6778_v25, 1  ;;  %12731 = vmatprep.subr.bf16.mxu0 %v13833_v8  ;;  %v13835_v25 = vld [vmem:[#allocation11 + $0x228] sm:$0xff]  }
 0x4fd   :  { %v6547_v9 = vsel %vm14217_vm8, %v6280_v33, %v6546_v61  ;;  %v6147_v36 = vpack.c.bf16 %v6101_v20, %v6100_v60  ;;  %v12936_v5 = vadd.f32 %v5604_v35, %v15347_v52  ;;  %v5891_v62 = vadd.f32 %v12935_v50, %v15258_v39  ;;  %v5606_v54 = vpop.f32.mrb[75].mxu0  ;;  %v6555_v3 = vld [vmem:[#allocation2 + $0x148] sm:$0x1]  ;;  %v6552_v20 = vld [vmem:[#allocation2 + $0x140] sm:$0xff]  ;;  %12732 = vmatpush3.bf16.msra.mxu0 %v13833_v8 }
 0x4fe   :  { %6548 = vst [vmem:[#allocation2 + $0x130] sm:$0xff] %v6547_v9  ;;  %v6776_v61 = vor.u32 %v6775_v19, %v6771_v27  ;;  %12733 = vmatprep.subr.bf16.mxu0 %v13835_v25 }
 0x4ff   :  { %v6282_v12 = vshrl.u32 %v6147_v36, 16  ;;  %v6037_v51 = vmax.f32 %v5891_v62, 0.0  ;;  %v5894_v1 = vadd.f32 %v12936_v5, %v15262_v4  ;;  %v6285_v33 = vshll.u32 %v6147_v36, 16 }
 0x500   :  { %v6781_v63 = vsel %vm1224_vm6, %v6776_v61, %v6780_v56  ;;  %v6558_v61 = vld [vmem:[#allocation2 + $0x150] sm:$0xff] }
 0x501   :  { %v6284_v60 = vrot.slane %v6282_v12, 7  ;;  %v6038_v39 = vmax.f32 %v5894_v1, 0.0  ;;  %v6102_v50 = vadd.f32 %v15363_v17, %v6037_v51  ;;  %10130 = vmatprep.mubr.bf16.mxu1 %v6781_v63  ;;  %12734 = vmatpush3.bf16.msra.mxu0 %v13835_v25  ;;  %v13837_v51 = vld [vmem:[#allocation11 + $0x230] sm:$0xff]   ;;  %v6561_v1 = vld [vmem:[#allocation2 + $0x158] sm:$0x1] }
 0x502   :  { %v5609_v58 = vpop.f32.mrb[76].mxu0  ;;  %10131 = vmatmul.mubr.bf16.vlgmr.msra.gmra.mrb[40].mxu1 %v6706_v30  ;;  %12735 = vmatprep.subr.bf16.mxu0 %v13837_v51 }
 0x503   :  { %v6287_v43 = vor.u32 %v6285_v33, %v6284_v60  ;;  %v6556_v4 = vsel %vm14161_vm3, %v6284_v60, %v6555_v3  ;;  %v6103_v35 = vadd.f32 %v15363_v17, %v6038_v39  ;;  %v12937_v27 = vadd.f32 %v5609_v58, %v15347_v52  ;;  %v5611_v22 = vpop.f32.mrb[77].mxu0 }
 0x504   :  { %6557 = vst [vmem:[#allocation2 + $0x148] sm:$0x1] %v6556_v4  ;;  %v5612_v9 = vpop.f32.mrb[78].mxu0 }
 0x505   :  { %v6553_v36 = vsel %vm14217_vm8, %v6287_v43, %v6552_v20  ;;  %v6148_v5 = vpack.c.bf16 %v6103_v35, %v6102_v50  ;;  %v5899_v62 = vadd.f32 %v12937_v27, %v15255_v45  ;;  %v12938_v54 = vadd.f32 %v5612_v9, %v15347_v52  ;;  %v5614_v46 = vpop.f32.mrb[79].mxu0  ;;  %12736 = vmatpush3.bf16.msra.mxu0 %v13837_v51 }
 0x506   :  { %6554 = vst [vmem:[#allocation2 + $0x140] sm:$0xff] %v6553_v36  ;;  %v6567_v36 = vld [vmem:[#allocation2 + $0x168] sm:$0x1]  ;;  %v6564_v46 = vld [vmem:[#allocation2 + $0x160] sm:$0xff] }
 0x507   :  { %v6289_v19 = vshrl.u32 %v6148_v5, 16  ;;  %v6039_v56 = vmax.f32 %v5899_v62, 0.0  ;;  %v5902_v12 = vadd.f32 %v12938_v54, %v15260_v18  ;;  %v6292_v30 = vshll.u32 %v6148_v5, 16 }
 0x509   :  { %v6291_v8 = vrot.slane %v6289_v19, 7  ;;  %v6040_v3 = vmax.f32 %v5902_v12, 0.0  ;;  %v6104_v60 = vadd.f32 %v15363_v17, %v6039_v56 }
 0x50a   :  { %v5617_v45 = vpop.f32.mrb[80].mxu0 }
 0x50b   :  { %v6294_v33 = vor.u32 %v6292_v30, %v6291_v8  ;;  %v6562_v39 = vsel %vm14161_vm3, %v6291_v8, %v6561_v1  ;;  %v6105_v20 = vadd.f32 %v15363_v17, %v6040_v3  ;;  %v12939_v50 = vadd.f32 %v5617_v45, %v15347_v52  ;;  %v5619_v18 = vpop.f32.mrb[81].mxu0  ;;  %v13838_v30 = vld [vmem:[#allocation11 + $0x238] sm:$0xff]  }
 0x50c   :  { %6563 = vst [vmem:[#allocation2 + $0x158] sm:$0x1] %v6562_v39  ;;  %v5620_v58 = vpop.f32.mrb[82].mxu0  ;;  %12737 = vmatprep.subr.bf16.mxu0 %v13838_v30  ;;  %v13836_v39 = vld [vmem:[#allocation11 + $0x80] sm:$0xff]  }
 0x50d   :  { %v6559_v63 = vsel %vm14217_vm8, %v6294_v33, %v6558_v61  ;;  %v6149_v43 = vpack.c.bf16 %v6105_v20, %v6104_v60  ;;  %v12940_v4 = vadd.f32 %v5620_v58, %v15347_v52  ;;  %v5907_v35 = vadd.f32 %v12939_v50, %v15275_v41  ;;  %v5622_v27 = vpop.f32.mrb[83].mxu0  ;;  %12738 = vmatpush3.bf16.msra.mxu0 %v13838_v30  ;;  %v6573_v58 = vld [vmem:[#allocation2 + $0x178] sm:$0x1] }
 0x50e   :  { %6560 = vst [vmem:[#allocation2 + $0x150] sm:$0xff] %v6559_v63  ;;  %10388 = vmatpush1.bf16.msra.mxu1 %v13836_v39 }
 0x50f   :  { %v6296_v22 = vshrl.u32 %v6149_v43, 16  ;;  %v6041_v25 = vmax.f32 %v5907_v35, 0.0  ;;  %v5910_v9 = vadd.f32 %v12940_v4, %v15280_v23  ;;  %v6299_v62 = vshll.u32 %v6149_v43, 16  ;;  %10389 = vmatprep.subr.bf16.mxu1 %v15119_v16  ;;  %v6570_v35 = vld [vmem:[#allocation2 + $0x170] sm:$0xff] }
 0x511   :  { %v6298_v5 = vrot.slane %v6296_v22, 7  ;;  %v6042_v54 = vmax.f32 %v5910_v9, 0.0  ;;  %v6106_v19 = vadd.f32 %v15363_v17, %v6041_v25 }
 0x512   :  { %v5625_v56 = vpop.f32.mrb[84].mxu0 }
 0x513   :  { %v6301_v12 = vor.u32 %v6299_v62, %v6298_v5  ;;  %v6568_v51 = vsel %vm14161_vm3, %v6298_v5, %v6567_v36  ;;  %v6107_v41 = vadd.f32 %v15363_v17, %v6042_v54  ;;  %v12941_v1 = vadd.f32 %v5625_v56, %v15347_v52  ;;  %v5627_v8 = vpop.f32.mrb[85].mxu0 }
 0x514   :  { %6569 = vst [vmem:[#allocation2 + $0x168] sm:$0x1] %v6568_v51  ;;  %v5628_v23 = vpop.f32.mrb[86].mxu0 }
 0x515   :  { %v6565_v3 = vsel %vm14217_vm8, %v6301_v12, %v6564_v46  ;;  %v6150_v61 = vpack.c.bf16 %v6107_v41, %v6106_v19  ;;  %v5915_v60 = vadd.f32 %v12941_v1, %v15271_v57  ;;  %v12942_v45 = vadd.f32 %v5628_v23, %v15347_v52  ;;  %v5630_v33 = vpop.f32.mrb[87].mxu0  ;;  %v6579_v1 = vld [vmem:[#allocation2 + $0x188] sm:$0x1] }
 0x516   :  { %6566 = vst [vmem:[#allocation2 + $0x160] sm:$0xff] %v6565_v3  ;;  %v6576_v3 = vld [vmem:[#allocation2 + $0x180] sm:$0xff] }
 0x517   :  { %v6303_v20 = vshrl.u32 %v6150_v61, 16  ;;  %v6043_v50 = vmax.f32 %v5915_v60, 0.0  ;;  %v5918_v18 = vadd.f32 %v12942_v45, %v15278_v10  ;;  %v6306_v43 = vshll.u32 %v6150_v61, 16 }
 0x519   :  { %v6305_v63 = vrot.slane %v6303_v20, 7  ;;  %v6044_v4 = vmax.f32 %v5918_v18, 0.0  ;;  %v6108_v57 = vadd.f32 %v15363_v17, %v6043_v50 }
 0x51a   :  { %v5633_v27 = vpop.f32.mrb[88].mxu0 }
 0x51b   :  { %v6308_v22 = vor.u32 %v6306_v43, %v6305_v63  ;;  %v6574_v25 = vsel %vm14161_vm3, %v6305_v63, %v6573_v58  ;;  %v6109_v9 = vadd.f32 %v15363_v17, %v6044_v4  ;;  %v12943_v36 = vadd.f32 %v5633_v27, %v15347_v52  ;;  %v5635_v10 = vpop.f32.mrb[89].mxu0  ;;  %v13839_v27 = vld [vmem:[#allocation11 + $0x88] sm:$0xff]  }
 0x51c   :  { %6575 = vst [vmem:[#allocation2 + $0x178] sm:$0x1] %v6574_v25  ;;  %v5636_v5 = vpop.f32.mrb[90].mxu0  ;;  %10390 = vmatpush1.bf16.msra.mxu1 %v13839_v27  ;;  %v6582_v10 = vld [vmem:[#allocation2 + $0x190] sm:$0xff] }
 0x51d   :  { %v6571_v62 = vsel %vm14217_vm8, %v6308_v22, %v6570_v35  ;;  %v6151_v54 = vpack.c.bf16 %v6109_v9, %v6108_v57  ;;  %v12944_v46 = vadd.f32 %v5636_v5, %v15347_v52  ;;  %v5923_v19 = vadd.f32 %v12943_v36, %v15295_v37  ;;  %v5638_v56 = vpop.f32.mrb[91].mxu0  ;;  %v6585_v22 = vld [vmem:[#allocation2 + $0x198] sm:$0x1]  ;;  %10391 = vmatprep.subr.bf16.mxu1 %v15119_v16 }
 0x51e   :  { %6572 = vst [vmem:[#allocation2 + $0x170] sm:$0xff] %v6571_v62 }
 0x51f   :  { %v6310_v12 = vshrl.u32 %v6151_v54, 16  ;;  %v6045_v51 = vmax.f32 %v5923_v19, 0.0  ;;  %v5926_v41 = vadd.f32 %v12944_v46, %v15300_v59  ;;  %v6313_v30 = vshll.u32 %v6151_v54, 16 }
 0x521   :  { %v6312_v8 = vrot.slane %v6310_v12, 7  ;;  %v6046_v23 = vmax.f32 %v5926_v41, 0.0  ;;  %v6110_v61 = vadd.f32 %v15363_v17, %v6045_v51  ;;  %v13840_v12 = vld [vmem:[#allocation11 + $0x90] sm:$0xff]  }
 0x522   :  { %v5641_v60 = vpop.f32.mrb[92].mxu0  ;;  %10392 = vmatpush1.bf16.msra.mxu1 %v13840_v12 }
 0x523   :  { %v6315_v45 = vor.u32 %v6313_v30, %v6312_v8  ;;  %v6580_v33 = vsel %vm14161_vm3, %v6312_v8, %v6579_v1  ;;  %v6111_v37 = vadd.f32 %v15363_v17, %v6046_v23  ;;  %v12945_v39 = vadd.f32 %v5641_v60, %v15347_v52  ;;  %v5643_v20 = vpop.f32.mrb[93].mxu0  ;;  %10393 = vmatprep.subr.bf16.mxu1 %v15119_v16  ;;  %v6591_v60 = vld [vmem:[#allocation2 + $0x1a8] sm:$0x1] }
 0x524   :  { %6581 = vst [vmem:[#allocation2 + $0x188] sm:$0x1] %v6580_v33  ;;  %v5644_v50 = vpop.f32.mrb[94].mxu0 }
 0x525   :  { %v6577_v59 = vsel %vm14217_vm8, %v6315_v45, %v6576_v3  ;;  %v6152_v18 = vpack.c.bf16 %v6111_v37, %v6110_v61  ;;  %v5931_v58 = vadd.f32 %v12945_v39, %v15290_v13  ;;  %v12946_v63 = vadd.f32 %v5644_v50, %v15347_v52  ;;  %v5646_v43 = vpop.f32.mrb[95].mxu0  ;;  %v6588_v39 = vld [vmem:[#allocation2 + $0x1a0] sm:$0xff] }
 0x526   :  { %6578 = vst [vmem:[#allocation2 + $0x180] sm:$0xff] %v6577_v59 }
 0x527   :  { %v6317_v4 = vshrl.u32 %v6152_v18, 16  ;;  %v6047_v35 = vmax.f32 %v5931_v58, 0.0  ;;  %v5934_v57 = vadd.f32 %v12946_v63, %v15298_v48  ;;  %v6320_v9 = vshll.u32 %v6152_v18, 16 }
 0x529   :  { %v6319_v25 = vrot.slane %v6317_v4, 7  ;;  %v6048_v36 = vmax.f32 %v5934_v57, 0.0  ;;  %v6112_v5 = vadd.f32 %v15363_v17, %v6047_v35 }
 0x52a   :  { %v5649_v62 = vpop.f32.mrb[96].mxu0 }
 0x52b   :  { %v6322_v13 = vor.u32 %v6320_v9, %v6319_v25  ;;  %v6586_v54 = vsel %vm14161_vm3, %v6319_v25, %v6585_v22  ;;  %v6113_v46 = vadd.f32 %v15363_v17, %v6048_v36  ;;  %v12947_v48 = vadd.f32 %v5649_v62, %v15347_v52  ;;  %v5651_v19 = vpop.f32.mrb[97].mxu0  ;;  %v6597_v36 = vld [vmem:[#allocation2 + $0x1b8] sm:$0x1] }
 0x52c   :  { %6587 = vst [vmem:[#allocation2 + $0x198] sm:$0x1] %v6586_v54  ;;  %v5652_v56 = vpop.f32.mrb[98].mxu0 }
 0x52d   :  { %v6583_v51 = vsel %vm14217_vm8, %v6322_v13, %v6582_v10  ;;  %v6153_v41 = vpack.c.bf16 %v6113_v46, %v6112_v5  ;;  %v12948_v1 = vadd.f32 %v5652_v56, %v15347_v52  ;;  %v5939_v8 = vadd.f32 %v12947_v48, %v15315_v47  ;;  %v5654_v30 = vpop.f32.mrb[99].mxu0  ;;  %v6594_v13 = vld [vmem:[#allocation2 + $0x1b0] sm:$0xff] }
 0x52e   :  { %6584 = vst [vmem:[#allocation2 + $0x190] sm:$0xff] %v6583_v51 }
 0x52f   :  { %v6324_v23 = vshrl.u32 %v6153_v41, 16  ;;  %v6049_v3 = vmax.f32 %v5939_v8, 0.0  ;;  %v5942_v61 = vadd.f32 %v12948_v1, %v15320_v14  ;;  %v6327_v33 = vshll.u32 %v6153_v41, 16 }
 0x531   :  { %v6326_v45 = vrot.slane %v6324_v23, 7  ;;  %v6050_v37 = vmax.f32 %v5942_v61, 0.0  ;;  %v6114_v20 = vadd.f32 %v15363_v17, %v6049_v3 }
 0x532   :  { %v5657_v50 = vpop.f32.mrb[100].mxu0 }
 0x533   :  { %v6329_v59 = vor.u32 %v6327_v33, %v6326_v45  ;;  %v6592_v47 = vsel %vm14161_vm3, %v6326_v45, %v6591_v60  ;;  %v6115_v18 = vadd.f32 %v15363_v17, %v6050_v37  ;;  %v12949_v58 = vadd.f32 %v5657_v50, %v15347_v52  ;;  %v5659_v63 = vpop.f32.mrb[101].mxu0  ;;  %v6603_v45 = vld [vmem:[#allocation2 + $0x1c8] sm:$0x1] }
 0x534   :  { %6593 = vst [vmem:[#allocation2 + $0x1a8] sm:$0x1] %v6592_v47  ;;  %v5660_v14 = vpop.f32.mrb[102].mxu0 }
 0x535   :  { %v6589_v43 = vsel %vm14217_vm8, %v6329_v59, %v6588_v39  ;;  %v6154_v4 = vpack.c.bf16 %v6115_v18, %v6114_v20  ;;  %v5947_v35 = vadd.f32 %v12949_v58, %v15310_v0  ;;  %v12950_v57 = vadd.f32 %v5660_v14, %v15347_v52  ;;  %v5662_v27 = vpop.f32.mrb[103].mxu0  ;;  %v6600_v20 = vld [vmem:[#allocation2 + $0x1c0] sm:$0xff] }
 0x536   :  { %6590 = vst [vmem:[#allocation2 + $0x1a0] sm:$0xff] %v6589_v43 }
 0x537   :  { %v6331_v22 = vshrl.u32 %v6154_v4, 16  ;;  %v6051_v25 = vmax.f32 %v5947_v35, 0.0  ;;  %v5950_v9 = vadd.f32 %v12950_v57, %v15318_v38  ;;  %v6334_v5 = vshll.u32 %v6154_v4, 16  ;;  %v13841_v38 = vld [vmem:[#allocation11 + $0x98] sm:$0xff]  }
 0x538   :  { %10394 = vmatpush1.bf16.msra.mxu1 %v13841_v38 }
 0x539   :  { %v6333_v10 = vrot.slane %v6331_v22, 7  ;;  %v6052_v62 = vmax.f32 %v5950_v9, 0.0  ;;  %v6116_v54 = vadd.f32 %v15363_v17, %v6051_v25  ;;  %10395 = vmatprep.subr.bf16.mxu1 %v15119_v16  ;;  %v6609_v9 = vld [vmem:[#allocation2 + $0x1d8] sm:$0x1] }
 0x53a   :  { %v5665_v46 = vpop.f32.mrb[104].mxu0 }
 0x53b   :  { %v6336_v48 = vor.u32 %v6334_v5, %v6333_v10  ;;  %v6598_v0 = vsel %vm14161_vm3, %v6333_v10, %v6597_v36  ;;  %v6117_v19 = vadd.f32 %v15363_v17, %v6052_v62  ;;  %v12951_v56 = vadd.f32 %v5665_v46, %v15347_v52  ;;  %v5667_v12 = vpop.f32.mrb[105].mxu0  ;;  %v6606_v62 = vld [vmem:[#allocation2 + $0x1d0] sm:$0xff] }
 0x53c   :  { %6599 = vst [vmem:[#allocation2 + $0x1b8] sm:$0x1] %v6598_v0  ;;  %v5668_v51 = vpop.f32.mrb[106].mxu0 }
 0x53d   :  { %v6595_v41 = vsel %vm14217_vm8, %v6336_v48, %v6594_v13  ;;  %v6155_v1 = vpack.c.bf16 %v6117_v19, %v6116_v54  ;;  %v12952_v8 = vadd.f32 %v5668_v51, %v15347_v52  ;;  %v5955_v30 = vadd.f32 %v12951_v56, %v15335_v28  ;;  %v5670_v23 = vpop.f32.mrb[107].mxu0 }
 0x53e   :  { %6596 = vst [vmem:[#allocation2 + $0x1b0] sm:$0xff] %v6595_v41 }
 0x53f   :  { %v6338_v3 = vshrl.u32 %v6155_v1, 16  ;;  %v6053_v61 = vmax.f32 %v5955_v30, 0.0  ;;  %v5958_v60 = vadd.f32 %v12952_v8, %v15339_v11  ;;  %v6341_v37 = vshll.u32 %v6155_v1, 16 }
 0x541   :  { %v6340_v33 = vrot.slane %v6338_v3, 7  ;;  %v6054_v39 = vmax.f32 %v5958_v60, 0.0  ;;  %v6118_v50 = vadd.f32 %v15363_v17, %v6053_v61  ;;  %v6615_v3 = vld [vmem:[#allocation2 + $0x1e8] sm:$0x1] }
 0x542   :  { %v5673_v59 = vpop.f32.mrb[108].mxu0 }
 0x543   :  { %v6343_v47 = vor.u32 %v6341_v37, %v6340_v33  ;;  %v6604_v28 = vsel %vm14161_vm3, %v6340_v33, %v6603_v45  ;;  %v6119_v18 = vadd.f32 %v15363_v17, %v6054_v39  ;;  %v12953_v58 = vadd.f32 %v5673_v59, %v15347_v52  ;;  %v5675_v63 = vpop.f32.mrb[109].mxu0  ;;  %v6612_v33 = vld [vmem:[#allocation2 + $0x1e0] sm:$0xff] }
 0x544   :  { %6605 = vst [vmem:[#allocation2 + $0x1c8] sm:$0x1] %v6604_v28  ;;  %v5676_v11 = vpop.f32.mrb[110].mxu0 }
 0x545   :  { %v6601_v14 = vsel %vm14217_vm8, %v6343_v47, %v6600_v20  ;;  %v6156_v43 = vpack.c.bf16 %v6119_v18, %v6118_v50  ;;  %v5963_v4 = vadd.f32 %v12953_v58, %v15330_v44  ;;  %v12954_v35 = vadd.f32 %v5676_v11, %v15347_v52  ;;  %v5678_v57 = vpop.f32.mrb[111].mxu0 }
 0x546   :  { %6602 = vst [vmem:[#allocation2 + $0x1c0] sm:$0xff] %v6601_v14 }
 0x547   :  { %v6345_v27 = vshrl.u32 %v6156_v43, 16  ;;  %v6055_v22 = vmax.f32 %v5963_v4, 0.0  ;;  %v5966_v25 = vadd.f32 %v12954_v35, %v15337_v2  ;;  %v6348_v10 = vshll.u32 %v6156_v43, 16  ;;  %v13842_v2 = vld [vmem:[#allocation11 + $0xa0] sm:$0xff]   ;;  %v6621_v35 = vld [vmem:[#allocation2 + $0x1f8] sm:$0x1] }
 0x548   :  { %10396 = vmatpush1.bf16.msra.mxu1 %v13842_v2 }
 0x549   :  { %v6347_v36 = vrot.slane %v6345_v27, 7  ;;  %v6056_v5 = vmax.f32 %v5966_v25, 0.0  ;;  %v6120_v13 = vadd.f32 %v15363_v17, %v6055_v22  ;;  %10397 = vmatprep.subr.bf16.mxu1 %v15119_v16  ;;  %v6618_v25 = vld [vmem:[#allocation2 + $0x1f0] sm:$0xff] }
 0x54a   :  { %v5681_v54 = vpop.f32.mrb[112].mxu0 }
 0x54b   :  { %v6350_v46 = vor.u32 %v6348_v10, %v6347_v36  ;;  %v6610_v44 = vsel %vm14161_vm3, %v6347_v36, %v6609_v9  ;;  %v6121_v48 = vadd.f32 %v15363_v17, %v6056_v5  ;;  %v12955_v0 = vadd.f32 %v5681_v54, %v15347_v52  ;;  %v5683_v19 = vpop.f32.mrb[113].mxu0 }
 0x54c   :  { %6611 = vst [vmem:[#allocation2 + $0x1d8] sm:$0x1] %v6610_v44  ;;  %v5684_v56 = vpop.f32.mrb[114].mxu0 }
 0x54d   :  { %v6607_v12 = vsel %vm14217_vm8, %v6350_v46, %v6606_v62  ;;  %v6157_v51 = vpack.c.bf16 %v6121_v48, %v6120_v13  ;;  %v12956_v38 = vadd.f32 %v5684_v56, %v15347_v52  ;;  %v5971_v41 = vadd.f32 %v12955_v0, %v15353_v24  ;;  %v5686_v1 = vpop.f32.mrb[115].mxu0 }
 0x54e   :  { %6608 = vst [vmem:[#allocation2 + $0x1d0] sm:$0xff] %v6607_v12 }
 0x54f   :  { %v6352_v8 = vshrl.u32 %v6157_v51, 16  ;;  %v6057_v30 = vmax.f32 %v5971_v41, 0.0  ;;  %v5974_v23 = vadd.f32 %v12956_v38, %v15359_v32  ;;  %v6355_v60 = vshll.u32 %v6157_v51, 16  ;;  %v6627_v51 = vld [vmem:[#allocation2 + $0x208] sm:$0x1] }
 0x551   :  { %v6354_v61 = vrot.slane %v6352_v8, 7  ;;  %v6058_v45 = vmax.f32 %v5974_v23, 0.0  ;;  %v6122_v37 = vadd.f32 %v15363_v17, %v6057_v30  ;;  %v6624_v8 = vld [vmem:[#allocation2 + $0x200] sm:$0xff] }
 0x552   :  { %v5689_v39 = vpop.f32.mrb[116].mxu0 }
 0x553   :  { %v6357_v20 = vor.u32 %v6355_v60, %v6354_v61  ;;  %v6616_v24 = vsel %vm14161_vm3, %v6354_v61, %v6615_v3  ;;  %v6123_v50 = vadd.f32 %v15363_v17, %v6058_v45  ;;  %v12957_v59 = vadd.f32 %v5689_v39, %v15347_v52  ;;  %v5691_v47 = vpop.f32.mrb[117].mxu0 }
 0x554   :  { %6617 = vst [vmem:[#allocation2 + $0x1e8] sm:$0x1] %v6616_v24  ;;  %v5692_v32 = vpop.f32.mrb[118].mxu0 }
 0x555   :  { %v6613_v28 = vsel %vm14217_vm8, %v6357_v20, %v6612_v33  ;;  %v6158_v18 = vpack.c.bf16 %v6123_v50, %v6122_v37  ;;  %v5979_v58 = vadd.f32 %v12957_v59, %v15351_v55  ;;  %v12958_v63 = vadd.f32 %v5692_v32, %v15347_v52  ;;  %v5694_v11 = vpop.f32.mrb[119].mxu0  ;;  %v6633_v32 = vld [vmem:[#allocation2 + $0x218] sm:$0x1] }
 0x556   :  { %6614 = vst [vmem:[#allocation2 + $0x1e0] sm:$0xff] %v6613_v28  ;;  %v12901_v28 = vadd.f32 %v15246_v49, %v15347_v52  ;;  %v12899_v11 = vadd.f32 %v15233_v29, %v15347_v52  ;;  %v12903_v29 = vadd.f32 %v15251_v21, %v15347_v52  ;;  %v17101_v21 = vld [vmem:[#allocation22_spill] sm:$0xff] }
 0x557   :  { %v6359_v14 = vshrl.u32 %v6158_v18, 16  ;;  %v6059_v43 = vmax.f32 %v5979_v58, 0.0  ;;  %v5982_v4 = vadd.f32 %v12958_v63, %v15357_v53  ;;  %v6362_v27 = vshll.u32 %v6158_v18, 16  ;;  %v13843_v53 = vld [vmem:[#allocation11 + $0xa8] sm:$0xff]  }
 0x558   :  { %10398 = vmatpush1.bf16.msra.mxu1 %v13843_v53 }
 0x559   :  { %v6361_v57 = vrot.slane %v6359_v14, 7  ;;  %v6060_v22 = vmax.f32 %v5982_v4, 0.0  ;;  %v6124_v9 = vadd.f32 %v15363_v17, %v6059_v43  ;;  %10399 = vmatprep.subr.bf16.mxu1 %v15119_v16  ;;  %v12902_v14 = vadd.f32 %v15248_v42, %v15347_v52  ;;  %v6630_v43 = vld [vmem:[#allocation2 + $0x210] sm:$0xff]  ;;  %v17100_v42 = vld [vmem:[#allocation21_spill] sm:$0xff] }
 0x55a   :  { %v5697_v36 = vpop.f32.mrb[120].mxu0 }
 0x55b   :  { %v6364_v10 = vor.u32 %v6362_v27, %v6361_v57  ;;  %v6622_v55 = vsel %vm14161_vm3, %v6361_v57, %v6621_v35  ;;  %v6125_v5 = vadd.f32 %v15363_v17, %v6060_v22  ;;  %v12959_v62 = vadd.f32 %v5697_v36, %v15347_v52  ;;  %v5699_v13 = vpop.f32.mrb[121].mxu0 }
 0x55c   :  { %6623 = vst [vmem:[#allocation2 + $0x1f8] sm:$0x1] %v6622_v55  ;;  %v5700_v54 = vpop.f32.mrb[122].mxu0  ;;  %v13844_v55 = vld [vmem:[#allocation11 + $0xb0] sm:$0xff]  }
 0x55d   :  { %v6619_v46 = vsel %vm14217_vm8, %v6364_v10, %v6618_v25  ;;  %v6159_v44 = vpack.c.bf16 %v6125_v5, %v6124_v9  ;;  %v12960_v48 = vadd.f32 %v5700_v54, %v15347_v52  ;;  %v5987_v0 = vadd.f32 %v12959_v62, %v15381_v40  ;;  %v5702_v19 = vpop.f32.mrb[123].mxu0  ;;  %10400 = vmatpush1.bf16.msra.mxu1 %v13844_v55  ;;  %v17114_v55 = vld [vmem:[#allocation35_spill] sm:$0xff] }
 0x55e   :  { %6620 = vst [vmem:[#allocation2 + $0x1f0] sm:$0xff] %v6619_v46  ;;  %v12905_v9 = vadd.f32 %v17100_v42, %v15347_v52  ;;  %v12906_v46 = vadd.f32 %v17101_v21, %v15347_v52  ;;  %10401 = vmatprep.subr.bf16.mxu1 %v15119_v16 }
 0x55f   :  { %v6366_v56 = vshrl.u32 %v6159_v44, 16  ;;  %v6061_v2 = vmax.f32 %v5987_v0, 0.0  ;;  %v5990_v12 = vadd.f32 %v12960_v48, %v15389_v26  ;;  %v6369_v41 = vshll.u32 %v6159_v44, 16  ;;  %v17102_v44 = vld [vmem:[#allocation23_spill] sm:$0xff] }
 0x560   :  { %v15604_v48 = vadd.f32 %v17102_v44, %v15347_v52  ;;  %v6453_v44 = vld [vmem:[#allocation2 + $0x18] sm:$0x1] }
 0x561   :  { %v6368_v38 = vrot.slane %v6366_v56, 7  ;;  %v6062_v1 = vmax.f32 %v5990_v12, 0.0  ;;  %v6126_v30 = vadd.f32 %v15363_v17, %v6061_v2  ;;  %v17103_v56 = vld [vmem:[#allocation24_spill] sm:$0xff]  ;;  %v17104_v12 = vld [vmem:[#allocation25_spill] sm:$0xff] }
 0x562   :  { %v5705_v23 = vpop.f32.mrb[124].mxu0  ;;  %v15608_v2 = vadd.f32 %v17103_v56, %v15347_v52  ;;  %v17115_v56 = vld [vmem:[#allocation36_spill] sm:$0xff] }
 0x563   :  { %v6371_v3 = vor.u32 %v6369_v41, %v6368_v38  ;;  %v6628_v40 = vsel %vm14161_vm3, %v6368_v38, %v6627_v51  ;;  %v6127_v61 = vadd.f32 %v15363_v17, %v6062_v1  ;;  %v12961_v60 = vadd.f32 %v5705_v23, %v15347_v52  ;;  %v5707_v45 = vpop.f32.mrb[125].mxu0  ;;  %v17105_v1 = vld [vmem:[#allocation26_spill] sm:$0xff] }
 0x564   :  { %6629 = vst [vmem:[#allocation2 + $0x208] sm:$0x1] %v6628_v40  ;;  %v5708_v26 = vpop.f32.mrb[126].mxu0  ;;  %v15612_v51 = vadd.f32 %v17104_v12, %v15347_v52  ;;  %v15666_v12 = vadd.f32 %v17115_v56, %v15347_v52 }
 0x565   :  { %v6625_v33 = vsel %vm14217_vm8, %v6371_v3, %v6624_v8  ;;  %v6160_v37 = vpack.c.bf16 %v6127_v61, %v6126_v30  ;;  %v5995_v39 = vadd.f32 %v12961_v60, %v15379_v34  ;;  %v12962_v20 = vadd.f32 %v5708_v26, %v15347_v52  ;;  %v5710_v24 = vpop.f32.mrb[127].mxu0  ;;  %v17106_v30 = vld [vmem:[#allocation27_spill] sm:$0xff]  ;;  %v17107_v3 = vld [vmem:[#allocation28_spill] sm:$0xff]  ;;  %v6639_v61 = vld [vmem:[#allocation2 + $0x228] sm:$0x1] }
 0x566   :  { %6626 = vst [vmem:[#allocation2 + $0x200] sm:$0xff] %v6625_v33  ;;  %v12900_v34 = vadd.f32 %v15235_v6, %v15347_v52  ;;  %v17099_v6 = vld [vmem:[#allocation20_spill] sm:$0xff]  ;;  %v15617_v8 = vadd.f32 %v17105_v1, %v15347_v52  ;;  %v15621_v23 = vadd.f32 %v17106_v30, %v15347_v52  ;;  %v15625_v40 = vadd.f32 %v17107_v3, %v15347_v52  ;;  %v17109_v24 = vld [vmem:[#allocation30_spill] sm:$0xff]  ;;  %v17116_v3 = vld [vmem:[#allocation37_spill] sm:$0xff] }
 0x567   :  { %v6373_v50 = vshrl.u32 %v6160_v37, 16  ;;  %v6063_v59 = vmax.f32 %v5995_v39, 0.0  ;;  %v5998_v47 = vadd.f32 %v12962_v20, %v15387_v31  ;;  %v6376_v58 = vshll.u32 %v6160_v37, 16  ;;  %v17108_v39 = vld [vmem:[#allocation29_spill] sm:$0xff] }
 0x568   :  { %v15594_v25 = vadd.f32 %v17099_v6, %v15347_v52  ;;  %v15631_v20 = vadd.f32 %v17108_v39, %v15347_v52  ;;  %v17113_v6 = vld [vmem:[#allocation34_spill] sm:$0xff] }
 0x569   :  { %v6375_v18 = vrot.slane %v6373_v50, 7  ;;  %v6064_v63 = vmax.f32 %v5998_v47, 0.0  ;;  %v6128_v4 = vadd.f32 %v15363_v17, %v6063_v59  ;;  %v15635_v50 = vadd.f32 %v17109_v24, %v15347_v52  ;;  %v6636_v59 = vld [vmem:[#allocation2 + $0x220] sm:$0xff] }
 0x56a   :  { %v12661_v31 = vpop.f32.mrb[128].mxu0  ;;  %v15655_v42 = vadd.f32 %v17113_v6, %v15347_v52 }
 0x56b   :  { %v6378_v35 = vor.u32 %v6376_v58, %v6375_v18  ;;  %v6634_v49 = vsel %vm14161_vm3, %v6375_v18, %v6633_v32  ;;  %v6129_v57 = vadd.f32 %v15363_v17, %v6064_v63  ;;  %v5755_v27 = vadd.f32 %v12901_v28, %v12661_v31  ;;  %v5746_v22 = vpop.f32.mrb[129].mxu0 }
 0x56c   :  { %6635 = vst [vmem:[#allocation2 + $0x218] sm:$0x1] %v6634_v49  ;;  %v5747_v36 = vadd.f32 %v12899_v11, %v5746_v22  ;;  %v12662_v10 = vpop.f32.mrb[130].mxu0 }
 0x56d   :  { %v6631_v5 = vsel %vm14217_vm8, %v6378_v35, %v6630_v43  ;;  %v6161_v62 = vpack.c.bf16 %v6129_v57, %v6128_v4  ;;  %v6003_v13 = vmax.f32 %v5755_v27, 0.0  ;;  %v5758_v54 = vadd.f32 %v12902_v14, %v12662_v10  ;;  %v5749_v53 = vpop.f32.mrb[131].mxu0  ;;  %v17110_v14 = vld [vmem:[#allocation31_spill] sm:$0xff]  ;;  %v17111_v4 = vld [vmem:[#allocation32_spill] sm:$0xff]  ;;  %v17112_v27 = vld [vmem:[#allocation33_spill] sm:$0xff] }
 0x56e   :  { %6632 = vst [vmem:[#allocation2 + $0x210] sm:$0xff] %v6631_v5  ;;  %v6001_v0 = vmax.f32 %v5747_v36, 0.0  ;;  %v5750_v19 = vadd.f32 %v12900_v34, %v5749_v53  ;;  %v15643_v43 = vadd.f32 %v17110_v14, %v15347_v52  ;;  %v15647_v31 = vadd.f32 %v17111_v4, %v15347_v52 }
 0x56f   :  { %v6380_v38 = vshrl.u32 %v6161_v62, 16  ;;  %v6004_v41 = vmax.f32 %v5758_v54, 0.0  ;;  %v6383_v26 = vshll.u32 %v6161_v62, 16  ;;  %v6068_v33 = vadd.f32 %v15363_v17, %v6003_v13 }
 0x570   :  { %v6002_v60 = vmax.f32 %v5750_v19, 0.0  ;;  %v6066_v47 = vadd.f32 %v15363_v17, %v6001_v0  ;;  %v15651_v22 = vadd.f32 %v17112_v27, %v15347_v52  ;;  %v15661_v5 = vadd.f32 %v17114_v55, %v15347_v52 }
 0x571   :  { %v6382_v45 = vrot.slane %v6380_v38, 7  ;;  %v6069_v37 = vadd.f32 %v15363_v17, %v6004_v41  ;;  %v6456_v38 = vld [vmem:[#allocation2 + $0x20] sm:$0xff] }
 0x572   :  { %v6067_v32 = vadd.f32 %v15363_v17, %v6002_v60  ;;  %v12665_v28 = vpop.f32.mrb[132].mxu0 }
 0x573   :  { %v6385_v18 = vor.u32 %v6383_v26, %v6382_v45  ;;  %v6640_v58 = vsel %vm14161_vm3, %v6382_v45, %v6639_v61  ;;  %v6131_v63 = vpack.c.bf16 %v6069_v37, %v6068_v33  ;;  %v5771_v11 = vadd.f32 %v12905_v9, %v12665_v28  ;;  %v5762_v34 = vpop.f32.mrb[133].mxu0  ;;  %v6450_v45 = vld [vmem:[#allocation2 + $0x10] sm:$0xff] }
 0x574   :  { %6641 = vst [vmem:[#allocation2 + $0x228] sm:$0x1] %v6640_v58  ;;  %v6130_v35 = vpack.c.bf16 %v6067_v32, %v6066_v47  ;;  %v5763_v49 = vadd.f32 %v12903_v29, %v5762_v34  ;;  %v12666_v57 = vpop.f32.mrb[134].mxu0  ;;  %v6459_v29 = vld [vmem:[#allocation2 + $0x28] sm:$0x1]  ;;  %v15670_v61 = vadd.f32 %v17116_v3, %v15347_v52  ;;  %v17117_v58 = vld [vmem:[#allocation38_spill] sm:$0xff] }
 0x575   :  { %v6637_v9 = vsel %vm14217_vm8, %v6385_v18, %v6636_v59  ;;  %v6170_v36 = vshrl.u32 %v6131_v63, 16  ;;  %v5765_v10 = vpop.f32.mrb[135].mxu0  ;;  %v6007_v13 = vmax.f32 %v5771_v11, 0.0  ;;  %v5774_v54 = vadd.f32 %v12906_v46, %v12666_v57  ;;  %v6462_v3 = vld [vmem:[#allocation2 + $0x30] sm:$0xff] }
 0x576   :  { %6638 = vst [vmem:[#allocation2 + $0x220] sm:$0xff] %v6637_v9  ;;  %v6163_v62 = vshrl.u32 %v6130_v35, 16  ;;  %v6173_v21 = vshll.u32 %v6131_v63, 16  ;;  %v6005_v0 = vmax.f32 %v5763_v49, 0.0  ;;  %v5766_v19 = vadd.f32 %v15594_v25, %v5765_v10 }
 0x577   :  { %v6172_v53 = vrot.slane %v6170_v36, 7  ;;  %v6166_v1 = vshll.u32 %v6130_v35, 16  ;;  %v6008_v30 = vmax.f32 %v5774_v54, 0.0  ;;  %v6072_v37 = vadd.f32 %v15363_v17, %v6007_v13  ;;  %v13845_v35 = vld [vmem:[#allocation11 + $0xb8] sm:$0xff]  }
 0x578   :  { %v6165_v41 = vrot.slane %v6163_v62, 7  ;;  %v6006_v26 = vmax.f32 %v5766_v19, 0.0  ;;  %v6070_v47 = vadd.f32 %v15363_v17, %v6005_v0  ;;  %v15687_v63 = vadd.f32 %v17117_v58, %v15347_v52  ;;  %10402 = vmatpush1.bf16.msra.mxu1 %v13845_v35  ;;  %v6468_v0 = vld [vmem:[#allocation2 + $0x40] sm:$0xff] }
 0x579   :  { %v6175_v60 = vor.u32 %v6173_v21, %v6172_v53  ;;  %v6460_v46 = vsel %vm14161_vm3, %v6172_v53, %v6459_v29  ;;  %v6073_v39 = vadd.f32 %v15363_v17, %v6008_v30  ;;  %10403 = vmatprep.subr.bf16.mxu1 %v15119_v16  ;;  %v6465_v53 = vld [vmem:[#allocation2 + $0x38] sm:$0x1] }
 0x57a   :  { %6461 = vst [vmem:[#allocation2 + $0x28] sm:$0x1] %v6460_v46  ;;  %v6168_v25 = vor.u32 %v6166_v1, %v6165_v41  ;;  %v6454_v33 = vsel %vm14161_vm3, %v6165_v41, %v6453_v44  ;;  %v12669_v24 = vpop.f32.mrb[136].mxu0  ;;  %v6071_v32 = vadd.f32 %v15363_v17, %v6006_v26 }
 0x57b   :  { %v15680_v59 = vsel %vm14217_vm8, %v6175_v60, %v6456_v38  ;;  %6455 = vst [vmem:[#allocation2 + $0x18] sm:$0x1] %v6454_v33  ;;  %v5787_v28 = vadd.f32 %v15612_v51, %v12669_v24  ;;  %v5778_v18 = vpop.f32.mrb[137].mxu0  ;;  %v6133_v34 = vpack.c.bf16 %v6073_v39, %v6072_v37 }
 0x57c   :  { %6458 = vst [vmem:[#allocation2 + $0x20] sm:$0xff] %v15680_v59  ;;  %v15692_v11 = vsel %vm14217_vm8, %v6168_v25, %v6450_v45  ;;  %v5779_v14 = vadd.f32 %v15604_v48, %v5778_v18  ;;  %v12670_v4 = vpop.f32.mrb[138].mxu0  ;;  %v6132_v49 = vpack.c.bf16 %v6071_v32, %v6070_v47  ;;  %v6795_v52 = vshrl.u32 %v15680_v59, 16  ;;  %v6471_v48 = vld [vmem:[#allocation2 + $0x48] sm:$0x1] }
 0x57d   :  { %6452 = vst [vmem:[#allocation2 + $0x10] sm:$0xff] %v15692_v11  ;;  %v6011_v51 = vmax.f32 %v5787_v28, 0.0  ;;  %v5790_v57 = vadd.f32 %v15617_v8, %v12670_v4  ;;  %v5781_v27 = vpop.f32.mrb[139].mxu0  ;;  %v6184_v6 = vshrl.u32 %v6133_v34, 16  ;;  %v6783_v10 = vshrl.u32 %v15692_v11, 16 }
 0x57e   :  { %v6009_v9 = vmax.f32 %v5779_v14, 0.0  ;;  %v5782_v36 = vadd.f32 %v15608_v2, %v5781_v27  ;;  %v6187_v55 = vshll.u32 %v6133_v34, 16  ;;  %v6177_v29 = vshrl.u32 %v6132_v49, 16  ;;  %v6483_v4 = vld [vmem:[#allocation2 + $0x68] sm:$0x1] }
 0x57f   :  { %v6180_v62 = vshll.u32 %v6132_v49, 16  ;;  %v6012_v13 = vmax.f32 %v5790_v57, 0.0  ;;  %v6186_v54 = vrot.slane %v6184_v6, 7  ;;  %v6076_v8 = vadd.f32 %v15363_v17, %v6011_v51 }
 0x580   :  { %v6074_v21 = vadd.f32 %v15363_v17, %v6009_v9  ;;  %v6010_v44 = vmax.f32 %v5782_v36, 0.0  ;;  %v6179_v19 = vrot.slane %v6177_v29, 7  ;;  %v6785_v38 = vshll.u32 %v15692_v11, 16  ;;  %v6477_v36 = vld [vmem:[#allocation2 + $0x58] sm:$0x1] }
 0x581   :  { %v6077_v2 = vadd.f32 %v15363_v17, %v6012_v13  ;;  %v8947_v56 = vld [vmem:[#allocation2 + $0x28] sm:$0x1]  ;;  %v6797_v41 = vshll.u32 %v15680_v59, 16  ;;  %v6189_v1 = vor.u32 %v6187_v55, %v6186_v54  ;;  %v6472_v30 = vsel %vm14161_vm3, %v6186_v54, %v6471_v48 }
 0x582   :  { %v6075_v60 = vadd.f32 %v15363_v17, %v6010_v44  ;;  %v12673_v46 = vpop.f32.mrb[140].mxu0  ;;  %v9075_v45 = vrot.slane %v8947_v56, 1  ;;  %6473 = vst [vmem:[#allocation2 + $0x48] sm:$0x1] %v6472_v30  ;;  %v6182_v26 = vor.u32 %v6180_v62, %v6179_v19  ;;  %v6466_v25 = vsel %vm14161_vm3, %v6179_v19, %v6465_v53  ;;  %v6709_v6 = vld [vmem:[#allocation2 + $0x18] sm:$0x1] }
 0x583   :  { %v6135_v33 = vpack.c.bf16 %v6077_v2, %v6076_v8  ;;  %v5803_v37 = vadd.f32 %v15631_v20, %v12673_v46  ;;  %v5794_v39 = vpop.f32.mrb[141].mxu0  ;;  %v8946_v24 = vld [vmem:[#allocation2 + $0x20] sm:$0xfe]  ;;  %v15714_v47 = vsel %vm14217_vm8, %v6189_v1, %v6468_v0  ;;  %6467 = vst [vmem:[#allocation2 + $0x38] sm:$0x1] %v6466_v25  ;;  %v6787_v8 = vrot.slane %v6785_v38, 1 }
 0x584   :  { %v6134_v32 = vpack.c.bf16 %v6075_v60, %v6074_v21  ;;  %v5795_v28 = vadd.f32 %v15621_v23, %v5794_v39  ;;  %v12674_v18 = vpop.f32.mrb[142].mxu0  ;;  %v9074_v58 = vrot.slane %v8946_v24, 1  ;;  %6470 = vst [vmem:[#allocation2 + $0x40] sm:$0xff] %v15714_v47  ;;  %v15720_v34 = vsel %vm14217_vm8, %v6182_v26, %v6462_v3  ;;  %v6480_v62 = vld [vmem:[#allocation2 + $0x60] sm:$0xff]  ;;  %v6474_v44 = vld [vmem:[#allocation2 + $0x50] sm:$0xff] }
 0x585   :  { %v6198_v14 = vshrl.u32 %v6135_v33, 16  ;;  %v6201_v20 = vshll.u32 %v6135_v33, 16  ;;  %v6015_v35 = vmax.f32 %v5803_v37, 0.0  ;;  %v5797_v49 = vpop.f32.mrb[143].mxu0  ;;  %6464 = vst [vmem:[#allocation2 + $0x30] sm:$0xff] %v15720_v34  ;;  %v5806_v23 = vadd.f32 %v15635_v50, %v12674_v18  ;;  %v13846_v39 = vld [vmem:[#allocation11 + $0xc0] sm:$0xff]  }
 0x586   :  { %v6191_v51 = vshrl.u32 %v6134_v32, 16  ;;  %v6194_v57 = vshll.u32 %v6134_v32, 16  ;;  %v6013_v27 = vmax.f32 %v5795_v28, 0.0  ;;  %v5798_v48 = vadd.f32 %v15625_v40, %v5797_v49  ;;  %v6495_v24 = vld [vmem:[#allocation2 + $0x88] sm:$0x1]  ;;  %10404 = vmatpush1.bf16.msra.mxu1 %v13846_v39 }
 0x587   :  { %v6200_v9 = vrot.slane %v6198_v14, 7  ;;  %v6080_v55 = vadd.f32 %v15363_v17, %v6015_v35  ;;  %v9076_v29 = vsel %vm1801_vm9, %v9074_v58, %v9075_v45  ;;  %v6016_v53 = vmax.f32 %v5806_v23, 0.0  ;;  %v6711_v14 = vld [vmem:[#allocation2 + $0x28] sm:$0x1]  ;;  %10405 = vmatprep.subr.bf16.mxu1 %v15119_v16 }
 0x588   :  { %v6193_v13 = vrot.slane %v6191_v51, 7  ;;  %v6078_v54 = vadd.f32 %v15363_v17, %v6013_v27  ;;  %12739 = vmatprep.mubr.bf16.mxu0 %v9076_v29  ;;  %v6014_v0 = vmax.f32 %v5798_v48, 0.0  ;;  %v6790_v19 = vshll.u32 %v6709_v6, 16  ;;  %v6489_v6 = vld [vmem:[#allocation2 + $0x78] sm:$0x1] }
 0x589   :  { %v6203_v21 = vor.u32 %v6201_v20, %v6200_v9  ;;  %v6484_v50 = vsel %vm14161_vm3, %v6200_v9, %v6483_v4  ;;  %v6081_v56 = vadd.f32 %v15363_v17, %v6016_v53  ;;  %v6788_v30 = vor.u32 %v6787_v8, %v6783_v10  ;;  %v6486_v8 = vld [vmem:[#allocation2 + $0x70] sm:$0xff]  ;;  %v6507_v39 = vld [vmem:[#allocation2 + $0xa8] sm:$0x1] }
 0x58a   :  { %6485 = vst [vmem:[#allocation2 + $0x68] sm:$0x1] %v6484_v50  ;;  %v6196_v2 = vor.u32 %v6194_v57, %v6193_v13  ;;  %v6478_v40 = vsel %vm14161_vm3, %v6193_v13, %v6477_v36  ;;  %v12677_v1 = vpop.f32.mrb[144].mxu0  ;;  %v6079_v3 = vadd.f32 %v15363_v17, %v6014_v0  ;;  %v6792_v45 = vrot.slane %v6790_v19, 1 }
 0x58b   :  { %v15737_v38 = vsel %vm14217_vm8, %v6203_v21, %v6480_v62  ;;  %6479 = vst [vmem:[#allocation2 + $0x58] sm:$0x1] %v6478_v40  ;;  %v5819_v60 = vadd.f32 %v15651_v22, %v12677_v1  ;;  %v5810_v46 = vpop.f32.mrb[145].mxu0  ;;  %v6137_v25 = vpack.c.bf16 %v6081_v56, %v6080_v55  ;;  %v6799_v37 = vrot.slane %v6797_v41, 1  ;;  %v6492_v55 = vld [vmem:[#allocation2 + $0x80] sm:$0xff] }
 0x58c   :  { %6482 = vst [vmem:[#allocation2 + $0x60] sm:$0xff] %v15737_v38  ;;  %v15744_v26 = vsel %vm14217_vm8, %v6196_v2, %v6474_v44  ;;  %v5811_v10 = vadd.f32 %v15643_v43, %v5810_v46  ;;  %v12678_v33 = vpop.f32.mrb[146].mxu0  ;;  %v6136_v22 = vpack.c.bf16 %v6079_v3, %v6078_v54  ;;  %v6793_v18 = vsel %vm1224_vm6, %v6788_v30, %v6792_v45  ;;  %v8948_v49 = vld [vmem:[#allocation2 + $0x30] sm:$0xfe]  ;;  %v8950_v54 = vld [vmem:[#allocation2 + $0x40] sm:$0xfe] }
 0x58d   :  { %6476 = vst [vmem:[#allocation2 + $0x50] sm:$0xff] %v15744_v26  ;;  %v6019_v32 = vmax.f32 %v5819_v60, 0.0  ;;  %v5822_v28 = vadd.f32 %v15655_v42, %v12678_v33  ;;  %v5813_v58 = vpop.f32.mrb[147].mxu0  ;;  %v6212_v20 = vshrl.u32 %v6137_v25, 16  ;;  %v6215_v4 = vshll.u32 %v6137_v25, 16  ;;  %10138 = vmatprep.mubr.bf16.mxu1 %v6793_v18 }
 0x58e   :  { %v6017_v35 = vmax.f32 %v5811_v10, 0.0  ;;  %v5814_v43 = vadd.f32 %v15647_v31, %v5813_v58  ;;  %v6205_v41 = vshrl.u32 %v6136_v22, 16  ;;  %v6208_v51 = vshll.u32 %v6136_v22, 16  ;;  %10139 = vmatmul.mubr.bf16.gmra.mrb[44].mxu1 %v15692_v11  ;;  %v8949_v42 = vld [vmem:[#allocation2 + $0x38] sm:$0x1] }
 0x58f   :  { %v6084_v57 = vadd.f32 %v15363_v17, %v6019_v32  ;;  %v6020_v27 = vmax.f32 %v5822_v28, 0.0  ;;  %v6214_v23 = vrot.slane %v6212_v20, 7  ;;  %v6800_v31 = vor.u32 %v6799_v37, %v6795_v52  ;;  %v8951_v40 = vld [vmem:[#allocation2 + $0x48] sm:$0x1]  ;;  %v6501_v58 = vld [vmem:[#allocation2 + $0x98] sm:$0x1] }
 0x590   :  { %v6082_v9 = vadd.f32 %v15363_v17, %v6017_v35  ;;  %v6018_v36 = vmax.f32 %v5814_v43, 0.0  ;;  %v6207_v48 = vrot.slane %v6205_v41, 7  ;;  %v6802_v62 = vshll.u32 %v6711_v14, 16  ;;  %v6504_v35 = vld [vmem:[#allocation2 + $0xa0] sm:$0xff] }
 0x591   :  { %v6085_v29 = vadd.f32 %v15363_v17, %v6020_v27  ;;  %v9077_v13 = vrot.slane %v8948_v49, 1  ;;  %v6217_v53 = vor.u32 %v6215_v4, %v6214_v23  ;;  %v6496_v11 = vsel %vm14161_vm3, %v6214_v23, %v6495_v24  ;;  %v6498_v49 = vld [vmem:[#allocation2 + $0x90] sm:$0xff] }
 0x592   :  { %v6083_v21 = vadd.f32 %v15363_v17, %v6018_v36  ;;  %v9078_v50 = vrot.slane %v8949_v42, 1  ;;  %v12681_v44 = vpop.f32.mrb[148].mxu0  ;;  %6497 = vst [vmem:[#allocation2 + $0x88] sm:$0x1] %v6496_v11  ;;  %v6210_v0 = vor.u32 %v6208_v51, %v6207_v48  ;;  %v6490_v52 = vsel %vm14161_vm3, %v6207_v48, %v6489_v6  ;;  %v8953_v36 = vld [vmem:[#allocation2 + $0x58] sm:$0x1] }
 0x593   :  { %v6139_v19 = vpack.c.bf16 %v6085_v29, %v6084_v57  ;;  %v6804_v2 = vrot.slane %v6802_v62, 1  ;;  %v5826_v56 = vpop.f32.mrb[149].mxu0  ;;  %v15767_v1 = vsel %vm14217_vm8, %v6217_v53, %v6492_v55  ;;  %6491 = vst [vmem:[#allocation2 + $0x78] sm:$0x1] %v6490_v52  ;;  %v9080_v60 = vrot.slane %v8950_v54, 1 }
 0x594   :  { %v6138_v30 = vpack.c.bf16 %v6083_v21, %v6082_v9  ;;  %v9079_v3 = vsel %vm1801_vm9, %v9077_v13, %v9078_v50  ;;  %v12682_v46 = vpop.f32.mrb[150].mxu0  ;;  %6494 = vst [vmem:[#allocation2 + $0x80] sm:$0xff] %v15767_v1  ;;  %v15773_v45 = vsel %vm14217_vm8, %v6210_v0, %v6486_v8  ;;  %v9081_v32 = vrot.slane %v8951_v40, 1  ;;  %v8952_v23 = vld [vmem:[#allocation2 + $0x50] sm:$0xfe]  ;;  %v13847_v21 = vld [vmem:[#allocation11 + $0xc8] sm:$0xff]  }
 0x595   :  { %v6226_v25 = vshrl.u32 %v6139_v19, 16  ;;  %v6229_v10 = vshll.u32 %v6139_v19, 16  ;;  %v6805_v33 = vsel %vm1224_vm6, %v6800_v31, %v6804_v2  ;;  %12740 = vmatmul.mubr.bf16.vlgmr.msra.gmra.mrb[152].mxu0 %v9079_v3  ;;  %v5829_v37 = vpop.f32.mrb[151].mxu0  ;;  %6488 = vst [vmem:[#allocation2 + $0x70] sm:$0xff] %v15773_v45  ;;  %v5835_v28 = vadd.f32 %v15670_v61, %v12681_v44  ;;  %v8954_v31 = vld [vmem:[#allocation2 + $0x60] sm:$0xfe]  ;;  %10406 = vmatpush1.bf16.msra.mxu1 %v13847_v21 }
 0x596   :  { %v6219_v24 = vshrl.u32 %v6138_v30, 16  ;;  %v6222_v22 = vshll.u32 %v6138_v30, 16  ;;  %10146 = vmatprep.mubr.bf16.mxu1 %v6805_v33  ;;  %v5827_v14 = vadd.f32 %v15661_v5, %v5826_v56  ;;  %v5838_v20 = vadd.f32 %v15687_v63, %v12682_v46  ;;  %v6713_v63 = vld [vmem:[#allocation2 + $0x38] sm:$0x1]  ;;  %v8955_v13 = vld [vmem:[#allocation2 + $0x68] sm:$0x1]  ;;  %10407 = vmatprep.subr.bf16.mxu1 %v15119_v16 }
 0x597   :  { %v6228_v18 = vrot.slane %v6226_v25, 7  ;;  %v5830_v4 = vadd.f32 %v15666_v12, %v5829_v37  ;;  %10147 = vmatmul.mubr.bf16.gmra.mrb[48].mxu1 %v15680_v59  ;;  %v9082_v41 = vsel %vm1801_vm9, %v9080_v60, %v9081_v32  ;;  %v6023_v51 = vmax.f32 %v5835_v28, 0.0  ;;  %v6715_v56 = vld [vmem:[#allocation2 + $0x48] sm:$0x1]  ;;  %v6513_v46 = vld [vmem:[#allocation2 + $0xb8] sm:$0x1] }
 0x598   :  { %v6221_v43 = vrot.slane %v6219_v24, 7  ;;  %v6807_v57 = vshrl.u32 %v15720_v34, 16  ;;  %12743 = vmatprep.mubr.bf16.mxu0 %v9082_v41  ;;  %v6021_v5 = vmax.f32 %v5827_v14, 0.0  ;;  %v6024_v42 = vmax.f32 %v5838_v20, 0.0  ;;  %v6519_v60 = vld [vmem:[#allocation2 + $0xc8] sm:$0x1] }
 0x599   :  { %v6231_v27 = vor.u32 %v6229_v10, %v6228_v18  ;;  %v6508_v61 = vsel %vm14161_vm3, %v6228_v18, %v6507_v39  ;;  %v6088_v6 = vadd.f32 %v15363_v17, %v6023_v51  ;;  %v6022_v9 = vmax.f32 %v5830_v4, 0.0  ;;  %v6516_v14 = vld [vmem:[#allocation2 + $0xc0] sm:$0xff] }
 0x59a   :  { %6509 = vst [vmem:[#allocation2 + $0xa8] sm:$0x1] %v6508_v61  ;;  %v6224_v12 = vor.u32 %v6222_v22, %v6221_v43  ;;  %v6502_v59 = vsel %vm14161_vm3, %v6221_v43, %v6501_v58  ;;  %v6086_v48 = vadd.f32 %v15363_v17, %v6021_v5  ;;  %v6089_v29 = vadd.f32 %v15363_v17, %v6024_v42  ;;  %v8957_v24 = vld [vmem:[#allocation2 + $0x78] sm:$0x1]  ;;  %v8959_v61 = vld [vmem:[#allocation2 + $0x88] sm:$0x1] }
 0x59b   :  { %v15791_v55 = vsel %vm14217_vm8, %v6231_v27, %v6504_v35  ;;  %6503 = vst [vmem:[#allocation2 + $0x98] sm:$0x1] %v6502_v59  ;;  %v6809_v62 = vshll.u32 %v15720_v34, 16  ;;  %v6087_v53 = vadd.f32 %v15363_v17, %v6022_v9  ;;  %v6814_v11 = vshll.u32 %v6713_v63, 16  ;;  %v8958_v58 = vld [vmem:[#allocation2 + $0x80] sm:$0xfe] }
 0x59c   :  { %6506 = vst [vmem:[#allocation2 + $0xa0] sm:$0xff] %v15791_v55  ;;  %v15799_v54 = vsel %vm14217_vm8, %v6224_v12, %v6498_v49  ;;  %v9083_v8 = vrot.slane %v8952_v23, 1  ;;  %v6141_v50 = vpack.c.bf16 %v6089_v29, %v6088_v6  ;;  %v9084_v0 = vrot.slane %v8953_v36, 1  ;;  %v8956_v30 = vld [vmem:[#allocation2 + $0x70] sm:$0xfe] }
 0x59d   :  { %6500 = vst [vmem:[#allocation2 + $0x90] sm:$0xff] %v15799_v54  ;;  %v6811_v44 = vrot.slane %v6809_v62, 1  ;;  %v9086_v52 = vrot.slane %v8954_v31, 1  ;;  %v6140_v19 = vpack.c.bf16 %v6087_v53, %v6086_v48  ;;  %v6816_v2 = vrot.slane %v6814_v11, 1  ;;  %v6510_v35 = vld [vmem:[#allocation2 + $0xb0] sm:$0xff] }
 0x59e   :  { %v9087_v40 = vrot.slane %v8955_v13, 1  ;;  %v6240_v3 = vshrl.u32 %v6141_v50, 16  ;;  %v9085_v17 = vsel %vm1801_vm9, %v9083_v8, %v9084_v0  ;;  %v6243_v10 = vshll.u32 %v6141_v50, 16  ;;  %v6717_v5 = vld [vmem:[#allocation2 + $0x58] sm:$0x1] }
 0x59f   :  { %v6812_v25 = vor.u32 %v6811_v44, %v6807_v57  ;;  %v6233_v33 = vshrl.u32 %v6140_v19, 16  ;;  %12744 = vmatmul.mubr.bf16.gmra.mrb[156].mxu0 %v9085_v17  ;;  %v6821_v39 = vshll.u32 %v15714_v47, 16  ;;  %v6826_v28 = vshll.u32 %v6715_v56, 16  ;;  %v6719_v8 = vld [vmem:[#allocation2 + $0x68] sm:$0x1]  ;;  %v13848_v56 = vld [vmem:[#allocation11 + $0xd0] sm:$0xff]  }
 0x5a0   :  { %v9088_v37 = vsel %vm1801_vm9, %v9086_v52, %v9087_v40  ;;  %v6242_v22 = vrot.slane %v6240_v3, 7  ;;  %v9089_v18 = vrot.slane %v8956_v30, 1  ;;  %v6236_v4 = vshll.u32 %v6140_v19, 16  ;;  %10408 = vmatpush1.bf16.msra.mxu1 %v13848_v56 }
 0x5a1   :  { %v6817_v32 = vsel %vm1224_vm6, %v6812_v25, %v6816_v2  ;;  %12747 = vmatprep.mubr.bf16.mxu0 %v9088_v37  ;;  %v6235_v20 = vrot.slane %v6233_v33, 7  ;;  %v6819_v43 = vshrl.u32 %v15714_v47, 16  ;;  %v6823_v49 = vrot.slane %v6821_v39, 1  ;;  %v8963_v19 = vld [vmem:[#allocation2 + $0xa8] sm:$0x1]  ;;  %10409 = vmatprep.subr.bf16.mxu1 %v15119_v16 }
 0x5a2   :  { %10154 = vmatprep.mubr.bf16.mxu1 %v6817_v32  ;;  %v6245_v41 = vor.u32 %v6243_v10, %v6242_v22  ;;  %v6520_v51 = vsel %vm14161_vm3, %v6242_v22, %v6519_v60  ;;  %v6828_v57 = vrot.slane %v6826_v28, 1  ;;  %v9090_v27 = vrot.slane %v8957_v24, 1  ;;  %v8961_v11 = vld [vmem:[#allocation2 + $0x98] sm:$0x1] }
 0x5a3   :  { %10155 = vmatmul.mubr.bf16.gmra.mrb[52].mxu1 %v15720_v34  ;;  %6521 = vst [vmem:[#allocation2 + $0xc8] sm:$0x1] %v6520_v51  ;;  %v6238_v42 = vor.u32 %v6236_v4, %v6235_v20  ;;  %v6514_v63 = vsel %vm14161_vm3, %v6235_v20, %v6513_v46  ;;  %v6824_v23 = vor.u32 %v6823_v49, %v6819_v43  ;;  %v9092_v12 = vrot.slane %v8958_v58, 1  ;;  %v8962_v50 = vld [vmem:[#allocation2 + $0xa0] sm:$0xfe] }
 0x5a4   :  { %v15816_v59 = vsel %vm14217_vm8, %v6245_v41, %v6516_v14  ;;  %6515 = vst [vmem:[#allocation2 + $0xb8] sm:$0x1] %v6514_v63  ;;  %v9091_v6 = vsel %vm1801_vm9, %v9089_v18, %v9090_v27  ;;  %v6833_v34 = vshll.u32 %v15744_v26, 16  ;;  %v9093_v36 = vrot.slane %v8959_v61, 1  ;;  %v8960_v48 = vld [vmem:[#allocation2 + $0x90] sm:$0xfe] }
 0x5a5   :  { %6518 = vst [vmem:[#allocation2 + $0xc0] sm:$0xff] %v15816_v59  ;;  %v15823_v9 = vsel %vm14217_vm8, %v6238_v42, %v6510_v35  ;;  %v6829_v7 = vsel %vm1224_vm6, %v6824_v23, %v6828_v57  ;;  %v6838_v31 = vshll.u32 %v6717_v5, 16  ;;  %v6831_v29 = vshrl.u32 %v15744_v26, 16  ;;  %v6721_v33 = vld [vmem:[#allocation2 + $0x78] sm:$0x1] }
 0x5a6   :  { %6512 = vst [vmem:[#allocation2 + $0xb0] sm:$0xff] %v15823_v9  ;;  %10162 = vmatprep.mubr.bf16.mxu1 %v6829_v7  ;;  %v6835_v62 = vrot.slane %v6833_v34, 1  ;;  %v9094_v13 = vsel %vm1801_vm9, %v9092_v12, %v9093_v36  ;;  %v9095_v21 = vrot.slane %v8960_v48, 1  ;;  %v6845_v44 = vshll.u32 %v15737_v38, 16  ;;  %v8968_v51 = vld [vmem:[#allocation2 + $0xd0] sm:$0xfe] }
 0x5a7   :  { %12748 = vmatmul.mubr.bf16.gmra.mrb[160].mxu0 %v9091_v6  ;;  %v6840_v53 = vrot.slane %v6838_v31, 1  ;;  %v9096_v52 = vrot.slane %v8961_v11, 1  ;;  %v6850_v2 = vshll.u32 %v6719_v8, 16  ;;  %v9098_v40 = vrot.slane %v8962_v50, 1  ;;  %v6723_v57 = vld [vmem:[#allocation2 + $0x88] sm:$0x1] }
 0x5a8   :  { %12751 = vmatprep.mubr.bf16.mxu0 %v9094_v13  ;;  %v6836_v15 = vor.u32 %v6835_v62, %v6831_v29  ;;  %v6847_v3 = vrot.slane %v6845_v44, 1  ;;  %v9099_v60 = vrot.slane %v8963_v19, 1  ;;  %v6843_v25 = vshrl.u32 %v15737_v38, 16  ;;  %v8970_v27 = vld [vmem:[#allocation2 + $0xe0] sm:$0xfe]  ;;  %v13849_v34 = vld [vmem:[#allocation11 + $0xd8] sm:$0xff]  }
 0x5a9   :  { %v9097_v30 = vsel %vm1801_vm9, %v9095_v21, %v9096_v52  ;;  %v6852_v17 = vrot.slane %v6850_v2, 1  ;;  %v6857_v22 = vshll.u32 %v15773_v45, 16  ;;  %v6862_v58 = vshll.u32 %v6721_v33, 16  ;;  %v8969_v5 = vld [vmem:[#allocation2 + $0xd8] sm:$0x1]  ;;  %10410 = vmatpush1.bf16.msra.mxu1 %v13849_v34 }
 0x5aa   :  { %v6841_v0 = vsel %vm1224_vm6, %v6836_v15, %v6840_v53  ;;  %v6848_v37 = vor.u32 %v6847_v3, %v6843_v25  ;;  %v8967_v18 = vld [vmem:[#allocation2 + $0xc8] sm:$0x1]  ;;  %v6855_v43 = vshrl.u32 %v15773_v45, 16  ;;  %v6869_v61 = vshll.u32 %v15767_v1, 16  ;;  %10411 = vmatprep.subr.bf16.mxu1 %v15119_v16  ;;  %v8972_v13 = vld [vmem:[#allocation2 + $0xf0] sm:$0xfe] }
 0x5ab   :  { %10163 = vmatmul.mubr.bf16.gmra.mrb[56].mxu1 %v15714_v47  ;;  %v9100_v47 = vsel %vm1801_vm9, %v9098_v40, %v9099_v60  ;;  %v8965_v10 = vld [vmem:[#allocation2 + $0xb8] sm:$0x1]  ;;  %v6859_v4 = vrot.slane %v6857_v22, 1  ;;  %v9105_v35 = vrot.slane %v8967_v18, 1  ;;  %v6864_v49 = vrot.slane %v6862_v58, 1  ;;  %v13850_v18 = vld [vmem:[#allocation11 + $0xe0] sm:$0xff]  }
 0x5ac   :  { %10170 = vmatprep.mubr.bf16.mxu1 %v6841_v0  ;;  %v8966_v24 = vld [vmem:[#allocation2 + $0xc0] sm:$0xfe]  ;;  %v6853_v32 = vsel %vm1224_vm6, %v6848_v37, %v6852_v17  ;;  %v9102_v28 = vrot.slane %v8965_v10, 1  ;;  %v9107_v63 = vrot.slane %v8968_v51, 1  ;;  %v8971_v23 = vld [vmem:[#allocation2 + $0xe8] sm:$0x1] }
 0x5ad   :  { %v8964_v46 = vld [vmem:[#allocation2 + $0xb0] sm:$0xfe]  ;;  %v9104_v14 = vrot.slane %v8966_v24, 1  ;;  %v6874_v12 = vshll.u32 %v6723_v57, 16  ;;  %v9110_v6 = vrot.slane %v8970_v27, 1  ;;  %v9108_v7 = vrot.slane %v8969_v5, 1  ;;  %10412 = vmatpush1.bf16.msra.mxu1 %v13850_v18 }
 0x5ae   :  { %v9101_v39 = vrot.slane %v8964_v46, 1  ;;  %v6871_v36 = vrot.slane %v6869_v61, 1  ;;  %v9111_v31 = vrot.slane %v8971_v23, 1  ;;  %v6867_v29 = vshrl.u32 %v15767_v1, 16  ;;  %v6725_v53 = vld [vmem:[#allocation2 + $0x98] sm:$0x1]  ;;  %10413 = vmatprep.subr.bf16.mxu1 %v15119_v16 }
 0x5af   :  { %12752 = vmatmul.mubr.bf16.gmra.mrb[164].mxu0 %v9097_v30  ;;  %v9106_v41 = vsel %vm1801_vm9, %v9104_v14, %v9105_v35  ;;  %v9109_v48 = vsel %vm1801_vm9, %v9107_v63, %v9108_v7  ;;  %v6876_v62 = vrot.slane %v6874_v12, 1  ;;  %v8974_v8 = vld [vmem:[#allocation2 + $0x100] sm:$0xfe]  ;;  %v6881_v15 = vshll.u32 %v15799_v54, 16  ;;  %v8973_v21 = vld [vmem:[#allocation2 + $0xf8] sm:$0x1] }
 0x5b0   :  { %12755 = vmatprep.mubr.bf16.mxu0 %v9100_v47  ;;  %v9103_v20 = vsel %vm1801_vm9, %v9101_v39, %v9102_v28  ;;  %v6872_v11 = vor.u32 %v6871_v36, %v6867_v29  ;;  %v9113_v44 = vrot.slane %v8972_v13, 1  ;;  %v8975_v0 = vld [vmem:[#allocation2 + $0x108] sm:$0x1]  ;;  %v6886_v52 = vshll.u32 %v6725_v53, 16  ;;  %v8976_v30 = vld [vmem:[#allocation2 + $0x110] sm:$0xfe] }
 0x5b1   :  { %v9116_v19 = vrot.slane %v8974_v8, 1  ;;  %v9114_v2 = vrot.slane %v8973_v21, 1  ;;  %v6883_v40 = vrot.slane %v6881_v15, 1  ;;  %v9117_v56 = vrot.slane %v8975_v0, 1  ;;  %v8977_v3 = vld [vmem:[#allocation2 + $0x118] sm:$0x1] }
 0x5b2   :  { %v6877_v50 = vsel %vm1224_vm6, %v6872_v11, %v6876_v62  ;;  %v6879_v46 = vshrl.u32 %v15799_v54, 16  ;;  %v6888_v25 = vrot.slane %v6886_v52, 1  ;;  %v6727_v17 = vld [vmem:[#allocation2 + $0xa8] sm:$0x1]  ;;  %v9119_v10 = vrot.slane %v8976_v30, 1 }
 0x5b3   :  { %10171 = vmatmul.mubr.bf16.gmra.mrb[60].mxu1 %v15744_v26  ;;  %v6860_v26 = vor.u32 %v6859_v4, %v6855_v43  ;;  %v9115_v60 = vsel %vm1801_vm9, %v9113_v44, %v9114_v2  ;;  %v9120_v33 = vrot.slane %v8977_v3, 1  ;;  %v8978_v37 = vld [vmem:[#allocation2 + $0x140] sm:$0xfe]  ;;  %v6893_v39 = vshll.u32 %v15791_v55, 16  ;;  %v8979_v22 = vld [vmem:[#allocation2 + $0x148] sm:$0x1] }
 0x5b4   :  { %10178 = vmatprep.mubr.bf16.mxu1 %v6853_v32  ;;  %v6884_v47 = vor.u32 %v6883_v40, %v6879_v46  ;;  %v6898_v32 = vshll.u32 %v6727_v17, 16  ;;  %v9122_v28 = vrot.slane %v8978_v37, 1  ;;  %v6891_v4 = vshrl.u32 %v15791_v55, 16  ;;  %v8980_v43 = vld [vmem:[#allocation2 + $0x150] sm:$0xfe]  ;;  %v13851_v44 = vld [vmem:[#allocation11 + $0xe8] sm:$0xff]  }
 0x5b5   :  { %v6865_v42 = vsel %vm1224_vm6, %v6860_v26, %v6864_v49  ;;  %v9121_v58 = vsel %vm1801_vm9, %v9119_v10, %v9120_v33  ;;  %v6895_v14 = vrot.slane %v6893_v39, 1  ;;  %v6729_v49 = vld [vmem:[#allocation2 + $0xb8] sm:$0x1]  ;;  %v8982_v51 = vld [vmem:[#allocation2 + $0x160] sm:$0xfe]  ;;  %v6905_v57 = vshll.u32 %v15823_v9, 16  ;;  %10414 = vmatpush1.bf16.msra.mxu1 %v13851_v44 }
 0x5b6   :  { %v6889_v24 = vsel %vm1224_vm6, %v6884_v47, %v6888_v25  ;;  %v6900_v35 = vrot.slane %v6898_v32, 1  ;;  %v8981_v26 = vld [vmem:[#allocation2 + $0x158] sm:$0x1]  ;;  %v9125_v61 = vrot.slane %v8980_v43, 1  ;;  %v8983_v5 = vld [vmem:[#allocation2 + $0x168] sm:$0x1]  ;;  %10415 = vmatprep.subr.bf16.mxu1 %v15119_v16 }
 0x5b7   :  { %12756 = vmatmul.mubr.bf16.gmra.mrb[168].mxu0 %v9103_v20  ;;  %v9123_v20 = vrot.slane %v8979_v22, 1  ;;  %v9128_v63 = vrot.slane %v8982_v51, 1  ;;  %v9126_v23 = vrot.slane %v8981_v26, 1  ;;  %v6907_v12 = vrot.slane %v6905_v57, 1  ;;  %v8986_v62 = vld [vmem:[#allocation2 + $0x180] sm:$0xfe] }
 0x5b8   :  { %12759 = vmatprep.mubr.bf16.mxu0 %v9106_v41  ;;  %v6896_v41 = vor.u32 %v6895_v14, %v6891_v4  ;;  %v6903_v7 = vshrl.u32 %v15823_v9, 16  ;;  %v8985_v13 = vld [vmem:[#allocation2 + $0x178] sm:$0x1]  ;;  %v8987_v8 = vld [vmem:[#allocation2 + $0x188] sm:$0x1]  ;;  %v9134_v21 = vrot.slane %v8986_v62, 1 }
 0x5b9   :  { %v9127_v34 = vsel %vm1801_vm9, %v9125_v61, %v9126_v23  ;;  %v9132_v0 = vrot.slane %v8985_v13, 1  ;;  %v6915_v40 = vshrl.u32 %v15816_v59, 16  ;;  %v8988_v3 = vld [vmem:[#allocation2 + $0x190] sm:$0xfe]  ;;  %v8990_v46 = vld [vmem:[#allocation2 + $0x1a0] sm:$0xfe] }
 0x5ba   :  { %v6901_v27 = vsel %vm1224_vm6, %v6896_v41, %v6900_v35  ;;  %v6908_v29 = vor.u32 %v6907_v12, %v6903_v7  ;;  %v8989_v25 = vld [vmem:[#allocation2 + $0x198] sm:$0x1]  ;;  %v9137_v47 = vrot.slane %v8988_v3, 1  ;;  %v8991_v10 = vld [vmem:[#allocation2 + $0x1a8] sm:$0x1]  ;;  %v9140_v37 = vrot.slane %v8990_v46, 1 }
 0x5bb   :  { %10179 = vmatmul.mubr.bf16.gmra.mrb[64].mxu1 %v15737_v38  ;;  %v9112_v38 = vsel %vm1801_vm9, %v9110_v6, %v9111_v31  ;;  %v9129_v6 = vrot.slane %v8983_v5, 1  ;;  %v15880_v39 = vld [vmem:[#allocation2 + $0xe0] sm:$0xff]  ;;  %v6735_v43 = vld [vmem:[#allocation2 + $0xe8] sm:$0x1]  ;;  %v13852_v61 = vld [vmem:[#allocation11 + $0xf0] sm:$0xff]  }
 0x5bc   :  { %10186 = vmatprep.mubr.bf16.mxu1 %v6865_v42  ;;  %v6910_v42 = vshll.u32 %v6729_v49, 16  ;;  %v6941_v14 = vshll.u32 %v15880_v39, 16  ;;  %v8994_v35 = vld [vmem:[#allocation2 + $0x1c0] sm:$0xfe]  ;;  %v8995_v51 = vld [vmem:[#allocation2 + $0x1c8] sm:$0x1]  ;;  %10416 = vmatpush1.bf16.msra.mxu1 %v13852_v61 }
 0x5bd   :  { %v9130_v31 = vsel %vm1801_vm9, %v9128_v63, %v9129_v6  ;;  %v9146_v26 = vrot.slane %v8994_v35, 1  ;;  %v6946_v63 = vshll.u32 %v6735_v43, 16  ;;  %v9147_v23 = vrot.slane %v8995_v51, 1  ;;  %10417 = vmatprep.subr.bf16.mxu1 %v15119_v16  ;;  %v8996_v7 = vld [vmem:[#allocation2 + $0x1d0] sm:$0xfe] }
 0x5be   :  { %v6912_v36 = vrot.slane %v6910_v42, 1  ;;  %v6943_v57 = vrot.slane %v6941_v14, 1  ;;  %v6939_v42 = vshrl.u32 %v15880_v39, 16  ;;  %v8999_v13 = vld [vmem:[#allocation2 + $0x1e8] sm:$0x1] }
 0x5bf   :  { %12760 = vmatmul.mubr.bf16.gmra.mrb[172].mxu0 %v9109_v48  ;;  %v8984_v48 = vld [vmem:[#allocation2 + $0x170] sm:$0xfe]  ;;  %v9005_v35 = vld [vmem:[#allocation2 + $0x218] sm:$0x1] }
 0x5c0   :  { %12763 = vmatprep.mubr.bf16.mxu0 %v9112_v38  ;;  %v6917_v38 = vshll.u32 %v15816_v59, 16  ;;  %v6913_v53 = vsel %vm1224_vm6, %v6908_v29, %v6912_v36  ;;  %v9131_v11 = vrot.slane %v8984_v48, 1  ;;  %v6944_v6 = vor.u32 %v6943_v57, %v6939_v42  ;;  %v8997_v48 = vld [vmem:[#allocation2 + $0x1d8] sm:$0x1]  ;;  %v15895_v29 = vld [vmem:[#allocation2 + $0x120] sm:$0xff] }
 0x5c1   :  { %v6948_v36 = vrot.slane %v6946_v63, 1  ;;  %v6965_v44 = vshll.u32 %v15895_v29, 16  ;;  %v6963_v3 = vshrl.u32 %v15895_v29, 16  ;;  %v15914_v57 = vld [vmem:[#allocation2 + $0x140] sm:$0xff] }
 0x5c2   :  { %v6919_v52 = vrot.slane %v6917_v38, 1  ;;  %v9133_v2 = vsel %vm1801_vm9, %v9131_v11, %v9132_v0  ;;  %v9149_v38 = vrot.slane %v8996_v7, 1  ;;  %v9153_v0 = vrot.slane %v8999_v13, 1 }
 0x5c3   :  { %10187 = vmatmul.mubr.bf16.gmra.mrb[68].mxu1 %v15773_v45  ;;  %v9118_v45 = vsel %vm1801_vm9, %v9116_v19, %v9117_v56  ;;  %v9135_v19 = vrot.slane %v8987_v8, 1  ;;  %v6949_v62 = vsel %vm1224_vm6, %v6944_v6, %v6948_v36  ;;  %v9150_v8 = vrot.slane %v8997_v48, 1 }
 0x5c4   :  { %10194 = vmatprep.mubr.bf16.mxu1 %v6877_v50  ;;  %v15871_v50 = vld [vmem:[#allocation2 + $0xd0] sm:$0xff]  ;;  %v6987_v48 = vshrl.u32 %v15914_v57, 16 }
 0x5c5   :  { %v9136_v30 = vsel %vm1801_vm9, %v9134_v21, %v9135_v19  ;;  %v6927_v22 = vshrl.u32 %v15871_v50, 16  ;;  %v9151_v19 = vsel %vm1801_vm9, %v9149_v38, %v9150_v8 }
 0x5c7   :  { %12764 = vmatmul.mubr.bf16.gmra.mrb[176].mxu0 %v9115_v60  ;;  %v6920_v60 = vor.u32 %v6919_v52, %v6915_v40  ;;  %v6739_v52 = vld [vmem:[#allocation2 + $0x128] sm:$0x1] }
 0x5c8   :  { %12767 = vmatprep.mubr.bf16.mxu0 %v9118_v45  ;;  %v6733_v45 = vld [vmem:[#allocation2 + $0xd8] sm:$0x1]  ;;  %v6970_v46 = vshll.u32 %v6739_v52, 16 }
 0x5c9   :  { %v6934_v32 = vshll.u32 %v6733_v45, 16 }
 0x5cb   :  { %10195 = vmatmul.mubr.bf16.gmra.mrb[72].mxu1 %v15767_v1  ;;  %v9124_v1 = vsel %vm1801_vm9, %v9122_v28, %v9123_v20  ;;  %v9141_v28 = vrot.slane %v8991_v10, 1  ;;  %v8992_v20 = vld [vmem:[#allocation2 + $0x1b0] sm:$0xfe]  ;;  %v6936_v4 = vrot.slane %v6934_v32, 1  ;;  %v13853_v32 = vld [vmem:[#allocation11 + $0xf8] sm:$0xff]  }
 0x5cc   :  { %10202 = vmatprep.mubr.bf16.mxu1 %v6889_v24  ;;  %v9138_v24 = vrot.slane %v8989_v25, 1  ;;  %v9143_v41 = vrot.slane %v8992_v20, 1  ;;  %v9001_v25 = vld [vmem:[#allocation2 + $0x1f8] sm:$0x1]  ;;  %10418 = vmatpush1.bf16.msra.mxu1 %v13853_v32  ;;  %v9006_v20 = vld [vmem:[#allocation2 + $0x220] sm:$0xfe] }
 0x5cd   :  { %10676 = vmatprep.subr.bf16.mxu1 %v15119_v16  ;;  %v9164_v51 = vrot.slane %v9006_v20, 1 }
 0x5ce   :  { %v9139_v18 = vsel %vm1801_vm9, %v9137_v47, %v9138_v24  ;;  %v9003_v47 = vld [vmem:[#allocation2 + $0x208] sm:$0x1] }
 0x5cf   :  { %12768 = vmatmul.mubr.bf16.gmra.mrb[180].mxu0 %v9121_v58 }
 0x5d0   :  { %12771 = vmatprep.mubr.bf16.mxu0 %v9124_v1  ;;  %v8993_v1 = vld [vmem:[#allocation2 + $0x1b8] sm:$0x1] }
 0x5d1   :  { %v9144_v5 = vrot.slane %v8993_v1, 1  ;;  %v6741_v1 = vld [vmem:[#allocation2 + $0x138] sm:$0x1] }
 0x5d3   :  { %10203 = vmatmul.mubr.bf16.gmra.mrb[76].mxu1 %v15799_v54  ;;  %v6731_v54 = vld [vmem:[#allocation2 + $0xc8] sm:$0x1]  ;;  %v9145_v12 = vsel %vm1801_vm9, %v9143_v41, %v9144_v5  ;;  %v6982_v5 = vshll.u32 %v6741_v1, 16 }
 0x5d4   :  { %10210 = vmatprep.mubr.bf16.mxu1 %v6901_v27  ;;  %v6922_v15 = vshll.u32 %v6731_v54, 16  ;;  %v15888_v27 = vld [vmem:[#allocation2 + $0xf0] sm:$0xff]  ;;  %v6737_v54 = vld [vmem:[#allocation2 + $0xf8] sm:$0x1] }
 0x5d5   :  { %v6958_v21 = vshll.u32 %v6737_v54, 16 }
 0x5d6   :  { %v6924_v56 = vrot.slane %v6922_v15, 1  ;;  %v6951_v15 = vshrl.u32 %v15888_v27, 16 }
 0x5d7   :  { %12772 = vmatmul.mubr.bf16.gmra.mrb[184].mxu0 %v9127_v34  ;;  %v9148_v34 = vsel %vm1801_vm9, %v9146_v26, %v9147_v23  ;;  %v9162_v26 = vrot.slane %v9005_v35, 1 }
 0x5d8   :  { %12775 = vmatprep.mubr.bf16.mxu0 %v9130_v31  ;;  %v6925_v17 = vsel %vm1224_vm6, %v6920_v60, %v6924_v56  ;;  %v8998_v31 = vld [vmem:[#allocation2 + $0x1e0] sm:$0xfe]  ;;  %v9000_v56 = vld [vmem:[#allocation2 + $0x1f0] sm:$0xfe]  ;;  %v6967_v60 = vrot.slane %v6965_v44, 1 }
 0x5d9   :  { %v9152_v11 = vrot.slane %v8998_v31, 1  ;;  %v15922_v31 = vld [vmem:[#allocation2 + $0x150] sm:$0xff] }
 0x5da   :  { %v6968_v24 = vor.u32 %v6967_v60, %v6963_v3  ;;  %v7001_v38 = vshll.u32 %v15922_v31, 16 }
 0x5db   :  { %10211 = vmatmul.mubr.bf16.gmra.mrb[80].mxu1 %v15791_v55  ;;  %v6929_v55 = vshll.u32 %v15871_v50, 16  ;;  %v9154_v40 = vsel %vm1801_vm9, %v9152_v11, %v9153_v0 }
 0x5dc   :  { %10218 = vmatprep.mubr.bf16.mxu1 %v6913_v53  ;;  %v7003_v8 = vrot.slane %v7001_v38, 1 }
 0x5dd   :  { %v6931_v33 = vrot.slane %v6929_v55, 1  ;;  %v6960_v55 = vrot.slane %v6958_v21, 1 }
 0x5df   :  { %12776 = vmatmul.mubr.bf16.gmra.mrb[188].mxu0 %v9133_v2  ;;  %v6932_v58 = vor.u32 %v6931_v33, %v6927_v22  ;;  %v15906_v33 = vld [vmem:[#allocation2 + $0x130] sm:$0xff]  ;;  %v6972_v22 = vrot.slane %v6970_v46, 1 }
 0x5e0   :  { %12779 = vmatprep.mubr.bf16.mxu0 %v9136_v30  ;;  %v9002_v30 = vld [vmem:[#allocation2 + $0x200] sm:$0xfe]  ;;  %v6975_v61 = vshrl.u32 %v15906_v33, 16 }
 0x5e1   :  { %v6937_v49 = vsel %vm1224_vm6, %v6932_v58, %v6936_v4  ;;  %v9158_v10 = vrot.slane %v9002_v30, 1  ;;  %v6977_v58 = vshll.u32 %v15906_v33, 16  ;;  %v6973_v4 = vsel %vm1224_vm6, %v6968_v24, %v6972_v22 }
 0x5e3   :  { %10219 = vmatmul.mubr.bf16.gmra.mrb[84].mxu1 %v15823_v9  ;;  %v9142_v9 = vsel %vm1801_vm9, %v9140_v37, %v9141_v28  ;;  %v9156_v37 = vrot.slane %v9001_v25, 1  ;;  %v9159_v28 = vrot.slane %v9003_v47, 1  ;;  %v6979_v41 = vrot.slane %v6977_v58, 1  ;;  %v6749_v25 = vld [vmem:[#allocation2 + $0x178] sm:$0x1]  ;;  %v15940_v47 = vld [vmem:[#allocation2 + $0x180] sm:$0xff] }
 0x5e4   :  { %10226 = vmatprep.mubr.bf16.mxu1 %v6925_v17  ;;  %v9155_v17 = vrot.slane %v9000_v56, 1  ;;  %v15934_v56 = vld [vmem:[#allocation2 + $0x170] sm:$0xff]  ;;  %v7037_v22 = vshll.u32 %v15940_v47, 16 }
 0x5e5   :  { %v9160_v14 = vsel %vm1801_vm9, %v9158_v10, %v9159_v28  ;;  %v6980_v23 = vor.u32 %v6979_v41, %v6975_v61  ;;  %v7025_v60 = vshll.u32 %v15934_v56, 16  ;;  %v7023_v10 = vshrl.u32 %v15934_v56, 16  ;;  %v6751_v28 = vld [vmem:[#allocation2 + $0x188] sm:$0x1] }
 0x5e6   :  { %v7039_v58 = vrot.slane %v7037_v22, 1  ;;  %v7042_v20 = vshll.u32 %v6751_v28, 16  ;;  %v6763_v28 = vld [vmem:[#allocation2 + $0x1e8] sm:$0x1] }
 0x5e7   :  { %12780 = vmatmul.mubr.bf16.gmra.mrb[192].mxu0 %v9139_v18  ;;  %v9157_v18 = vsel %vm1801_vm9, %v9155_v17, %v9156_v37  ;;  %v7027_v17 = vrot.slane %v7025_v60, 1  ;;  %v7030_v37 = vshll.u32 %v6749_v25, 16 }
 0x5e8   :  { %12783 = vmatprep.mubr.bf16.mxu0 %v9142_v9  ;;  %v9004_v9 = vld [vmem:[#allocation2 + $0x210] sm:$0xfe]  ;;  %v7044_v1 = vrot.slane %v7042_v20, 1 }
 0x5e9   :  { %v9161_v43 = vrot.slane %v9004_v9, 1  ;;  %v7028_v24 = vor.u32 %v7027_v17, %v7023_v10  ;;  %v7032_v32 = vrot.slane %v7030_v37, 1  ;;  %v7035_v9 = vshrl.u32 %v15940_v47, 16  ;;  %v15976_v17 = vld [vmem:[#allocation2 + $0x1e0] sm:$0xff] }
 0x5ea   :  { %v7109_v22 = vshll.u32 %v15976_v17, 16  ;;  %v7107_v20 = vshrl.u32 %v15976_v17, 16 }
 0x5eb   :  { %10227 = vmatmul.mubr.bf16.gmra.mrb[88].mxu1 %v15816_v59  ;;  %v6953_v59 = vshll.u32 %v15888_v27, 16  ;;  %v9163_v63 = vsel %vm1801_vm9, %v9161_v43, %v9162_v26  ;;  %v6753_v43 = vld [vmem:[#allocation2 + $0x198] sm:$0x1] }
 0x5ec   :  { %10234 = vmatprep.mubr.bf16.mxu1 %v6937_v49  ;;  %v9007_v49 = vld [vmem:[#allocation2 + $0x228] sm:$0x1]  ;;  %v7054_v61 = vshll.u32 %v6753_v43, 16 }
 0x5ed   :  { %v6955_v53 = vrot.slane %v6953_v59, 1  ;;  %v9165_v42 = vrot.slane %v9007_v49, 1  ;;  %v6984_v59 = vrot.slane %v6982_v5, 1 }
 0x5ef   :  { %12784 = vmatmul.mubr.bf16.gmra.mrb[196].mxu0 %v9145_v12  ;;  %v6956_v2 = vor.u32 %v6955_v53, %v6951_v15  ;;  %v6989_v12 = vshll.u32 %v15914_v57, 16  ;;  %v9166_v6 = vsel %vm1801_vm9, %v9164_v51, %v9165_v42  ;;  %v6985_v7 = vsel %vm1224_vm6, %v6980_v23, %v6984_v59  ;;  %v6745_v53 = vld [vmem:[#allocation2 + $0x158] sm:$0x1]  ;;  %v15952_v51 = vld [vmem:[#allocation2 + $0x1a0] sm:$0xff]  ;;  %v6755_v23 = vld [vmem:[#allocation2 + $0x1a8] sm:$0x1] }
 0x5f0   :  { %12787 = vmatprep.mubr.bf16.mxu0 %v9148_v34  ;;  %v6743_v34 = vld [vmem:[#allocation2 + $0x148] sm:$0x1]  ;;  %v6999_v15 = vshrl.u32 %v15922_v31, 16  ;;  %v7006_v21 = vshll.u32 %v6745_v53, 16  ;;  %v7061_v42 = vshll.u32 %v15952_v51, 16  ;;  %v15958_v59 = vld [vmem:[#allocation2 + $0x1b0] sm:$0xff] }
 0x5f1   :  { %v6961_v45 = vsel %vm1224_vm6, %v6956_v2, %v6960_v55  ;;  %v6991_v36 = vrot.slane %v6989_v12, 1  ;;  %v6994_v54 = vshll.u32 %v6743_v34, 16  ;;  %v7059_v34 = vshrl.u32 %v15952_v51, 16  ;;  %v15964_v53 = vld [vmem:[#allocation2 + $0x1c0] sm:$0xff] }
 0x5f2   :  { %v7004_v44 = vor.u32 %v7003_v8, %v6999_v15  ;;  %v7008_v52 = vrot.slane %v7006_v21, 1  ;;  %v7085_v21 = vshll.u32 %v15964_v53, 16 }
 0x5f3   :  { %10235 = vmatmul.mubr.bf16.gmra.mrb[92].mxu1 %v15871_v50  ;;  %v6996_v13 = vrot.slane %v6994_v54, 1 }
 0x5f4   :  { %10242 = vmatprep.mubr.bf16.mxu1 %v6949_v62  ;;  %v6992_v62 = vor.u32 %v6991_v36, %v6987_v48  ;;  %v7009_v2 = vsel %vm1224_vm6, %v7004_v44, %v7008_v52  ;;  %v7073_v48 = vshll.u32 %v15958_v59, 16 }
 0x5f6   :  { %v6997_v11 = vsel %vm1224_vm6, %v6992_v62, %v6996_v13  ;;  %v6757_v62 = vld [vmem:[#allocation2 + $0x1b8] sm:$0x1]  ;;  %v7075_v13 = vrot.slane %v7073_v48, 1 }
 0x5f7   :  { %12788 = vmatmul.mubr.bf16.gmra.mrb[200].mxu0 %v9151_v19  ;;  %v6747_v19 = vld [vmem:[#allocation2 + $0x168] sm:$0x1]  ;;  %v7078_v8 = vshll.u32 %v6757_v62, 16 }
 0x5f8   :  { %12791 = vmatprep.mubr.bf16.mxu0 %v9154_v40  ;;  %v7018_v30 = vshll.u32 %v6747_v19, 16  ;;  %v7087_v19 = vrot.slane %v7085_v21, 1 }
 0x5f9   :  { %v7080_v44 = vrot.slane %v7078_v8, 1 }
 0x5fa   :  { %v7020_v46 = vrot.slane %v7018_v30, 1 }
 0x5fb   :  { %10243 = vmatmul.mubr.bf16.gmra.mrb[96].mxu1 %v15880_v39 }
 0x5fc   :  { %10250 = vmatprep.mubr.bf16.mxu1 %v6961_v45 }
 0x5ff   :  { %12792 = vmatmul.mubr.bf16.gmra.mrb[204].mxu0 %v9157_v18  ;;  %v7033_v18 = vsel %vm1224_vm6, %v7028_v24, %v7032_v32 }
 0x600   :  { %12795 = vmatprep.mubr.bf16.mxu0 %v9160_v14  ;;  %v15946_v14 = vld [vmem:[#allocation2 + $0x190] sm:$0xff] }
 0x601   :  { %v7049_v35 = vshll.u32 %v15946_v14, 16  ;;  %v7047_v26 = vshrl.u32 %v15946_v14, 16 }
 0x603   :  { %10251 = vmatmul.mubr.bf16.gmra.mrb[100].mxu1 %v15888_v27  ;;  %v7051_v41 = vrot.slane %v7049_v35, 1 }
 0x604   :  { %10258 = vmatprep.mubr.bf16.mxu1 %v6973_v4  ;;  %v7040_v4 = vor.u32 %v7039_v58, %v7035_v9  ;;  %v7111_v58 = vrot.slane %v7109_v22, 1  ;;  %v15982_v9 = vld [vmem:[#allocation2 + $0x1f0] sm:$0xff] }
 0x605   :  { %v7052_v5 = vor.u32 %v7051_v41, %v7047_v26 }
 0x606   :  { %v7045_v49 = vsel %vm1224_vm6, %v7040_v4, %v7044_v1  ;;  %v7114_v4 = vshll.u32 %v6763_v28, 16  ;;  %v7112_v35 = vor.u32 %v7111_v58, %v7107_v20  ;;  %v7121_v1 = vshll.u32 %v15982_v9, 16  ;;  %v7219_v28 = vld [vmem:[#allocation2 + $0x8] sm:$0x1]  ;;  %v16030_v58 = vld [vmem:[#allocation2 + $0x10] sm:$0xff] }
 0x607   :  { %12796 = vmatmul.mubr.bf16.gmra.mrb[208].mxu0 %v9163_v63  ;;  %v7056_v63 = vrot.slane %v7054_v61, 1  ;;  %v15988_v61 = vld [vmem:[#allocation2 + $0x200] sm:$0xff] }
 0x608   :  { %12799 = vmatprep.mubr.bf16.mxu0 %v9166_v6  ;;  %v7063_v6 = vrot.slane %v7061_v42, 1  ;;  %v7116_v43 = vrot.slane %v7114_v4, 1  ;;  %v7123_v26 = vrot.slane %v7121_v1, 1 }
 0x609   :  { %v7057_v12 = vsel %vm1224_vm6, %v7052_v5, %v7056_v63  ;;  %v7119_v5 = vshrl.u32 %v15982_v9, 16 }
 0x60a   :  { %v7064_v36 = vor.u32 %v7063_v6, %v7059_v34  ;;  %v7117_v41 = vsel %vm1224_vm6, %v7112_v35, %v7116_v43  ;;  %v7347_v35 = vrot.slane %v7219_v28, 1 }
 0x60b   :  { %10259 = vmatmul.mubr.bf16.gmra.mrb[104].mxu1 %v15895_v29  ;;  %v15928_v29 = vld [vmem:[#allocation2 + $0x160] sm:$0xff]  ;;  %v7124_v63 = vor.u32 %v7123_v26, %v7119_v5 }
 0x60c   :  { %10266 = vmatprep.mubr.bf16.mxu1 %v6985_v7  ;;  %v7013_v0 = vshll.u32 %v15928_v29, 16  ;;  %v7011_v55 = vshrl.u32 %v15928_v29, 16  ;;  %v7066_v7 = vshll.u32 %v6755_v23, 16  ;;  %v7133_v23 = vshll.u32 %v15988_v61, 16  ;;  %v16042_v5 = vld [vmem:[#allocation2 + $0x20] sm:$0xff] }
 0x60e   :  { %v7015_v40 = vrot.slane %v7013_v0, 1  ;;  %v7068_v54 = vrot.slane %v7066_v7, 1  ;;  %v6759_v0 = vld [vmem:[#allocation2 + $0x1c8] sm:$0x1]  ;;  %v7135_v62 = vrot.slane %v7133_v23, 1 }
 0x60f   :  { %v13855_v23 = vld [vmem:[#allocation11 + $0x108] sm:$0xff]  }
 0x610   :  { %v7016_v3 = vor.u32 %v7015_v40, %v7011_v55  ;;  %v7069_v38 = vsel %vm1224_vm6, %v7064_v36, %v7068_v54  ;;  %v7083_v40 = vshrl.u32 %v15964_v53, 16  ;;  %v7090_v55 = vshll.u32 %v6759_v0, 16  ;;  %v6767_v36 = vld [vmem:[#allocation2 + $0x208] sm:$0x1] }
 0x612   :  { %v7021_v45 = vsel %vm1224_vm6, %v7016_v3, %v7020_v46  ;;  %v7088_v30 = vor.u32 %v7087_v19, %v7083_v40  ;;  %v7092_v60 = vrot.slane %v7090_v55, 1  ;;  %v6761_v46 = vld [vmem:[#allocation2 + $0x1d8] sm:$0x1] }
 0x613   :  { %10267 = vmatmul.mubr.bf16.gmra.mrb[108].mxu1 %v15906_v33  ;;  %v7102_v37 = vshll.u32 %v6761_v46, 16 }
 0x614   :  { %10274 = vmatprep.mubr.bf16.mxu1 %v6997_v11  ;;  %v7071_v11 = vshrl.u32 %v15958_v59, 16  ;;  %v7093_v25 = vsel %vm1224_vm6, %v7088_v30, %v7092_v60 }
 0x615   :  { %v7104_v32 = vrot.slane %v7102_v37, 1 }
 0x616   :  { %v7076_v15 = vor.u32 %v7075_v13, %v7071_v11  ;;  %v7131_v13 = vshrl.u32 %v15988_v61, 16  ;;  %v7138_v11 = vshll.u32 %v6767_v36, 16  ;;  %v7221_v36 = vld [vmem:[#allocation2 + $0x18] sm:$0x1] }
 0x618   :  { %v7081_v52 = vsel %vm1224_vm6, %v7076_v15, %v7080_v44  ;;  %v7136_v8 = vor.u32 %v7135_v62, %v7131_v13  ;;  %v7140_v21 = vrot.slane %v7138_v11, 1  ;;  %v6769_v44 = vld [vmem:[#allocation2 + $0x218] sm:$0x1]  ;;  %v7350_v13 = vrot.slane %v7221_v36, 1  ;;  %v13856_v11 = vld [vmem:[#allocation11 + $0x110] sm:$0xff]  }
 0x619   :  { %v7225_v36 = vld [vmem:[#allocation2 + $0x38] sm:$0x1] }
 0x61b   :  { %10275 = vmatmul.mubr.bf16.gmra.mrb[112].mxu1 %v15914_v57 }
 0x61c   :  { %10282 = vmatprep.mubr.bf16.mxu1 %v7009_v2  ;;  %v15970_v2 = vld [vmem:[#allocation2 + $0x1d0] sm:$0xff] }
 0x61d   :  { %v7097_v3 = vshll.u32 %v15970_v2, 16  ;;  %v7095_v10 = vshrl.u32 %v15970_v2, 16 }
 0x623   :  { %10283 = vmatmul.mubr.bf16.gmra.mrb[116].mxu1 %v15922_v31 }
 0x624   :  { %10290 = vmatprep.mubr.bf16.mxu1 %v7021_v45  ;;  %v7099_v45 = vrot.slane %v7097_v3, 1  ;;  %v7150_v3 = vshll.u32 %v6769_v44, 16  ;;  %v7222_v44 = vld [vmem:[#allocation2 + $0x20] sm:$0xfe] }
 0x626   :  { %v7100_v24 = vor.u32 %v7099_v45, %v7095_v10 }
 0x62b   :  { %10291 = vmatmul.mubr.bf16.gmra.mrb[120].mxu1 %v15928_v29 }
 0x62c   :  { %10298 = vmatprep.mubr.bf16.mxu1 %v7033_v18  ;;  %v7105_v18 = vsel %vm1224_vm6, %v7100_v24, %v7104_v32  ;;  %v7218_v32 = vld [vmem:[#allocation2] sm:$0xfe] }
 0x62d   :  { %v7346_v4 = vrot.slane %v7218_v32, 1  ;;  %v13858_v32 = vld [vmem:[#allocation11 + $0x120] sm:$0xff]  }
 0x633   :  { %10299 = vmatmul.mubr.bf16.gmra.mrb[124].mxu1 %v15934_v56 }
 0x634   :  { %10306 = vmatprep.mubr.bf16.mxu1 %v7045_v49  ;;  %v6765_v49 = vld [vmem:[#allocation2 + $0x1f8] sm:$0x1] }
 0x635   :  { %v7126_v42 = vshll.u32 %v6765_v49, 16  ;;  %v7348_v49 = vsel %vm1801_vm9, %v7346_v4, %v7347_v35  ;;  %v16070_v35 = vld [vmem:[#allocation2 + $0x40] sm:$0xff] }
 0x637   :  { %v7128_v34 = vrot.slane %v7126_v42, 1  ;;  %v7220_v42 = vld [vmem:[#allocation2 + $0x10] sm:$0xfe] }
 0x638   :  { %v7349_v62 = vrot.slane %v7220_v42, 1  ;;  %v13859_v42 = vld [vmem:[#allocation11 + $0x128] sm:$0xff]  }
 0x639   :  { %v7129_v48 = vsel %vm1224_vm6, %v7124_v63, %v7128_v34 }
 0x63b   :  { %10307 = vmatmul.mubr.bf16.gmra.mrb[128].mxu1 %v15940_v47 }
 0x63c   :  { %10314 = vmatprep.mubr.bf16.mxu1 %v7057_v12 }
 0x643   :  { %10315 = vmatmul.mubr.bf16.gmra.mrb[132].mxu1 %v15946_v14 }
 0x644   :  { %10322 = vmatprep.mubr.bf16.mxu1 %v7069_v38  ;;  %v16002_v38 = vld [vmem:[#allocation2 + $0x210] sm:$0xff] }
 0x645   :  { %v7145_v15 = vshll.u32 %v16002_v38, 16  ;;  %v7143_v30 = vshrl.u32 %v16002_v38, 16 }
 0x647   :  { %v7147_v19 = vrot.slane %v7145_v15, 1 }
 0x649   :  { %v7148_v46 = vor.u32 %v7147_v19, %v7143_v30  ;;  %v13857_v19 = vld [vmem:[#allocation11 + $0x118] sm:$0xff]  }
 0x64b   :  { %10323 = vmatmul.mubr.bf16.gmra.mrb[136].mxu1 %v15952_v51 }
 0x64c   :  { %10330 = vmatprep.mubr.bf16.mxu1 %v7081_v52  ;;  %v7141_v52 = vsel %vm1224_vm6, %v7136_v8, %v7140_v21  ;;  %v7351_v8 = vsel %vm1801_vm9, %v7349_v62, %v7350_v13  ;;  %v16056_v21 = vld [vmem:[#allocation2 + $0x30] sm:$0xff] }
 0x653   :  { %10331 = vmatmul.mubr.bf16.gmra.mrb[140].mxu1 %v15958_v59 }
 0x654   :  { %10338 = vmatprep.mubr.bf16.mxu1 %v7093_v25  ;;  %v7152_v25 = vrot.slane %v7150_v3, 1  ;;  %v7223_v3 = vld [vmem:[#allocation2 + $0x28] sm:$0x1] }
 0x656   :  { %v7153_v10 = vsel %vm1224_vm6, %v7148_v46, %v7152_v25  ;;  %v7352_v25 = vrot.slane %v7222_v44, 1 }
 0x65b   :  { %10339 = vmatmul.mubr.bf16.gmra.mrb[144].mxu1 %v15964_v53 }
 0x65c   :  { %10346 = vmatprep.mubr.bf16.mxu1 %v7105_v18 }
 0x663   :  { %10347 = vmatmul.mubr.bf16.gmra.mrb[148].mxu1 %v15970_v2 }
 0x664   :  { %10354 = vmatprep.mubr.bf16.mxu1 %v7117_v41  ;;  %v13854_v41 = vld [vmem:[#allocation11 + $0x100] sm:$0xff]  }
 0x668   :  { %v15992_v12 = vpop.f32.mrb[152].mxu0 }
 0x669   :  { %v15994_v6 = vpop.f32.mrb[153].mxu0 }
 0x66a   :  { %v15996_v7 = vpop.f32.mrb[154].mxu0 }
 0x66b   :  { %10355 = vmatmul.mubr.bf16.gmra.mrb[152].mxu1 %v15976_v17  ;;  %v16000_v54 = vpop.f32.mrb[155].mxu0 }
 0x66c   :  { %10362 = vmatprep.mubr.bf16.mxu1 %v7129_v48 }
 0x672   :  { %v16006_v0 = vpop.f32.mrb[156].mxu0 }
 0x673   :  { %10363 = vmatmul.mubr.bf16.gmra.mrb[156].mxu1 %v15982_v9  ;;  %v16010_v40 = vpop.f32.mrb[157].mxu0 }
 0x674   :  { %10370 = vmatprep.mubr.bf16.mxu1 %v7141_v52  ;;  %v16012_v55 = vpop.f32.mrb[158].mxu0 }
 0x675   :  { %v16015_v60 = vpop.f32.mrb[159].mxu0 }
 0x67a   :  { %v16017_v45 = vpop.f32.mrb[160].mxu0 }
 0x67b   :  { %17118 = vst [vmem:[#allocation20_spill] sm:$0xff] %v16017_v45  ;;  %10371 = vmatmul.mubr.bf16.gmra.mrb[160].mxu1 %v15988_v61  ;;  %v16021_v37 = vpop.f32.mrb[161].mxu0 }
 0x67c   :  { %17119 = vst [vmem:[#allocation21_spill] sm:$0xff] %v16021_v37  ;;  %10378 = vmatprep.mubr.bf16.mxu1 %v7153_v10  ;;  %v16023_v24 = vpop.f32.mrb[162].mxu0  ;;  %v7353_v10 = vrot.slane %v7223_v3, 1 }
 0x67d   :  { %17120 = vst [vmem:[#allocation22_spill] sm:$0xff] %v16023_v24  ;;  %v16025_v22 = vpop.f32.mrb[163].mxu0 }
 0x67e   :  { %17121 = vst [vmem:[#allocation23_spill] sm:$0xff] %v16025_v22  ;;  %v7354_v28 = vsel %vm1801_vm9, %v7352_v25, %v7353_v10  ;;  %v7226_v25 = vld [vmem:[#allocation2 + $0x40] sm:$0xfe] }
 0x682   :  { %v16027_v18 = vpop.f32.mrb[164].mxu0 }
 0x683   :  { %17122 = vst [vmem:[#allocation24_spill] sm:$0xff] %v16027_v18  ;;  %10379 = vmatmul.mubr.bf16.gmra.mrb[164].mxu1 %v16002_v38  ;;  %v16032_v20 = vpop.f32.mrb[165].mxu0 }
 0x684   :  { %17123 = vst [vmem:[#allocation25_spill] sm:$0xff] %v16032_v20  ;;  %10419 = vmatprep.mubr.bf16.mxu1 %v16030_v58  ;;  %v16035_v1 = vpop.f32.mrb[166].mxu0  ;;  %v8436_v20 = vld [vmem:[#allocation2 + $0x30] sm:$0xff] }
 0x685   :  { %17124 = vst [vmem:[#allocation26_spill] sm:$0xff] %v16035_v1  ;;  %v16037_v43 = vpop.f32.mrb[167].mxu0 }
 0x686   :  { %17125 = vst [vmem:[#allocation27_spill] sm:$0xff] %v16037_v43 }
 0x68a   :  { %v16040_v26 = vpop.f32.mrb[168].mxu0 }
 0x68b   :  { %17126 = vst [vmem:[#allocation28_spill] sm:$0xff] %v16040_v26  ;;  %10420 = vmatmul.mubr.bf16.vlgmr.msra.gmra.mrb[40].mxu1 %v7348_v49  ;;  %v16044_v63 = vpop.f32.mrb[169].mxu0  ;;  %v7224_v49 = vld [vmem:[#allocation2 + $0x30] sm:$0xfe] }
 0x68c   :  { %17127 = vst [vmem:[#allocation29_spill] sm:$0xff] %v16044_v63  ;;  %10427 = vmatprep.mubr.bf16.mxu1 %v16042_v5  ;;  %10677 = vmatpush1.bf16.msra.mxu1 %v13854_v41  ;;  %v16047_v34 = vpop.f32.mrb[170].mxu0  ;;  %v7355_v13 = vrot.slane %v7224_v49, 1  ;;  %v7227_v49 = vld [vmem:[#allocation2 + $0x48] sm:$0x1] }
 0x68d   :  { %17128 = vst [vmem:[#allocation30_spill] sm:$0xff] %v16047_v34  ;;  %10678 = vmatprep.subr.bf16.mxu1 %v15119_v16  ;;  %v16050_v48 = vpop.f32.mrb[171].mxu0 }
 0x68e   :  { %17129 = vst [vmem:[#allocation31_spill] sm:$0xff] %v16050_v48 }
 0x690   :  { %10679 = vmatpush1.bf16.msra.mxu1 %v13855_v23 }
 0x691   :  { %10680 = vmatprep.subr.bf16.mxu1 %v15119_v16 }
 0x692   :  { %v16054_v15 = vpop.f32.mrb[172].mxu0 }
 0x693   :  { %17130 = vst [vmem:[#allocation32_spill] sm:$0xff] %v16054_v15  ;;  %10428 = vmatmul.mubr.bf16.gmra.mrb[44].mxu1 %v7351_v8  ;;  %v16058_v52 = vpop.f32.mrb[173].mxu0  ;;  %v13860_v8 = vld [vmem:[#allocation11 + $0x130] sm:$0xff]  }
 0x694   :  { %17131 = vst [vmem:[#allocation33_spill] sm:$0xff] %v16058_v52  ;;  %10435 = vmatprep.mubr.bf16.mxu1 %v16056_v21  ;;  %10681 = vmatpush1.bf16.msra.mxu1 %v13856_v11  ;;  %v16061_v30 = vpop.f32.mrb[174].mxu0  ;;  %v7356_v11 = vrot.slane %v7225_v36, 1  ;;  %v7358_v36 = vrot.slane %v7226_v25, 1 }
 0x695   :  { %17132 = vst [vmem:[#allocation34_spill] sm:$0xff] %v16061_v30  ;;  %10682 = vmatprep.subr.bf16.mxu1 %v15119_v16  ;;  %v16064_v46 = vpop.f32.mrb[175].mxu0 }
 0x696   :  { %17133 = vst [vmem:[#allocation35_spill] sm:$0xff] %v16064_v46  ;;  %v7357_v44 = vsel %vm1801_vm9, %v7355_v13, %v7356_v11  ;;  %v7359_v13 = vrot.slane %v7227_v49, 1  ;;  %v13862_v11 = vld [vmem:[#allocation11 + $0x140] sm:$0xff]  }
 0x698   :  { %10683 = vmatpush1.bf16.msra.mxu1 %v13857_v19  ;;  %v16082_v19 = vld [vmem:[#allocation2 + $0x50] sm:$0xff] }
 0x699   :  { %10684 = vmatprep.subr.bf16.mxu1 %v15119_v16 }
 0x69a   :  { %v16068_v4 = vpop.f32.mrb[176].mxu0 }
 0x69b   :  { %17134 = vst [vmem:[#allocation36_spill] sm:$0xff] %v16068_v4  ;;  %10436 = vmatmul.mubr.bf16.gmra.mrb[48].mxu1 %v7354_v28  ;;  %v16072_v41 = vpop.f32.mrb[177].mxu0 }
 0x69c   :  { %17135 = vst [vmem:[#allocation37_spill] sm:$0xff] %v16072_v41  ;;  %10443 = vmatprep.mubr.bf16.mxu1 %v16070_v35  ;;  %10685 = vmatpush1.bf16.msra.mxu1 %v13858_v32  ;;  %v16075_v23 = vpop.f32.mrb[178].mxu0  ;;  %v13861_v32 = vld [vmem:[#allocation11 + $0x138] sm:$0xff]  }
 0x69d   :  { %17136 = vst [vmem:[#allocation38_spill] sm:$0xff] %v16075_v23  ;;  %10686 = vmatprep.subr.bf16.mxu1 %v15119_v16  ;;  %v16078_v62 = vpop.f32.mrb[179].mxu0  ;;  %v7230_v23 = vld [vmem:[#allocation2 + $0x60] sm:$0xfe] }
 0x69e   :  { %17137 = vst [vmem:[#allocation39_spill] sm:$0xff] %v16078_v62  ;;  %v7233_v62 = vld [vmem:[#allocation2 + $0x78] sm:$0x1] }
 0x6a0   :  { %10687 = vmatpush1.bf16.msra.mxu1 %v13859_v42 }
 0x6a1   :  { %10688 = vmatprep.subr.bf16.mxu1 %v15119_v16 }
 0x6a2   :  { %v16084_v3 = vpop.f32.mrb[180].mxu0 }
 0x6a3   :  { %10444 = vmatmul.mubr.bf16.gmra.mrb[52].mxu1 %v7357_v44  ;;  %17138 = vst [vmem:[#allocation40_spill] sm:$0xff] %v16084_v3  ;;  %v16087_v10 = vpop.f32.mrb[181].mxu0  ;;  %v7360_v44 = vsel %vm1801_vm9, %v7358_v36, %v7359_v13 }
 0x6a4   :  { %10451 = vmatprep.mubr.bf16.mxu1 %v16082_v19  ;;  %17139 = vst [vmem:[#allocation41_spill] sm:$0xff] %v16087_v10  ;;  %10689 = vmatpush1.bf16.msra.mxu1 %v13860_v8  ;;  %v16089_v28 = vpop.f32.mrb[182].mxu0  ;;  %v16098_v8 = vld [vmem:[#allocation2 + $0x60] sm:$0xff]  ;;  %v7228_v10 = vld [vmem:[#allocation2 + $0x50] sm:$0xfe] }
 0x6a5   :  { %17140 = vst [vmem:[#allocation42_spill] sm:$0xff] %v16089_v28  ;;  %10690 = vmatprep.subr.bf16.mxu1 %v15119_v16  ;;  %v16092_v42 = vpop.f32.mrb[183].mxu0  ;;  %v7361_v36 = vrot.slane %v7228_v10, 1  ;;  %v7231_v10 = vld [vmem:[#allocation2 + $0x68] sm:$0x1] }
 0x6a6   :  { %17141 = vst [vmem:[#allocation43_spill] sm:$0xff] %v16092_v42  ;;  %v13863_v42 = vld [vmem:[#allocation11 + $0x148] sm:$0xff]  }
 0x6a8   :  { %10691 = vmatpush1.bf16.msra.mxu1 %v13861_v32  ;;  %v7229_v32 = vld [vmem:[#allocation2 + $0x58] sm:$0x1] }
 0x6a9   :  { %10692 = vmatprep.subr.bf16.mxu1 %v15119_v16  ;;  %v7362_v13 = vrot.slane %v7229_v32, 1  ;;  %v7364_v32 = vrot.slane %v7230_v23, 1 }
 0x6aa   :  { %v16096_v3 = vpop.f32.mrb[184].mxu0 }
 0x6ab   :  { %17142 = vst [vmem:[#allocation44_spill] sm:$0xff] %v16096_v3  ;;  %10452 = vmatmul.mubr.bf16.gmra.mrb[56].mxu1 %v7360_v44  ;;  %v16100_v28 = vpop.f32.mrb[185].mxu0  ;;  %v13864_v44 = vld [vmem:[#allocation11 + $0x150] sm:$0xff]   ;;  %v7363_v3 = vsel %vm1801_vm9, %v7361_v36, %v7362_v13  ;;  %v7365_v36 = vrot.slane %v7231_v10, 1  ;;  %v7368_v10 = vrot.slane %v7233_v62, 1 }
 0x6ac   :  { %17143 = vst [vmem:[#allocation45_spill] sm:$0xff] %v16100_v28  ;;  %10459 = vmatprep.mubr.bf16.mxu1 %v16098_v8  ;;  %10693 = vmatpush1.bf16.msra.mxu1 %v13862_v11  ;;  %v16103_v25 = vpop.f32.mrb[186].mxu0  ;;  %v16112_v11 = vld [vmem:[#allocation2 + $0x70] sm:$0xff] }
 0x6ad   :  { %17144 = vst [vmem:[#allocation46_spill] sm:$0xff] %v16103_v25  ;;  %10694 = vmatprep.subr.bf16.mxu1 %v15119_v16  ;;  %v16106_v49 = vpop.f32.mrb[187].mxu0  ;;  %v7366_v13 = vsel %vm1801_vm9, %v7364_v32, %v7365_v36 }
 0x6ae   :  { %17145 = vst [vmem:[#allocation47_spill] sm:$0xff] %v16106_v49 }
 0x6b0   :  { %10695 = vmatpush1.bf16.msra.mxu1 %v13863_v42 }
 0x6b1   :  { %10696 = vmatprep.subr.bf16.mxu1 %v15119_v16 }
 0x6b2   :  { %v16110_v28 = vpop.f32.mrb[188].mxu0 }
 0x6b3   :  { %17146 = vst [vmem:[#allocation48_spill] sm:$0xff] %v16110_v28  ;;  %10460 = vmatmul.mubr.bf16.gmra.mrb[60].mxu1 %v7363_v3  ;;  %v16114_v25 = vpop.f32.mrb[189].mxu0  ;;  %v16125_v28 = vld [vmem:[#allocation2 + $0x80] sm:$0xff] }
 0x6b4   :  { %17147 = vst [vmem:[#allocation49_spill] sm:$0xff] %v16114_v25  ;;  %10467 = vmatprep.mubr.bf16.mxu1 %v16112_v11  ;;  %10697 = vmatpush1.bf16.msra.mxu1 %v13864_v44  ;;  %v16117_v49 = vpop.f32.mrb[190].mxu0  ;;  %v7232_v25 = vld [vmem:[#allocation2 + $0x70] sm:$0xfe]  ;;  %v13865_v44 = vld [vmem:[#allocation11 + $0x158] sm:$0xff]  }
 0x6b5   :  { %17148 = vst [vmem:[#allocation50_spill] sm:$0xff] %v16117_v49  ;;  %10698 = vmatprep.subr.bf16.mxu1 %v15119_v16  ;;  %v16120_v42 = vpop.f32.mrb[191].mxu0  ;;  %v7367_v23 = vrot.slane %v7232_v25, 1 }
 0x6b6   :  { %17149 = vst [vmem:[#allocation51_spill] sm:$0xff] %v16120_v42 }
 0x6b7   :  { %v7369_v32 = vsel %vm1801_vm9, %v7367_v23, %v7368_v10  ;;  %v16150_v10 = vld [vmem:[#allocation2 + $0xa0] sm:$0xff] }
 0x6b8   :  { %10699 = vmatpush1.bf16.msra.mxu1 %v13865_v44 }
 0x6b9   :  { %10700 = vmatprep.subr.bf16.mxu1 %v15119_v16 }
 0x6ba   :  { %v16123_v3 = vpop.f32.mrb[192].mxu0 }
 0x6bb   :  { %17150 = vst [vmem:[#allocation52_spill] sm:$0xff] %v16123_v3  ;;  %10468 = vmatmul.mubr.bf16.gmra.mrb[64].mxu1 %v7366_v13  ;;  %v16127_v4 = vpop.f32.mrb[193].mxu0  ;;  %v16138_v13 = vld [vmem:[#allocation2 + $0x90] sm:$0xff]  ;;  %v7234_v3 = vld [vmem:[#allocation2 + $0x80] sm:$0xfe] }
 0x6bc   :  { %17151 = vst [vmem:[#allocation53_spill] sm:$0xff] %v16127_v4  ;;  %10475 = vmatprep.mubr.bf16.mxu1 %v16125_v28  ;;  %v16130_v49 = vpop.f32.mrb[194].mxu0  ;;  %v7370_v44 = vrot.slane %v7234_v3, 1 }
 0x6bd   :  { %17152 = vst [vmem:[#allocation54_spill] sm:$0xff] %v16130_v49  ;;  %v16132_v41 = vpop.f32.mrb[195].mxu0 }
 0x6be   :  { %17153 = vst [vmem:[#allocation55_spill] sm:$0xff] %v16132_v41  ;;  %v7235_v41 = vld [vmem:[#allocation2 + $0x88] sm:$0x1] }
 0x6bf   :  { %v7371_v42 = vrot.slane %v7235_v41, 1 }
 0x6c1   :  { %v7372_v62 = vsel %vm1801_vm9, %v7370_v44, %v7371_v42 }
 0x6c2   :  { %v16136_v36 = vpop.f32.mrb[196].mxu0 }
 0x6c3   :  { %17154 = vst [vmem:[#allocation56_spill] sm:$0xff] %v16136_v36  ;;  %10476 = vmatmul.mubr.bf16.gmra.mrb[68].mxu1 %v7369_v32  ;;  %v16140_v4 = vpop.f32.mrb[197].mxu0  ;;  %v7236_v32 = vld [vmem:[#allocation2 + $0x90] sm:$0xfe] }
 0x6c4   :  { %17155 = vst [vmem:[#allocation57_spill] sm:$0xff] %v16140_v4  ;;  %10483 = vmatprep.mubr.bf16.mxu1 %v16138_v13  ;;  %v16143_v49 = vpop.f32.mrb[198].mxu0  ;;  %v13866_v4 = vld [vmem:[#allocation11 + $0x160] sm:$0xff]   ;;  %v7373_v3 = vrot.slane %v7236_v32, 1 }
 0x6c5   :  { %17156 = vst [vmem:[#allocation58_spill] sm:$0xff] %v16143_v49  ;;  %v16145_v25 = vpop.f32.mrb[199].mxu0  ;;  %v7237_v49 = vld [vmem:[#allocation2 + $0x98] sm:$0x1]  ;;  %10701 = vmatpush1.bf16.msra.mxu1 %v13866_v4 }
 0x6c6   :  { %17157 = vst [vmem:[#allocation59_spill] sm:$0xff] %v16145_v25  ;;  %10702 = vmatprep.subr.bf16.mxu1 %v15119_v16  ;;  %v7374_v41 = vrot.slane %v7237_v49, 1 }
 0x6c8   :  { %v7375_v42 = vsel %vm1801_vm9, %v7373_v3, %v7374_v41  ;;  %v16175_v41 = vld [vmem:[#allocation2 + $0xc0] sm:$0xff] }
 0x6ca   :  { %v16148_v23 = vpop.f32.mrb[200].mxu0 }
 0x6cb   :  { %17158 = vst [vmem:[#allocation60_spill] sm:$0xff] %v16148_v23  ;;  %10484 = vmatmul.mubr.bf16.gmra.mrb[72].mxu1 %v7372_v62  ;;  %v16152_v36 = vpop.f32.mrb[201].mxu0  ;;  %v16163_v62 = vld [vmem:[#allocation2 + $0xb0] sm:$0xff]  ;;  %v7238_v23 = vld [vmem:[#allocation2 + $0xa0] sm:$0xfe] }
 0x6cc   :  { %17159 = vst [vmem:[#allocation61_spill] sm:$0xff] %v16152_v36  ;;  %10491 = vmatprep.mubr.bf16.mxu1 %v16150_v10  ;;  %v16155_v30 = vpop.f32.mrb[202].mxu0  ;;  %v7376_v4 = vrot.slane %v7238_v23, 1 }
 0x6cd   :  { %17160 = vst [vmem:[#allocation62_spill] sm:$0xff] %v16155_v30  ;;  %v16157_v15 = vpop.f32.mrb[203].mxu0 }
 0x6ce   :  { %17161 = vst [vmem:[#allocation63_spill] sm:$0xff] %v16157_v15  ;;  %v7239_v15 = vld [vmem:[#allocation2 + $0xa8] sm:$0x1] }
 0x6cf   :  { %v7377_v25 = vrot.slane %v7239_v15, 1 }
 0x6d1   :  { %v7378_v49 = vsel %vm1801_vm9, %v7376_v4, %v7377_v25  ;;  %v7242_v4 = vld [vmem:[#allocation2 + $0xc0] sm:$0xfe] }
 0x6d2   :  { %v16161_v44 = vpop.f32.mrb[204].mxu0 }
 0x6d3   :  { %17162 = vst [vmem:[#allocation64_spill] sm:$0xff] %v16161_v44  ;;  %10492 = vmatmul.mubr.bf16.gmra.mrb[76].mxu1 %v7375_v42  ;;  %v16165_v36 = vpop.f32.mrb[205].mxu0  ;;  %v7240_v42 = vld [vmem:[#allocation2 + $0xb0] sm:$0xfe] }
 0x6d4   :  { %17163 = vst [vmem:[#allocation65_spill] sm:$0xff] %v16165_v36  ;;  %10499 = vmatprep.mubr.bf16.mxu1 %v16163_v62  ;;  %v16168_v30 = vpop.f32.mrb[206].mxu0  ;;  %v13867_v36 = vld [vmem:[#allocation11 + $0x168] sm:$0xff]   ;;  %v7379_v23 = vrot.slane %v7240_v42, 1  ;;  %v13868_v42 = vld [vmem:[#allocation11 + $0x170] sm:$0xff]  }
 0x6d5   :  { %17164 = vst [vmem:[#allocation66_spill] sm:$0xff] %v16168_v30  ;;  %v16170_v32 = vpop.f32.mrb[207].mxu0  ;;  %v7241_v30 = vld [vmem:[#allocation2 + $0xb8] sm:$0x1]  ;;  %10703 = vmatpush1.bf16.msra.mxu1 %v13867_v36 }
 0x6d6   :  { %17165 = vst [vmem:[#allocation67_spill] sm:$0xff] %v16170_v32  ;;  %10704 = vmatprep.subr.bf16.mxu1 %v15119_v16  ;;  %v7380_v15 = vrot.slane %v7241_v30, 1  ;;  %v7245_v36 = vld [vmem:[#allocation2 + $0xd8] sm:$0x1] }
 0x6d7   :  { %v7386_v30 = vrot.slane %v7245_v36, 1 }
 0x6d8   :  { %v7381_v25 = vsel %vm1801_vm9, %v7379_v23, %v7380_v15  ;;  %v7247_v15 = vld [vmem:[#allocation2 + $0xe8] sm:$0x1] }
 0x6d9   :  { %10705 = vmatpush1.bf16.msra.mxu1 %v13868_v42  ;;  %v7250_v42 = vld [vmem:[#allocation2 + $0x120] sm:$0xfe] }
 0x6da   :  { %v16173_v3 = vpop.f32.mrb[208].mxu0  ;;  %10706 = vmatprep.subr.bf16.mxu1 %v15119_v16 }
 0x6db   :  { %17166 = vst [vmem:[#allocation68_spill] sm:$0xff] %v16173_v3  ;;  %10500 = vmatmul.mubr.bf16.gmra.mrb[80].mxu1 %v7378_v49  ;;  %v16177_v44 = vpop.f32.mrb[209].mxu0  ;;  %v7243_v49 = vld [vmem:[#allocation2 + $0xc8] sm:$0x1]  ;;  %v7382_v3 = vrot.slane %v7242_v4, 1 }
 0x6dc   :  { %17167 = vst [vmem:[#allocation69_spill] sm:$0xff] %v16177_v44  ;;  %10507 = vmatprep.mubr.bf16.mxu1 %v16175_v41  ;;  %v16180_v46 = vpop.f32.mrb[210].mxu0  ;;  %v7383_v44 = vrot.slane %v7243_v49, 1  ;;  %v7249_v4 = vld [vmem:[#allocation2 + $0xf8] sm:$0x1] }
 0x6dd   :  { %17168 = vst [vmem:[#allocation70_spill] sm:$0xff] %v16180_v46  ;;  %v16182_v52 = vpop.f32.mrb[211].mxu0  ;;  %v7244_v46 = vld [vmem:[#allocation2 + $0xd0] sm:$0xfe] }
 0x6de   :  { %17169 = vst [vmem:[#allocation71_spill] sm:$0xff] %v16182_v52  ;;  %v7384_v32 = vsel %vm1801_vm9, %v7382_v3, %v7383_v44  ;;  %v7385_v52 = vrot.slane %v7244_v46, 1  ;;  %v7389_v44 = vrot.slane %v7247_v15, 1  ;;  %v7248_v3 = vld [vmem:[#allocation2 + $0xf0] sm:$0xfe]  ;;  %v13869_v46 = vld [vmem:[#allocation11 + $0x178] sm:$0xff]  }
 0x6df   :  { %v7391_v49 = vrot.slane %v7248_v3, 1  ;;  %10707 = vmatpush1.bf16.msra.mxu1 %v13869_v46  ;;  %v7252_v15 = vld [vmem:[#allocation2 + $0x130] sm:$0xfe]  ;;  %v7254_v46 = vld [vmem:[#allocation2 + $0x140] sm:$0xfe] }
 0x6e0   :  { %v7387_v23 = vsel %vm1801_vm9, %v7385_v52, %v7386_v30  ;;  %10965 = vmatprep.subr.bf16.mxu1 %v15119_v16  ;;  %v7392_v52 = vrot.slane %v7249_v4, 1  ;;  %v7394_v30 = vrot.slane %v7250_v42, 1  ;;  %v7255_v4 = vld [vmem:[#allocation2 + $0x148] sm:$0x1]  ;;  %v7256_v42 = vld [vmem:[#allocation2 + $0x150] sm:$0xfe] }
 0x6e2   :  { %v7393_v36 = vsel %vm1801_vm9, %v7391_v49, %v7392_v52  ;;  %v7400_v49 = vrot.slane %v7254_v46, 1 }
 0x6e3   :  { %10508 = vmatmul.mubr.bf16.gmra.mrb[84].mxu1 %v7381_v25 }
 0x6e4   :  { %10515 = vmatprep.mubr.bf16.mxu1 %v15871_v50  ;;  %v7246_v50 = vld [vmem:[#allocation2 + $0xe0] sm:$0xfe] }
 0x6e5   :  { %v7388_v25 = vrot.slane %v7246_v50, 1 }
 0x6eb   :  { %10516 = vmatmul.mubr.bf16.gmra.mrb[88].mxu1 %v7384_v32  ;;  %v7390_v32 = vsel %vm1801_vm9, %v7388_v25, %v7389_v44  ;;  %v7253_v25 = vld [vmem:[#allocation2 + $0x138] sm:$0x1]  ;;  %v7397_v44 = vrot.slane %v7252_v15, 1 }
 0x6ec   :  { %10523 = vmatprep.mubr.bf16.mxu1 %v15880_v39  ;;  %v16193_v39 = vld [vmem:[#allocation2 + $0x100] sm:$0xff] }
 0x6f3   :  { %10524 = vmatmul.mubr.bf16.gmra.mrb[92].mxu1 %v7387_v23 }
 0x6f4   :  { %10531 = vmatprep.mubr.bf16.mxu1 %v15888_v27  ;;  %v7251_v27 = vld [vmem:[#allocation2 + $0x128] sm:$0x1] }
 0x6f5   :  { %v7395_v23 = vrot.slane %v7251_v27, 1  ;;  %v7257_v27 = vld [vmem:[#allocation2 + $0x158] sm:$0x1] }
 0x6f7   :  { %v7396_v50 = vsel %vm1801_vm9, %v7394_v30, %v7395_v23  ;;  %v7258_v23 = vld [vmem:[#allocation2 + $0x160] sm:$0xfe] }
 0x6fb   :  { %10532 = vmatmul.mubr.bf16.gmra.mrb[96].mxu1 %v7390_v32  ;;  %v7398_v32 = vrot.slane %v7253_v25, 1 }
 0x6fc   :  { %10539 = vmatprep.mubr.bf16.mxu1 %v16193_v39 }
 0x6fd   :  { %v7399_v3 = vsel %vm1801_vm9, %v7397_v44, %v7398_v32  ;;  %v7260_v44 = vld [vmem:[#allocation2 + $0x170] sm:$0xfe]  ;;  %v7261_v32 = vld [vmem:[#allocation2 + $0x178] sm:$0x1] }
 0x703   :  { %10540 = vmatmul.mubr.bf16.gmra.mrb[100].mxu1 %v7393_v36  ;;  %v7404_v36 = vrot.slane %v7257_v27, 1  ;;  %v7265_v27 = vld [vmem:[#allocation2 + $0x198] sm:$0x1] }
 0x704   :  { %10547 = vmatprep.mubr.bf16.mxu1 %v15906_v33  ;;  %v7401_v33 = vrot.slane %v7255_v4, 1  ;;  %v7262_v4 = vld [vmem:[#allocation2 + $0x180] sm:$0xfe] }
 0x706   :  { %v7402_v52 = vsel %vm1801_vm9, %v7400_v49, %v7401_v33  ;;  %v7263_v49 = vld [vmem:[#allocation2 + $0x188] sm:$0x1] }
 0x707   :  { %v7413_v33 = vrot.slane %v7263_v49, 1  ;;  %v7272_v49 = vld [vmem:[#allocation2 + $0x1d0] sm:$0xfe] }
 0x70b   :  { %10548 = vmatmul.mubr.bf16.gmra.mrb[104].mxu1 %v7396_v50  ;;  %v7259_v50 = vld [vmem:[#allocation2 + $0x168] sm:$0x1] }
 0x70c   :  { %10555 = vmatprep.mubr.bf16.mxu1 %v15914_v57  ;;  %v7403_v57 = vrot.slane %v7256_v42, 1  ;;  %v7407_v15 = vrot.slane %v7259_v50, 1  ;;  %v7264_v42 = vld [vmem:[#allocation2 + $0x190] sm:$0xfe] }
 0x70e   :  { %v7405_v30 = vsel %vm1801_vm9, %v7403_v57, %v7404_v36  ;;  %v7416_v57 = vrot.slane %v7265_v27, 1  ;;  %v7275_v27 = vld [vmem:[#allocation2 + $0x1e8] sm:$0x1] }
 0x713   :  { %10556 = vmatmul.mubr.bf16.gmra.mrb[108].mxu1 %v7399_v3  ;;  %v7410_v3 = vrot.slane %v7261_v32, 1 }
 0x714   :  { %10563 = vmatprep.mubr.bf16.mxu1 %v15922_v31  ;;  %v7406_v31 = vrot.slane %v7258_v23, 1  ;;  %v7267_v23 = vld [vmem:[#allocation2 + $0x1a8] sm:$0x1] }
 0x715   :  { %v7419_v50 = vrot.slane %v7267_v23, 1 }
 0x716   :  { %v7408_v25 = vsel %vm1801_vm9, %v7406_v31, %v7407_v15  ;;  %v7268_v15 = vld [vmem:[#allocation2 + $0x1b0] sm:$0xfe] }
 0x71b   :  { %10564 = vmatmul.mubr.bf16.gmra.mrb[112].mxu1 %v7402_v52 }
 0x71c   :  { %10571 = vmatprep.mubr.bf16.mxu1 %v15928_v29  ;;  %v7409_v29 = vrot.slane %v7260_v44, 1 }
 0x71e   :  { %v7411_v46 = vsel %vm1801_vm9, %v7409_v29, %v7410_v3  ;;  %v7270_v29 = vld [vmem:[#allocation2 + $0x1c0] sm:$0xfe]  ;;  %v7271_v3 = vld [vmem:[#allocation2 + $0x1c8] sm:$0x1] }
 0x723   :  { %10572 = vmatmul.mubr.bf16.gmra.mrb[116].mxu1 %v7405_v30  ;;  %v7266_v30 = vld [vmem:[#allocation2 + $0x1a0] sm:$0xfe] }
 0x724   :  { %10579 = vmatprep.mubr.bf16.mxu1 %v15934_v56  ;;  %v7412_v56 = vrot.slane %v7262_v4, 1 }
 0x726   :  { %v7414_v52 = vsel %vm1801_vm9, %v7412_v56, %v7413_v33  ;;  %v7273_v56 = vld [vmem:[#allocation2 + $0x1d8] sm:$0x1] }
 0x727   :  { %v7428_v33 = vrot.slane %v7273_v56, 1  ;;  %v7571_v56 = vld [vmem:[#allocation2 + $0x18] sm:$0x1] }
 0x72b   :  { %10580 = vmatmul.mubr.bf16.gmra.mrb[120].mxu1 %v7408_v25  ;;  %v7269_v25 = vld [vmem:[#allocation2 + $0x1b8] sm:$0x1] }
 0x72c   :  { %10587 = vmatprep.mubr.bf16.mxu1 %v15940_v47  ;;  %v7415_v47 = vrot.slane %v7264_v42, 1  ;;  %v7422_v44 = vrot.slane %v7269_v25, 1  ;;  %v7274_v42 = vld [vmem:[#allocation2 + $0x1e0] sm:$0xfe] }
 0x72e   :  { %v7417_v36 = vsel %vm1801_vm9, %v7415_v47, %v7416_v57  ;;  %v7431_v47 = vrot.slane %v7275_v27, 1  ;;  %v8084_v27 = vld [vmem:[#allocation2 + $0x20] sm:$0xfe] }
 0x733   :  { %10588 = vmatmul.mubr.bf16.gmra.mrb[124].mxu1 %v7411_v46  ;;  %v7425_v46 = vrot.slane %v7271_v3, 1  ;;  %v8083_v3 = vld [vmem:[#allocation2 + $0x18] sm:$0x1] }
 0x734   :  { %10595 = vmatprep.mubr.bf16.mxu1 %v15946_v14  ;;  %v7418_v14 = vrot.slane %v7266_v30, 1  ;;  %v7277_v30 = vld [vmem:[#allocation2 + $0x1f8] sm:$0x1] }
 0x735   :  { %v7434_v23 = vrot.slane %v7277_v30, 1 }
 0x736   :  { %v7420_v31 = vsel %vm1801_vm9, %v7418_v14, %v7419_v50  ;;  %v7278_v50 = vld [vmem:[#allocation2 + $0x200] sm:$0xfe] }
 0x73b   :  { %10596 = vmatmul.mubr.bf16.gmra.mrb[128].mxu1 %v7414_v52 }
 0x73c   :  { %10603 = vmatprep.mubr.bf16.mxu1 %v15952_v51  ;;  %v7421_v51 = vrot.slane %v7268_v15, 1 }
 0x73e   :  { %v7423_v32 = vsel %vm1801_vm9, %v7421_v51, %v7422_v44  ;;  %v7537_v51 = vld [vmem:[#allocation2 + $0x220] sm:$0xff]  ;;  %v7280_v44 = vld [vmem:[#allocation2 + $0x210] sm:$0xfe] }
 0x743   :  { %10604 = vmatmul.mubr.bf16.gmra.mrb[132].mxu1 %v7417_v36  ;;  %v7276_v36 = vld [vmem:[#allocation2 + $0x1f0] sm:$0xfe] }
 0x744   :  { %10611 = vmatprep.mubr.bf16.mxu1 %v15958_v59  ;;  %v7424_v59 = vrot.slane %v7270_v29, 1  ;;  %v7439_v29 = vrot.slane %v7280_v44, 1 }
 0x746   :  { %v7426_v4 = vsel %vm1801_vm9, %v7424_v59, %v7425_v46  ;;  %v7637_v59 = vshll.u32 %v16030_v58, 16 }
 0x74b   :  { %10612 = vmatmul.mubr.bf16.gmra.mrb[136].mxu1 %v7420_v31  ;;  %v7279_v31 = vld [vmem:[#allocation2 + $0x208] sm:$0x1] }
 0x74c   :  { %10619 = vmatprep.mubr.bf16.mxu1 %v15964_v53  ;;  %v7427_v53 = vrot.slane %v7272_v49, 1  ;;  %v7437_v15 = vrot.slane %v7279_v31, 1  ;;  %v8211_v49 = vrot.slane %v8083_v3, 1 }
 0x74e   :  { %v7429_v52 = vsel %vm1801_vm9, %v7427_v53, %v7428_v33  ;;  %v7639_v53 = vrot.slane %v7637_v59, 1  ;;  %v13872_v59 = vld [vmem:[#allocation11 + $0x190] sm:$0xff]  }
 0x753   :  { %10620 = vmatmul.mubr.bf16.gmra.mrb[140].mxu1 %v7423_v32  ;;  %v8082_v32 = vld [vmem:[#allocation2 + $0x10] sm:$0xfe] }
 0x754   :  { %10627 = vmatprep.mubr.bf16.mxu1 %v15970_v2  ;;  %v7430_v2 = vrot.slane %v7274_v42, 1  ;;  %v8210_v46 = vrot.slane %v8082_v32, 1  ;;  %v7642_v42 = vshll.u32 %v7571_v56, 16  ;;  %v8087_v32 = vld [vmem:[#allocation2 + $0x38] sm:$0x1] }
 0x756   :  { %v7432_v57 = vsel %vm1801_vm9, %v7430_v2, %v7431_v47  ;;  %v8212_v33 = vsel %vm1801_vm9, %v8210_v46, %v8211_v49  ;;  %v8085_v47 = vld [vmem:[#allocation2 + $0x28] sm:$0x1]  ;;  %v7644_v30 = vrot.slane %v7642_v42, 1  ;;  %v8217_v46 = vrot.slane %v8087_v32, 1 }
 0x75b   :  { %10628 = vmatmul.mubr.bf16.gmra.mrb[144].mxu1 %v7426_v4 }
 0x75c   :  { %10635 = vmatprep.mubr.bf16.mxu1 %v15976_v17  ;;  %v7433_v17 = vrot.slane %v7276_v36, 1  ;;  %v8213_v36 = vrot.slane %v8084_v27, 1  ;;  %v8089_v27 = vld [vmem:[#allocation2 + $0x48] sm:$0x1] }
 0x75e   :  { %v7435_v14 = vsel %vm1801_vm9, %v7433_v17, %v7434_v23  ;;  %v13870_v17 = vld [vmem:[#allocation11 + $0x180] sm:$0xff]   ;;  %v8214_v23 = vrot.slane %v8085_v47, 1 }
 0x763   :  { %10636 = vmatmul.mubr.bf16.gmra.mrb[148].mxu1 %v7429_v52  ;;  %v7635_v52 = vshrl.u32 %v16030_v58, 16  ;;  %v7647_v58 = vshrl.u32 %v16042_v5, 16 }
 0x764   :  { %10643 = vmatprep.mubr.bf16.mxu1 %v15982_v9  ;;  %v7436_v9 = vrot.slane %v7278_v50, 1 }
 0x765   :  { %v7640_v2 = vor.u32 %v7639_v53, %v7635_v52  ;;  %v13873_v52 = vld [vmem:[#allocation11 + $0x198] sm:$0xff]  }
 0x766   :  { %v7438_v25 = vsel %vm1801_vm9, %v7436_v9, %v7437_v15  ;;  %v8215_v9 = vsel %vm1801_vm9, %v8213_v36, %v8214_v23  ;;  %v13874_v36 = vld [vmem:[#allocation11 + $0x1a0] sm:$0xff]  }
 0x767   :  { %v7645_v50 = vsel %vm1224_vm6, %v7640_v2, %v7644_v30  ;;  %v7673_v2 = vshll.u32 %v16070_v35, 16  ;;  %v8220_v30 = vrot.slane %v8089_v27, 1  ;;  %v13878_v27 = vld [vmem:[#allocation11 + $0x1c0] sm:$0xff]  }
 0x769   :  { %v7675_v23 = vrot.slane %v7673_v2, 1 }
 0x76b   :  { %10644 = vmatmul.mubr.bf16.gmra.mrb[152].mxu1 %v7432_v57  ;;  %v7649_v57 = vshll.u32 %v16042_v5, 16 }
 0x76c   :  { %10651 = vmatprep.mubr.bf16.mxu1 %v15988_v61  ;;  %v7281_v61 = vld [vmem:[#allocation2 + $0x218] sm:$0x1] }
 0x76d   :  { %v7440_v4 = vrot.slane %v7281_v61, 1  ;;  %v7651_v31 = vrot.slane %v7649_v57, 1  ;;  %v7661_v61 = vshll.u32 %v16056_v21, 16 }
 0x76f   :  { %v7652_v44 = vor.u32 %v7651_v31, %v7647_v58  ;;  %v7663_v5 = vrot.slane %v7661_v61, 1  ;;  %v13875_v58 = vld [vmem:[#allocation11 + $0x1a8] sm:$0xff]   ;;  %v13876_v61 = vld [vmem:[#allocation11 + $0x1b0] sm:$0xff]  }
 0x773   :  { %10652 = vmatmul.mubr.bf16.gmra.mrb[156].mxu1 %v7435_v14  ;;  %v7573_v14 = vld [vmem:[#allocation2 + $0x28] sm:$0x1] }
 0x774   :  { %10659 = vmatprep.mubr.bf16.mxu1 %v16002_v38  ;;  %v7441_v38 = vsel %vm1801_vm9, %v7439_v29, %v7440_v4  ;;  %v7654_v15 = vshll.u32 %v7573_v14, 16  ;;  %v7575_v4 = vld [vmem:[#allocation2 + $0x38] sm:$0x1] }
 0x775   :  { %v7666_v53 = vshll.u32 %v7575_v4, 16  ;;  %v7683_v4 = vshrl.u32 %v16082_v19, 16 }
 0x776   :  { %v7656_v3 = vrot.slane %v7654_v15, 1 }
 0x777   :  { %v7668_v57 = vrot.slane %v7666_v53, 1  ;;  %v8093_v53 = vld [vmem:[#allocation2 + $0x68] sm:$0x1] }
 0x778   :  { %v7657_v49 = vsel %vm1224_vm6, %v7652_v44, %v7656_v3  ;;  %v7579_v3 = vld [vmem:[#allocation2 + $0x58] sm:$0x1]  ;;  %v8226_v2 = vrot.slane %v8093_v53, 1 }
 0x77b   :  { %10660 = vmatmul.mubr.bf16.gmra.mrb[160].mxu1 %v7438_v25  ;;  %v8086_v25 = vld [vmem:[#allocation2 + $0x30] sm:$0xfe] }
 0x77c   :  { %10667 = vmatprep.mubr.bf16.mxu1 %v7537_v51  ;;  %v13871_v51 = vld [vmem:[#allocation11 + $0x188] sm:$0xff]   ;;  %v8216_v29 = vrot.slane %v8086_v25, 1  ;;  %v8091_v25 = vld [vmem:[#allocation2 + $0x58] sm:$0x1] }
 0x77e   :  { %v8218_v56 = vsel %vm1801_vm9, %v8216_v29, %v8217_v46  ;;  %v8223_v29 = vrot.slane %v8091_v25, 1 }
 0x783   :  { %10668 = vmatmul.mubr.bf16.gmra.mrb[164].mxu1 %v7441_v38  ;;  %v7659_v38 = vshrl.u32 %v16056_v21, 16 }
 0x784   :  { %10708 = vmatprep.mubr.bf16.mxu1 %v8212_v33  ;;  %v8088_v33 = vld [vmem:[#allocation2 + $0x40] sm:$0xfe] }
 0x785   :  { %v7664_v42 = vor.u32 %v7663_v5, %v7659_v38  ;;  %v8219_v47 = vrot.slane %v8088_v33, 1  ;;  %v8092_v5 = vld [vmem:[#allocation2 + $0x60] sm:$0xfe]  ;;  %v7697_v33 = vshll.u32 %v16098_v8, 16 }
 0x787   :  { %v7669_v21 = vsel %vm1224_vm6, %v7664_v42, %v7668_v57  ;;  %v8221_v14 = vsel %vm1801_vm9, %v8219_v47, %v8220_v30  ;;  %v7581_v47 = vld [vmem:[#allocation2 + $0x68] sm:$0x1]  ;;  %v7699_v57 = vrot.slane %v7697_v33, 1  ;;  %v7695_v30 = vshrl.u32 %v16098_v8, 16 }
 0x78b   :  { %10709 = vmatmul.mubr.bf16.vlgmr.msra.gmra.mrb[40].mxu1 %v7645_v50  ;;  %v7671_v50 = vshrl.u32 %v16070_v35, 16 }
 0x78c   :  { %10716 = vmatprep.mubr.bf16.mxu1 %v8215_v9  ;;  %10966 = vmatpush1.bf16.msra.mxu1 %v13870_v17  ;;  %v7577_v17 = vld [vmem:[#allocation2 + $0x48] sm:$0x1]  ;;  %v8090_v9 = vld [vmem:[#allocation2 + $0x50] sm:$0xfe] }
 0x78d   :  { %10967 = vmatprep.subr.bf16.mxu1 %v15119_v16  ;;  %v7678_v31 = vshll.u32 %v7577_v17, 16  ;;  %v7676_v15 = vor.u32 %v7675_v23, %v7671_v50  ;;  %v8222_v44 = vrot.slane %v8090_v9, 1  ;;  %v7702_v17 = vshll.u32 %v7581_v47, 16  ;;  %v13879_v23 = vld [vmem:[#allocation11 + $0x1c8] sm:$0xff]   ;;  %v8095_v50 = vld [vmem:[#allocation2 + $0x78] sm:$0x1] }
 0x78e   :  { %v8229_v25 = vrot.slane %v8095_v50, 1  ;;  %v8099_v47 = vld [vmem:[#allocation2 + $0x98] sm:$0x1] }
 0x78f   :  { %v7680_v32 = vrot.slane %v7678_v31, 1  ;;  %v8224_v46 = vsel %vm1801_vm9, %v8222_v44, %v8223_v29  ;;  %v7709_v31 = vshll.u32 %v16112_v11, 16 }
 0x790   :  { %10968 = vmatpush1.bf16.msra.mxu1 %v13871_v51  ;;  %v7685_v51 = vshll.u32 %v16082_v19, 16 }
 0x791   :  { %10969 = vmatprep.subr.bf16.mxu1 %v15119_v16  ;;  %v7681_v35 = vsel %vm1224_vm6, %v7676_v15, %v7680_v32  ;;  %v13880_v15 = vld [vmem:[#allocation11 + $0x1d0] sm:$0xff]   ;;  %v7711_v44 = vrot.slane %v7709_v31, 1  ;;  %v8100_v31 = vld [vmem:[#allocation2 + $0xa0] sm:$0xfe] }
 0x793   :  { %10717 = vmatmul.mubr.bf16.gmra.mrb[44].mxu1 %v7657_v49  ;;  %v7690_v49 = vshll.u32 %v7579_v3, 16  ;;  %v8096_v3 = vld [vmem:[#allocation2 + $0x80] sm:$0xfe] }
 0x794   :  { %10724 = vmatprep.mubr.bf16.mxu1 %v8218_v56  ;;  %10970 = vmatpush1.bf16.msra.mxu1 %v13872_v59  ;;  %v7687_v59 = vrot.slane %v7685_v51, 1  ;;  %v13877_v56 = vld [vmem:[#allocation11 + $0x1b8] sm:$0xff]  }
 0x795   :  { %10971 = vmatprep.subr.bf16.mxu1 %v15119_v16  ;;  %v7692_v42 = vrot.slane %v7690_v49, 1  ;;  %v7583_v51 = vld [vmem:[#allocation2 + $0x78] sm:$0x1] }
 0x796   :  { %v7688_v38 = vor.u32 %v7687_v59, %v7683_v4  ;;  %v7714_v29 = vshll.u32 %v7583_v51, 16  ;;  %v8097_v59 = vld [vmem:[#allocation2 + $0x88] sm:$0x1]  ;;  %v8231_v4 = vrot.slane %v8096_v3, 1  ;;  %v7743_v3 = vshrl.u32 %v16150_v10, 16 }
 0x798   :  { %10972 = vmatpush1.bf16.msra.mxu1 %v13873_v52  ;;  %v8225_v52 = vrot.slane %v8092_v5, 1  ;;  %v7693_v19 = vsel %vm1224_vm6, %v7688_v38, %v7692_v42  ;;  %v7716_v49 = vrot.slane %v7714_v29, 1  ;;  %v8232_v5 = vrot.slane %v8097_v59, 1  ;;  %v8098_v42 = vld [vmem:[#allocation2 + $0x90] sm:$0xfe]  ;;  %v13882_v59 = vld [vmem:[#allocation11 + $0x1e0] sm:$0xff]  }
 0x799   :  { %10973 = vmatprep.subr.bf16.mxu1 %v15119_v16 }
 0x79a   :  { %v8233_v33 = vsel %vm1801_vm9, %v8231_v4, %v8232_v5  ;;  %v8103_v4 = vld [vmem:[#allocation2 + $0xb8] sm:$0x1] }
 0x79b   :  { %10725 = vmatmul.mubr.bf16.gmra.mrb[48].mxu1 %v7669_v21  ;;  %v8094_v21 = vld [vmem:[#allocation2 + $0x70] sm:$0xfe] }
 0x79c   :  { %10732 = vmatprep.mubr.bf16.mxu1 %v8221_v14  ;;  %10974 = vmatpush1.bf16.msra.mxu1 %v13874_v36  ;;  %v8227_v36 = vsel %vm1801_vm9, %v8225_v52, %v8226_v2  ;;  %v7700_v14 = vor.u32 %v7699_v57, %v7695_v30  ;;  %v8228_v9 = vrot.slane %v8094_v21, 1  ;;  %v8234_v57 = vrot.slane %v8098_v42, 1 }
 0x79d   :  { %10975 = vmatprep.subr.bf16.mxu1 %v15119_v16  ;;  %v8235_v30 = vrot.slane %v8099_v47, 1  ;;  %v8105_v47 = vld [vmem:[#allocation2 + $0xc8] sm:$0x1] }
 0x79e   :  { %v8230_v32 = vsel %vm1801_vm9, %v8228_v9, %v8229_v25  ;;  %v8237_v25 = vrot.slane %v8100_v31, 1  ;;  %v8106_v31 = vld [vmem:[#allocation2 + $0xd0] sm:$0xfe] }
 0x7a0   :  { %10976 = vmatpush1.bf16.msra.mxu1 %v13875_v58  ;;  %v7704_v58 = vrot.slane %v7702_v17, 1  ;;  %v7587_v17 = vld [vmem:[#allocation2 + $0x98] sm:$0x1] }
 0x7a1   :  { %10977 = vmatprep.subr.bf16.mxu1 %v15119_v16  ;;  %v7738_v50 = vshll.u32 %v7587_v17, 16  ;;  %v7593_v17 = vld [vmem:[#allocation2 + $0xc8] sm:$0x1] }
 0x7a2   :  { %v7705_v8 = vsel %vm1224_vm6, %v7700_v14, %v7704_v58  ;;  %v7731_v14 = vshrl.u32 %v16138_v13, 16  ;;  %v8101_v58 = vld [vmem:[#allocation2 + $0xa8] sm:$0x1] }
 0x7a3   :  { %10733 = vmatmul.mubr.bf16.gmra.mrb[52].mxu1 %v7681_v35  ;;  %v7740_v51 = vrot.slane %v7738_v50, 1  ;;  %v7774_v50 = vshll.u32 %v7593_v17, 16 }
 0x7a4   :  { %10740 = vmatprep.mubr.bf16.mxu1 %v8224_v46  ;;  %10978 = vmatpush1.bf16.msra.mxu1 %v13876_v61  ;;  %v7707_v61 = vshrl.u32 %v16112_v11, 16  ;;  %v7721_v46 = vshll.u32 %v16125_v28, 16  ;;  %v7719_v11 = vshrl.u32 %v16125_v28, 16  ;;  %v8236_v28 = vsel %vm1801_vm9, %v8234_v57, %v8235_v30 }
 0x7a5   :  { %10979 = vmatprep.subr.bf16.mxu1 %v15119_v16  ;;  %v8244_v30 = vrot.slane %v8105_v47, 1  ;;  %v13884_v47 = vld [vmem:[#allocation11 + $0x1f0] sm:$0xff]  }
 0x7a6   :  { %v7712_v35 = vor.u32 %v7711_v44, %v7707_v61  ;;  %v7723_v53 = vrot.slane %v7721_v46, 1  ;;  %v7589_v44 = vld [vmem:[#allocation2 + $0xa8] sm:$0x1] }
 0x7a8   :  { %10980 = vmatpush1.bf16.msra.mxu1 %v13877_v56  ;;  %v7585_v56 = vld [vmem:[#allocation2 + $0x88] sm:$0x1]  ;;  %v7717_v38 = vsel %vm1224_vm6, %v7712_v35, %v7716_v49  ;;  %v7724_v2 = vor.u32 %v7723_v53, %v7719_v11  ;;  %v8102_v35 = vld [vmem:[#allocation2 + $0xb0] sm:$0xfe]  ;;  %v7757_v49 = vshll.u32 %v16163_v62, 16 }
 0x7a9   :  { %10981 = vmatprep.subr.bf16.mxu1 %v15119_v16  ;;  %v7726_v52 = vshll.u32 %v7585_v56, 16  ;;  %v8240_v5 = vrot.slane %v8102_v35, 1  ;;  %v7591_v53 = vld [vmem:[#allocation2 + $0xb8] sm:$0x1] }
 0x7aa   :  { %v7759_v11 = vrot.slane %v7757_v49, 1  ;;  %v7762_v42 = vshll.u32 %v7591_v53, 16  ;;  %v7597_v53 = vld [vmem:[#allocation2 + $0xe8] sm:$0x1] }
 0x7ab   :  { %10741 = vmatmul.mubr.bf16.gmra.mrb[56].mxu1 %v7693_v19  ;;  %v7733_v19 = vshll.u32 %v16138_v13, 16  ;;  %v7750_v13 = vshll.u32 %v7589_v44, 16 }
 0x7ac   :  { %10748 = vmatprep.mubr.bf16.mxu1 %v8227_v36  ;;  %10982 = vmatpush1.bf16.msra.mxu1 %v13878_v27  ;;  %v13881_v27 = vld [vmem:[#allocation11 + $0x1d8] sm:$0xff]   ;;  %v7728_v36 = vrot.slane %v7726_v52, 1  ;;  %v7755_v52 = vshrl.u32 %v16163_v62, 16  ;;  %v7767_v62 = vshrl.u32 %v16175_v41, 16 }
 0x7ad   :  { %10983 = vmatprep.subr.bf16.mxu1 %v15119_v16  ;;  %v7752_v56 = vrot.slane %v7750_v13, 1 }
 0x7ae   :  { %v7729_v21 = vsel %vm1224_vm6, %v7724_v2, %v7728_v36  ;;  %v7760_v2 = vor.u32 %v7759_v11, %v7755_v52  ;;  %v7764_v36 = vrot.slane %v7762_v42, 1  ;;  %v7598_v52 = vld [vmem:[#allocation2 + $0xf0] sm:$0xff] }
 0x7b0   :  { %10984 = vmatpush1.bf16.msra.mxu1 %v13879_v23  ;;  %v7735_v23 = vrot.slane %v7733_v19, 1  ;;  %v7769_v19 = vshll.u32 %v16175_v41, 16  ;;  %v16292_v41 = vld [vmem:[#allocation2 + $0xe0] sm:$0xff] }
 0x7b1   :  { %10985 = vmatprep.subr.bf16.mxu1 %v15119_v16  ;;  %v7793_v49 = vshll.u32 %v16292_v41, 16  ;;  %v7791_v42 = vshrl.u32 %v16292_v41, 16 }
 0x7b2   :  { %v7736_v9 = vor.u32 %v7735_v23, %v7731_v14  ;;  %v7771_v23 = vrot.slane %v7769_v19, 1  ;;  %v7594_v14 = vld [vmem:[#allocation2 + $0xd0] sm:$0xff] }
 0x7b3   :  { %10749 = vmatmul.mubr.bf16.gmra.mrb[60].mxu1 %v7705_v8  ;;  %v8238_v8 = vrot.slane %v8101_v58, 1  ;;  %v7779_v13 = vshrl.u32 %v7594_v14, 16  ;;  %v7795_v11 = vrot.slane %v7793_v49, 1 }
 0x7b4   :  { %10756 = vmatprep.mubr.bf16.mxu1 %v8230_v32  ;;  %10986 = vmatpush1.bf16.msra.mxu1 %v13880_v15  ;;  %v7745_v15 = vshll.u32 %v16150_v10, 16  ;;  %v7741_v32 = vsel %vm1224_vm6, %v7736_v9, %v7740_v51  ;;  %v13883_v9 = vld [vmem:[#allocation11 + $0x1e8] sm:$0xff]   ;;  %v7772_v58 = vor.u32 %v7771_v23, %v7767_v62  ;;  %v8246_v51 = vrot.slane %v8106_v31, 1  ;;  %v7599_v23 = vld [vmem:[#allocation2 + $0xf8] sm:$0x1] }
 0x7b5   :  { %10987 = vmatprep.subr.bf16.mxu1 %v15119_v16  ;;  %v8239_v29 = vsel %vm1801_vm9, %v8237_v25, %v8238_v8  ;;  %v7781_v25 = vshll.u32 %v7594_v14, 16  ;;  %v7776_v8 = vrot.slane %v7774_v50, 1  ;;  %v16301_v19 = vor.u32 %v7795_v11, %v7791_v42  ;;  %v7603_v11 = vld [vmem:[#allocation2 + $0x138] sm:$0x1] }
 0x7b6   :  { %v7747_v61 = vrot.slane %v7745_v15, 1  ;;  %v8107_v15 = vld [vmem:[#allocation2 + $0xd8] sm:$0x1]  ;;  %v7803_v50 = vshrl.u32 %v7598_v52, 16  ;;  %v7810_v31 = vshll.u32 %v7599_v23, 16 }
 0x7b7   :  { %v8247_v44 = vrot.slane %v8107_v15, 1  ;;  %v8113_v15 = vld [vmem:[#allocation2 + $0x108] sm:$0x1] }
 0x7b8   :  { %10988 = vmatpush1.bf16.msra.mxu1 %v13881_v27  ;;  %v7748_v46 = vor.u32 %v7747_v61, %v7743_v3  ;;  %v8104_v27 = vld [vmem:[#allocation2 + $0xc0] sm:$0xfe]  ;;  %v7777_v61 = vsel %vm1224_vm6, %v7772_v58, %v7776_v8  ;;  %v8256_v8 = vrot.slane %v8113_v15, 1 }
 0x7b9   :  { %10989 = vmatprep.subr.bf16.mxu1 %v15119_v16  ;;  %v8243_v57 = vrot.slane %v8104_v27, 1  ;;  %v8248_v3 = vsel %vm1801_vm9, %v8246_v51, %v8247_v44  ;;  %v7798_v27 = vshll.u32 %v7597_v53, 16  ;;  %v7812_v51 = vrot.slane %v7810_v31, 1  ;;  %v7601_v44 = vld [vmem:[#allocation2 + $0x108] sm:$0x1]  ;;  %v16321_v31 = vld [vmem:[#allocation2 + $0x150] sm:$0xff] }
 0x7bb   :  { %10757 = vmatmul.mubr.bf16.gmra.mrb[64].mxu1 %v7717_v38  ;;  %v8241_v38 = vrot.slane %v8103_v4, 1  ;;  %v8109_v4 = vld [vmem:[#allocation2 + $0xe8] sm:$0x1]  ;;  %v7800_v17 = vrot.slane %v7798_v27, 1  ;;  %v16316_v27 = vld [vmem:[#allocation2 + $0x140] sm:$0xff] }
 0x7bc   :  { %10764 = vmatprep.mubr.bf16.mxu1 %v8233_v33  ;;  %10990 = vmatpush1.bf16.msra.mxu1 %v13882_v59  ;;  %v7753_v33 = vsel %vm1224_vm6, %v7748_v46, %v7752_v56  ;;  %v8108_v59 = vld [vmem:[#allocation2 + $0xe0] sm:$0xfe]  ;;  %v7839_v15 = vshrl.u32 %v16316_v27, 16 }
 0x7bd   :  { %10991 = vmatprep.subr.bf16.mxu1 %v15119_v16  ;;  %v8242_v10 = vsel %vm1801_vm9, %v8240_v5, %v8241_v38  ;;  %v8249_v5 = vrot.slane %v8108_v59, 1  ;;  %v8250_v38 = vrot.slane %v8109_v4, 1  ;;  %v8114_v59 = vld [vmem:[#allocation2 + $0x130] sm:$0xfe]  ;;  %v13885_v4 = vld [vmem:[#allocation11 + $0x1f8] sm:$0xff]  }
 0x7c0   :  { %10992 = vmatpush1.bf16.msra.mxu1 %v13883_v9  ;;  %v8112_v9 = vld [vmem:[#allocation2 + $0x100] sm:$0xfe] }
 0x7c1   :  { %10993 = vmatprep.subr.bf16.mxu1 %v15119_v16 }
 0x7c3   :  { %10765 = vmatmul.mubr.bf16.gmra.mrb[68].mxu1 %v7729_v21  ;;  %v7765_v21 = vsel %vm1224_vm6, %v7760_v2, %v7764_v36  ;;  %v8110_v2 = vld [vmem:[#allocation2 + $0xf0] sm:$0xfe]  ;;  %v7805_v36 = vshll.u32 %v7598_v52, 16 }
 0x7c4   :  { %10772 = vmatprep.mubr.bf16.mxu1 %v8236_v28  ;;  %v8245_v28 = vsel %vm1801_vm9, %v8243_v57, %v8244_v30  ;;  %v8111_v57 = vld [vmem:[#allocation2 + $0xf8] sm:$0x1]  ;;  %10994 = vmatpush1.bf16.msra.mxu1 %v13884_v47  ;;  %v8252_v30 = vrot.slane %v8110_v2, 1  ;;  %v7834_v2 = vshll.u32 %v7603_v11, 16  ;;  %v8116_v47 = vld [vmem:[#allocation2 + $0x140] sm:$0xfe] }
 0x7c5   :  { %10995 = vmatprep.subr.bf16.mxu1 %v15119_v16  ;;  %v7807_v14 = vrot.slane %v7805_v36, 1  ;;  %v8255_v16 = vrot.slane %v8112_v9, 1  ;;  %v8117_v36 = vld [vmem:[#allocation2 + $0x148] sm:$0x1]  ;;  %v16323_v9 = vld [vmem:[#allocation12] sm:$0xff]  }
 0x7c6   :  { %v8262_v23 = vrot.slane %v8117_v36, 1 }
 0x7c7   :  { %v16307_v58 = vor.u32 %v7807_v14, %v7803_v50 }
 0x7c8   :  { %10996 = vmatpush1.bf16.msra.mxu1 %v13885_v4  ;;  %v16333_v4 = vld [vmem:[#allocation2 + $0x160] sm:$0xff] }
 0x7c9   :  { %12803 = vmatprep.subr.bf16.mxu1 %v16323_v9  ;;  %v7863_v36 = vshrl.u32 %v16333_v4, 16 }
 0x7cb   :  { %10773 = vmatmul.mubr.bf16.gmra.mrb[72].mxu1 %v7741_v32  ;;  %v7595_v32 = vld [vmem:[#allocation2 + $0xd8] sm:$0x1] }
 0x7cc   :  { %10780 = vmatprep.mubr.bf16.mxu1 %v8239_v29  ;;  %v7783_v29 = vrot.slane %v7781_v25, 1  ;;  %v7786_v35 = vshll.u32 %v7595_v32, 16  ;;  %v7817_v25 = vshll.u32 %v16193_v39, 16  ;;  %v7813_v32 = vsel %vm1224_vm6, %v16307_v58, %v7812_v51 }
 0x7ce   :  { %v16294_v46 = vor.u32 %v7783_v29, %v7779_v13  ;;  %v7788_v56 = vrot.slane %v7786_v35, 1  ;;  %v8257_v29 = vsel %vm1801_vm9, %v8255_v16, %v8256_v8  ;;  %v7815_v13 = vshrl.u32 %v16193_v39, 16  ;;  %v8118_v16 = vld [vmem:[#allocation2 + $0x150] sm:$0xfe]  ;;  %v8119_v8 = vld [vmem:[#allocation2 + $0x158] sm:$0x1] }
 0x7cf   :  { %v7822_v35 = vshll.u32 %v7601_v44, 16  ;;  %v7853_v44 = vshll.u32 %v16321_v31, 16 }
 0x7d1   :  { %v7824_v53 = vrot.slane %v7822_v35, 1  ;;  %v7855_v35 = vrot.slane %v7853_v44, 1  ;;  %v16351_v44 = vld [vmem:[#allocation2 + $0x180] sm:$0xff] }
 0x7d3   :  { %10781 = vmatmul.mubr.bf16.gmra.mrb[76].mxu1 %v7753_v33  ;;  %v7789_v33 = vsel %vm1224_vm6, %v16294_v46, %v7788_v56 }
 0x7d4   :  { %10788 = vmatprep.mubr.bf16.mxu1 %v8242_v10  ;;  %v8251_v10 = vsel %vm1801_vm9, %v8249_v5, %v8250_v38  ;;  %v8115_v5 = vld [vmem:[#allocation2 + $0x138] sm:$0x1]  ;;  %v8258_v38 = vrot.slane %v8114_v59, 1 }
 0x7db   :  { %10789 = vmatmul.mubr.bf16.gmra.mrb[80].mxu1 %v7765_v21  ;;  %v8253_v21 = vrot.slane %v8111_v57, 1 }
 0x7dc   :  { %10796 = vmatprep.mubr.bf16.mxu1 %v8245_v28  ;;  %v7801_v28 = vsel %vm1224_vm6, %v16301_v19, %v7800_v17  ;;  %v8261_v17 = vrot.slane %v8116_v47, 1 }
 0x7dd   :  { %v8254_v62 = vsel %vm1801_vm9, %v8252_v30, %v8253_v21  ;;  %v7841_v30 = vshll.u32 %v16316_v27, 16  ;;  %v7836_v21 = vrot.slane %v7834_v2, 1 }
 0x7de   :  { %v8263_v50 = vsel %vm1801_vm9, %v8261_v17, %v8262_v23  ;;  %v8122_v17 = vld [vmem:[#allocation2 + $0x170] sm:$0xfe]  ;;  %v8123_v23 = vld [vmem:[#allocation2 + $0x178] sm:$0x1] }
 0x7e3   :  { %10797 = vmatmul.mubr.bf16.gmra.mrb[84].mxu1 %v7777_v61  ;;  %v7819_v61 = vrot.slane %v7817_v25, 1 }
 0x7e4   :  { %10804 = vmatprep.mubr.bf16.mxu1 %v8248_v3  ;;  %v7602_v3 = vld [vmem:[#allocation2 + $0x130] sm:$0xff] }
 0x7e5   :  { %v7820_v49 = vor.u32 %v7819_v61, %v7815_v13  ;;  %v7829_v56 = vshll.u32 %v7602_v3, 16  ;;  %v7827_v39 = vshrl.u32 %v7602_v3, 16  ;;  %v7607_v3 = vld [vmem:[#allocation2 + $0x158] sm:$0x1] }
 0x7e7   :  { %v7831_v52 = vrot.slane %v7829_v56, 1  ;;  %v8120_v56 = vld [vmem:[#allocation2 + $0x160] sm:$0xfe] }
 0x7e8   :  { %v8267_v11 = vrot.slane %v8120_v56, 1  ;;  %v7613_v56 = vld [vmem:[#allocation2 + $0x188] sm:$0x1] }
 0x7e9   :  { %v7832_v57 = vor.u32 %v7831_v52, %v7827_v39 }
 0x7eb   :  { %10805 = vmatmul.mubr.bf16.gmra.mrb[88].mxu1 %v7789_v33  ;;  %v8259_v33 = vrot.slane %v8115_v5, 1  ;;  %v7837_v14 = vsel %vm1224_vm6, %v7832_v57, %v7836_v21  ;;  %v7858_v5 = vshll.u32 %v7607_v3, 16  ;;  %v16342_v57 = vld [vmem:[#allocation2 + $0x170] sm:$0xff] }
 0x7ec   :  { %10812 = vmatprep.mubr.bf16.mxu1 %v8251_v10  ;;  %v7825_v10 = vsel %vm1224_vm6, %v7820_v49, %v7824_v53  ;;  %v7851_v49 = vshrl.u32 %v16321_v31, 16  ;;  %v8121_v53 = vld [vmem:[#allocation2 + $0x168] sm:$0x1] }
 0x7ed   :  { %v8260_v42 = vsel %vm1801_vm9, %v8258_v38, %v8259_v33  ;;  %v7865_v33 = vshll.u32 %v16333_v4, 16  ;;  %v8268_v52 = vrot.slane %v8121_v53, 1 }
 0x7ee   :  { %v16336_v38 = vor.u32 %v7855_v35, %v7851_v49  ;;  %v7889_v35 = vshll.u32 %v16351_v44, 16 }
 0x7ef   :  { %v7867_v2 = vrot.slane %v7865_v33, 1  ;;  %v8269_v47 = vsel %vm1801_vm9, %v8267_v11, %v8268_v52  ;;  %v7887_v52 = vshrl.u32 %v16351_v44, 16 }
 0x7f0   :  { %v7891_v33 = vrot.slane %v7889_v35, 1 }
 0x7f1   :  { %v16345_v21 = vor.u32 %v7867_v2, %v7863_v36 }
 0x7f2   :  { %v16363_v2 = vor.u32 %v7891_v33, %v7887_v52  ;;  %v16378_v33 = vld [vmem:[#allocation2 + $0x1b0] sm:$0xff] }
 0x7f3   :  { %10813 = vmatmul.mubr.bf16.gmra.mrb[92].mxu1 %v7801_v28  ;;  %v7605_v28 = vld [vmem:[#allocation2 + $0x148] sm:$0x1] }
 0x7f4   :  { %10820 = vmatprep.mubr.bf16.mxu1 %v8254_v62  ;;  %v7843_v62 = vrot.slane %v7841_v30, 1  ;;  %v7846_v25 = vshll.u32 %v7605_v28, 16  ;;  %v7877_v28 = vshll.u32 %v16342_v57, 16 }
 0x7f6   :  { %v16327_v51 = vor.u32 %v7843_v62, %v7839_v15  ;;  %v7848_v61 = vrot.slane %v7846_v25, 1  ;;  %v7611_v15 = vld [vmem:[#allocation2 + $0x178] sm:$0x1] }
 0x7f8   :  { %v7849_v13 = vsel %vm1224_vm6, %v16327_v51, %v7848_v61  ;;  %v7882_v61 = vshll.u32 %v7611_v15, 16  ;;  %v16369_v15 = vld [vmem:[#allocation2 + $0x1a0] sm:$0xff] }
 0x7fa   :  { %v7884_v49 = vrot.slane %v7882_v61, 1  ;;  %v8129_v61 = vld [vmem:[#allocation2 + $0x1a8] sm:$0x1] }
 0x7fb   :  { %10821 = vmatmul.mubr.bf16.gmra.mrb[96].mxu1 %v7813_v32  ;;  %v8264_v32 = vrot.slane %v8118_v16, 1  ;;  %v7879_v16 = vrot.slane %v7877_v28, 1  ;;  %v7615_v28 = vld [vmem:[#allocation2 + $0x198] sm:$0x1] }
 0x7fc   :  { %10828 = vmatprep.mubr.bf16.mxu1 %v8257_v29  ;;  %v8265_v29 = vrot.slane %v8119_v8, 1 }
 0x7fe   :  { %v8266_v59 = vsel %vm1801_vm9, %v8264_v32, %v8265_v29  ;;  %v7875_v32 = vshrl.u32 %v16342_v57, 16  ;;  %v8124_v29 = vld [vmem:[#allocation2 + $0x180] sm:$0xfe] }
 0x800   :  { %v16354_v3 = vor.u32 %v7879_v16, %v7875_v32  ;;  %v7906_v16 = vshll.u32 %v7615_v28, 16  ;;  %v7619_v28 = vld [vmem:[#allocation2 + $0x1b8] sm:$0x1] }
 0x802   :  { %v7885_v53 = vsel %vm1224_vm6, %v16354_v3, %v7884_v49  ;;  %v7908_v35 = vrot.slane %v7906_v16, 1  ;;  %v7617_v49 = vld [vmem:[#allocation2 + $0x1a8] sm:$0x1]  ;;  %v7923_v16 = vshrl.u32 %v16378_v33, 16 }
 0x803   :  { %10829 = vmatmul.mubr.bf16.gmra.mrb[100].mxu1 %v7825_v10  ;;  %v7860_v10 = vrot.slane %v7858_v5, 1  ;;  %v7918_v52 = vshll.u32 %v7617_v49, 16 }
 0x804   :  { %10836 = vmatprep.mubr.bf16.mxu1 %v8260_v42  ;;  %v7609_v42 = vld [vmem:[#allocation2 + $0x168] sm:$0x1] }
 0x805   :  { %v7861_v39 = vsel %vm1224_vm6, %v16336_v38, %v7860_v10  ;;  %v7870_v30 = vshll.u32 %v7609_v42, 16  ;;  %v16360_v10 = vld [vmem:[#allocation2 + $0x190] sm:$0xff]  ;;  %v7894_v42 = vshll.u32 %v7613_v56, 16 }
 0x806   :  { %v7901_v36 = vshll.u32 %v16360_v10, 16 }
 0x807   :  { %v7872_v62 = vrot.slane %v7870_v30, 1 }
 0x809   :  { %v7873_v25 = vsel %vm1224_vm6, %v16345_v21, %v7872_v62  ;;  %v7903_v62 = vrot.slane %v7901_v36, 1  ;;  %v7925_v36 = vshll.u32 %v16378_v33, 16 }
 0x80b   :  { %10837 = vmatmul.mubr.bf16.gmra.mrb[104].mxu1 %v7837_v14  ;;  %v8270_v14 = vrot.slane %v8122_v17, 1  ;;  %v7896_v17 = vrot.slane %v7894_v42, 1  ;;  %v8130_v42 = vld [vmem:[#allocation2 + $0x1b0] sm:$0xfe] }
 0x80c   :  { %10844 = vmatprep.mubr.bf16.mxu1 %v8263_v50  ;;  %v8271_v50 = vrot.slane %v8123_v23, 1 }
 0x80e   :  { %v8272_v8 = vsel %vm1801_vm9, %v8270_v14, %v8271_v50  ;;  %v7897_v14 = vsel %vm1224_vm6, %v16363_v2, %v7896_v17  ;;  %v7920_v17 = vrot.slane %v7918_v52, 1 }
 0x813   :  { %10845 = vmatmul.mubr.bf16.gmra.mrb[108].mxu1 %v7849_v13  ;;  %v8125_v13 = vld [vmem:[#allocation2 + $0x188] sm:$0x1] }
 0x814   :  { %10852 = vmatprep.mubr.bf16.mxu1 %v8266_v59  ;;  %v8273_v59 = vrot.slane %v8124_v29, 1  ;;  %v8274_v5 = vrot.slane %v8125_v13, 1  ;;  %v7913_v29 = vshll.u32 %v16369_v15, 16 }
 0x816   :  { %v8275_v11 = vsel %vm1801_vm9, %v8273_v59, %v8274_v5  ;;  %v8280_v59 = vrot.slane %v8129_v61, 1  ;;  %v7915_v56 = vrot.slane %v7913_v29, 1  ;;  %v8132_v61 = vld [vmem:[#allocation2 + $0x1c0] sm:$0xfe] }
 0x81b   :  { %10853 = vmatmul.mubr.bf16.gmra.mrb[112].mxu1 %v7861_v39  ;;  %v8126_v39 = vld [vmem:[#allocation2 + $0x190] sm:$0xfe] }
 0x81c   :  { %10860 = vmatprep.mubr.bf16.mxu1 %v8269_v47  ;;  %v8127_v47 = vld [vmem:[#allocation2 + $0x198] sm:$0x1]  ;;  %v8276_v30 = vrot.slane %v8126_v39, 1 }
 0x81d   :  { %v8277_v23 = vrot.slane %v8127_v47, 1  ;;  %v8131_v47 = vld [vmem:[#allocation2 + $0x1b8] sm:$0x1] }
 0x81f   :  { %v8278_v50 = vsel %vm1801_vm9, %v8276_v30, %v8277_v23  ;;  %v8282_v30 = vrot.slane %v8130_v42, 1  ;;  %v8283_v23 = vrot.slane %v8131_v47, 1  ;;  %v16396_v42 = vld [vmem:[#allocation2 + $0x1d0] sm:$0xff] }
 0x823   :  { %10861 = vmatmul.mubr.bf16.gmra.mrb[116].mxu1 %v7873_v25  ;;  %v7899_v25 = vshrl.u32 %v16360_v10, 16 }
 0x824   :  { %10868 = vmatprep.mubr.bf16.mxu1 %v8272_v8  ;;  %v8128_v8 = vld [vmem:[#allocation2 + $0x1a0] sm:$0xfe] }
 0x825   :  { %v16372_v32 = vor.u32 %v7903_v62, %v7899_v25  ;;  %v8279_v13 = vrot.slane %v8128_v8, 1  ;;  %v7927_v62 = vrot.slane %v7925_v36, 1  ;;  %v16387_v25 = vld [vmem:[#allocation2 + $0x1c0] sm:$0xff]  ;;  %v7930_v8 = vshll.u32 %v7619_v28, 16 }
 0x826   :  { %v7935_v47 = vshrl.u32 %v16387_v25, 16  ;;  %v7949_v28 = vshll.u32 %v16396_v42, 16 }
 0x827   :  { %v7909_v5 = vsel %vm1224_vm6, %v16372_v32, %v7908_v35  ;;  %v16390_v29 = vor.u32 %v7927_v62, %v7923_v16  ;;  %v7937_v35 = vshll.u32 %v16387_v25, 16  ;;  %v7932_v49 = vrot.slane %v7930_v8, 1  ;;  %v7623_v16 = vld [vmem:[#allocation2 + $0x1d8] sm:$0x1] }
 0x82b   :  { %10869 = vmatmul.mubr.bf16.gmra.mrb[120].mxu1 %v7885_v53  ;;  %v8281_v53 = vsel %vm1801_vm9, %v8279_v13, %v8280_v59  ;;  %v8133_v13 = vld [vmem:[#allocation2 + $0x1c8] sm:$0x1]  ;;  %v8285_v59 = vrot.slane %v8132_v61, 1  ;;  %v7951_v61 = vrot.slane %v7949_v28, 1 }
 0x82c   :  { %10876 = vmatprep.mubr.bf16.mxu1 %v8275_v11  ;;  %v7911_v11 = vshrl.u32 %v16369_v15, 16 }
 0x82e   :  { %v16381_v39 = vor.u32 %v7915_v56, %v7911_v11  ;;  %v7621_v56 = vld [vmem:[#allocation2 + $0x1c8] sm:$0x1]  ;;  %v7939_v11 = vrot.slane %v7937_v35, 1  ;;  %v16405_v35 = vld [vmem:[#allocation2 + $0x1e0] sm:$0xff] }
 0x82f   :  { %v7942_v36 = vshll.u32 %v7621_v56, 16 }
 0x831   :  { %v7944_v62 = vrot.slane %v7942_v36, 1 }
 0x833   :  { %10877 = vmatmul.mubr.bf16.gmra.mrb[124].mxu1 %v7897_v14  ;;  %v7921_v14 = vsel %vm1224_vm6, %v16381_v39, %v7920_v17  ;;  %v16399_v17 = vor.u32 %v7939_v11, %v7935_v47  ;;  %v7961_v11 = vshll.u32 %v16405_v35, 16 }
 0x834   :  { %10884 = vmatprep.mubr.bf16.mxu1 %v8278_v50  ;;  %v8284_v50 = vsel %vm1801_vm9, %v8282_v30, %v8283_v23  ;;  %v8134_v30 = vld [vmem:[#allocation2 + $0x1d0] sm:$0xfe]  ;;  %v8135_v23 = vld [vmem:[#allocation2 + $0x1d8] sm:$0x1] }
 0x835   :  { %v7945_v8 = vsel %vm1224_vm6, %v16399_v17, %v7944_v62  ;;  %v7963_v28 = vrot.slane %v7961_v11, 1  ;;  %v16414_v62 = vld [vmem:[#allocation2 + $0x1f0] sm:$0xff] }
 0x83b   :  { %10885 = vmatmul.mubr.bf16.gmra.mrb[128].mxu1 %v7909_v5  ;;  %v8286_v5 = vrot.slane %v8133_v13, 1 }
 0x83c   :  { %10892 = vmatprep.mubr.bf16.mxu1 %v8281_v53  ;;  %v7933_v53 = vsel %vm1224_vm6, %v16390_v29, %v7932_v49  ;;  %v7954_v49 = vshll.u32 %v7623_v16, 16 }
 0x83d   :  { %v8287_v52 = vsel %vm1801_vm9, %v8285_v59, %v8286_v5  ;;  %v7947_v59 = vshrl.u32 %v16396_v42, 16  ;;  %v8136_v5 = vld [vmem:[#allocation2 + $0x1e0] sm:$0xfe] }
 0x83e   :  { %v7956_v47 = vrot.slane %v7954_v49, 1 }
 0x83f   :  { %v16408_v56 = vor.u32 %v7951_v61, %v7947_v59  ;;  %v7973_v59 = vshll.u32 %v16414_v62, 16 }
 0x843   :  { %10893 = vmatmul.mubr.bf16.gmra.mrb[132].mxu1 %v7921_v14  ;;  %v8288_v14 = vrot.slane %v8134_v30, 1  ;;  %v7625_v30 = vld [vmem:[#allocation2 + $0x1e8] sm:$0x1] }
 0x844   :  { %10900 = vmatprep.mubr.bf16.mxu1 %v8284_v50  ;;  %v8289_v50 = vrot.slane %v8135_v23, 1  ;;  %v7957_v23 = vsel %vm1224_vm6, %v16408_v56, %v7956_v47  ;;  %v7966_v16 = vshll.u32 %v7625_v30, 16  ;;  %v7627_v47 = vld [vmem:[#allocation2 + $0x1f8] sm:$0x1]  ;;  %v7971_v30 = vshrl.u32 %v16414_v62, 16 }
 0x846   :  { %v8290_v13 = vsel %vm1801_vm9, %v8288_v14, %v8289_v50  ;;  %v7959_v50 = vshrl.u32 %v16405_v35, 16 }
 0x848   :  { %v16417_v61 = vor.u32 %v7963_v28, %v7959_v50  ;;  %v7978_v28 = vshll.u32 %v7627_v47, 16 }
 0x84a   :  { %v7980_v34 = vrot.slane %v7978_v28, 1 }
 0x84b   :  { %10901 = vmatmul.mubr.bf16.gmra.mrb[136].mxu1 %v7933_v53  ;;  %v8137_v53 = vld [vmem:[#allocation2 + $0x1e8] sm:$0x1] }
 0x84c   :  { %10908 = vmatprep.mubr.bf16.mxu1 %v8287_v52  ;;  %v8291_v52 = vrot.slane %v8136_v5, 1  ;;  %v8292_v36 = vrot.slane %v8137_v53, 1  ;;  %v7968_v5 = vrot.slane %v7966_v16, 1 }
 0x84e   :  { %v8293_v14 = vsel %vm1801_vm9, %v8291_v52, %v8292_v36  ;;  %v7969_v11 = vsel %vm1224_vm6, %v16417_v61, %v7968_v5  ;;  %v7975_v52 = vrot.slane %v7973_v59, 1  ;;  %v7629_v5 = vld [vmem:[#allocation2 + $0x208] sm:$0x1] }
 0x850   :  { %v16426_v50 = vor.u32 %v7975_v52, %v7971_v30  ;;  %v7990_v52 = vshll.u32 %v7629_v5, 16 }
 0x852   :  { %v7981_v59 = vsel %vm1224_vm6, %v16426_v50, %v7980_v34  ;;  %v7992_v48 = vrot.slane %v7990_v52, 1  ;;  %v7631_v34 = vld [vmem:[#allocation2 + $0x218] sm:$0x1]  ;;  %v8145_v52 = vld [vmem:[#allocation2 + $0x228] sm:$0x1] }
 0x853   :  { %10909 = vmatmul.mubr.bf16.gmra.mrb[140].mxu1 %v7945_v8  ;;  %v8138_v8 = vld [vmem:[#allocation2 + $0x1f0] sm:$0xfe] }
 0x854   :  { %10916 = vmatprep.mubr.bf16.mxu1 %v8290_v13  ;;  %v8139_v13 = vld [vmem:[#allocation2 + $0x1f8] sm:$0x1]  ;;  %v8294_v49 = vrot.slane %v8138_v8, 1  ;;  %v8141_v8 = vld [vmem:[#allocation2 + $0x208] sm:$0x1] }
 0x855   :  { %v8295_v53 = vrot.slane %v8139_v13, 1  ;;  %v8298_v26 = vrot.slane %v8141_v8, 1 }
 0x857   :  { %v8296_v36 = vsel %vm1801_vm9, %v8294_v49, %v8295_v53 }
 0x85b   :  { %10917 = vmatmul.mubr.bf16.gmra.mrb[144].mxu1 %v7957_v23  ;;  %v16423_v23 = vld [vmem:[#allocation2 + $0x200] sm:$0xff] }
 0x85c   :  { %10924 = vmatprep.mubr.bf16.mxu1 %v8293_v14  ;;  %v8140_v14 = vld [vmem:[#allocation2 + $0x200] sm:$0xfe]  ;;  %v7985_v16 = vshll.u32 %v16423_v23, 16  ;;  %v7983_v47 = vshrl.u32 %v16423_v23, 16 }
 0x85d   :  { %v8297_v13 = vrot.slane %v8140_v14, 1  ;;  %v8143_v14 = vld [vmem:[#allocation2 + $0x218] sm:$0x1] }
 0x85e   :  { %v7987_v49 = vrot.slane %v7985_v16, 1  ;;  %v8301_v63 = vrot.slane %v8143_v14, 1 }
 0x85f   :  { %v8299_v53 = vsel %vm1801_vm9, %v8297_v13, %v8298_v26 }
 0x860   :  { %v16435_v30 = vor.u32 %v7987_v49, %v7983_v47  ;;  %v8002_v49 = vshll.u32 %v7631_v34, 16  ;;  %v8434_v47 = vld [vmem:[#allocation2 + $0x20] sm:$0xff] }
 0x861   :  { %v8501_v18 = vshll.u32 %v8434_v47, 16  ;;  %v8499_v24 = vshrl.u32 %v8434_v47, 16 }
 0x862   :  { %v7993_v16 = vsel %vm1224_vm6, %v16435_v30, %v7992_v48  ;;  %v8004_v48 = vrot.slane %v8002_v49, 1 }
 0x863   :  { %10925 = vmatmul.mubr.bf16.gmra.mrb[148].mxu1 %v7969_v11  ;;  %v16432_v11 = vld [vmem:[#allocation2 + $0x210] sm:$0xff]  ;;  %v8503_v43 = vrot.slane %v8501_v18, 1 }
 0x864   :  { %10932 = vmatprep.mubr.bf16.mxu1 %v8296_v36  ;;  %v8142_v36 = vld [vmem:[#allocation2 + $0x210] sm:$0xfe]  ;;  %v7997_v28 = vshll.u32 %v16432_v11, 16  ;;  %v7995_v5 = vshrl.u32 %v16432_v11, 16 }
 0x865   :  { %v8300_v8 = vrot.slane %v8142_v36, 1  ;;  %v8504_v49 = vor.u32 %v8503_v43, %v8499_v24  ;;  %v8439_v24 = vld [vmem:[#allocation2 + $0x48] sm:$0x1] }
 0x866   :  { %v7999_v26 = vrot.slane %v7997_v28, 1  ;;  %v8304_v28 = vrot.slane %v8145_v52, 1  ;;  %v8513_v52 = vshll.u32 %v8436_v20, 16 }
 0x867   :  { %v8302_v13 = vsel %vm1801_vm9, %v8300_v8, %v8301_v63 }
 0x868   :  { %v16444_v1 = vor.u32 %v7999_v26, %v7995_v5 }
 0x86a   :  { %v8005_v63 = vsel %vm1224_vm6, %v16444_v1, %v8004_v48  ;;  %v8437_v48 = vld [vmem:[#allocation2 + $0x38] sm:$0x1] }
 0x86b   :  { %10933 = vmatmul.mubr.bf16.gmra.mrb[152].mxu1 %v7981_v59  ;;  %v16441_v59 = vld [vmem:[#allocation2 + $0x220] sm:$0xff] }
 0x86c   :  { %10940 = vmatprep.mubr.bf16.mxu1 %v8299_v53  ;;  %v8144_v53 = vld [vmem:[#allocation2 + $0x220] sm:$0xfe]  ;;  %v8009_v36 = vshll.u32 %v16441_v59, 16  ;;  %v8007_v26 = vshrl.u32 %v16441_v59, 16 }
 0x86d   :  { %v8303_v14 = vrot.slane %v8144_v53, 1 }
 0x86e   :  { %v8011_v8 = vrot.slane %v8009_v36, 1 }
 0x86f   :  { %v8305_v34 = vsel %vm1801_vm9, %v8303_v14, %v8304_v28  ;;  %v8515_v14 = vrot.slane %v8513_v52, 1  ;;  %v8438_v28 = vld [vmem:[#allocation2 + $0x40] sm:$0xff] }
 0x870   :  { %v16451_v45 = vor.u32 %v8011_v8, %v8007_v26  ;;  %v13887_v26 = vld [vmem:[#allocation12 + $0x8] sm:$0xff]  }
 0x873   :  { %10941 = vmatmul.mubr.bf16.gmra.mrb[156].mxu1 %v7993_v16  ;;  %v7633_v16 = vld [vmem:[#allocation2 + $0x228] sm:$0x1] }
 0x874   :  { %10948 = vmatprep.mubr.bf16.mxu1 %v8302_v13  ;;  %v8435_v13 = vld [vmem:[#allocation2 + $0x28] sm:$0x1]  ;;  %v8014_v5 = vshll.u32 %v7633_v16, 16  ;;  %v8511_v16 = vshrl.u32 %v8436_v20, 16 }
 0x875   :  { %v8506_v53 = vshll.u32 %v8435_v13, 16  ;;  %v8525_v13 = vshll.u32 %v8438_v28, 16 }
 0x876   :  { %v8016_v22 = vrot.slane %v8014_v5, 1 }
 0x877   :  { %v8508_v37 = vrot.slane %v8506_v53, 1  ;;  %v8527_v5 = vrot.slane %v8525_v13, 1  ;;  %v8523_v53 = vshrl.u32 %v8438_v28, 16  ;;  %v13890_v13 = vld [vmem:[#allocation12 + $0x20] sm:$0xff]  }
 0x878   :  { %v8017_v36 = vsel %vm1224_vm6, %v16451_v45, %v8016_v22  ;;  %v8440_v22 = vld [vmem:[#allocation2 + $0x50] sm:$0xff] }
 0x879   :  { %v8509_v18 = vsel %vm1224_vm6, %v8504_v49, %v8508_v37  ;;  %v8530_v37 = vshll.u32 %v8439_v24, 16  ;;  %v13888_v49 = vld [vmem:[#allocation12 + $0x10] sm:$0xff]   ;;  %v8528_v52 = vor.u32 %v8527_v5, %v8523_v53 }
 0x87a   :  { %v8444_v53 = vld [vmem:[#allocation2 + $0x70] sm:$0xff] }
 0x87b   :  { %10949 = vmatmul.mubr.bf16.gmra.mrb[160].mxu1 %v8005_v63  ;;  %v8518_v63 = vshll.u32 %v8437_v48, 16  ;;  %v8532_v48 = vrot.slane %v8530_v37, 1 }
 0x87c   :  { %10956 = vmatprep.mubr.bf16.mxu1 %v8305_v34  ;;  %v8516_v34 = vor.u32 %v8515_v14, %v8511_v16  ;;  %v8441_v14 = vld [vmem:[#allocation2 + $0x58] sm:$0x1] }
 0x87d   :  { %v8520_v8 = vrot.slane %v8518_v63, 1  ;;  %v8442_v63 = vld [vmem:[#allocation2 + $0x60] sm:$0xff] }
 0x87e   :  { %v8549_v24 = vshll.u32 %v8442_v63, 16  ;;  %v8547_v37 = vshrl.u32 %v8442_v63, 16 }
 0x87f   :  { %v8521_v43 = vsel %vm1224_vm6, %v8516_v34, %v8520_v8  ;;  %v8542_v34 = vshll.u32 %v8441_v14, 16  ;;  %v8445_v14 = vld [vmem:[#allocation2 + $0x78] sm:$0x1] }
 0x883   :  { %10957 = vmatmul.mubr.bf16.gmra.mrb[164].mxu1 %v8017_v36  ;;  %v8537_v36 = vshll.u32 %v8440_v22, 16 }
 0x884   :  { %10997 = vmatprep.mubr.bf16.mxu1 %v8509_v18  ;;  %v13889_v18 = vld [vmem:[#allocation12 + $0x18] sm:$0xff]  }
 0x885   :  { %v8539_v16 = vrot.slane %v8537_v36, 1  ;;  %v8561_v36 = vshll.u32 %v8444_v53, 16 }
 0x88b   :  { %10998 = vmatmul.mubr.bf16.vlgmr.msra.gmra.mrb[40].mxu1 %v8434_v47  ;;  %v8533_v47 = vsel %vm1224_vm6, %v8528_v52, %v8532_v48 }
 0x88c   :  { %11005 = vmatprep.mubr.bf16.mxu1 %v8521_v43  ;;  %12804 = vmatpush3.bf16.msra.mxu1 %v16323_v9  ;;  %v8535_v9 = vshrl.u32 %v8440_v22, 16  ;;  %v8544_v43 = vrot.slane %v8542_v34, 1 }
 0x88d   :  { %12805 = vmatprep.subr.bf16.mxu1 %v13887_v26 }
 0x88e   :  { %v8540_v8 = vor.u32 %v8539_v16, %v8535_v9  ;;  %v8446_v16 = vld [vmem:[#allocation2 + $0x80] sm:$0xff]  ;;  %v8559_v9 = vshrl.u32 %v8444_v53, 16 }
 0x890   :  { %12806 = vmatpush3.bf16.msra.mxu1 %v13887_v26  ;;  %v8443_v26 = vld [vmem:[#allocation2 + $0x68] sm:$0x1]  ;;  %v8545_v5 = vsel %vm1224_vm6, %v8540_v8, %v8544_v43  ;;  %v8573_v8 = vshll.u32 %v8446_v16, 16 }
 0x891   :  { %12807 = vmatprep.subr.bf16.mxu1 %v13888_v49  ;;  %v8554_v52 = vshll.u32 %v8443_v26, 16  ;;  %v8447_v43 = vld [vmem:[#allocation2 + $0x88] sm:$0x1] }
 0x892   :  { %v8575_v26 = vrot.slane %v8573_v8, 1 }
 0x893   :  { %11006 = vmatmul.mubr.bf16.gmra.mrb[44].mxu1 %v8436_v20  ;;  %v8551_v20 = vrot.slane %v8549_v24, 1  ;;  %v8556_v48 = vrot.slane %v8554_v52, 1 }
 0x894   :  { %11013 = vmatprep.mubr.bf16.mxu1 %v8533_v47  ;;  %12808 = vmatpush3.bf16.msra.mxu1 %v13888_v49 }
 0x895   :  { %12809 = vmatprep.subr.bf16.mxu1 %v13889_v18  ;;  %v8552_v49 = vor.u32 %v8551_v20, %v8547_v37  ;;  %v8448_v20 = vld [vmem:[#allocation2 + $0x90] sm:$0xff]  ;;  %v8571_v37 = vshrl.u32 %v8446_v16, 16 }
 0x897   :  { %v8557_v47 = vsel %vm1224_vm6, %v8552_v49, %v8556_v48  ;;  %v8576_v52 = vor.u32 %v8575_v26, %v8571_v37  ;;  %v8585_v49 = vshll.u32 %v8448_v20, 16  ;;  %v8449_v48 = vld [vmem:[#allocation2 + $0x98] sm:$0x1]  ;;  %v8452_v26 = vld [vmem:[#allocation2 + $0xb0] sm:$0xff] }
 0x898   :  { %12810 = vmatpush3.bf16.msra.mxu1 %v13889_v18  ;;  %v8563_v18 = vrot.slane %v8561_v36, 1 }
 0x899   :  { %12811 = vmatprep.subr.bf16.mxu1 %v13890_v13 }
 0x89a   :  { %v8564_v34 = vor.u32 %v8563_v18, %v8559_v9  ;;  %v8583_v18 = vshrl.u32 %v8448_v20, 16  ;;  %v8590_v9 = vshll.u32 %v8449_v48, 16 }
 0x89b   :  { %11014 = vmatmul.mubr.bf16.gmra.mrb[48].mxu1 %v8438_v28  ;;  %v8566_v28 = vshll.u32 %v8445_v14, 16 }
 0x89c   :  { %11021 = vmatprep.mubr.bf16.mxu1 %v8545_v5  ;;  %12812 = vmatpush3.bf16.msra.mxu1 %v13890_v13  ;;  %v13891_v5 = vld [vmem:[#allocation12 + $0x28] sm:$0xff]   ;;  %v8592_v8 = vrot.slane %v8590_v9, 1 }
 0x89d   :  { %v8568_v24 = vrot.slane %v8566_v28, 1  ;;  %12813 = vmatprep.subr.bf16.mxu1 %v13891_v5 }
 0x89f   :  { %v8569_v13 = vsel %vm1224_vm6, %v8564_v34, %v8568_v24  ;;  %v8451_v24 = vld [vmem:[#allocation2 + $0xa8] sm:$0x1] }
 0x8a0   :  { %12814 = vmatpush3.bf16.msra.mxu1 %v13891_v5  ;;  %v8602_v37 = vshll.u32 %v8451_v24, 16 }
 0x8a3   :  { %11022 = vmatmul.mubr.bf16.gmra.mrb[52].mxu1 %v8440_v22  ;;  %v8578_v22 = vshll.u32 %v8447_v43, 16 }
 0x8a4   :  { %11029 = vmatprep.mubr.bf16.mxu1 %v8557_v47  ;;  %v8587_v47 = vrot.slane %v8585_v49, 1  ;;  %v8453_v49 = vld [vmem:[#allocation2 + $0xb8] sm:$0x1] }
 0x8a5   :  { %v8580_v36 = vrot.slane %v8578_v22, 1  ;;  %v8609_v22 = vshll.u32 %v8452_v26, 16 }
 0x8a6   :  { %v8588_v28 = vor.u32 %v8587_v47, %v8583_v18  ;;  %v8607_v47 = vshrl.u32 %v8452_v26, 16  ;;  %v8614_v18 = vshll.u32 %v8453_v49, 16 }
 0x8a7   :  { %v8581_v14 = vsel %vm1224_vm6, %v8576_v52, %v8580_v36  ;;  %v8604_v52 = vrot.slane %v8602_v37, 1  ;;  %v8611_v48 = vrot.slane %v8609_v22, 1 }
 0x8a8   :  { %v8593_v43 = vsel %vm1224_vm6, %v8588_v28, %v8592_v8  ;;  %v8616_v28 = vrot.slane %v8614_v18, 1  ;;  %v8381_v18 = vld [vmem:[#allocation2 + $0xd0] sm:$0xff] }
 0x8ab   :  { %11030 = vmatmul.mubr.bf16.gmra.mrb[56].mxu1 %v8442_v63  ;;  %v8450_v63 = vld [vmem:[#allocation2 + $0xa0] sm:$0xff] }
 0x8ac   :  { %11037 = vmatprep.mubr.bf16.mxu1 %v8569_v13  ;;  %v8597_v34 = vshll.u32 %v8450_v63, 16  ;;  %v8595_v5 = vshrl.u32 %v8450_v63, 16 }
 0x8ae   :  { %v8599_v13 = vrot.slane %v8597_v34, 1  ;;  %v8455_v34 = vld [vmem:[#allocation2 + $0xc8] sm:$0x1] }
 0x8b3   :  { %11038 = vmatmul.mubr.bf16.gmra.mrb[60].mxu1 %v8444_v53  ;;  %v8600_v53 = vor.u32 %v8599_v13, %v8595_v5  ;;  %v8626_v5 = vshll.u32 %v8455_v34, 16 }
 0x8b4   :  { %11045 = vmatprep.mubr.bf16.mxu1 %v8581_v14  ;;  %v8454_v14 = vld [vmem:[#allocation2 + $0xc0] sm:$0xff] }
 0x8b5   :  { %v8605_v36 = vsel %vm1224_vm6, %v8600_v53, %v8604_v52  ;;  %v8621_v9 = vshll.u32 %v8454_v14, 16  ;;  %v8619_v13 = vshrl.u32 %v8454_v14, 16  ;;  %v8628_v37 = vrot.slane %v8626_v5, 1  ;;  %v8457_v53 = vld [vmem:[#allocation2 + $0xd8] sm:$0x1] }
 0x8b6   :  { %v8638_v52 = vshll.u32 %v8457_v53, 16 }
 0x8b7   :  { %v8623_v24 = vrot.slane %v8621_v9, 1 }
 0x8b8   :  { %v8640_v49 = vrot.slane %v8638_v52, 1 }
 0x8bb   :  { %11046 = vmatmul.mubr.bf16.gmra.mrb[64].mxu1 %v8446_v16  ;;  %v8612_v16 = vor.u32 %v8611_v48, %v8607_v47 }
 0x8bc   :  { %11053 = vmatprep.mubr.bf16.mxu1 %v8593_v43  ;;  %v13892_v43 = vld [vmem:[#allocation12 + $0x30] sm:$0xff]  }
 0x8bd   :  { %v8617_v8 = vsel %vm1224_vm6, %v8612_v16, %v8616_v28  ;;  %12815 = vmatprep.subr.bf16.mxu1 %v13892_v43  ;;  %v8461_v16 = vld [vmem:[#allocation2 + $0xf8] sm:$0x1] }
 0x8be   :  { %12816 = vmatpush3.bf16.msra.mxu1 %v13892_v43  ;;  %v8662_v28 = vshll.u32 %v8461_v16, 16  ;;  %v8464_v43 = vld [vmem:[#allocation2 + $0x110] sm:$0xff]  ;;  %v9009_v16 = vld [vmem:[#allocation2 + $0x238] sm:$0x1] }
 0x8bf   :  { %v8679_v52 = vshrl.u32 %v8464_v43, 16 }
 0x8c3   :  { %11054 = vmatmul.mubr.bf16.gmra.mrb[68].mxu1 %v8448_v20  ;;  %v8624_v20 = vor.u32 %v8623_v24, %v8619_v13  ;;  %v8463_v24 = vld [vmem:[#allocation2 + $0x108] sm:$0x1]  ;;  %v13893_v13 = vld [vmem:[#allocation12 + $0x38] sm:$0xff]  }
 0x8c4   :  { %11061 = vmatprep.mubr.bf16.mxu1 %v8605_v36  ;;  %v8459_v36 = vld [vmem:[#allocation2 + $0xe8] sm:$0x1]  ;;  %12817 = vmatprep.subr.bf16.mxu1 %v13893_v13 }
 0x8c5   :  { %v8629_v22 = vsel %vm1224_vm6, %v8624_v20, %v8628_v37  ;;  %v8650_v48 = vshll.u32 %v8459_v36, 16  ;;  %v8674_v20 = vshll.u32 %v8463_v24, 16  ;;  %v8681_v37 = vshll.u32 %v8464_v43, 16  ;;  %12818 = vmatpush3.bf16.msra.mxu1 %v13893_v13 }
 0x8c7   :  { %v8652_v47 = vrot.slane %v8650_v48, 1 }
 0x8c9   :  { %v8653_v9 = vsel %vm1224_vm6, %v16301_v19, %v8652_v47  ;;  %v8465_v19 = vld [vmem:[#allocation2 + $0x118] sm:$0x1] }
 0x8ca   :  { %v8686_v36 = vshll.u32 %v8465_v19, 16 }
 0x8cb   :  { %11062 = vmatmul.mubr.bf16.gmra.mrb[72].mxu1 %v8450_v63  ;;  %v8641_v63 = vsel %vm1224_vm6, %v16294_v46, %v8640_v49  ;;  %v8683_v49 = vrot.slane %v8681_v37, 1  ;;  %v8471_v37 = vld [vmem:[#allocation2 + $0x168] sm:$0x1] }
 0x8cc   :  { %11069 = vmatprep.mubr.bf16.mxu1 %v8617_v8  ;;  %v8664_v8 = vrot.slane %v8662_v28, 1  ;;  %v8688_v48 = vrot.slane %v8686_v36, 1  ;;  %v8722_v19 = vshll.u32 %v8471_v37, 16 }
 0x8ce   :  { %v8665_v46 = vsel %vm1224_vm6, %v16307_v58, %v8664_v8  ;;  %v8684_v58 = vor.u32 %v8683_v49, %v8679_v52  ;;  %v8475_v49 = vld [vmem:[#allocation2 + $0x188] sm:$0x1] }
 0x8d0   :  { %v8689_v47 = vsel %vm1224_vm6, %v8684_v58, %v8688_v48  ;;  %v8479_v58 = vld [vmem:[#allocation2 + $0x1a8] sm:$0x1] }
 0x8d3   :  { %11070 = vmatmul.mubr.bf16.gmra.mrb[76].mxu1 %v8452_v26  ;;  %v8462_v26 = vld [vmem:[#allocation2 + $0x100] sm:$0xff] }
 0x8d4   :  { %11077 = vmatprep.mubr.bf16.mxu1 %v8629_v22  ;;  %v8669_v34 = vshll.u32 %v8462_v26, 16  ;;  %v8667_v5 = vshrl.u32 %v8462_v26, 16  ;;  %v8676_v22 = vrot.slane %v8674_v20, 1 }
 0x8db   :  { %11078 = vmatmul.mubr.bf16.gmra.mrb[80].mxu1 %v8454_v14  ;;  %v8671_v14 = vrot.slane %v8669_v34, 1  ;;  %v9168_v34 = vrot.slane %v9009_v16, 1  ;;  %v8483_v16 = vld [vmem:[#allocation2 + $0x1c8] sm:$0x1] }
 0x8dc   :  { %11085 = vmatprep.mubr.bf16.mxu1 %v8641_v63  ;;  %v8383_v63 = vld [vmem:[#allocation2 + $0xf0] sm:$0xff] }
 0x8dd   :  { %v8672_v53 = vor.u32 %v8671_v14, %v8667_v5  ;;  %v8469_v14 = vld [vmem:[#allocation2 + $0x158] sm:$0x1] }
 0x8de   :  { %v8710_v5 = vshll.u32 %v8469_v14, 16 }
 0x8e0   :  { %v8712_v20 = vrot.slane %v8710_v5, 1 }
 0x8e3   :  { %11086 = vmatmul.mubr.bf16.gmra.mrb[84].mxu1 %v8381_v18  ;;  %v9008_v18 = vld [vmem:[#allocation2 + $0x230] sm:$0xfe] }
 0x8e4   :  { %11093 = vmatprep.mubr.bf16.mxu1 %v8653_v9  ;;  %v8467_v9 = vld [vmem:[#allocation2 + $0x148] sm:$0x1]  ;;  %v9167_v28 = vrot.slane %v9008_v18, 1 }
 0x8e5   :  { %v8698_v24 = vshll.u32 %v8467_v9, 16 }
 0x8e6   :  { %v9169_v8 = vsel %vm1801_vm9, %v9167_v28, %v9168_v34  ;;  %v8485_v28 = vld [vmem:[#allocation2 + $0x1d8] sm:$0x1] }
 0x8e7   :  { %12800 = vmatmul.mubr.bf16.gmra.mrb[212].mxu0 %v9169_v8  ;;  %v8487_v8 = vld [vmem:[#allocation2 + $0x1e8] sm:$0x1] }
 0x8eb   :  { %11094 = vmatmul.mubr.bf16.gmra.mrb[88].mxu1 %v16292_v41  ;;  %v8677_v41 = vsel %vm1224_vm6, %v8672_v53, %v8676_v22  ;;  %v8724_v53 = vrot.slane %v8722_v19, 1  ;;  %v8473_v22 = vld [vmem:[#allocation2 + $0x178] sm:$0x1] }
 0x8ec   :  { %11101 = vmatprep.mubr.bf16.mxu1 %v8665_v46  ;;  %v8700_v46 = vrot.slane %v8698_v24, 1 }
 0x8ee   :  { %v8701_v13 = vsel %vm1224_vm6, %v16327_v51, %v8700_v46  ;;  %v8734_v51 = vshll.u32 %v8473_v22, 16  ;;  %v8489_v46 = vld [vmem:[#allocation2 + $0x1f8] sm:$0x1] }
 0x8f0   :  { %v8736_v52 = vrot.slane %v8734_v51, 1 }
 0x8f3   :  { %11102 = vmatmul.mubr.bf16.gmra.mrb[92].mxu1 %v8383_v63  ;;  %v8477_v63 = vld [vmem:[#allocation2 + $0x198] sm:$0x1] }
 0x8f4   :  { %11109 = vmatprep.mubr.bf16.mxu1 %v8677_v41 }
 0x8fb   :  { %11110 = vmatmul.mubr.bf16.gmra.mrb[96].mxu1 %v8462_v26  ;;  %v8713_v26 = vsel %vm1224_vm6, %v16336_v38, %v8712_v20  ;;  %v8746_v38 = vshll.u32 %v8475_v49, 16 }
 0x8fc   :  { %11117 = vmatprep.mubr.bf16.mxu1 %v8689_v47  ;;  %v8481_v47 = vld [vmem:[#allocation2 + $0x1b8] sm:$0x1] }
 0x8fd   :  { %v8748_v36 = vrot.slane %v8746_v38, 1  ;;  %v8496_v38 = vld [vmem:[#allocation2 + $0x230] sm:$0xff] }
 0x903   :  { %11118 = vmatmul.mubr.bf16.gmra.mrb[100].mxu1 %v8464_v43  ;;  %v8725_v43 = vsel %vm1224_vm6, %v16345_v21, %v8724_v53  ;;  %v8758_v21 = vshll.u32 %v8477_v63, 16  ;;  %v8493_v53 = vld [vmem:[#allocation2 + $0x218] sm:$0x1] }
 0x904   :  { %11125 = vmatprep.mubr.bf16.mxu1 %v8701_v13  ;;  %v8491_v13 = vld [vmem:[#allocation2 + $0x208] sm:$0x1] }
 0x905   :  { %v8760_v41 = vrot.slane %v8758_v21, 1 }
 0x90b   :  { %11126 = vmatmul.mubr.bf16.gmra.mrb[104].mxu1 %v16316_v27  ;;  %v8737_v27 = vsel %vm1224_vm6, %v16354_v3, %v8736_v52  ;;  %v8770_v3 = vshll.u32 %v8479_v58, 16 }
 0x90c   :  { %11133 = vmatprep.mubr.bf16.mxu1 %v8713_v26 }
 0x90d   :  { %v8772_v48 = vrot.slane %v8770_v3, 1  ;;  %v8871_v3 = vshrl.u32 %v8496_v38, 16 }
 0x913   :  { %11134 = vmatmul.mubr.bf16.gmra.mrb[108].mxu1 %v16321_v31  ;;  %v8749_v31 = vsel %vm1224_vm6, %v16363_v2, %v8748_v36  ;;  %v8782_v2 = vshll.u32 %v8481_v47, 16  ;;  %v8873_v36 = vshll.u32 %v8496_v38, 16 }
 0x914   :  { %11141 = vmatprep.mubr.bf16.mxu1 %v8725_v43 }
 0x915   :  { %v8784_v18 = vrot.slane %v8782_v2, 1 }
 0x91b   :  { %11142 = vmatmul.mubr.bf16.gmra.mrb[112].mxu1 %v16333_v4  ;;  %v8761_v4 = vsel %vm1224_vm6, %v16372_v32, %v8760_v41  ;;  %v8794_v32 = vshll.u32 %v8483_v16, 16 }
 0x91c   :  { %11149 = vmatprep.mubr.bf16.mxu1 %v8737_v27  ;;  %v8495_v27 = vld [vmem:[#allocation2 + $0x228] sm:$0x1] }
 0x91d   :  { %v8796_v9 = vrot.slane %v8794_v32, 1 }
 0x923   :  { %11150 = vmatmul.mubr.bf16.gmra.mrb[116].mxu1 %v16342_v57  ;;  %v8773_v57 = vsel %vm1224_vm6, %v16381_v39, %v8772_v48  ;;  %v8806_v39 = vshll.u32 %v8485_v28, 16  ;;  %v17170_v28 = vld [vmem:[#allocation21_spill] sm:$0xff] }
 0x924   :  { %11157 = vmatprep.mubr.bf16.mxu1 %v8749_v31 }
 0x925   :  { %v8808_v34 = vrot.slane %v8806_v39, 1 }
 0x92b   :  { %11158 = vmatmul.mubr.bf16.gmra.mrb[120].mxu1 %v16351_v44  ;;  %v8785_v44 = vsel %vm1224_vm6, %v16390_v29, %v8784_v18  ;;  %v8818_v29 = vshll.u32 %v8487_v8, 16  ;;  %v17171_v8 = vld [vmem:[#allocation23_spill] sm:$0xff] }
 0x92c   :  { %11165 = vmatprep.mubr.bf16.mxu1 %v8761_v4 }
 0x92d   :  { %v8820_v24 = vrot.slane %v8818_v29, 1 }
 0x933   :  { %11166 = vmatmul.mubr.bf16.gmra.mrb[124].mxu1 %v16360_v10  ;;  %v8797_v10 = vsel %vm1224_vm6, %v16399_v17, %v8796_v9  ;;  %v8830_v17 = vshll.u32 %v8489_v46, 16  ;;  %v11547_v46 = vld [vmem:[#allocation8 + $0x20] sm:$0xff] }
 0x934   :  { %11173 = vmatprep.mubr.bf16.mxu1 %v8773_v57 }
 0x935   :  { %v8832_v14 = vrot.slane %v8830_v17, 1 }
 0x93b   :  { %11174 = vmatmul.mubr.bf16.gmra.mrb[128].mxu1 %v16369_v15  ;;  %v8809_v15 = vsel %vm1224_vm6, %v16408_v56, %v8808_v34  ;;  %v8842_v56 = vshll.u32 %v8491_v13, 16 }
 0x93c   :  { %11181 = vmatprep.mubr.bf16.mxu1 %v8785_v44 }
 0x93d   :  { %v8844_v19 = vrot.slane %v8842_v56, 1 }
 0x943   :  { %11182 = vmatmul.mubr.bf16.gmra.mrb[132].mxu1 %v16378_v33  ;;  %v8821_v33 = vsel %vm1224_vm6, %v16417_v61, %v8820_v24  ;;  %v11546_v24 = vld [vmem:[#allocation8 + $0x18] sm:$0xff] }
 0x944   :  { %11189 = vmatprep.mubr.bf16.mxu1 %v8797_v10 }
 0x94b   :  { %11190 = vmatmul.mubr.bf16.gmra.mrb[136].mxu1 %v16387_v25  ;;  %v8833_v25 = vsel %vm1224_vm6, %v16426_v50, %v8832_v14  ;;  %v8854_v50 = vshll.u32 %v8493_v53, 16  ;;  %v17174_v14 = vld [vmem:[#allocation20_spill] sm:$0xff]  ;;  %v11549_v53 = vld [vmem:[#allocation8 + $0x30] sm:$0xff] }
 0x94c   :  { %11197 = vmatprep.mubr.bf16.mxu1 %v8809_v15 }
 0x94d   :  { %v8856_v49 = vrot.slane %v8854_v50, 1  ;;  %v11551_v50 = vld [vmem:[#allocation8 + $0x40] sm:$0xff] }
 0x953   :  { %11198 = vmatmul.mubr.bf16.gmra.mrb[140].mxu1 %v16396_v42 }
 0x954   :  { %11205 = vmatprep.mubr.bf16.mxu1 %v8821_v33  ;;  %v11548_v33 = vld [vmem:[#allocation8 + $0x28] sm:$0xff] }
 0x95b   :  { %11206 = vmatmul.mubr.bf16.gmra.mrb[144].mxu1 %v16405_v35  ;;  %v8845_v35 = vsel %vm1224_vm6, %v16435_v30, %v8844_v19  ;;  %v8866_v30 = vshll.u32 %v8495_v27, 16 }
 0x95c   :  { %11213 = vmatprep.mubr.bf16.mxu1 %v8833_v25 }
 0x95d   :  { %v8868_v41 = vrot.slane %v8866_v30, 1  ;;  %v17177_v30 = vld [vmem:[#allocation27_spill] sm:$0xff] }
 0x95e   :  { %v10999_v5 = vpop.f32.mrb[40].mxu1 }
 0x95f   :  { %v16513_v20 = vadd.f32 %v15994_v6, %v10999_v5  ;;  %v11001_v37 = vpop.f32.mrb[41].mxu1 }
 0x960   :  { %v11002_v42 = vpop.f32.mrb[42].mxu1  ;;  %v12434_v37 = vpack.c.bf16 %v11548_v33, %v11547_v46  ;;  %v11561_v33 = vld [vmem:[#allocation8 + $0x90] sm:$0xff] }
 0x961   :  { %v16516_v26 = vadd.f32 %v16000_v54, %v11002_v42  ;;  %v11004_v61 = vpop.f32.mrb[43].mxu1  ;;  %v17175_v42 = vld [vmem:[#allocation22_spill] sm:$0xff] }
 0x963   :  { %11214 = vmatmul.mubr.bf16.gmra.mrb[148].mxu1 %v16414_v62  ;;  %v8857_v62 = vsel %vm1224_vm6, %v16444_v1, %v8856_v49  ;;  %v8869_v1 = vsel %vm1224_vm6, %v16451_v45, %v8868_v41  ;;  %v11544_v45 = vld [vmem:[#allocation8 + $0x8] sm:$0xff] }
 0x964   :  { %11221 = vmatprep.mubr.bf16.mxu1 %v8845_v35  ;;  %v11550_v35 = vld [vmem:[#allocation8 + $0x38] sm:$0xff]  ;;  %v11556_v41 = vld [vmem:[#allocation8 + $0x68] sm:$0xff] }
 0x965   :  { %v12437_v27 = vpack.c.bf16 %v11550_v35, %v11549_v53 }
 0x966   :  { %v11007_v22 = vpop.f32.mrb[44].mxu1 }
 0x967   :  { %v16522_v43 = vadd.f32 %v15992_v12, %v11007_v22  ;;  %v11009_v6 = vpop.f32.mrb[45].mxu1  ;;  %v8497_v12 = vld [vmem:[#allocation2 + $0x238] sm:$0x1]  ;;  %v11552_v22 = vld [vmem:[#allocation8 + $0x48] sm:$0xff] }
 0x968   :  { %v11010_v51 = vpop.f32.mrb[46].mxu1  ;;  %v8878_v48 = vshll.u32 %v8497_v12, 16  ;;  %v11553_v12 = vld [vmem:[#allocation8 + $0x50] sm:$0xff] }
 0x969   :  { %v16525_v52 = vadd.f32 %v15996_v7, %v11010_v51  ;;  %v11012_v54 = vpop.f32.mrb[47].mxu1  ;;  %v17176_v51 = vld [vmem:[#allocation25_spill] sm:$0xff] }
 0x96a   :  { %v8880_v57 = vrot.slane %v8878_v48, 1 }
 0x96b   :  { %11222 = vmatmul.mubr.bf16.gmra.mrb[152].mxu1 %v16423_v23  ;;  %v8875_v23 = vrot.slane %v8873_v36, 1 }
 0x96c   :  { %11229 = vmatprep.mubr.bf16.mxu1 %v8857_v62  ;;  %v12440_v62 = vpack.c.bf16 %v11552_v22, %v11551_v50  ;;  %v17183_v50 = vld [vmem:[#allocation30_spill] sm:$0xff] }
 0x96d   :  { %v8876_v47 = vor.u32 %v8875_v23, %v8871_v3  ;;  %v17178_v3 = vld [vmem:[#allocation24_spill] sm:$0xff] }
 0x96e   :  { %v11015_v63 = vpop.f32.mrb[48].mxu1 }
 0x96f   :  { %v16531_v31 = vadd.f32 %v16010_v40, %v11015_v63  ;;  %v11017_v21 = vpop.f32.mrb[49].mxu1  ;;  %v8881_v32 = vsel %vm1224_vm6, %v8876_v47, %v8880_v57 }
 0x970   :  { %v11018_v7 = vpop.f32.mrb[50].mxu1  ;;  %v11554_v21 = vld [vmem:[#allocation8 + $0x58] sm:$0xff] }
 0x971   :  { %v16534_v58 = vadd.f32 %v16015_v60, %v11018_v7  ;;  %v11020_v4 = vpop.f32.mrb[51].mxu1  ;;  %v11555_v7 = vld [vmem:[#allocation8 + $0x60] sm:$0xff] }
 0x972   :  { %v12446_v57 = vpack.c.bf16 %v11556_v41, %v11555_v7 }
 0x973   :  { %11230 = vmatmul.mubr.bf16.gmra.mrb[156].mxu1 %v16432_v11  ;;  %v11543_v11 = vld [vmem:[#allocation8] sm:$0xff] }
 0x974   :  { %11237 = vmatprep.mubr.bf16.mxu1 %v8869_v1  ;;  %v12428_v34 = vpack.c.bf16 %v11544_v45, %v11543_v11  ;;  %v12443_v1 = vpack.c.bf16 %v11554_v21, %v11553_v12  ;;  %v11559_v11 = vld [vmem:[#allocation8 + $0x80] sm:$0xff]  ;;  %v11560_v45 = vld [vmem:[#allocation8 + $0x88] sm:$0xff] }
 0x976   :  { %v11023_v40 = vpop.f32.mrb[52].mxu1 }
 0x977   :  { %v16540_v2 = vadd.f32 %v16006_v0, %v11023_v40  ;;  %v11025_v18 = vpop.f32.mrb[53].mxu1  ;;  %v17179_v40 = vld [vmem:[#allocation26_spill] sm:$0xff] }
 0x978   :  { %v11026_v16 = vpop.f32.mrb[54].mxu1 }
 0x979   :  { %v16543_v60 = vadd.f32 %v16012_v55, %v11026_v16  ;;  %v11028_v44 = vpop.f32.mrb[55].mxu1 }
 0x97a   :  { %v11557_v44 = vld [vmem:[#allocation8 + $0x70] sm:$0xff] }
 0x97b   :  { %11238 = vmatmul.mubr.bf16.gmra.mrb[160].mxu1 %v16441_v59  ;;  %v11545_v59 = vld [vmem:[#allocation8 + $0x10] sm:$0xff] }
 0x97c   :  { %11245 = vmatprep.mubr.bf16.mxu1 %v8881_v32  ;;  %v12431_v56 = vpack.c.bf16 %v11546_v24, %v11545_v59  ;;  %v11558_v32 = vld [vmem:[#allocation8 + $0x78] sm:$0xff] }
 0x97d   :  { %v17181_v59 = vld [vmem:[#allocation31_spill] sm:$0xff] }
 0x97e   :  { %v11031_v9 = vpop.f32.mrb[56].mxu1 }
 0x97f   :  { %v16548_v10 = vadd.f32 %v17170_v28, %v11031_v9  ;;  %v11033_v39 = vpop.f32.mrb[57].mxu1  ;;  %v17180_v28 = vld [vmem:[#allocation29_spill] sm:$0xff] }
 0x980   :  { %v11034_v0 = vpop.f32.mrb[58].mxu1 }
 0x981   :  { %v16551_v15 = vadd.f32 %v17171_v8, %v11034_v0  ;;  %v11036_v55 = vpop.f32.mrb[59].mxu1 }
 0x982   :  { %v12452_v55 = vpack.c.bf16 %v11560_v45, %v11559_v11 }
 0x983   :  { %11246 = vmatmul.mubr.bf16.gmra.mrb[164].mxu1 %v8496_v38 }
 0x984   :  { %12819 = vmatprep.mubr.msk.bf16.mxu1 %vm16555_vm10, %v12428_v34  ;;  %v12449_v34 = vpack.c.bf16 %v11558_v32, %v11557_v44  ;;  %v17186_v44 = vld [vmem:[#allocation32_spill] sm:$0xff] }
 0x986   :  { %v11039_v17 = vpop.f32.mrb[60].mxu1 }
 0x987   :  { %v16562_v13 = vadd.f32 %v17174_v14, %v11039_v17  ;;  %v11041_v25 = vpop.f32.mrb[61].mxu1  ;;  %v11562_v17 = vld [vmem:[#allocation8 + $0x98] sm:$0xff]  ;;  %v11563_v14 = vld [vmem:[#allocation8 + $0xa0] sm:$0xff] }
 0x988   :  { %v11042_v5 = vpop.f32.mrb[62].mxu1  ;;  %v11564_v25 = vld [vmem:[#allocation8 + $0xa8] sm:$0xff] }
 0x989   :  { %v16565_v61 = vadd.f32 %v17175_v42, %v11042_v5  ;;  %v11044_v19 = vpop.f32.mrb[63].mxu1  ;;  %v17182_v5 = vld [vmem:[#allocation28_spill] sm:$0xff]  ;;  %v12458_v35 = vpack.c.bf16 %v11564_v25, %v11563_v14  ;;  %v17188_v14 = vld [vmem:[#allocation37_spill] sm:$0xff] }
 0x98a   :  { %v12455_v19 = vpack.c.bf16 %v11562_v17, %v11561_v33  ;;  %v11576_v33 = vld [vmem:[#allocation8 + $0x108] sm:$0xff] }
 0x98b   :  { %12820 = vmatmul.mubr.msk.bf16.vlgmr.msra.gmra.mrb[168].mxu1 %vm16555_vm10, %v12431_v56 }
 0x98c   :  { %12823 = vmatprep.mubr.msk.bf16.mxu1 %vm16555_vm10, %v12434_v37 }
 0x98e   :  { %v11047_v6 = vpop.f32.mrb[64].mxu1 }
 0x98f   :  { %v16572_v54 = vadd.f32 %v17176_v51, %v11047_v6  ;;  %v11049_v49 = vpop.f32.mrb[65].mxu1  ;;  %v11565_v51 = vld [vmem:[#allocation8 + $0xb0] sm:$0xff] }
 0x990   :  { %v11050_v38 = vpop.f32.mrb[66].mxu1  ;;  %v11566_v49 = vld [vmem:[#allocation8 + $0xb8] sm:$0xff] }
 0x991   :  { %v16575_v36 = vadd.f32 %v17177_v30, %v11050_v38  ;;  %v11052_v63 = vpop.f32.mrb[67].mxu1  ;;  %v11568_v38 = vld [vmem:[#allocation8 + $0xc8] sm:$0xff]  ;;  %v12461_v21 = vpack.c.bf16 %v11566_v49, %v11565_v51  ;;  %v11578_v51 = vld [vmem:[#allocation8 + $0x118] sm:$0xff]  ;;  %v11579_v49 = vld [vmem:[#allocation8 + $0x120] sm:$0xff] }
 0x992   :  { %v17184_v30 = vld [vmem:[#allocation33_spill] sm:$0xff] }
 0x993   :  { %12824 = vmatmul.mubr.msk.bf16.gmra.mrb[172].mxu1 %vm16555_vm10, %v12437_v27  ;;  %v11567_v27 = vld [vmem:[#allocation8 + $0xc0] sm:$0xff] }
 0x994   :  { %12827 = vmatprep.mubr.msk.bf16.mxu1 %vm16555_vm10, %v12440_v62  ;;  %v12464_v41 = vpack.c.bf16 %v11568_v38, %v11567_v27  ;;  %v11580_v27 = vld [vmem:[#allocation8 + $0x128] sm:$0xff] }
 0x996   :  { %v11055_v4 = vpop.f32.mrb[68].mxu1 }
 0x997   :  { %v16582_v23 = vadd.f32 %v17178_v3, %v11055_v4  ;;  %v11057_v48 = vpop.f32.mrb[69].mxu1  ;;  %v17185_v4 = vld [vmem:[#allocation35_spill] sm:$0xff] }
 0x998   :  { %v11058_v47 = vpop.f32.mrb[70].mxu1 }
 0x999   :  { %v16585_v18 = vadd.f32 %v17179_v40, %v11058_v47  ;;  %v11060_v16 = vpop.f32.mrb[71].mxu1  ;;  %v11570_v47 = vld [vmem:[#allocation8 + $0xd8] sm:$0xff]  ;;  %v11572_v40 = vld [vmem:[#allocation8 + $0xe8] sm:$0xff] }
 0x99b   :  { %12828 = vmatmul.mubr.msk.bf16.gmra.mrb[176].mxu1 %vm16555_vm10, %v12443_v1  ;;  %v11569_v1 = vld [vmem:[#allocation8 + $0xd0] sm:$0xff] }
 0x99c   :  { %12831 = vmatprep.mubr.msk.bf16.mxu1 %vm16555_vm10, %v12446_v57  ;;  %v11571_v57 = vld [vmem:[#allocation8 + $0xe0] sm:$0xff]  ;;  %v12467_v45 = vpack.c.bf16 %v11570_v47, %v11569_v1  ;;  %v11581_v47 = vld [vmem:[#allocation8 + $0x130] sm:$0xff] }
 0x99e   :  { %v11063_v9 = vpop.f32.mrb[72].mxu1 }
 0x99f   :  { %v16592_v39 = vadd.f32 %v17180_v28, %v11063_v9  ;;  %v11065_v0 = vpop.f32.mrb[73].mxu1  ;;  %v12470_v28 = vpack.c.bf16 %v11572_v40, %v11571_v57  ;;  %v11582_v57 = vld [vmem:[#allocation8 + $0x138] sm:$0xff]  ;;  %v11583_v40 = vld [vmem:[#allocation8 + $0x140] sm:$0xff] }
 0x9a0   :  { %v11066_v8 = vpop.f32.mrb[74].mxu1  ;;  %v17187_v0 = vld [vmem:[#allocation34_spill] sm:$0xff] }
 0x9a1   :  { %v16595_v24 = vadd.f32 %v17181_v59, %v11066_v8  ;;  %v11068_v46 = vpop.f32.mrb[75].mxu1  ;;  %v11574_v59 = vld [vmem:[#allocation8 + $0xf8] sm:$0xff] }
 0x9a2   :  { %v11575_v46 = vld [vmem:[#allocation8 + $0x100] sm:$0xff] }
 0x9a3   :  { %12832 = vmatmul.mubr.msk.bf16.gmra.mrb[180].mxu1 %vm16555_vm10, %v12449_v34 }
 0x9a4   :  { %12835 = vmatprep.mubr.msk.bf16.mxu1 %vm16555_vm10, %v12452_v55  ;;  %v11573_v55 = vld [vmem:[#allocation8 + $0xf0] sm:$0xff] }
 0x9a6   :  { %v11071_v56 = vpop.f32.mrb[76].mxu1 }
 0x9a7   :  { %v16602_v37 = vadd.f32 %v17182_v5, %v11071_v56  ;;  %v11073_v42 = vpop.f32.mrb[77].mxu1  ;;  %v12473_v5 = vpack.c.bf16 %v11574_v59, %v11573_v55  ;;  %v17193_v59 = vld [vmem:[#allocation43_spill] sm:$0xff] }
 0x9a8   :  { %v11074_v53 = vpop.f32.mrb[78].mxu1 }
 0x9a9   :  { %v16605_v22 = vadd.f32 %v17183_v50, %v11074_v53  ;;  %v11076_v6 = vpop.f32.mrb[79].mxu1  ;;  %v17189_v53 = vld [vmem:[#allocation39_spill] sm:$0xff] }
 0x9aa   :  { %v11577_v6 = vld [vmem:[#allocation8 + $0x110] sm:$0xff] }
 0x9ab   :  { %12836 = vmatmul.mubr.msk.bf16.gmra.mrb[184].mxu1 %vm16555_vm10, %v12455_v19  ;;  %v12476_v19 = vpack.c.bf16 %v11576_v33, %v11575_v46 }
 0x9ac   :  { %12839 = vmatprep.mubr.msk.bf16.mxu1 %vm16555_vm10, %v12458_v35 }
 0x9ae   :  { %v11079_v62 = vpop.f32.mrb[80].mxu1 }
 0x9af   :  { %v16612_v63 = vadd.f32 %v17184_v30, %v11079_v62  ;;  %v11081_v12 = vpop.f32.mrb[81].mxu1  ;;  %v17190_v62 = vld [vmem:[#allocation36_spill] sm:$0xff] }
 0x9b0   :  { %v11082_v7 = vpop.f32.mrb[82].mxu1 }
 0x9b1   :  { %v16615_v3 = vadd.f32 %v17185_v4, %v11082_v7  ;;  %v11084_v48 = vpop.f32.mrb[83].mxu1  ;;  %v17191_v4 = vld [vmem:[#allocation38_spill] sm:$0xff] }
 0x9b3   :  { %12840 = vmatmul.mubr.msk.bf16.gmra.mrb[188].mxu1 %vm16555_vm10, %v12461_v21  ;;  %v12479_v21 = vpack.c.bf16 %v11578_v51, %v11577_v6  ;;  %v17194_v6 = vld [vmem:[#allocation40_spill] sm:$0xff] }
 0x9b4   :  { %12843 = vmatprep.mubr.msk.bf16.mxu1 %vm16555_vm10, %v12464_v41  ;;  %v12482_v41 = vpack.c.bf16 %v11580_v27, %v11579_v49 }
 0x9b6   :  { %v11087_v16 = vpop.f32.mrb[84].mxu1 }
 0x9b7   :  { %v16622_v32 = vadd.f32 %v17186_v44, %v11087_v16  ;;  %v11089_v11 = vpop.f32.mrb[85].mxu1  ;;  %v11584_v16 = vld [vmem:[#allocation8 + $0x148] sm:$0xff] }
 0x9b8   :  { %v11090_v9 = vpop.f32.mrb[86].mxu1  ;;  %v17192_v11 = vld [vmem:[#allocation41_spill] sm:$0xff] }
 0x9b9   :  { %v16625_v34 = vadd.f32 %v17187_v0, %v11090_v9  ;;  %v11092_v8 = vpop.f32.mrb[87].mxu1 }
 0x9ba   :  { %v12488_v8 = vpack.c.bf16 %v11584_v16, %v11583_v40  ;;  %v16654_v55 = vpop.f32.mrb[212].mxu0  ;;  %v17196_v40 = vld [vmem:[#allocation45_spill] sm:$0xff] }
 0x9bb   :  { %12844 = vmatmul.mubr.msk.bf16.gmra.mrb[192].mxu1 %vm16555_vm10, %v12467_v45 }
 0x9bc   :  { %12847 = vmatprep.mubr.msk.bf16.mxu1 %vm16555_vm10, %v12470_v28  ;;  %v12485_v28 = vpack.c.bf16 %v11582_v57, %v11581_v47  ;;  %v11592_v47 = vld [vmem:[#allocation8 + $0x188] sm:$0xff] }
 0x9be   :  { %v11095_v17 = vpop.f32.mrb[88].mxu1 }
 0x9bf   :  { %v16632_v25 = vadd.f32 %v17188_v14, %v11095_v17  ;;  %v11097_v56 = vpop.f32.mrb[89].mxu1  ;;  %v16659_v17 = vpop.f32.mrb[213].mxu0 }
 0x9c0   :  { %v11098_v42 = vpop.f32.mrb[90].mxu1  ;;  %v16661_v14 = vpop.f32.mrb[214].mxu0 }
 0x9c1   :  { %v16635_v35 = vadd.f32 %v17189_v53, %v11098_v42  ;;  %v11100_v50 = vpop.f32.mrb[91].mxu1  ;;  %v16665_v56 = vpop.f32.mrb[215].mxu0  ;;  %v11586_v42 = vld [vmem:[#allocation8 + $0x158] sm:$0xff]  ;;  %v11588_v53 = vld [vmem:[#allocation8 + $0x168] sm:$0xff] }
 0x9c3   :  { %12848 = vmatmul.mubr.msk.bf16.gmra.mrb[196].mxu1 %vm16555_vm10, %v12473_v5  ;;  %v11585_v5 = vld [vmem:[#allocation8 + $0x150] sm:$0xff] }
 0x9c4   :  { %12851 = vmatprep.mubr.msk.bf16.mxu1 %vm16555_vm10, %v12476_v19  ;;  %v11587_v19 = vld [vmem:[#allocation8 + $0x160] sm:$0xff]  ;;  %v12491_v27 = vpack.c.bf16 %v11586_v42, %v11585_v5  ;;  %v11594_v5 = vld [vmem:[#allocation8 + $0x198] sm:$0xff] }
 0x9c5   :  { %v11595_v42 = vld [vmem:[#allocation8 + $0x1a0] sm:$0xff] }
 0x9c6   :  { %v11103_v38 = vpop.f32.mrb[92].mxu1 }
 0x9c7   :  { %v16642_v30 = vadd.f32 %v17190_v62, %v11103_v38  ;;  %v11105_v12 = vpop.f32.mrb[93].mxu1  ;;  %v12494_v62 = vpack.c.bf16 %v11588_v53, %v11587_v19  ;;  %v11596_v19 = vld [vmem:[#allocation8 + $0x1a8] sm:$0xff] }
 0x9c8   :  { %v11106_v7 = vpop.f32.mrb[94].mxu1  ;;  %v17195_v12 = vld [vmem:[#allocation42_spill] sm:$0xff] }
 0x9c9   :  { %v16645_v48 = vadd.f32 %v17191_v4, %v11106_v7  ;;  %v11108_v1 = vpop.f32.mrb[95].mxu1  ;;  %v11590_v4 = vld [vmem:[#allocation8 + $0x178] sm:$0xff] }
 0x9ca   :  { %v11591_v1 = vld [vmem:[#allocation8 + $0x180] sm:$0xff] }
 0x9cb   :  { %12852 = vmatmul.mubr.msk.bf16.gmra.mrb[200].mxu1 %vm16555_vm10, %v12479_v21 }
 0x9cc   :  { %12855 = vmatprep.mubr.msk.bf16.mxu1 %vm16555_vm10, %v12482_v41  ;;  %v11589_v41 = vld [vmem:[#allocation8 + $0x170] sm:$0xff] }
 0x9ce   :  { %v11111_v44 = vpop.f32.mrb[96].mxu1 }
 0x9cf   :  { %v16652_v45 = vadd.f32 %v17192_v11, %v11111_v44  ;;  %v11113_v9 = vpop.f32.mrb[97].mxu1  ;;  %v12497_v11 = vpack.c.bf16 %v11590_v4, %v11589_v41  ;;  %v11597_v4 = vld [vmem:[#allocation8 + $0x1b0] sm:$0xff] }
 0x9d0   :  { %v11114_v0 = vpop.f32.mrb[98].mxu1 }
 0x9d1   :  { %v16657_v46 = vadd.f32 %v17193_v59, %v11114_v0  ;;  %v11116_v33 = vpop.f32.mrb[99].mxu1  ;;  %v17197_v0 = vld [vmem:[#allocation47_spill] sm:$0xff] }
 0x9d2   :  { %v11593_v33 = vld [vmem:[#allocation8 + $0x190] sm:$0xff] }
 0x9d3   :  { %12856 = vmatmul.mubr.msk.bf16.gmra.mrb[204].mxu1 %vm16555_vm10, %v12485_v28  ;;  %v12500_v28 = vpack.c.bf16 %v11592_v47, %v11591_v1  ;;  %v11598_v1 = vld [vmem:[#allocation8 + $0x1b8] sm:$0xff]  ;;  %v11599_v47 = vld [vmem:[#allocation8 + $0x1c0] sm:$0xff] }
 0x9d4   :  { %12859 = vmatprep.mubr.msk.bf16.mxu1 %vm16555_vm10, %v12488_v8 }
 0x9d6   :  { %v11119_v50 = vpop.f32.mrb[100].mxu1 }
 0x9d7   :  { %v16670_v51 = vadd.f32 %v17194_v6, %v11119_v50  ;;  %v11121_v49 = vpop.f32.mrb[101].mxu1  ;;  %v17198_v50 = vld [vmem:[#allocation44_spill] sm:$0xff] }
 0x9d8   :  { %v11122_v38 = vpop.f32.mrb[102].mxu1 }
 0x9d9   :  { %v16673_v21 = vadd.f32 %v17195_v12, %v11122_v38  ;;  %v11124_v7 = vpop.f32.mrb[103].mxu1  ;;  %v17199_v12 = vld [vmem:[#allocation46_spill] sm:$0xff] }
 0x9db   :  { %12860 = vmatmul.mubr.msk.bf16.gmra.mrb[208].mxu1 %vm16555_vm10, %v12491_v27  ;;  %v12503_v27 = vpack.c.bf16 %v11594_v5, %v11593_v33  ;;  %v17201_v33 = vld [vmem:[#allocation51_spill] sm:$0xff] }
 0x9dc   :  { %12863 = vmatprep.mubr.msk.bf16.mxu1 %vm16555_vm10, %v12494_v62  ;;  %v12506_v62 = vpack.c.bf16 %v11596_v19, %v11595_v42  ;;  %v11601_v19 = vld [vmem:[#allocation8 + $0x1d0] sm:$0xff] }
 0x9de   :  { %v11127_v57 = vpop.f32.mrb[104].mxu1 }
 0x9df   :  { %v16680_v16 = vadd.f32 %v17196_v40, %v11127_v57  ;;  %v11129_v44 = vpop.f32.mrb[105].mxu1  ;;  %v11600_v57 = vld [vmem:[#allocation8 + $0x1c8] sm:$0xff] }
 0x9e0   :  { %v11130_v9 = vpop.f32.mrb[106].mxu1  ;;  %v17200_v44 = vld [vmem:[#allocation49_spill] sm:$0xff] }
 0x9e1   :  { %v16683_v8 = vadd.f32 %v17197_v0, %v11130_v9  ;;  %v11132_v59 = vpop.f32.mrb[107].mxu1 }
 0x9e2   :  { %v12512_v59 = vpack.c.bf16 %v11600_v57, %v11599_v47  ;;  %v17203_v47 = vld [vmem:[#allocation50_spill] sm:$0xff] }
 0x9e3   :  { %12864 = vmatmul.mubr.msk.bf16.gmra.mrb[212].mxu1 %vm16555_vm10, %v12497_v11 }
 0x9e4   :  { %12867 = vmatprep.mubr.msk.bf16.mxu1 %vm16555_vm10, %v12500_v28  ;;  %v12509_v28 = vpack.c.bf16 %v11598_v1, %v11597_v4 }
 0x9e6   :  { %v11135_v53 = vpop.f32.mrb[108].mxu1 }
 0x9e7   :  { %v16690_v6 = vadd.f32 %v17198_v50, %v11135_v53  ;;  %v11137_v49 = vpop.f32.mrb[109].mxu1  ;;  %v11602_v53 = vld [vmem:[#allocation8 + $0x1d8] sm:$0xff]  ;;  %v11603_v50 = vld [vmem:[#allocation8 + $0x1e0] sm:$0xff] }
 0x9e8   :  { %v11138_v38 = vpop.f32.mrb[110].mxu1  ;;  %v11604_v49 = vld [vmem:[#allocation8 + $0x1e8] sm:$0xff] }
 0x9e9   :  { %v16693_v7 = vadd.f32 %v17199_v12, %v11138_v38  ;;  %v11140_v41 = vpop.f32.mrb[111].mxu1  ;;  %v17202_v38 = vld [vmem:[#allocation48_spill] sm:$0xff]  ;;  %v12518_v1 = vpack.c.bf16 %v11604_v49, %v11603_v50 }
 0x9ea   :  { %v12515_v41 = vpack.c.bf16 %v11602_v53, %v11601_v19  ;;  %v17205_v53 = vld [vmem:[#allocation55_spill] sm:$0xff] }
 0x9eb   :  { %12868 = vmatmul.mubr.msk.bf16.gmra.mrb[216].mxu1 %vm16555_vm10, %v12503_v27 }
 0x9ec   :  { %12871 = vmatprep.mubr.msk.bf16.mxu1 %vm16555_vm10, %v12506_v62 }
 0x9ee   :  { %v11143_v40 = vpop.f32.mrb[112].mxu1 }
 0x9ef   :  { %v16700_v11 = vadd.f32 %v17200_v44, %v11143_v40  ;;  %v11145_v9 = vpop.f32.mrb[113].mxu1  ;;  %v11605_v44 = vld [vmem:[#allocation8 + $0x1f0] sm:$0xff] }
 0x9f0   :  { %v11146_v0 = vpop.f32.mrb[114].mxu1  ;;  %v11606_v9 = vld [vmem:[#allocation8 + $0x1f8] sm:$0xff] }
 0x9f1   :  { %v16703_v5 = vadd.f32 %v17201_v33, %v11146_v0  ;;  %v11148_v42 = vpop.f32.mrb[115].mxu1  ;;  %v17204_v0 = vld [vmem:[#allocation53_spill] sm:$0xff] }
 0x9f2   :  { %v12521_v42 = vpack.c.bf16 %v11606_v9, %v11605_v44  ;;  %v17210_v44 = vld [vmem:[#allocation57_spill] sm:$0xff] }
 0x9f3   :  { %12872 = vmatmul.mubr.msk.bf16.gmra.mrb[220].mxu1 %vm16555_vm10, %v12509_v28 }
 0x9f4   :  { %12875 = vmatprep.mubr.msk.bf16.mxu1 %vm16555_vm10, %v12512_v59 }
 0x9f6   :  { %v11151_v27 = vpop.f32.mrb[116].mxu1 }
 0x9f7   :  { %v16710_v62 = vadd.f32 %v17202_v38, %v11151_v27  ;;  %v11153_v12 = vpop.f32.mrb[117].mxu1  ;;  %v17207_v38 = vld [vmem:[#allocation52_spill] sm:$0xff] }
 0x9f8   :  { %v11154_v4 = vpop.f32.mrb[118].mxu1 }
 0x9f9   :  { %v16713_v57 = vadd.f32 %v17203_v47, %v11154_v4  ;;  %v11156_v40 = vpop.f32.mrb[119].mxu1 }
 0x9fb   :  { %12876 = vmatmul.mubr.msk.bf16.gmra.mrb[224].mxu1 %vm16555_vm10, %v12515_v41 }
 0x9fc   :  { %12879 = vmatprep.mubr.msk.bf16.mxu1 %vm16555_vm10, %v12518_v1  ;;  %v17208_v1 = vld [vmem:[#allocation54_spill] sm:$0xff] }
 0x9fe   :  { %v11159_v28 = vpop.f32.mrb[120].mxu1 }
 0x9ff   :  { %v16720_v59 = vadd.f32 %v17204_v0, %v11159_v28  ;;  %v11161_v33 = vpop.f32.mrb[121].mxu1 }
 0xa00   :  { %v11162_v19 = vpop.f32.mrb[122].mxu1 }
 0xa01   :  { %v16723_v50 = vadd.f32 %v17205_v53, %v11162_v19  ;;  %v11164_v49 = vpop.f32.mrb[123].mxu1  ;;  %v17212_v19 = vld [vmem:[#allocation59_spill] sm:$0xff] }
 0xa02   :  { %v17214_v49 = vld [vmem:[#allocation56_spill] sm:$0xff] }
 0xa03   :  { %17206 = vst [vmem:[#allocation21_spill] sm:$0xff] %v16723_v50  ;;  %12880 = vmatmul.mubr.msk.bf16.gmra.mrb[228].mxu1 %vm16555_vm10, %v12521_v42  ;;  %v17216_v50 = vld [vmem:[#allocation58_spill] sm:$0xff] }
 0xa06   :  { %v11167_v27 = vpop.f32.mrb[124].mxu1 }
 0xa07   :  { %v16728_v12 = vadd.f32 %v17207_v38, %v11167_v27  ;;  %v11169_v41 = vpop.f32.mrb[125].mxu1 }
 0xa08   :  { %v11170_v4 = vpop.f32.mrb[126].mxu1 }
 0xa09   :  { %v16731_v47 = vadd.f32 %v17208_v1, %v11170_v4  ;;  %v11172_v40 = vpop.f32.mrb[127].mxu1 }
 0xa0b   :  { %17209 = vst [vmem:[#allocation23_spill] sm:$0xff] %v16731_v47  ;;  %v17218_v47 = vld [vmem:[#allocation61_spill] sm:$0xff] }
 0xa0e   :  { %v11175_v28 = vpop.f32.mrb[128].mxu1 }
 0xa0f   :  { %v16734_v9 = vadd.f32 %v17210_v44, %v11175_v28  ;;  %v11177_v0 = vpop.f32.mrb[129].mxu1 }
 0xa10   :  { %v11178_v33 = vpop.f32.mrb[130].mxu1 }
 0xa11   :  { %17211 = vst [vmem:[#allocation20_spill] sm:$0xff] %v16734_v9  ;;  %v16737_v53 = vadd.f32 %v17212_v19, %v11178_v33  ;;  %v11180_v29 = vpop.f32.mrb[131].mxu1  ;;  %v17220_v9 = vld [vmem:[#allocation63_spill] sm:$0xff] }
 0xa13   :  { %17213 = vst [vmem:[#allocation22_spill] sm:$0xff] %v16737_v53  ;;  %v17222_v53 = vld [vmem:[#allocation60_spill] sm:$0xff] }
 0xa16   :  { %v11183_v42 = vpop.f32.mrb[132].mxu1 }
 0xa17   :  { %v16740_v27 = vadd.f32 %v17214_v49, %v11183_v42  ;;  %v11185_v38 = vpop.f32.mrb[133].mxu1 }
 0xa18   :  { %v11186_v41 = vpop.f32.mrb[134].mxu1 }
 0xa19   :  { %17215 = vst [vmem:[#allocation25_spill] sm:$0xff] %v16740_v27  ;;  %v16743_v4 = vadd.f32 %v17216_v50, %v11186_v41  ;;  %v11188_v1 = vpop.f32.mrb[135].mxu1  ;;  %v17224_v27 = vld [vmem:[#allocation62_spill] sm:$0xff] }
 0xa1b   :  { %17217 = vst [vmem:[#allocation27_spill] sm:$0xff] %v16743_v4  ;;  %v17226_v4 = vld [vmem:[#allocation65_spill] sm:$0xff] }
 0xa1e   :  { %v11191_v40 = vpop.f32.mrb[136].mxu1 }
 0xa1f   :  { %v16746_v28 = vadd.f32 %v17218_v47, %v11191_v40  ;;  %v11193_v44 = vpop.f32.mrb[137].mxu1 }
 0xa20   :  { %v11194_v0 = vpop.f32.mrb[138].mxu1 }
 0xa21   :  { %17219 = vst [vmem:[#allocation24_spill] sm:$0xff] %v16746_v28  ;;  %v16749_v33 = vadd.f32 %v17220_v9, %v11194_v0  ;;  %v11196_v19 = vpop.f32.mrb[139].mxu1  ;;  %v17228_v28 = vld [vmem:[#allocation67_spill] sm:$0xff] }
 0xa23   :  { %17221 = vst [vmem:[#allocation26_spill] sm:$0xff] %v16749_v33  ;;  %v17230_v33 = vld [vmem:[#allocation64_spill] sm:$0xff] }
 0xa26   :  { %v11199_v29 = vpop.f32.mrb[140].mxu1 }
 0xa27   :  { %v16752_v42 = vadd.f32 %v17222_v53, %v11199_v29  ;;  %v11201_v49 = vpop.f32.mrb[141].mxu1 }
 0xa28   :  { %v11202_v38 = vpop.f32.mrb[142].mxu1 }
 0xa29   :  { %17223 = vst [vmem:[#allocation29_spill] sm:$0xff] %v16752_v42  ;;  %v16755_v50 = vadd.f32 %v17224_v27, %v11202_v38  ;;  %v11204_v41 = vpop.f32.mrb[143].mxu1  ;;  %v17232_v42 = vld [vmem:[#allocation66_spill] sm:$0xff] }
 0xa2b   :  { %17225 = vst [vmem:[#allocation31_spill] sm:$0xff] %v16755_v50  ;;  %v17233_v50 = vld [vmem:[#allocation69_spill] sm:$0xff] }
 0xa2e   :  { %v11207_v1 = vpop.f32.mrb[144].mxu1 }
 0xa2f   :  { %v16758_v47 = vadd.f32 %v17226_v4, %v11207_v1  ;;  %v11209_v40 = vpop.f32.mrb[145].mxu1 }
 0xa30   :  { %v11210_v44 = vpop.f32.mrb[146].mxu1 }
 0xa31   :  { %17227 = vst [vmem:[#allocation28_spill] sm:$0xff] %v16758_v47  ;;  %v16761_v9 = vadd.f32 %v17228_v28, %v11210_v44  ;;  %v11212_v0 = vpop.f32.mrb[147].mxu1  ;;  %v17234_v47 = vld [vmem:[#allocation71_spill] sm:$0xff] }
 0xa33   :  { %17229 = vst [vmem:[#allocation30_spill] sm:$0xff] %v16761_v9  ;;  %v17235_v9 = vld [vmem:[#allocation68_spill] sm:$0xff] }
 0xa36   :  { %v11215_v19 = vpop.f32.mrb[148].mxu1 }
 0xa37   :  { %v16764_v53 = vadd.f32 %v17230_v33, %v11215_v19  ;;  %v11217_v29 = vpop.f32.mrb[149].mxu1 }
 0xa38   :  { %v11218_v49 = vpop.f32.mrb[150].mxu1 }
 0xa39   :  { %17231 = vst [vmem:[#allocation33_spill] sm:$0xff] %v16764_v53  ;;  %v16767_v27 = vadd.f32 %v17232_v42, %v11218_v49  ;;  %v11220_v38 = vpop.f32.mrb[151].mxu1  ;;  %v17236_v53 = vld [vmem:[#allocation70_spill] sm:$0xff] }
 0xa3e   :  { %v11223_v41 = vpop.f32.mrb[152].mxu1 }
 0xa3f   :  { %v16770_v4 = vadd.f32 %v17233_v50, %v11223_v41  ;;  %v11225_v1 = vpop.f32.mrb[153].mxu1 }
 0xa40   :  { %v11226_v40 = vpop.f32.mrb[154].mxu1 }
 0xa41   :  { %v16773_v28 = vadd.f32 %v17234_v47, %v11226_v40  ;;  %v11228_v44 = vpop.f32.mrb[155].mxu1 }
 0xa46   :  { %v11231_v0 = vpop.f32.mrb[156].mxu1 }
 0xa47   :  { %v16776_v33 = vadd.f32 %v17235_v9, %v11231_v0  ;;  %v11233_v19 = vpop.f32.mrb[157].mxu1 }
 0xa48   :  { %v11234_v29 = vpop.f32.mrb[158].mxu1 }
 0xa49   :  { %v16779_v42 = vadd.f32 %v17236_v53, %v11234_v29  ;;  %v11236_v49 = vpop.f32.mrb[159].mxu1 }
 0xa4e   :  { %v11239_v38 = vpop.f32.mrb[160].mxu1 }
 0xa4f   :  { %v16782_v50 = vadd.f32 %v16659_v17, %v11239_v38  ;;  %v11241_v41 = vpop.f32.mrb[161].mxu1  ;;  %v16793_v17 = vstv %s12273_s30  ;;  %v16797_v38 = vstv %s12274_s6 }
 0xa50   :  { %v11242_v1 = vpop.f32.mrb[162].mxu1  ;;  %v11722_v49 = vmul.f32 %v16793_v17, %v16522_v43  ;;  %v11720_v41 = vmul.f32 %v16793_v17, %v16513_v20 }
 0xa51   :  { %v16785_v47 = vadd.f32 %v16665_v56, %v11242_v1  ;;  %v11244_v40 = vpop.f32.mrb[163].mxu1 }
 0xa52   :  { %v11723_v40 = vmul.f32 %v16793_v17, %v16525_v52 }
 0xa53   :  { %17237 = vst [vmem:[#allocation35_spill] sm:$0xff] %v16785_v47 }
 0xa56   :  { %v11247_v44 = vpop.f32.mrb[164].mxu1 }
 0xa57   :  { %v16788_v9 = vadd.f32 %v16654_v55, %v11247_v44  ;;  %v11249_v0 = vpop.f32.mrb[165].mxu1 }
 0xa58   :  { %v11250_v53 = vpop.f32.mrb[166].mxu1  ;;  %v11721_v0 = vmul.f32 %v16793_v17, %v16516_v26  ;;  %v11726_v26 = vmul.f32 %v16793_v17, %v16540_v2 }
 0xa59   :  { %v16791_v19 = vadd.f32 %v16661_v14, %v11250_v53  ;;  %v11252_v29 = vpop.f32.mrb[167].mxu1 }
 0xa5b   :  { %17238 = vst [vmem:[#allocation32_spill] sm:$0xff] %v16791_v19 }
 0xa5e   :  { %v12821_v56 = vpop.f32.mrb[168].mxu1 }
 0xa5f   :  { %v11875_v1 = vadd.f32 %v12821_v56, %v11722_v49  ;;  %v11866_v55 = vpop.f32.mrb[169].mxu1  ;;  %v11724_v56 = vmul.f32 %v16793_v17, %v16531_v31 }
 0xa60   :  { %v11867_v14 = vadd.f32 %v11866_v55, %v11720_v41  ;;  %v12822_v44 = vpop.f32.mrb[170].mxu1  ;;  %v11727_v55 = vmul.f32 %v16793_v17, %v16543_v60 }
 0xa61   :  { %v12124_v53 = vadd.f32 %v16797_v38, %v11875_v1  ;;  %v11878_v43 = vadd.f32 %v12822_v44, %v11723_v40  ;;  %v11869_v29 = vpop.f32.mrb[171].mxu1 }
 0xa62   :  { %v12122_v47 = vadd.f32 %v16797_v38, %v11867_v14  ;;  %v11870_v19 = vadd.f32 %v11869_v29, %v11721_v0  ;;  %v11728_v29 = vmul.f32 %v16793_v17, %v16548_v10 }
 0xa63   :  { %12189 = vst.msk [vmem:[#allocation14 + $0x10] sm:$0xff] %vm12186_vm11, %v12124_v53  ;;  %v12125_v20 = vadd.f32 %v16797_v38, %v11878_v43 }
 0xa64   :  { %12187 = vst.msk [vmem:[#allocation14] sm:$0xff] %vm12186_vm11, %v12122_v47  ;;  %v12123_v52 = vadd.f32 %v16797_v38, %v11870_v19  ;;  %v11725_v19 = vmul.f32 %v16793_v17, %v16534_v58  ;;  %v11730_v58 = vmul.f32 %v16793_v17, %v16562_v13 }
 0xa65   :  { %12190 = vst.msk [vmem:[#allocation14 + $0x18] sm:$0xff] %vm12186_vm11, %v12125_v20 }
 0xa66   :  { %12188 = vst.msk [vmem:[#allocation14 + $0x8] sm:$0xff] %vm12186_vm11, %v12123_v52  ;;  %v12825_v49 = vpop.f32.mrb[172].mxu1 }
 0xa67   :  { %v11891_v41 = vadd.f32 %v12825_v49, %v11726_v26  ;;  %v11882_v1 = vpop.f32.mrb[173].mxu1  ;;  %v11731_v26 = vmul.f32 %v16793_v17, %v16565_v61 }
 0xa68   :  { %v11883_v40 = vadd.f32 %v11882_v1, %v11724_v56  ;;  %v12826_v47 = vpop.f32.mrb[174].mxu1 }
 0xa69   :  { %v12128_v14 = vadd.f32 %v16797_v38, %v11891_v41  ;;  %v11894_v44 = vadd.f32 %v12826_v47, %v11727_v55  ;;  %v11885_v2 = vpop.f32.mrb[175].mxu1  ;;  %v11729_v41 = vmul.f32 %v16793_v17, %v16551_v15  ;;  %v11734_v15 = vmul.f32 %v16793_v17, %v16582_v23 }
 0xa6a   :  { %v12126_v0 = vadd.f32 %v16797_v38, %v11883_v40  ;;  %v11886_v53 = vadd.f32 %v11885_v2, %v11725_v19 }
 0xa6b   :  { %12193 = vst.msk [vmem:[#allocation14 + $0x30] sm:$0xff] %vm12186_vm11, %v12128_v14  ;;  %v12129_v31 = vadd.f32 %v16797_v38, %v11894_v44  ;;  %v11732_v14 = vmul.f32 %v16793_v17, %v16572_v54 }
 0xa6c   :  { %12191 = vst.msk [vmem:[#allocation14 + $0x20] sm:$0xff] %vm12186_vm11, %v12126_v0  ;;  %v12127_v60 = vadd.f32 %v16797_v38, %v11886_v53  ;;  %v11735_v0 = vmul.f32 %v16793_v17, %v16585_v18 }
 0xa6d   :  { %12194 = vst.msk [vmem:[#allocation14 + $0x38] sm:$0xff] %vm12186_vm11, %v12129_v31 }
 0xa6e   :  { %12192 = vst.msk [vmem:[#allocation14 + $0x28] sm:$0xff] %vm12186_vm11, %v12127_v60  ;;  %v12829_v43 = vpop.f32.mrb[176].mxu1  ;;  %v11733_v60 = vmul.f32 %v16793_v17, %v16575_v36  ;;  %v11738_v36 = vmul.f32 %v16793_v17, %v16602_v37 }
 0xa6f   :  { %v11907_v20 = vadd.f32 %v12829_v43, %v11730_v58  ;;  %v11898_v52 = vpop.f32.mrb[177].mxu1 }
 0xa70   :  { %v11899_v49 = vadd.f32 %v11898_v52, %v11728_v29  ;;  %v12830_v56 = vpop.f32.mrb[178].mxu1 }
 0xa71   :  { %v12132_v1 = vadd.f32 %v16797_v38, %v11907_v20  ;;  %v11910_v55 = vadd.f32 %v12830_v56, %v11731_v26  ;;  %v11901_v13 = vpop.f32.mrb[179].mxu1  ;;  %v11736_v26 = vmul.f32 %v16793_v17, %v16592_v39 }
 0xa72   :  { %v12130_v40 = vadd.f32 %v16797_v38, %v11899_v49  ;;  %v11902_v47 = vadd.f32 %v11901_v13, %v11729_v41  ;;  %v11739_v41 = vmul.f32 %v16793_v17, %v16605_v22  ;;  %v11737_v13 = vmul.f32 %v16793_v17, %v16595_v24 }
 0xa73   :  { %12197 = vst.msk [vmem:[#allocation14 + $0x50] sm:$0xff] %vm12186_vm11, %v12132_v1  ;;  %v12133_v10 = vadd.f32 %v16797_v38, %v11910_v55  ;;  %v11742_v24 = vmul.f32 %v16793_v17, %v16622_v32 }
 0xa74   :  { %12195 = vst.msk [vmem:[#allocation14 + $0x40] sm:$0xff] %vm12186_vm11, %v12130_v40  ;;  %v12131_v61 = vadd.f32 %v16797_v38, %v11902_v47 }
 0xa75   :  { %12198 = vst.msk [vmem:[#allocation14 + $0x58] sm:$0xff] %vm12186_vm11, %v12133_v10 }
 0xa76   :  { %12196 = vst.msk [vmem:[#allocation14 + $0x48] sm:$0xff] %vm12186_vm11, %v12131_v61  ;;  %v12833_v19 = vpop.f32.mrb[180].mxu1 }
 0xa77   :  { %v11923_v44 = vadd.f32 %v12833_v19, %v11734_v15  ;;  %v11914_v2 = vpop.f32.mrb[181].mxu1  ;;  %v11740_v19 = vmul.f32 %v16793_v17, %v16612_v63 }
 0xa78   :  { %v11915_v53 = vadd.f32 %v11914_v2, %v11732_v14  ;;  %v12834_v31 = vpop.f32.mrb[182].mxu1  ;;  %v11743_v2 = vmul.f32 %v16793_v17, %v16625_v34 }
 0xa79   :  { %v12136_v58 = vadd.f32 %v16797_v38, %v11923_v44  ;;  %v11926_v43 = vadd.f32 %v12834_v31, %v11735_v0  ;;  %v11917_v23 = vpop.f32.mrb[183].mxu1  ;;  %v11741_v31 = vmul.f32 %v16793_v17, %v16615_v3  ;;  %v11746_v3 = vmul.f32 %v16793_v17, %v16642_v30 }
 0xa7a   :  { %v12134_v29 = vadd.f32 %v16797_v38, %v11915_v53  ;;  %v11918_v20 = vadd.f32 %v11917_v23, %v11733_v60 }
 0xa7b   :  { %12201 = vst.msk [vmem:[#allocation14 + $0x70] sm:$0xff] %vm12186_vm11, %v12136_v58  ;;  %v12137_v54 = vadd.f32 %v16797_v38, %v11926_v43 }
 0xa7c   :  { %12199 = vst.msk [vmem:[#allocation14 + $0x60] sm:$0xff] %vm12186_vm11, %v12134_v29  ;;  %v12135_v18 = vadd.f32 %v16797_v38, %v11918_v20  ;;  %v11744_v20 = vmul.f32 %v16793_v17, %v16632_v25 }
 0xa7d   :  { %12202 = vst.msk [vmem:[#allocation14 + $0x78] sm:$0xff] %vm12186_vm11, %v12137_v54 }
 0xa7e   :  { %12200 = vst.msk [vmem:[#allocation14 + $0x68] sm:$0xff] %vm12186_vm11, %v12135_v18  ;;  %v12837_v52 = vpop.f32.mrb[184].mxu1 }
 0xa7f   :  { %v11939_v49 = vadd.f32 %v12837_v52, %v11738_v36  ;;  %v11930_v56 = vpop.f32.mrb[185].mxu1  ;;  %v11747_v36 = vmul.f32 %v16793_v17, %v16645_v48 }
 0xa80   :  { %v11931_v1 = vadd.f32 %v11930_v56, %v11736_v26  ;;  %v12838_v55 = vpop.f32.mrb[186].mxu1 }
 0xa81   :  { %v12140_v40 = vadd.f32 %v16797_v38, %v11939_v49  ;;  %v11942_v47 = vadd.f32 %v12838_v55, %v11739_v41  ;;  %v11933_v37 = vpop.f32.mrb[187].mxu1  ;;  %v11745_v49 = vmul.f32 %v16793_v17, %v16635_v35  ;;  %v11750_v35 = vmul.f32 %v16793_v17, %v16670_v51 }
 0xa82   :  { %v12138_v10 = vadd.f32 %v16797_v38, %v11931_v1  ;;  %v11934_v61 = vadd.f32 %v11933_v37, %v11737_v13 }
 0xa83   :  { %12205 = vst.msk [vmem:[#allocation14 + $0x90] sm:$0xff] %vm12186_vm11, %v12140_v40  ;;  %v12141_v39 = vadd.f32 %v16797_v38, %v11942_v47  ;;  %v11748_v40 = vmul.f32 %v16793_v17, %v16652_v45 }
 0xa84   :  { %12203 = vst.msk [vmem:[#allocation14 + $0x80] sm:$0xff] %vm12186_vm11, %v12138_v10  ;;  %v12139_v22 = vadd.f32 %v16797_v38, %v11934_v61  ;;  %v11751_v10 = vmul.f32 %v16793_v17, %v16673_v21 }
 0xa85   :  { %12206 = vst.msk [vmem:[#allocation14 + $0x98] sm:$0xff] %vm12186_vm11, %v12141_v39 }
 0xa86   :  { %12204 = vst.msk [vmem:[#allocation14 + $0x88] sm:$0xff] %vm12186_vm11, %v12139_v22  ;;  %v12841_v15 = vpop.f32.mrb[188].mxu1  ;;  %v11749_v22 = vmul.f32 %v16793_v17, %v16657_v46  ;;  %v11754_v46 = vmul.f32 %v16793_v17, %v16690_v6 }
 0xa87   :  { %v11955_v14 = vadd.f32 %v12841_v15, %v11742_v24  ;;  %v11946_v44 = vpop.f32.mrb[189].mxu1 }
 0xa88   :  { %v11947_v0 = vadd.f32 %v11946_v44, %v11740_v19  ;;  %v12842_v53 = vpop.f32.mrb[190].mxu1 }
 0xa89   :  { %v12144_v60 = vadd.f32 %v16797_v38, %v11955_v14  ;;  %v11958_v58 = vadd.f32 %v12842_v53, %v11743_v2  ;;  %v11949_v32 = vpop.f32.mrb[191].mxu1  ;;  %v11752_v2 = vmul.f32 %v16793_v17, %v16680_v16 }
 0xa8a   :  { %v12142_v43 = vadd.f32 %v16797_v38, %v11947_v0  ;;  %v11950_v23 = vadd.f32 %v11949_v32, %v11741_v31  ;;  %v11755_v31 = vmul.f32 %v16793_v17, %v16693_v7  ;;  %v11753_v32 = vmul.f32 %v16793_v17, %v16683_v8 }
 0xa8b   :  { %12209 = vst.msk [vmem:[#allocation14 + $0xb0] sm:$0xff] %vm12186_vm11, %v12144_v60  ;;  %v12145_v63 = vadd.f32 %v16797_v38, %v11958_v58  ;;  %v11758_v8 = vmul.f32 %v16793_v17, %v16710_v62 }
 0xa8c   :  { %12207 = vst.msk [vmem:[#allocation14 + $0xa0] sm:$0xff] %vm12186_vm11, %v12142_v43  ;;  %v12143_v34 = vadd.f32 %v16797_v38, %v11950_v23 }
 0xa8d   :  { %12210 = vst.msk [vmem:[#allocation14 + $0xb8] sm:$0xff] %vm12186_vm11, %v12145_v63 }
 0xa8e   :  { %12208 = vst.msk [vmem:[#allocation14 + $0xa8] sm:$0xff] %vm12186_vm11, %v12143_v34  ;;  %v12845_v29 = vpop.f32.mrb[192].mxu1 }
 0xa8f   :  { %v11971_v54 = vadd.f32 %v12845_v29, %v11746_v3  ;;  %v11962_v18 = vpop.f32.mrb[193].mxu1  ;;  %v11756_v29 = vmul.f32 %v16793_v17, %v16700_v11 }
 0xa90   :  { %v11963_v52 = vadd.f32 %v11962_v18, %v11744_v20  ;;  %v12846_v26 = vpop.f32.mrb[194].mxu1  ;;  %v11759_v18 = vmul.f32 %v16793_v17, %v16713_v57 }
 0xa91   :  { %v12148_v56 = vadd.f32 %v16797_v38, %v11971_v54  ;;  %v11974_v41 = vadd.f32 %v12846_v26, %v11747_v36  ;;  %v11965_v30 = vpop.f32.mrb[195].mxu1  ;;  %v11757_v26 = vmul.f32 %v16793_v17, %v16703_v5  ;;  %v11762_v5 = vmul.f32 %v16793_v17, %v16728_v12 }
 0xa92   :  { %v12146_v1 = vadd.f32 %v16797_v38, %v11963_v52  ;;  %v11966_v55 = vadd.f32 %v11965_v30, %v11745_v49 }
 0xa93   :  { %12213 = vst.msk [vmem:[#allocation14 + $0xd0] sm:$0xff] %vm12186_vm11, %v12148_v56  ;;  %v12149_v25 = vadd.f32 %v16797_v38, %v11974_v41 }
 0xa94   :  { %12211 = vst.msk [vmem:[#allocation14 + $0xc0] sm:$0xff] %vm12186_vm11, %v12146_v1  ;;  %v12147_v48 = vadd.f32 %v16797_v38, %v11966_v55  ;;  %v11760_v55 = vmul.f32 %v16793_v17, %v16720_v59 }
 0xa95   :  { %12214 = vst.msk [vmem:[#allocation14 + $0xd8] sm:$0xff] %vm12186_vm11, %v12149_v25 }
 0xa96   :  { %12212 = vst.msk [vmem:[#allocation14 + $0xc8] sm:$0xff] %vm12186_vm11, %v12147_v48  ;;  %v12849_v13 = vpop.f32.mrb[196].mxu1 }
 0xa97   :  { %v11987_v47 = vadd.f32 %v12849_v13, %v11750_v35  ;;  %v11978_v37 = vpop.f32.mrb[197].mxu1  ;;  %v17239_v35 = vld [vmem:[#allocation23_spill] sm:$0xff] }
 0xa98   :  { %v11979_v61 = vadd.f32 %v11978_v37, %v11748_v40  ;;  %v12850_v39 = vpop.f32.mrb[198].mxu1  ;;  %v11763_v13 = vmul.f32 %v16793_v17, %v17239_v35  ;;  %v17240_v37 = vld [vmem:[#allocation21_spill] sm:$0xff] }
 0xa99   :  { %v12152_v24 = vadd.f32 %v16797_v38, %v11987_v47  ;;  %v11990_v15 = vadd.f32 %v12850_v39, %v11751_v10  ;;  %v11981_v51 = vpop.f32.mrb[199].mxu1  ;;  %v11761_v10 = vmul.f32 %v16793_v17, %v17240_v37 }
 0xa9a   :  { %v12150_v19 = vadd.f32 %v16797_v38, %v11979_v61  ;;  %v11982_v14 = vadd.f32 %v11981_v51, %v11749_v22  ;;  %v17241_v51 = vld [vmem:[#allocation25_spill] sm:$0xff] }
 0xa9b   :  { %12217 = vst.msk [vmem:[#allocation14 + $0xf0] sm:$0xff] %vm12186_vm11, %v12152_v24  ;;  %v12153_v45 = vadd.f32 %v16797_v38, %v11990_v15 }
 0xa9c   :  { %12215 = vst.msk [vmem:[#allocation14 + $0xe0] sm:$0xff] %vm12186_vm11, %v12150_v19  ;;  %v12151_v21 = vadd.f32 %v16797_v38, %v11982_v14  ;;  %v11766_v19 = vmul.f32 %v16793_v17, %v17241_v51 }
 0xa9d   :  { %12218 = vst.msk [vmem:[#allocation14 + $0xf8] sm:$0xff] %vm12186_vm11, %v12153_v45  ;;  %v17242_v45 = vld [vmem:[#allocation20_spill] sm:$0xff] }
 0xa9e   :  { %12216 = vst.msk [vmem:[#allocation14 + $0xe8] sm:$0xff] %vm12186_vm11, %v12151_v21  ;;  %v12853_v44 = vpop.f32.mrb[200].mxu1  ;;  %v11764_v21 = vmul.f32 %v16793_v17, %v17242_v45  ;;  %v11778_v45 = vmul.f32 %v16793_v17, %v16776_v33 }
 0xa9f   :  { %v12003_v0 = vadd.f32 %v12853_v44, %v11754_v46  ;;  %v11994_v53 = vpop.f32.mrb[201].mxu1 }
 0xaa0   :  { %v11995_v60 = vadd.f32 %v11994_v53, %v11752_v2  ;;  %v12854_v58 = vpop.f32.mrb[202].mxu1  ;;  %v17243_v2 = vld [vmem:[#allocation27_spill] sm:$0xff] }
 0xaa1   :  { %v12156_v43 = vadd.f32 %v16797_v38, %v12003_v0  ;;  %v12006_v23 = vadd.f32 %v12854_v58, %v11755_v31  ;;  %v11997_v6 = vpop.f32.mrb[203].mxu1  ;;  %v11767_v0 = vmul.f32 %v16793_v17, %v17243_v2 }
 0xaa2   :  { %v12154_v63 = vadd.f32 %v16797_v38, %v11995_v60  ;;  %v11998_v34 = vadd.f32 %v11997_v6, %v11753_v32  ;;  %v17244_v60 = vld [vmem:[#allocation22_spill] sm:$0xff] }
 0xaa3   :  { %12221 = vst.msk [vmem:[#allocation14 + $0x110] sm:$0xff] %vm12186_vm11, %v12156_v43  ;;  %v12157_v16 = vadd.f32 %v16797_v38, %v12006_v23  ;;  %v11765_v58 = vmul.f32 %v16793_v17, %v17244_v60  ;;  %v11777_v60 = vmul.f32 %v16793_v17, %v16773_v28  ;;  %v11782_v28 = vmul.f32 %v16793_v17, %v16788_v9 }
 0xaa4   :  { %12219 = vst.msk [vmem:[#allocation14 + $0x100] sm:$0xff] %vm12186_vm11, %v12154_v63  ;;  %v12155_v7 = vadd.f32 %v16797_v38, %v11998_v34 }
 0xaa5   :  { %12222 = vst.msk [vmem:[#allocation14 + $0x118] sm:$0xff] %vm12186_vm11, %v12157_v16 }
 0xaa6   :  { %12220 = vst.msk [vmem:[#allocation14 + $0x108] sm:$0xff] %vm12186_vm11, %v12155_v7  ;;  %v12857_v3 = vpop.f32.mrb[204].mxu1  ;;  %v17245_v7 = vld [vmem:[#allocation29_spill] sm:$0xff] }
 0xaa7   :  { %v12019_v20 = vadd.f32 %v12857_v3, %v11758_v8  ;;  %v12010_v54 = vpop.f32.mrb[205].mxu1  ;;  %v11770_v8 = vmul.f32 %v16793_v17, %v17245_v7  ;;  %v17252_v7 = vld [vmem:[#allocation32_spill] sm:$0xff] }
 0xaa8   :  { %v12011_v36 = vadd.f32 %v12010_v54, %v11756_v29  ;;  %v12858_v52 = vpop.f32.mrb[206].mxu1  ;;  %v17246_v29 = vld [vmem:[#allocation24_spill] sm:$0xff] }
 0xaa9   :  { %v12160_v49 = vadd.f32 %v16797_v38, %v12019_v20  ;;  %v12022_v56 = vadd.f32 %v12858_v52, %v11759_v18  ;;  %v12013_v62 = vpop.f32.mrb[207].mxu1  ;;  %v11768_v20 = vmul.f32 %v16793_v17, %v17246_v29 }
 0xaaa   :  { %v12158_v41 = vadd.f32 %v16797_v38, %v12011_v36  ;;  %v12014_v30 = vadd.f32 %v12013_v62, %v11757_v26  ;;  %v17247_v36 = vld [vmem:[#allocation31_spill] sm:$0xff] }
 0xaab   :  { %12225 = vst.msk [vmem:[#allocation14 + $0x130] sm:$0xff] %vm12186_vm11, %v12160_v49  ;;  %v12161_v11 = vadd.f32 %v16797_v38, %v12022_v56  ;;  %v11771_v52 = vmul.f32 %v16793_v17, %v17247_v36  ;;  %v17248_v56 = vld [vmem:[#allocation26_spill] sm:$0xff] }
 0xaac   :  { %12223 = vst.msk [vmem:[#allocation14 + $0x120] sm:$0xff] %vm12186_vm11, %v12158_v41  ;;  %v12159_v57 = vadd.f32 %v16797_v38, %v12014_v30  ;;  %v11769_v62 = vmul.f32 %v16793_v17, %v17248_v56 }
 0xaad   :  { %12226 = vst.msk [vmem:[#allocation14 + $0x138] sm:$0xff] %vm12186_vm11, %v12161_v11 }
 0xaae   :  { %12224 = vst.msk [vmem:[#allocation14 + $0x128] sm:$0xff] %vm12186_vm11, %v12159_v57  ;;  %v12861_v1 = vpop.f32.mrb[208].mxu1 }
 0xaaf   :  { %v12035_v25 = vadd.f32 %v12861_v1, %v11762_v5  ;;  %v12026_v48 = vpop.f32.mrb[209].mxu1 }
 0xab0   :  { %v12027_v40 = vadd.f32 %v12026_v48, %v11760_v55  ;;  %v12862_v47 = vpop.f32.mrb[210].mxu1 }
 0xab1   :  { %v12164_v61 = vadd.f32 %v16797_v38, %v12035_v25  ;;  %v12038_v39 = vadd.f32 %v12862_v47, %v11763_v13  ;;  %v12029_v12 = vpop.f32.mrb[211].mxu1  ;;  %v17249_v25 = vld [vmem:[#allocation33_spill] sm:$0xff]  ;;  %v17250_v13 = vld [vmem:[#allocation28_spill] sm:$0xff] }
 0xab2   :  { %v12162_v22 = vadd.f32 %v16797_v38, %v12027_v40  ;;  %v12030_v24 = vadd.f32 %v12029_v12, %v11761_v10  ;;  %v11774_v48 = vmul.f32 %v16793_v17, %v17249_v25  ;;  %v11772_v40 = vmul.f32 %v16793_v17, %v17250_v13  ;;  %v17251_v12 = vld [vmem:[#allocation30_spill] sm:$0xff] }
 0xab3   :  { %12229 = vst.msk [vmem:[#allocation14 + $0x150] sm:$0xff] %vm12186_vm11, %v12164_v61  ;;  %v12165_v59 = vadd.f32 %v16797_v38, %v12038_v39  ;;  %v11775_v10 = vmul.f32 %v16793_v17, %v16767_v27 }
 0xab4   :  { %12227 = vst.msk [vmem:[#allocation14 + $0x140] sm:$0xff] %vm12186_vm11, %v12162_v22  ;;  %v12163_v15 = vadd.f32 %v16797_v38, %v12030_v24  ;;  %v11773_v22 = vmul.f32 %v16793_v17, %v17251_v12 }
 0xab5   :  { %12230 = vst.msk [vmem:[#allocation14 + $0x158] sm:$0xff] %vm12186_vm11, %v12165_v59 }
 0xab6   :  { %12228 = vst.msk [vmem:[#allocation14 + $0x148] sm:$0xff] %vm12186_vm11, %v12163_v15  ;;  %v12865_v14 = vpop.f32.mrb[212].mxu1 }
 0xab7   :  { %v12051_v46 = vadd.f32 %v12865_v14, %v11766_v19  ;;  %v12042_v44 = vpop.f32.mrb[213].mxu1 }
 0xab8   :  { %v12043_v53 = vadd.f32 %v12042_v44, %v11764_v21  ;;  %v12866_v31 = vpop.f32.mrb[214].mxu1 }
 0xab9   :  { %v12168_v32 = vadd.f32 %v16797_v38, %v12051_v46  ;;  %v12054_v43 = vadd.f32 %v12866_v31, %v11767_v0  ;;  %v12045_v23 = vpop.f32.mrb[215].mxu1  ;;  %v11776_v46 = vmul.f32 %v16793_v17, %v16770_v4  ;;  %v11779_v0 = vmul.f32 %v16793_v17, %v16779_v42 }
 0xaba   :  { %v12166_v6 = vadd.f32 %v16797_v38, %v12043_v53  ;;  %v12046_v63 = vadd.f32 %v12045_v23, %v11765_v58 }
 0xabb   :  { %12233 = vst.msk [vmem:[#allocation14 + $0x170] sm:$0xff] %vm12186_vm11, %v12168_v32  ;;  %v12169_v34 = vadd.f32 %v16797_v38, %v12054_v43 }
 0xabc   :  { %12231 = vst.msk [vmem:[#allocation14 + $0x160] sm:$0xff] %vm12186_vm11, %v12166_v6  ;;  %v12167_v16 = vadd.f32 %v16797_v38, %v12046_v63  ;;  %v11780_v63 = vmul.f32 %v16793_v17, %v16782_v50 }
 0xabd   :  { %12234 = vst.msk [vmem:[#allocation14 + $0x178] sm:$0xff] %vm12186_vm11, %v12169_v34 }
 0xabe   :  { %12232 = vst.msk [vmem:[#allocation14 + $0x168] sm:$0xff] %vm12186_vm11, %v12167_v16  ;;  %v12869_v3 = vpop.f32.mrb[216].mxu1 }
 0xabf   :  { %v12067_v54 = vadd.f32 %v12869_v3, %v11770_v8  ;;  %v12058_v18 = vpop.f32.mrb[217].mxu1  ;;  %v11783_v8 = vmul.f32 %v16793_v17, %v17252_v7 }
 0xac0   :  { %v12059_v26 = vadd.f32 %v12058_v18, %v11768_v20  ;;  %v12870_v49 = vpop.f32.mrb[218].mxu1  ;;  %v17253_v20 = vld [vmem:[#allocation35_spill] sm:$0xff] }
 0xac1   :  { %v12172_v41 = vadd.f32 %v16797_v38, %v12067_v54  ;;  %v12070_v30 = vadd.f32 %v12870_v49, %v11771_v52  ;;  %v12061_v11 = vpop.f32.mrb[219].mxu1  ;;  %v11781_v54 = vmul.f32 %v16793_v17, %v17253_v20 }
 0xac2   :  { %v12170_v57 = vadd.f32 %v16797_v38, %v12059_v26  ;;  %v12062_v5 = vadd.f32 %v12061_v11, %v11769_v62 }
 0xac3   :  { %12237 = vst.msk [vmem:[#allocation14 + $0x190] sm:$0xff] %vm12186_vm11, %v12172_v41  ;;  %v12173_v1 = vadd.f32 %v16797_v38, %v12070_v30 }
 0xac4   :  { %12235 = vst.msk [vmem:[#allocation14 + $0x180] sm:$0xff] %vm12186_vm11, %v12170_v57  ;;  %v12171_v55 = vadd.f32 %v16797_v38, %v12062_v5 }
 0xac5   :  { %12238 = vst.msk [vmem:[#allocation14 + $0x198] sm:$0xff] %vm12186_vm11, %v12173_v1 }
 0xac6   :  { %12236 = vst.msk [vmem:[#allocation14 + $0x188] sm:$0xff] %vm12186_vm11, %v12171_v55  ;;  %v12873_v35 = vpop.f32.mrb[220].mxu1 }
 0xac7   :  { %v12083_v47 = vadd.f32 %v12873_v35, %v11774_v48  ;;  %v12074_v37 = vpop.f32.mrb[221].mxu1 }
 0xac8   :  { %v12075_v61 = vadd.f32 %v12074_v37, %v11772_v40  ;;  %v12874_v39 = vpop.f32.mrb[222].mxu1 }
 0xac9   :  { %v12176_v24 = vadd.f32 %v16797_v38, %v12083_v47  ;;  %v12086_v59 = vadd.f32 %v12874_v39, %v11775_v10  ;;  %v12077_v15 = vpop.f32.mrb[223].mxu1 }
 0xaca   :  { %v12174_v51 = vadd.f32 %v16797_v38, %v12075_v61  ;;  %v12078_v19 = vadd.f32 %v12077_v15, %v11773_v22 }
 0xacb   :  { %12241 = vst.msk [vmem:[#allocation14 + $0x1b0] sm:$0xff] %vm12186_vm11, %v12176_v24  ;;  %v12177_v14 = vadd.f32 %v16797_v38, %v12086_v59 }
 0xacc   :  { %12239 = vst.msk [vmem:[#allocation14 + $0x1a0] sm:$0xff] %vm12186_vm11, %v12174_v51  ;;  %v12175_v27 = vadd.f32 %v16797_v38, %v12078_v19 }
 0xacd   :  { %12242 = vst.msk [vmem:[#allocation14 + $0x1b8] sm:$0xff] %vm12186_vm11, %v12177_v14 }
 0xace   :  { %12240 = vst.msk [vmem:[#allocation14 + $0x1a8] sm:$0xff] %vm12186_vm11, %v12175_v27  ;;  %v12877_v21 = vpop.f32.mrb[224].mxu1 }
 0xacf   :  { %v12099_v44 = vadd.f32 %v12877_v21, %v11778_v45  ;;  %v12090_v2 = vpop.f32.mrb[225].mxu1 }
 0xad0   :  { %v12091_v53 = vadd.f32 %v12090_v2, %v11776_v46  ;;  %v12878_v31 = vpop.f32.mrb[226].mxu1 }
 0xad1   :  { %v12180_v58 = vadd.f32 %v16797_v38, %v12099_v44  ;;  %v12102_v32 = vadd.f32 %v12878_v31, %v11779_v0  ;;  %v12093_v33 = vpop.f32.mrb[227].mxu1 }
 0xad2   :  { %v12178_v43 = vadd.f32 %v16797_v38, %v12091_v53  ;;  %v12094_v23 = vadd.f32 %v12093_v33, %v11777_v60 }
 0xad3   :  { %12245 = vst.msk [vmem:[#allocation14 + $0x1d0] sm:$0xff] %vm12186_vm11, %v12180_v58  ;;  %v12181_v4 = vadd.f32 %v16797_v38, %v12102_v32 }
 0xad4   :  { %12243 = vst.msk [vmem:[#allocation14 + $0x1c0] sm:$0xff] %vm12186_vm11, %v12178_v43  ;;  %v12179_v42 = vadd.f32 %v16797_v38, %v12094_v23 }
 0xad5   :  { %12246 = vst.msk [vmem:[#allocation14 + $0x1d8] sm:$0xff] %vm12186_vm11, %v12181_v4 }
 0xad6   :  { %12244 = vst.msk [vmem:[#allocation14 + $0x1c8] sm:$0xff] %vm12186_vm11, %v12179_v42  ;;  %v12881_v6 = vpop.f32.mrb[228].mxu1 }
 0xad7   :  { %v12115_v34 = vadd.f32 %v12881_v6, %v11782_v28  ;;  %v12106_v16 = vpop.f32.mrb[229].mxu1 }
 0xad8   :  { %v12107_v3 = vadd.f32 %v12106_v16, %v11780_v63  ;;  %v12882_v29 = vpop.f32.mrb[230].mxu1 }
 0xad9   :  { %v12184_v18 = vadd.f32 %v16797_v38, %v12115_v34  ;;  %v12118_v36 = vadd.f32 %v12882_v29, %v11783_v8  ;;  %v12109_v9 = vpop.f32.mrb[231].mxu1 }
 0xada   :  { %v12182_v52 = vadd.f32 %v16797_v38, %v12107_v3  ;;  %v12110_v26 = vadd.f32 %v12109_v9, %v11781_v54 }
 0xadb   :  { %12249 = vst.msk [vmem:[#allocation14 + $0x1f0] sm:$0xff] %vm12186_vm11, %v12184_v18  ;;  %v12185_v50 = vadd.f32 %v16797_v38, %v12118_v36 }
 0xadc   :  { %12247 = vst.msk [vmem:[#allocation14 + $0x1e0] sm:$0xff] %vm12186_vm11, %v12182_v52  ;;  %v12183_v49 = vadd.f32 %v16797_v38, %v12110_v26 }
 0xadd   :  { %12250 = vst.msk [vmem:[#allocation14 + $0x1f8] sm:$0xff] %vm12186_vm11, %v12185_v50 }
 0xade   :  { %12248 = vst.msk [vmem:[#allocation14 + $0x1e8] sm:$0xff] %vm12186_vm11, %v12183_v49 }
 0xadf   :  { %14014 = shalt.err (!%p14011_p11)
}
 0xae0   :  { %s14015_s12 = scalar_lea.hbm %s17073_s5, 8192 }
 0xae1   :  { %p14016_p12 = scmp.ne.s32.totalorder %s17073_s5, %s14015_s12  ;;  %p14019_p13 = scmp.lt.u32.totalorder %s14015_s12, %s17073_s5 }
 0xae3   :  { %p14021_p0 = pnand %p14019_p13, %p14016_p12 }
 0xae5   :  { %14024 = shalt.err (!%p14021_p0)
}
 0xae6   :  { %12262 = dma.vmem_to_hbm [thread:$0]  %s12257_s8, 8192, %s17073_s5, [#allocation6], %s14040_s0, %s14040_s0, %s14041_s26  }
 0xae7   :  { %14033 = dma.done.wait [#allocation6], 8192  }
 0xae8   :  { %14034 = vsyncadd [#allocation6], 4294959104 }
 0xae9   :  { %12266 = vsyncpa [#allocation5], 1 }
 0xaea   :  { %12267 = vsyncpa [#allocation10], 1 }
 0xaeb   :  { %12268 = vsyncpa [#allocation13], 1 }
 0xaec   :  { %12269 = vsyncpa [#allocation6], 1 }
 0xaed   :  { %12270 = vsyncpa [#allocation7], 1 }

</bundles_post_ra>
